<compile_context>
chip_gen: v5e
topology: v5e:2x2
jax: 0.10.0
libtpu: 0.0.40
codegen_flags: <defaults>
</compile_context>

<pallas_src>
import math
from functools import partial

import jax
import jax.numpy as jnp
import numpy as np
from jax import lax
from jax.experimental import pallas as pl
from jax.experimental.pallas import tpu as pltpu

# -------- deterministic module parameters (from the module __init__) --------
VFOV_RAD = math.pi / 3.0        # CameraParameters.vertical_fov_radians
FEAT_H, FEAT_W = 16, 16         # CameraParameters.features_spatial_dimensions
MAP_RESOLUTION_M = 0.1          # MapDimensions.resolution_meters
DEPTH_NORM_FACTOR = 10.0        # to_depth_meters NORMALIZATION_FACTOR
DEPTH_MIN, DEPTH_MAX = 0.01, 0.99
DH_MIN, DH_MAX = 1.0, 0.5       # delta_height_min / delta_height_max

# Adding/subtracting 1.5*2^23 to an f32 with |x| < 2^22 yields exact
# round-to-nearest-even (same tie behaviour as torch.round) using only
# add/sub, which always lower in Mosaic.
_ROUND_MAGIC = float(1.5 * 2 ** 23)


def _round_nearest_even(x):
    return (x + _ROUND_MAGIC) - _ROUND_MAGIC


# ------------------------------ fused kernel --------------------------------
def _fused_kernel(cam_ref, depth_ref, xfac_ref, yfac_ref, out_ref,
                  *, B, HW, NPAD):
    f32, i32 = jnp.float32, jnp.int32

    # ---------------- unprojection (GenerateSemanticPointCloud) -------------
    d_norm = depth_ref[...]                          # (1, NPAD) normalized
    d = d_norm * DEPTH_NORM_FACTOR                   # meters
    x_c = xfac_ref[...] * d                          # camera-frame rays
    y_c = yfac_ref[...] * d
    z_c = -d                                         # camera looks along -z

    # per-point camera coefficients: per-batch scalars from SMEM broadcast via
    # batch-range masks (point p = b*HW + h*W + w).
    p_iota = lax.broadcasted_iota(i32, (1, NPAD), 1)
    bmasks = [jnp.logical_and(p_iota >= b * HW, p_iota < (b + 1) * HW)
              for b in range(B)]

    def per_point(k):
        acc = jnp.zeros((1, NPAD), f32)
        for b in range(B):
            acc = jnp.where(bmasks[b], cam_ref[b, k], acc)
        return acc

    r00, r01, r02, tx = per_point(0), per_point(1), per_point(2), per_point(3)
    r10, r11, r12, ty = per_point(4), per_point(5), per_point(6), per_point(7)
    r20, r21, r22, tz = per_point(8), per_point(9), per_point(10), per_point(11)

    batch_i = jnp.zeros((1, NPAD), i32)
    for b in range(B):
        batch_i = jnp.where(bmasks[b], jnp.full((1, NPAD), b, i32), batch_i)

    xw = r00 * x_c + r01 * y_c + r02 * z_c + tx
    yw = r10 * x_c + r11 * y_c + r12 * z_c + ty      # heights
    zw = r20 * x_c + r21 * y_c + r22 * z_c + tz

    # validity: depth window on normalized depth, height window around the
    # robot height (pose[:, 1] == camera translation y == ty).
    depth_ok = jnp.logical_and(d_norm > DEPTH_MIN, d_norm < DEPTH_MAX)
    height_ok = jnp.logical_and(yw > ty - DH_MIN, yw < ty + DH_MAX)
    valid = jnp.logical_and(depth_ok, height_ok)

    # half-resolution cell rounding (torch: values / (resolution_meters / 2)).
    half_res = jnp.float32(MAP_RESOLUTION_M / 2.0)
    rows_i = _round_nearest_even(zw / half_res).astype(i32)
    cols_i = _round_nearest_even(xw / half_res).astype(i32)

    # --------- keep-highest (torch_scatter.scatter_max) as dominance --------
    # dominated[p] = OR_q (cell[q]==cell[p] & (h[q]>h[p] | (h[q]==h[p] & q<p)))
    # p on lanes, q on sublanes; q-side views are built in-kernel by
    # broadcast + square transpose (no lane-sparse columns anywhere).
    qg = lax.broadcasted_iota(i32, (NPAD, NPAD), 0)   # candidate index
    pg = lax.broadcasted_iota(i32, (NPAD, NPAD), 1)   # decided index
    hq = jnp.transpose(jnp.broadcast_to(yw, (NPAD, NPAD)))
    better = jnp.logical_or(hq > yw,
                            jnp.logical_and(hq == yw, qg < pg))

    def flatten_cells(valid_mask):
        # Mirrors KeepHighestSemanticPointcloud.{discrete_positive_index,
        # to_flattened_indices}: subtract per-axis min over the current cloud,
        # flatten with rows.max()/cols.max() strides (aliasing preserved on
        # purpose for torch parity).  Invalid points get cell id -1.
        big = jnp.full((1, NPAD), 2 ** 30, i32)
        zero = jnp.zeros((1, NPAD), i32)
        r = rows_i - jnp.min(jnp.where(valid_mask, rows_i, big),
                             axis=1, keepdims=True)
        c = cols_i - jnp.min(jnp.where(valid_mask, cols_i, big),
                             axis=1, keepdims=True)
        rmax = jnp.max(jnp.where(valid_mask, r, zero), axis=1, keepdims=True)
        cmax = jnp.max(jnp.where(valid_mask, c, zero), axis=1, keepdims=True)
        flat = batch_i * (rmax * cmax) + r * cmax + c
        return jnp.where(valid_mask, flat, jnp.full((1, NPAD), -1, i32))

    def dominated(flat_row):
        cq = jnp.transpose(jnp.broadcast_to(flat_row, (NPAD, NPAD)))
        hit = jnp.logical_and(cq == flat_row, better).astype(i32)
        return jnp.max(hit, axis=0, keepdims=True) > 0   # (1, NPAD) bool

    # Pass 1: local cloud.  Pass 2: world cloud (initialized from the kept
    # local cloud), re-discretized over the kept set exactly like the torch
    # forward.
    keep1 = jnp.logical_and(valid, jnp.logical_not(dominated(flatten_cells(valid))))
    keep = jnp.logical_and(keep1, jnp.logical_not(dominated(flatten_cells(keep1))))

    # ------------------------ packed output slab ----------------------------
    out_ref[0:1, :] = xw
    out_ref[1:2, :] = yw
    out_ref[2:3, :] = zw
    out_ref[3:4, :] = jnp.where(keep, 1.0, 0.0)


# ------------------------------- call wrapper --------------------------------
def _ray_factor_rows(B, H, W, NPAD):
    # TODO(synk): habitat's PointCloud depth projector is not in the provided
    # source; a standard pinhole with focal = (H/2)/tan(vfov/2) is assumed.
    HW = H * W
    focal = (H / 2.0) / math.tan(VFOV_RAD / 2.0)
    xcol = (np.arange(W, dtype=np.float32) - (W - 1) / 2.0) / focal
    yrow = -(np.arange(H, dtype=np.float32) - (H - 1) / 2.0) / focal
    xfac = np.zeros((1, NPAD), np.float32)
    yfac = np.zeros((1, NPAD), np.float32)
    xfac[0, :B * HW] = np.tile(np.tile(xcol, H), B)
    yfac[0, :B * HW] = np.tile(np.repeat(yrow, W), B)
    return xfac, yfac


def fused_update_call(depth_row, cam_flat, B, H, W):
    HW = H * W
    N = B * HW
    NPAD = ((N + 127) // 128) * 128
    if NPAD != N:
        depth_row = jnp.pad(depth_row, ((0, 0), (0, NPAD - N)))
    xfac, yfac = _ray_factor_rows(B, H, W, NPAD)

    return pl.pallas_call(
        partial(_fused_kernel, B=B, HW=HW, NPAD=NPAD),
        grid=(1,),
        in_specs=[
            pl.BlockSpec(memory_space=pltpu.MemorySpace.SMEM),  # cam (B, 16)
            pl.BlockSpec((1, NPAD), lambda i: (0, 0)),          # depth
            pl.BlockSpec((1, NPAD), lambda i: (0, 0)),          # xfac
            pl.BlockSpec((1, NPAD), lambda i: (0, 0)),          # yfac
        ],
        out_specs=pl.BlockSpec((4, NPAD), lambda i: (0, 0)),
        out_shape=jax.ShapeDtypeStruct((4, NPAD), jnp.float32),
        compiler_params=pltpu.CompilerParams(
            dimension_semantics=("arbitrary",),
            vmem_limit_bytes=32 * 1024 * 1024),
    )(cam_flat, depth_row, jnp.asarray(xfac), jnp.asarray(yfac))


def get_camera_matrix(pose, elevation, heading):
    # TODO(synk): habitat's `_transform3D` is not part of the provided source;
    # the standard extrinsic T = Trans(pose) @ Ry(heading) @ Rx(elevation+pi)
    # matching its call signature is assumed.
    e = elevation + jnp.pi
    ce, se = jnp.cos(e), jnp.sin(e)
    ch, sh = jnp.cos(heading), jnp.sin(heading)
    z = jnp.zeros_like(ch)
    o = jnp.ones_like(ch)
    tx, ty, tz = pose[:, 0], pose[:, 1], pose[:, 2]
    cam = jnp.stack([ch, sh * se, sh * ce, tx,
                     z, ce, -se, ty,
                     -sh, ch * se, ch * ce, tz,
                     z, z, z, o], axis=1)
    return cam.astype(jnp.float32)          # (B, 16) row-major 4x4


@jax.jit
def update_world_semantic_pointcloud(depth_normalized, semantics, pose,
                                     elevation, heading, not_done_masks):
    # compute_semantics: `ComputeSemantics` is an abstract placeholder in the
    # reference source -> semantics pass through unchanged (identity).
    # TODO(synk): stateful world-pointcloud accumulation / clearing of finished
    # episodes across calls requires dynamic shapes; one forward step starting
    # from an empty world pointcloud is implemented (concatenate == init).
    del not_done_masks
    B, _, H, W = depth_normalized.shape
    depth_row = depth_normalized.reshape(1, B * H * W)   # point p = b*HW+h*W+w
    cam_flat = get_camera_matrix(pose, elevation, heading)
    slab = fused_update_call(depth_row, cam_flat, B, H, W)  # (4, NPAD)
    sem_flat = semantics.reshape(-1)
    return slab, sem_flat


if __name__ == "__main__":
    key = jax.random.PRNGKey(0)
    B, H, W = 2, FEAT_H, FEAT_W
    k1, k2, k3, k4, k5 = jax.random.split(key, 5)

    depth_normalized = jax.random.uniform(k1, (B, 1, H, W), jnp.float32)
    semantics = jax.random.randint(k2, (B, 1, H, W), 0, 10, jnp.int32)
    rgb = jax.random.uniform(k3, (B, 3, H, W), jnp.float32)  # unused (identity)
    pose = jnp.stack(
        [jax.random.uniform(k4, (B,), minval=-1.0, maxval=1.0),
         jnp.full((B,), 1.25, jnp.float32),
         jax.random.uniform(k5, (B,), minval=-1.0, maxval=1.0)], axis=1)
    elevation = jnp.zeros((B,), jnp.float32)
    heading = jnp.array([0.3, -1.1], jnp.float32)
    not_done_masks = jnp.ones((B, 1), jnp.int32)             # all unfinished

    slab, sem_flat = update_world_semantic_pointcloud(
        depth_normalized, semantics, pose, elevation, heading, not_done_masks)
    jax.block_until_ready((slab, sem_flat))

    # Materialize the world semantic pointcloud (dynamic-shape gather on host).
    # TODO(synk): torch returns the kept points reordered by scatter_max's
    # argmax (cell-id) order; the same point set in original order is used.
    N = B * H * W
    slab_np = np.asarray(slab)
    keep = slab_np[3, :N] > 0.5
    xyz_flat = slab_np[:3, :N].T                              # (N, 3)
    sem_np = np.asarray(sem_flat)
    batch_idx = np.repeat(np.arange(B), H * W)

    world_xyz = xyz_flat[keep]
    world_sem = sem_np[keep]
    world_bidx = batch_idx[keep]
    assert world_xyz.shape[0] == world_sem.shape[0] == world_bidx.shape[0]
    assert world_xyz.ndim == 2 and world_xyz.shape[1] == 3
    assert world_xyz.shape[0] <= N

    print("KERNEL_OK")
</pallas_src>

<mosaic_0001>
module attributes {stable_mosaic.version = 11 : i64} {
  func.func @_fused_kernel(%arg0: i32, %arg1: memref<2x16xf32, #tpu.memory_space<smem>>, %arg2: memref<1x512xf32, #tpu.memory_space<vmem>>, %arg3: memref<1x512xf32, #tpu.memory_space<vmem>>, %arg4: memref<1x512xf32, #tpu.memory_space<vmem>>, %arg5: memref<4x512xf32, #tpu.memory_space<vmem>>) attributes {dimension_semantics = [#tpu.dimension_semantics<arbitrary>], iteration_bounds = array<i64: 1>, scalar_prefetch = 0 : i64, scratch_operands = 0 : i64, tpu.core_type = #tpu.core_type<tc>, window_params = [{transform_indices = @transform_0, window_bounds = array<i64: 2, 16>}, {pipeline_mode = #tpu.pipeline_mode<synchronous>, transform_indices = @transform_1, window_bounds = array<i64: 1, 512>}, {pipeline_mode = #tpu.pipeline_mode<synchronous>, transform_indices = @transform_2, window_bounds = array<i64: 1, 512>}, {pipeline_mode = #tpu.pipeline_mode<synchronous>, transform_indices = @transform_3, window_bounds = array<i64: 1, 512>}, {pipeline_mode = #tpu.pipeline_mode<synchronous>, transform_indices = @transform_4, window_bounds = array<i64: 4, 512>}]} {
    %c0 = arith.constant 0 : index
    %c0_0 = arith.constant 0 : index
    %0 = vector.load %arg2[%c0, %c0_0] : memref<1x512xf32, #tpu.memory_space<vmem>>, vector<1x512xf32>
    %cst = arith.constant 1.000000e+01 : f32
    %1 = vector.broadcast %cst : f32 to vector<1x512xf32>
    %2 = arith.mulf %0, %1 : vector<1x512xf32>
    %c0_1 = arith.constant 0 : index
    %c0_2 = arith.constant 0 : index
    %3 = vector.load %arg3[%c0_1, %c0_2] : memref<1x512xf32, #tpu.memory_space<vmem>>, vector<1x512xf32>
    %4 = arith.mulf %3, %2 : vector<1x512xf32>
    %c0_3 = arith.constant 0 : index
    %c0_4 = arith.constant 0 : index
    %5 = vector.load %arg4[%c0_3, %c0_4] : memref<1x512xf32, #tpu.memory_space<vmem>>, vector<1x512xf32>
    %6 = arith.mulf %5, %2 : vector<1x512xf32>
    %cst_5 = arith.constant 0.000000e+00 : f32
    %7 = vector.broadcast %cst_5 : f32 to vector<1x512xf32>
    %8 = arith.subf %7, %2 : vector<1x512xf32>
    %9 = tpu.iota {dimensions = array<i32: 1>} : vector<1x512xi32>
    %c0_i32 = arith.constant 0 : i32
    %10 = vector.broadcast %c0_i32 : i32 to vector<1x512xi32>
    %11 = arith.cmpi sge, %9, %10 : vector<1x512xi32>
    %c256_i32 = arith.constant 256 : i32
    %12 = vector.broadcast %c256_i32 : i32 to vector<1x512xi32>
    %13 = arith.cmpi slt, %9, %12 : vector<1x512xi32>
    %14 = arith.andi %11, %13 : vector<1x512xi1>
    %c256_i32_6 = arith.constant 256 : i32
    %15 = vector.broadcast %c256_i32_6 : i32 to vector<1x512xi32>
    %16 = arith.cmpi sge, %9, %15 : vector<1x512xi32>
    %c512_i32 = arith.constant 512 : i32
    %17 = vector.broadcast %c512_i32 : i32 to vector<1x512xi32>
    %18 = arith.cmpi slt, %9, %17 : vector<1x512xi32>
    %19 = arith.andi %16, %18 : vector<1x512xi1>
    %cst_7 = arith.constant 0.000000e+00 : f32
    %20 = vector.broadcast %cst_7 : f32 to vector<1x512xf32>
    %c0_8 = arith.constant 0 : index
    %c0_9 = arith.constant 0 : index
    %21 = memref.load %arg1[%c0_8, %c0_9] : memref<2x16xf32, #tpu.memory_space<smem>>
    %22 = vector.broadcast %21 : f32 to vector<1x512xf32>
    %23 = arith.select %14, %22, %20 : vector<1x512xi1>, vector<1x512xf32>
    %c1 = arith.constant 1 : index
    %c0_10 = arith.constant 0 : index
    %24 = memref.load %arg1[%c1, %c0_10] : memref<2x16xf32, #tpu.memory_space<smem>>
    %25 = vector.broadcast %24 : f32 to vector<1x512xf32>
    %26 = arith.select %19, %25, %23 : vector<1x512xi1>, vector<1x512xf32>
    %cst_11 = arith.constant 0.000000e+00 : f32
    %27 = vector.broadcast %cst_11 : f32 to vector<1x512xf32>
    %c0_12 = arith.constant 0 : index
    %c1_13 = arith.constant 1 : index
    %28 = memref.load %arg1[%c0_12, %c1_13] : memref<2x16xf32, #tpu.memory_space<smem>>
    %29 = vector.broadcast %28 : f32 to vector<1x512xf32>
    %30 = arith.select %14, %29, %27 : vector<1x512xi1>, vector<1x512xf32>
    %c1_14 = arith.constant 1 : index
    %c1_15 = arith.constant 1 : index
    %31 = memref.load %arg1[%c1_14, %c1_15] : memref<2x16xf32, #tpu.memory_space<smem>>
    %32 = vector.broadcast %31 : f32 to vector<1x512xf32>
    %33 = arith.select %19, %32, %30 : vector<1x512xi1>, vector<1x512xf32>
    %cst_16 = arith.constant 0.000000e+00 : f32
    %34 = vector.broadcast %cst_16 : f32 to vector<1x512xf32>
    %c0_17 = arith.constant 0 : index
    %c2 = arith.constant 2 : index
    %35 = memref.load %arg1[%c0_17, %c2] : memref<2x16xf32, #tpu.memory_space<smem>>
    %36 = vector.broadcast %35 : f32 to vector<1x512xf32>
    %37 = arith.select %14, %36, %34 : vector<1x512xi1>, vector<1x512xf32>
    %c1_18 = arith.constant 1 : index
    %c2_19 = arith.constant 2 : index
    %38 = memref.load %arg1[%c1_18, %c2_19] : memref<2x16xf32, #tpu.memory_space<smem>>
    %39 = vector.broadcast %38 : f32 to vector<1x512xf32>
    %40 = arith.select %19, %39, %37 : vector<1x512xi1>, vector<1x512xf32>
    %cst_20 = arith.constant 0.000000e+00 : f32
    %41 = vector.broadcast %cst_20 : f32 to vector<1x512xf32>
    %c0_21 = arith.constant 0 : index
    %c3 = arith.constant 3 : index
    %42 = memref.load %arg1[%c0_21, %c3] : memref<2x16xf32, #tpu.memory_space<smem>>
    %43 = vector.broadcast %42 : f32 to vector<1x512xf32>
    %44 = arith.select %14, %43, %41 : vector<1x512xi1>, vector<1x512xf32>
    %c1_22 = arith.constant 1 : index
    %c3_23 = arith.constant 3 : index
    %45 = memref.load %arg1[%c1_22, %c3_23] : memref<2x16xf32, #tpu.memory_space<smem>>
    %46 = vector.broadcast %45 : f32 to vector<1x512xf32>
    %47 = arith.select %19, %46, %44 : vector<1x512xi1>, vector<1x512xf32>
    %cst_24 = arith.constant 0.000000e+00 : f32
    %48 = vector.broadcast %cst_24 : f32 to vector<1x512xf32>
    %c0_25 = arith.constant 0 : index
    %c4 = arith.constant 4 : index
    %49 = memref.load %arg1[%c0_25, %c4] : memref<2x16xf32, #tpu.memory_space<smem>>
    %50 = vector.broadcast %49 : f32 to vector<1x512xf32>
    %51 = arith.select %14, %50, %48 : vector<1x512xi1>, vector<1x512xf32>
    %c1_26 = arith.constant 1 : index
    %c4_27 = arith.constant 4 : index
    %52 = memref.load %arg1[%c1_26, %c4_27] : memref<2x16xf32, #tpu.memory_space<smem>>
    %53 = vector.broadcast %52 : f32 to vector<1x512xf32>
    %54 = arith.select %19, %53, %51 : vector<1x512xi1>, vector<1x512xf32>
    %cst_28 = arith.constant 0.000000e+00 : f32
    %55 = vector.broadcast %cst_28 : f32 to vector<1x512xf32>
    %c0_29 = arith.constant 0 : index
    %c5 = arith.constant 5 : index
    %56 = memref.load %arg1[%c0_29, %c5] : memref<2x16xf32, #tpu.memory_space<smem>>
    %57 = vector.broadcast %56 : f32 to vector<1x512xf32>
    %58 = arith.select %14, %57, %55 : vector<1x512xi1>, vector<1x512xf32>
    %c1_30 = arith.constant 1 : index
    %c5_31 = arith.constant 5 : index
    %59 = memref.load %arg1[%c1_30, %c5_31] : memref<2x16xf32, #tpu.memory_space<smem>>
    %60 = vector.broadcast %59 : f32 to vector<1x512xf32>
    %61 = arith.select %19, %60, %58 : vector<1x512xi1>, vector<1x512xf32>
    %cst_32 = arith.constant 0.000000e+00 : f32
    %62 = vector.broadcast %cst_32 : f32 to vector<1x512xf32>
    %c0_33 = arith.constant 0 : index
    %c6 = arith.constant 6 : index
    %63 = memref.load %arg1[%c0_33, %c6] : memref<2x16xf32, #tpu.memory_space<smem>>
    %64 = vector.broadcast %63 : f32 to vector<1x512xf32>
    %65 = arith.select %14, %64, %62 : vector<1x512xi1>, vector<1x512xf32>
    %c1_34 = arith.constant 1 : index
    %c6_35 = arith.constant 6 : index
    %66 = memref.load %arg1[%c1_34, %c6_35] : memref<2x16xf32, #tpu.memory_space<smem>>
    %67 = vector.broadcast %66 : f32 to vector<1x512xf32>
    %68 = arith.select %19, %67, %65 : vector<1x512xi1>, vector<1x512xf32>
    %cst_36 = arith.constant 0.000000e+00 : f32
    %69 = vector.broadcast %cst_36 : f32 to vector<1x512xf32>
    %c0_37 = arith.constant 0 : index
    %c7 = arith.constant 7 : index
    %70 = memref.load %arg1[%c0_37, %c7] : memref<2x16xf32, #tpu.memory_space<smem>>
    %71 = vector.broadcast %70 : f32 to vector<1x512xf32>
    %72 = arith.select %14, %71, %69 : vector<1x512xi1>, vector<1x512xf32>
    %c1_38 = arith.constant 1 : index
    %c7_39 = arith.constant 7 : index
    %73 = memref.load %arg1[%c1_38, %c7_39] : memref<2x16xf32, #tpu.memory_space<smem>>
    %74 = vector.broadcast %73 : f32 to vector<1x512xf32>
    %75 = arith.select %19, %74, %72 : vector<1x512xi1>, vector<1x512xf32>
    %cst_40 = arith.constant 0.000000e+00 : f32
    %76 = vector.broadcast %cst_40 : f32 to vector<1x512xf32>
    %c0_41 = arith.constant 0 : index
    %c8 = arith.constant 8 : index
    %77 = memref.load %arg1[%c0_41, %c8] : memref<2x16xf32, #tpu.memory_space<smem>>
    %78 = vector.broadcast %77 : f32 to vector<1x512xf32>
    %79 = arith.select %14, %78, %76 : vector<1x512xi1>, vector<1x512xf32>
    %c1_42 = arith.constant 1 : index
    %c8_43 = arith.constant 8 : index
    %80 = memref.load %arg1[%c1_42, %c8_43] : memref<2x16xf32, #tpu.memory_space<smem>>
    %81 = vector.broadcast %80 : f32 to vector<1x512xf32>
    %82 = arith.select %19, %81, %79 : vector<1x512xi1>, vector<1x512xf32>
    %cst_44 = arith.constant 0.000000e+00 : f32
    %83 = vector.broadcast %cst_44 : f32 to vector<1x512xf32>
    %c0_45 = arith.constant 0 : index
    %c9 = arith.constant 9 : index
    %84 = memref.load %arg1[%c0_45, %c9] : memref<2x16xf32, #tpu.memory_space<smem>>
    %85 = vector.broadcast %84 : f32 to vector<1x512xf32>
    %86 = arith.select %14, %85, %83 : vector<1x512xi1>, vector<1x512xf32>
    %c1_46 = arith.constant 1 : index
    %c9_47 = arith.constant 9 : index
    %87 = memref.load %arg1[%c1_46, %c9_47] : memref<2x16xf32, #tpu.memory_space<smem>>
    %88 = vector.broadcast %87 : f32 to vector<1x512xf32>
    %89 = arith.select %19, %88, %86 : vector<1x512xi1>, vector<1x512xf32>
    %cst_48 = arith.constant 0.000000e+00 : f32
    %90 = vector.broadcast %cst_48 : f32 to vector<1x512xf32>
    %c0_49 = arith.constant 0 : index
    %c10 = arith.constant 10 : index
    %91 = memref.load %arg1[%c0_49, %c10] : memref<2x16xf32, #tpu.memory_space<smem>>
    %92 = vector.broadcast %91 : f32 to vector<1x512xf32>
    %93 = arith.select %14, %92, %90 : vector<1x512xi1>, vector<1x512xf32>
    %c1_50 = arith.constant 1 : index
    %c10_51 = arith.constant 10 : index
    %94 = memref.load %arg1[%c1_50, %c10_51] : memref<2x16xf32, #tpu.memory_space<smem>>
    %95 = vector.broadcast %94 : f32 to vector<1x512xf32>
    %96 = arith.select %19, %95, %93 : vector<1x512xi1>, vector<1x512xf32>
    %cst_52 = arith.constant 0.000000e+00 : f32
    %97 = vector.broadcast %cst_52 : f32 to vector<1x512xf32>
    %c0_53 = arith.constant 0 : index
    %c11 = arith.constant 11 : index
    %98 = memref.load %arg1[%c0_53, %c11] : memref<2x16xf32, #tpu.memory_space<smem>>
    %99 = vector.broadcast %98 : f32 to vector<1x512xf32>
    %100 = arith.select %14, %99, %97 : vector<1x512xi1>, vector<1x512xf32>
    %c1_54 = arith.constant 1 : index
    %c11_55 = arith.constant 11 : index
    %101 = memref.load %arg1[%c1_54, %c11_55] : memref<2x16xf32, #tpu.memory_space<smem>>
    %102 = vector.broadcast %101 : f32 to vector<1x512xf32>
    %103 = arith.select %19, %102, %100 : vector<1x512xi1>, vector<1x512xf32>
    %c0_i32_56 = arith.constant 0 : i32
    %104 = vector.broadcast %c0_i32_56 : i32 to vector<1x512xi32>
    %c0_i32_57 = arith.constant 0 : i32
    %105 = vector.broadcast %c0_i32_57 : i32 to vector<1x512xi32>
    %106 = arith.select %14, %105, %104 : vector<1x512xi1>, vector<1x512xi32>
    %c1_i32 = arith.constant 1 : i32
    %107 = vector.broadcast %c1_i32 : i32 to vector<1x512xi32>
    %108 = arith.select %19, %107, %106 : vector<1x512xi1>, vector<1x512xi32>
    %109 = arith.mulf %26, %4 : vector<1x512xf32>
    %110 = arith.mulf %33, %6 : vector<1x512xf32>
    %111 = arith.addf %109, %110 : vector<1x512xf32>
    %112 = arith.mulf %40, %8 : vector<1x512xf32>
    %113 = arith.addf %111, %112 : vector<1x512xf32>
    %114 = arith.addf %113, %47 : vector<1x512xf32>
    %115 = arith.mulf %54, %4 : vector<1x512xf32>
    %116 = arith.mulf %61, %6 : vector<1x512xf32>
    %117 = arith.addf %115, %116 : vector<1x512xf32>
    %118 = arith.mulf %68, %8 : vector<1x512xf32>
    %119 = arith.addf %117, %118 : vector<1x512xf32>
    %120 = arith.addf %119, %75 : vector<1x512xf32>
    %121 = arith.mulf %82, %4 : vector<1x512xf32>
    %122 = arith.mulf %89, %6 : vector<1x512xf32>
    %123 = arith.addf %121, %122 : vector<1x512xf32>
    %124 = arith.mulf %96, %8 : vector<1x512xf32>
    %125 = arith.addf %123, %124 : vector<1x512xf32>
    %126 = arith.addf %125, %103 : vector<1x512xf32>
    %cst_58 = arith.constant 0.00999999977 : f32
    %127 = vector.broadcast %cst_58 : f32 to vector<1x512xf32>
    %128 = arith.cmpf ogt, %0, %127 : vector<1x512xf32>
    %cst_59 = arith.constant 9.900000e-01 : f32
    %129 = vector.broadcast %cst_59 : f32 to vector<1x512xf32>
    %130 = arith.cmpf olt, %0, %129 : vector<1x512xf32>
    %131 = arith.andi %128, %130 : vector<1x512xi1>
    %cst_60 = arith.constant 1.000000e+00 : f32
    %132 = vector.broadcast %cst_60 : f32 to vector<1x512xf32>
    %133 = arith.subf %75, %132 : vector<1x512xf32>
    %134 = arith.cmpf ogt, %120, %133 : vector<1x512xf32>
    %cst_61 = arith.constant 5.000000e-01 : f32
    %135 = vector.broadcast %cst_61 : f32 to vector<1x512xf32>
    %136 = arith.addf %75, %135 : vector<1x512xf32>
    %137 = arith.cmpf olt, %120, %136 : vector<1x512xf32>
    %138 = arith.andi %134, %137 : vector<1x512xi1>
    %139 = arith.andi %131, %138 : vector<1x512xi1>
    %cst_62 = arith.constant 5.000000e-02 : f32
    %140 = vector.broadcast %cst_62 : f32 to vector<1x512xf32>
    %141 = arith.divf %126, %140 : vector<1x512xf32>
    %cst_63 = arith.constant 0x4B400000 : f32
    %142 = vector.broadcast %cst_63 : f32 to vector<1x512xf32>
    %143 = arith.addf %141, %142 : vector<1x512xf32>
    %cst_64 = arith.constant 0x4B400000 : f32
    %144 = vector.broadcast %cst_64 : f32 to vector<1x512xf32>
    %145 = arith.subf %143, %144 : vector<1x512xf32>
    %146 = arith.fptosi %145 : vector<1x512xf32> to vector<1x512xi32>
    %cst_65 = arith.constant 5.000000e-02 : f32
    %147 = vector.broadcast %cst_65 : f32 to vector<1x512xf32>
    %148 = arith.divf %114, %147 : vector<1x512xf32>
    %cst_66 = arith.constant 0x4B400000 : f32
    %149 = vector.broadcast %cst_66 : f32 to vector<1x512xf32>
    %150 = arith.addf %148, %149 : vector<1x512xf32>
    %cst_67 = arith.constant 0x4B400000 : f32
    %151 = vector.broadcast %cst_67 : f32 to vector<1x512xf32>
    %152 = arith.subf %150, %151 : vector<1x512xf32>
    %153 = arith.fptosi %152 : vector<1x512xf32> to vector<1x512xi32>
    %154 = tpu.iota {dimensions = array<i32: 0>} : vector<512x512xi32>
    %155 = tpu.iota {dimensions = array<i32: 1>} : vector<512x512xi32>
    %156 = vector.shape_cast %120 : vector<1x512xf32> to vector<1x512xf32>
    %157 = vector.broadcast %156 : vector<1x512xf32> to vector<512x512xf32>
    %158 = tpu.transpose %157, [1, 0] : vector<512x512xf32> -> vector<512x512xf32>
    %159 = vector.broadcast %120 : vector<1x512xf32> to vector<512x512xf32>
    %160 = arith.cmpf ogt, %158, %159 : vector<512x512xf32>
    %161 = vector.broadcast %120 : vector<1x512xf32> to vector<512x512xf32>
    %162 = arith.cmpf oeq, %158, %161 : vector<512x512xf32>
    %163 = arith.cmpi slt, %154, %155 : vector<512x512xi32>
    %164 = arith.andi %162, %163 : vector<512x512xi1>
    %165 = arith.ori %160, %164 : vector<512x512xi1>
    %c1073741824_i32 = arith.constant 1073741824 : i32
    %166 = vector.broadcast %c1073741824_i32 : i32 to vector<1x512xi32>
    %c0_i32_68 = arith.constant 0 : i32
    %167 = vector.broadcast %c0_i32_68 : i32 to vector<1x512xi32>
    %168 = arith.select %139, %146, %166 : vector<1x512xi1>, vector<1x512xi32>
    %cst_69 = arith.constant dense<2147483647> : vector<1xi32>
    %169 = vector.multi_reduction <minsi>, %168, %cst_69 [1] : vector<1x512xi32> to vector<1xi32>
    %170 = vector.shape_cast %169 : vector<1xi32> to vector<1x1xi32>
    %171 = vector.broadcast %170 : vector<1x1xi32> to vector<1x512xi32>
    %172 = arith.subi %146, %171 : vector<1x512xi32>
    %173 = arith.select %139, %153, %166 : vector<1x512xi1>, vector<1x512xi32>
    %cst_70 = arith.constant dense<2147483647> : vector<1xi32>
    %174 = vector.multi_reduction <minsi>, %173, %cst_70 [1] : vector<1x512xi32> to vector<1xi32>
    %175 = vector.shape_cast %174 : vector<1xi32> to vector<1x1xi32>
    %176 = vector.broadcast %175 : vector<1x1xi32> to vector<1x512xi32>
    %177 = arith.subi %153, %176 : vector<1x512xi32>
    %178 = arith.select %139, %172, %167 : vector<1x512xi1>, vector<1x512xi32>
    %cst_71 = arith.constant dense<-2147483648> : vector<1xi32>
    %179 = vector.multi_reduction <maxsi>, %178, %cst_71 [1] : vector<1x512xi32> to vector<1xi32>
    %180 = vector.shape_cast %179 : vector<1xi32> to vector<1x1xi32>
    %181 = arith.select %139, %177, %167 : vector<1x512xi1>, vector<1x512xi32>
    %cst_72 = arith.constant dense<-2147483648> : vector<1xi32>
    %182 = vector.multi_reduction <maxsi>, %181, %cst_72 [1] : vector<1x512xi32> to vector<1xi32>
    %183 = vector.shape_cast %182 : vector<1xi32> to vector<1x1xi32>
    %184 = arith.muli %180, %183 : vector<1x1xi32>
    %185 = vector.broadcast %184 : vector<1x1xi32> to vector<1x512xi32>
    %186 = arith.muli %108, %185 : vector<1x512xi32>
    %187 = vector.broadcast %183 : vector<1x1xi32> to vector<1x512xi32>
    %188 = arith.muli %172, %187 : vector<1x512xi32>
    %189 = arith.addi %186, %188 : vector<1x512xi32>
    %190 = arith.addi %189, %177 : vector<1x512xi32>
    %c-1_i32 = arith.constant -1 : i32
    %191 = vector.broadcast %c-1_i32 : i32 to vector<1x512xi32>
    %192 = arith.select %139, %190, %191 : vector<1x512xi1>, vector<1x512xi32>
    %193 = vector.shape_cast %192 : vector<1x512xi32> to vector<1x512xi32>
    %194 = vector.broadcast %193 : vector<1x512xi32> to vector<512x512xi32>
    %195 = tpu.transpose %194, [1, 0] : vector<512x512xi32> -> vector<512x512xi32>
    %196 = vector.broadcast %192 : vector<1x512xi32> to vector<512x512xi32>
    %197 = arith.cmpi eq, %195, %196 : vector<512x512xi32>
    %198 = arith.andi %197, %165 : vector<512x512xi1>
    %199 = arith.extui %198 : vector<512x512xi1> to vector<512x512xi32>
    %cst_73 = arith.constant dense<-2147483648> : vector<512xi32>
    %200 = vector.multi_reduction <maxsi>, %199, %cst_73 [0] : vector<512x512xi32> to vector<512xi32>
    %201 = vector.shape_cast %200 : vector<512xi32> to vector<1x512xi32>
    %c0_i32_74 = arith.constant 0 : i32
    %202 = vector.broadcast %c0_i32_74 : i32 to vector<1x512xi32>
    %203 = arith.cmpi sgt, %201, %202 : vector<1x512xi32>
    %cst_75 = arith.constant dense<true> : vector<1x512xi1>
    %204 = arith.xori %203, %cst_75 : vector<1x512xi1>
    %205 = arith.andi %139, %204 : vector<1x512xi1>
    %c1073741824_i32_76 = arith.constant 1073741824 : i32
    %206 = vector.broadcast %c1073741824_i32_76 : i32 to vector<1x512xi32>
    %c0_i32_77 = arith.constant 0 : i32
    %207 = vector.broadcast %c0_i32_77 : i32 to vector<1x512xi32>
    %208 = arith.select %205, %146, %206 : vector<1x512xi1>, vector<1x512xi32>
    %cst_78 = arith.constant dense<2147483647> : vector<1xi32>
    %209 = vector.multi_reduction <minsi>, %208, %cst_78 [1] : vector<1x512xi32> to vector<1xi32>
    %210 = vector.shape_cast %209 : vector<1xi32> to vector<1x1xi32>
    %211 = vector.broadcast %210 : vector<1x1xi32> to vector<1x512xi32>
    %212 = arith.subi %146, %211 : vector<1x512xi32>
    %213 = arith.select %205, %153, %206 : vector<1x512xi1>, vector<1x512xi32>
    %cst_79 = arith.constant dense<2147483647> : vector<1xi32>
    %214 = vector.multi_reduction <minsi>, %213, %cst_79 [1] : vector<1x512xi32> to vector<1xi32>
    %215 = vector.shape_cast %214 : vector<1xi32> to vector<1x1xi32>
    %216 = vector.broadcast %215 : vector<1x1xi32> to vector<1x512xi32>
    %217 = arith.subi %153, %216 : vector<1x512xi32>
    %218 = arith.select %205, %212, %207 : vector<1x512xi1>, vector<1x512xi32>
    %cst_80 = arith.constant dense<-2147483648> : vector<1xi32>
    %219 = vector.multi_reduction <maxsi>, %218, %cst_80 [1] : vector<1x512xi32> to vector<1xi32>
    %220 = vector.shape_cast %219 : vector<1xi32> to vector<1x1xi32>
    %221 = arith.select %205, %217, %207 : vector<1x512xi1>, vector<1x512xi32>
    %cst_81 = arith.constant dense<-2147483648> : vector<1xi32>
    %222 = vector.multi_reduction <maxsi>, %221, %cst_81 [1] : vector<1x512xi32> to vector<1xi32>
    %223 = vector.shape_cast %222 : vector<1xi32> to vector<1x1xi32>
    %224 = arith.muli %220, %223 : vector<1x1xi32>
    %225 = vector.broadcast %224 : vector<1x1xi32> to vector<1x512xi32>
    %226 = arith.muli %108, %225 : vector<1x512xi32>
    %227 = vector.broadcast %223 : vector<1x1xi32> to vector<1x512xi32>
    %228 = arith.muli %212, %227 : vector<1x512xi32>
    %229 = arith.addi %226, %228 : vector<1x512xi32>
    %230 = arith.addi %229, %217 : vector<1x512xi32>
    %c-1_i32_82 = arith.constant -1 : i32
    %231 = vector.broadcast %c-1_i32_82 : i32 to vector<1x512xi32>
    %232 = arith.select %205, %230, %231 : vector<1x512xi1>, vector<1x512xi32>
    %233 = vector.shape_cast %232 : vector<1x512xi32> to vector<1x512xi32>
    %234 = vector.broadcast %233 : vector<1x512xi32> to vector<512x512xi32>
    %235 = tpu.transpose %234, [1, 0] : vector<512x512xi32> -> vector<512x512xi32>
    %236 = vector.broadcast %232 : vector<1x512xi32> to vector<512x512xi32>
    %237 = arith.cmpi eq, %235, %236 : vector<512x512xi32>
    %238 = arith.andi %237, %165 : vector<512x512xi1>
    %239 = arith.extui %238 : vector<512x512xi1> to vector<512x512xi32>
    %cst_83 = arith.constant dense<-2147483648> : vector<512xi32>
    %240 = vector.multi_reduction <maxsi>, %239, %cst_83 [0] : vector<512x512xi32> to vector<512xi32>
    %241 = vector.shape_cast %240 : vector<512xi32> to vector<1x512xi32>
    %c0_i32_84 = arith.constant 0 : i32
    %242 = vector.broadcast %c0_i32_84 : i32 to vector<1x512xi32>
    %243 = arith.cmpi sgt, %241, %242 : vector<1x512xi32>
    %cst_85 = arith.constant dense<true> : vector<1x512xi1>
    %244 = arith.xori %243, %cst_85 : vector<1x512xi1>
    %245 = arith.andi %205, %244 : vector<1x512xi1>
    %c0_86 = arith.constant 0 : index
    %c0_87 = arith.constant 0 : index
    %246 = vector.load %arg5[%c0_86, %c0_87] : memref<4x512xf32, #tpu.memory_space<vmem>>, vector<1x512xf32>
    tpu.vector_store %arg5[%c0_86, %c0_87], %114 {strides = array<i32>} : memref<4x512xf32, #tpu.memory_space<vmem>>, vector<1x512xf32>,
    %c1_88 = arith.constant 1 : index
    %c0_89 = arith.constant 0 : index
    %247 = vector.load %arg5[%c1_88, %c0_89] : memref<4x512xf32, #tpu.memory_space<vmem>>, vector<1x512xf32>
    tpu.vector_store %arg5[%c1_88, %c0_89], %120 {strides = array<i32>} : memref<4x512xf32, #tpu.memory_space<vmem>>, vector<1x512xf32>,
    %c2_90 = arith.constant 2 : index
    %c0_91 = arith.constant 0 : index
    %248 = vector.load %arg5[%c2_90, %c0_91] : memref<4x512xf32, #tpu.memory_space<vmem>>, vector<1x512xf32>
    tpu.vector_store %arg5[%c2_90, %c0_91], %126 {strides = array<i32>} : memref<4x512xf32, #tpu.memory_space<vmem>>, vector<1x512xf32>,
    %cst_92 = arith.constant 1.000000e+00 : f32
    %cst_93 = arith.constant 0.000000e+00 : f32
    %249 = vector.broadcast %cst_92 : f32 to vector<1x512xf32>
    %250 = vector.broadcast %cst_93 : f32 to vector<1x512xf32>
    %251 = arith.select %245, %249, %250 : vector<1x512xi1>, vector<1x512xf32>
    %c3_94 = arith.constant 3 : index
    %c0_95 = arith.constant 0 : index
    %252 = vector.load %arg5[%c3_94, %c0_95] : memref<4x512xf32, #tpu.memory_space<vmem>>, vector<1x512xf32>
    tpu.vector_store %arg5[%c3_94, %c0_95], %251 {strides = array<i32>} : memref<4x512xf32, #tpu.memory_space<vmem>>, vector<1x512xf32>,
    return
  }
  func.func @transform_0(%arg0: i32) -> (i32, i32) {
    %c0_i32 = arith.constant 0 : i32
    %c0_i32_0 = arith.constant 0 : i32
    %c0_i32_1 = arith.constant 0 : i32
    return %c0_i32, %c0_i32_0 : i32, i32
  }
  func.func @transform_1(%arg0: i32) -> (i32, i32) {
    %c0_i32 = arith.constant 0 : i32
    %c0_i32_0 = arith.constant 0 : i32
    %c0_i32_1 = arith.constant 0 : i32
    return %c0_i32, %c0_i32_0 : i32, i32
  }
  func.func @transform_2(%arg0: i32) -> (i32, i32) {
    %c0_i32 = arith.constant 0 : i32
    %c0_i32_0 = arith.constant 0 : i32
    %c0_i32_1 = arith.constant 0 : i32
    return %c0_i32, %c0_i32_0 : i32, i32
  }
  func.func @transform_3(%arg0: i32) -> (i32, i32) {
    %c0_i32 = arith.constant 0 : i32
    %c0_i32_0 = arith.constant 0 : i32
    %c0_i32_1 = arith.constant 0 : i32
    return %c0_i32, %c0_i32_0 : i32, i32
  }
  func.func @transform_4(%arg0: i32) -> (i32, i32) {
    %c0_i32 = arith.constant 0 : i32
    %c0_i32_0 = arith.constant 0 : i32
    %c0_i32_1 = arith.constant 0 : i32
    return %c0_i32, %c0_i32_0 : i32, i32
  }
}

</mosaic_0001>

<bundles_post_ra>
// kernel: update_world_semantic_pointcloud.1
= control target key start
LH: loop header
LB: loop body
LE: loop exit
PB: predicated region body
PF: predicated region fallthrough
CT: control target
= control target key end

     0   :  { %9 = vsyncpa [#allocation4], 0  ;;  %s16302_s0 = inlined_call_operand.vmem [shape: f32[2,16], index: 0, kind: input, shape index: {}]   ;;  %s16303_s1 = inlined_call_operand.vmem [shape: f32[1,512], index: 1, kind: input, shape index: {}]   ;;  %s16304_s2 = inlined_call_operand.vmem [shape: f32[1,512], index: 2, kind: input, shape index: {}]   ;;  %s16305_s3 = inlined_call_operand.vmem [shape: f32[1,512], index: 3, kind: input, shape index: {}]   ;;  %s16306_s4 = inlined_call_operand.hbm [shape: f32[4,512], index: 4, kind: output, shape index: {}]  }
   0x1   :  { %10 = vsyncpa [#allocation3], 0  ;;  %s16_s17 = sshll.u32 %s16302_s0, 4  ;;  %s5305_s18 = smov [#allocation2]   ;;  %s17_s17 = int_to_ptr.vmem [resolvable:$true] %s16_s17 }
   0x2   :  { %19 = dma.vmem_to_smem %s17_s17, 32, %s5305_s18, [#allocation4]  }
   0x3   :  { %5301 = dma.done.wait [#allocation4], 32  }
   0x4   :  { %5302 = vsyncadd [#allocation4], 4294967264 }
   0x5   :  { %30 = sfence }
   0x6   :  { %v5342_v0 = vld [vmem:[%s16303_s1] sm:$0xf]  ;;  %s5189_s0 = sld [smem:[#allocation2 + $0x4]]  ;;  %v5306_v46 = vmov 0.05   ;;  %vm16330_vm0 = vcmask 1040384  }
   0x7   :  { %v33_v1 = vld [vmem:[%s16304_s2] sm:$0xf]  ;;  %v32_v3 = vmul.f32 10.0, %v5342_v0  ;;  %s5190_s25 = sld [smem:[#allocation2 + $0x84]]  ;;  %5263 = vrcp.f32 %v5306_v46  ;;  %vm16329_vm2 = vcmask 1042434   ;;  %vm16328_vm4 = vcmask 1041408  }
   0x8   :  { %v35_v2 = vld [vmem:[%s16305_s3] sm:$0xf]  ;;  %s5191_s26 = sld [smem:[#allocation2 + $0x5]]  ;;  %s5309_s19 = smov [#allocation5]  }
   0x9   :  { %v34_v4 = vmul.f32 %v33_v1, %v32_v3  ;;  %v36_v5 = vmul.f32 %v35_v2, %v32_v3  ;;  %s5351_s27 = sld [smem:[#allocation2 + $0x85]]  ;;  %v37_v6 = vsub.f32 0.0, %v32_v3  ;;  %s5170_s20 = sshll.u32 %s5309_s19, 4  ;;  %s5171_s20 = int_to_ptr.vmem [resolvable:$true] %s5170_s20 }
   0xa   :  { %s5353_s1 = sld [smem:[#allocation2 + $0x6]]  ;;  %s5172_s23 = sshll.u32 %s16306_s4, 4  ;;  %s5173_s23 = int_to_ptr.hbm [resolvable:$true] %s5172_s23 }
   0xb   :  { %v5355_v7 = vperm.slane %v34_v4, 0  ;;  %s5357_s28 = sld [smem:[#allocation2 + $0x86]]  ;;  %v5359_v8 = vperm.slane %v34_v4, 1  ;;  %v5361_v9 = vperm.slane %v34_v4, 2  ;;  %v5363_v10 = vperm.slane %v34_v4, 3 }
   0xc   :  { %v5365_v11 = vperm.slane %v36_v5, 0  ;;  %v116_v12 = vstv %s5189_s0  ;;  %s5195_s2 = sld [smem:[#allocation2 + $0x7]]  ;;  %v5367_v13 = vperm.slane %v36_v5, 1  ;;  %v5369_v14 = vperm.slane %v36_v5, 2 }
   0xd   :  { %v5371_v15 = vperm.slane %v36_v5, 3  ;;  %v122_v16 = vstv %s5190_s25  ;;  %s5196_s3 = sld [smem:[#allocation2 + $0x87]]  ;;  %v5373_v17 = vperm.slane %v37_v6, 0  ;;  %v266_v18 = vmul.f32 %v5355_v7, %v116_v12  ;;  %v5437_v4 = vpop.eup %5263 }
   0xe   :  { %v267_v19 = vmul.f32 %v5359_v8, %v116_v12  ;;  %v128_v20 = vstv %s5191_s26  ;;  %s5377_s29 = sld [smem:[#allocation2 + $0x8]]  ;;  %v5379_v21 = vperm.slane %v37_v6, 1  ;;  %v268_v22 = vmul.f32 %v5361_v9, %v122_v16 }
   0xf   :  { %v269_v23 = vmul.f32 %v5363_v10, %v122_v16  ;;  %v134_v24 = vstv %s5351_s27  ;;  %s5384_s30 = sld [smem:[#allocation2 + $0x88]]  ;;  %v5386_v25 = vperm.slane %v37_v6, 2  ;;  %v270_v26 = vmul.f32 %v5365_v11, %v128_v20 }
  0x10   :  { %v271_v27 = vmul.f32 %v5367_v13, %v128_v20  ;;  %v140_v28 = vstv %s5353_s1  ;;  %s5391_s5 = sld [smem:[#allocation2 + $0x9]]  ;;  %v5393_v29 = vperm.slane %v37_v6, 3  ;;  %v272_v30 = vmul.f32 %v5369_v14, %v134_v24 }
  0x11   :  { %v273_v31 = vmul.f32 %v5371_v15, %v134_v24  ;;  %v146_v32 = vstv %s5357_s28  ;;  %s5398_s6 = sld [smem:[#allocation2 + $0x89]]  ;;  %v274_v33 = vadd.f32 %v270_v26, %v266_v18  ;;  %v278_v35 = vmul.f32 %v5373_v17, %v140_v28 }
  0x12   :  { %v275_v34 = vadd.f32 %v271_v27, %v267_v19  ;;  %v152_v36 = vstv %s5195_s2  ;;  %s5401_s7 = sld [smem:[#allocation2 + $0xa]]  ;;  %v276_v37 = vadd.f32 %v272_v30, %v268_v22  ;;  %v279_v39 = vmul.f32 %v5379_v21, %v140_v28 }
  0x13   :  { %v277_v38 = vadd.f32 %v273_v31, %v269_v23  ;;  %v158_v40 = vstv %s5196_s3  ;;  %s5404_s8 = sld [smem:[#allocation2 + $0x8a]]  ;;  %v280_v41 = vmul.f32 %v5386_v25, %v146_v32  ;;  %v281_v42 = vmul.f32 %v5393_v29, %v146_v32 }
  0x14   :  { %v282_v43 = vadd.f32 %v278_v35, %v274_v33  ;;  %v164_v44 = vstv %s5377_s29  ;;  %s5409_s9 = sld [smem:[#allocation2 + $0xb]]  ;;  %v283_v45 = vadd.f32 %v279_v39, %v275_v34  ;;  %v5205_v49 = vadd.f32 -1.0, %v152_v36 }
  0x15   :  { %v170_v47 = vstv %s5384_s30  ;;  %s5412_s10 = sld [smem:[#allocation2 + $0x8b]]  ;;  %v284_v48 = vadd.f32 %v280_v41, %v276_v37  ;;  %v5414_v50 = vadd.f32 -1.0, %v158_v40  ;;  %v285_v52 = vadd.f32 %v281_v42, %v277_v38 }
  0x16   :  { %v176_v51 = vstv %s5391_s5  ;;  %v290_v53 = vmul.f32 %v5355_v7, %v164_v44  ;;  %v291_v54 = vmul.f32 %v5359_v8, %v164_v44  ;;  %v5420_v56 = vadd.f32 %v282_v43, %v152_v36  ;;  %s5429_s11 = sld [smem:[#allocation2]] }
  0x17   :  { %v182_v55 = vstv %s5398_s6  ;;  %v5422_v57 = vadd.f32 %v283_v45, %v152_v36  ;;  %v292_v58 = vmul.f32 %v5361_v9, %v170_v47  ;;  %v293_v60 = vmul.f32 %v5363_v10, %v170_v47  ;;  %s5435_s12 = sld [smem:[#allocation2 + $0x80]] }
  0x18   :  { %16928 = vst [vmem:[#allocation8_spill] sm:$0xff] %v5420_v56  ;;  %v188_v59 = vstv %s5401_s7  ;;  %v294_v61 = vmul.f32 %v5365_v11, %v176_v51  ;;  %v295_v62 = vmul.f32 %v5367_v13, %v176_v51  ;;  %v296_v1 = vmul.f32 %v5369_v14, %v182_v55  ;;  %s5442_s13 = sld [smem:[#allocation2 + $0x1]] }
  0x19   :  { %16929 = vst [vmem:[#allocation9_spill] sm:$0xff] %v5422_v57  ;;  %v194_v63 = vstv %s5404_s8  ;;  %v297_v2 = vmul.f32 %v5371_v15, %v182_v55  ;;  %v302_v3 = vmul.f32 %v5373_v17, %v188_v59  ;;  %v5439_v5 = vadd.f32 %v284_v48, %v158_v40  ;;  %s5447_s14 = sld [smem:[#allocation2 + $0x81]] }
  0x1a   :  { %v298_v6 = vadd.f32 %v294_v61, %v290_v53  ;;  %v299_v12 = vadd.f32 %v295_v62, %v291_v54  ;;  %v303_v16 = vmul.f32 %v5379_v21, %v188_v59  ;;  %v5444_v18 = vadd.f32 %v285_v52, %v158_v40  ;;  %s5450_s15 = sld [smem:[#allocation2 + $0x2]] }
  0x1b   :  { %16930 = vst [vmem:[#allocation10_spill] sm:$0xff] %v5439_v5  ;;  %v300_v19 = vadd.f32 %v296_v1, %v292_v58  ;;  %v301_v20 = vadd.f32 %v297_v2, %v293_v60  ;;  %v304_v22 = vmul.f32 %v5386_v25, %v194_v63  ;;  %v305_v23 = vmul.f32 %v5393_v29, %v194_v63  ;;  %s5455_s16 = sld [smem:[#allocation2 + $0x82]] }
  0x1c   :  { %16931 = vst [vmem:[#allocation11_spill] sm:$0xff] %v5444_v18  ;;  %v306_v24 = vadd.f32 %v302_v3, %v298_v6  ;;  %v200_v26 = vstv %s5409_s9  ;;  %v206_v27 = vstv %s5412_s10  ;;  %v307_v28 = vadd.f32 %v303_v16, %v299_v12  ;;  %s5458_s17 = sld [smem:[#allocation2 + $0x3]] }
  0x1d   :  { %vm321_vm1 = vcmp.gt.f32.partialorder %v5420_v56, %v5205_v49  ;;  %v308_v30 = vadd.f32 %v304_v22, %v300_v19  ;;  %v309_v31 = vadd.f32 %v305_v23, %v301_v20  ;;  %vm322_vm3 = vcmp.gt.f32.partialorder %v5422_v57, %v5205_v49  ;;  %s5486_s18 = sld [smem:[#allocation2 + $0x83]] }
  0x1e   :  { %v325_v32 = vadd.f32 0.5, %v152_v36  ;;  %vm323_vm5 = vcmp.gt.f32.partialorder %v5439_v5, %v5414_v50  ;;  %vm324_vm6 = vcmp.gt.f32.partialorder %v5444_v18, %v5414_v50  ;;  %v327_v33 = vadd.f32 0.5, %v158_v40 }
  0x1f   :  { %v353_v34 = vmul.f32 0.05, %v5437_v4  ;;  %v5465_v35 = vadd.f32 %v306_v24, %v200_v26  ;;  %v5470_v36 = vperm.slane %v5420_v56, 0  ;;  %v5472_v37 = vadd.f32 %v307_v28, %v200_v26 }
  0x20   :  { %vm329_vm7 = vcmp.lt.f32.partialorder %v5420_v56, %v325_v32  ;;  %vm330_vm8 = vcmp.lt.f32.partialorder %v5422_v57, %v325_v32  ;;  %vm331_vm9 = vcmp.lt.f32.partialorder %v5439_v5, %v327_v33  ;;  %vm332_vm10 = vcmp.lt.f32.partialorder %v5444_v18, %v327_v33 }
  0x21   :  { %16932 = vst [vmem:[#allocation12_spill] sm:$0xff] %v5465_v35  ;;  %vm333_vm11 = vmand %vm321_vm1, %vm329_vm7  ;;  %v354_v38 = vsub.f32 1.0, %v353_v34  ;;  %v5478_v39 = vadd.f32 %v308_v30, %v206_v27  ;;  %v5480_v40 = vadd.f32 %v309_v31, %v206_v27  ;;  %v16307_v41 = vmov 0   ;;  %460 = vxpose.xlu2.b32.start [1/16] %v5470_v36, 128 }
  0x22   :  { %16933 = vst [vmem:[#allocation13_spill] sm:$0xff] %v5472_v37  ;;  %vm334_vm12 = vmand %vm322_vm3, %vm330_vm8  ;;  %v337_v42 = vsel %vm333_vm11, 1, %v16307_v41  ;;  %vm357_vm13 = vweird.f32 %v5437_v4  ;;  %v68_v45 = vstv %s5429_s11  ;;  %v74_v46 = vstv %s5435_s12 }
  0x23   :  { %16934 = vst [vmem:[#allocation14_spill] sm:$0xff] %v5478_v39  ;;  %vm335_vm14 = vmand %vm323_vm5, %vm331_vm9  ;;  %v338_v43 = vsel %vm334_vm12, 1, %v16307_v41  ;;  %v355_v44 = vmul.f32 %v5437_v4, %v354_v38  ;;  %v80_v49 = vstv %s5442_s13  ;;  %v86_v51 = vstv %s5447_s14 }
  0x24   :  { %16935 = vst [vmem:[#allocation15_spill] sm:$0xff] %v5480_v40  ;;  %vm336_vm15 = vmand %vm324_vm6, %vm332_vm10  ;;  %v339_v47 = vsel %vm335_vm14, 1, %v16307_v41  ;;  %v341_v48 = vrot.slane %v338_v43, 7  ;;  %v92_v55 = vstv %s5450_s15  ;;  %v98_v60 = vstv %s5455_s16 }
  0x25   :  { %v340_v52 = vsel %vm336_vm15, 1, %v16307_v41  ;;  %v342_v53 = vrot.slane %v339_v47, 6  ;;  %v356_v54 = vadd.f32 %v5437_v4, %v355_v44  ;;  %v104_v61 = vstv %s5458_s17 }
  0x26   :  { %v343_v58 = vrot.slane %v340_v52, 5  ;;  %v345_v59 = vsel %vm16330_vm0, %v337_v42, %v341_v48  ;;  %v224_v62 = vmul.f32 %v5355_v7, %v68_v45  ;;  %v225_v63 = vmul.f32 %v5359_v8, %v68_v45 }
  0x27   :  { %v5513_v50 = vsel %vm357_vm13, %v5437_v4, %v356_v54  ;;  %v226_v1 = vmul.f32 %v5361_v9, %v74_v46  ;;  %vm314_vm1 = vcmp.gt.f32.partialorder %v5342_v0, 0.01  ;;  %vm315_vm3 = vcmp.lt.f32.partialorder %v5342_v0, 0.99 }
  0x28   :  { %v347_v2 = vsel %vm16329_vm2, %v342_v53, %v343_v58  ;;  %v359_v3 = vmul.f32 %v5513_v50, %v5465_v35  ;;  %v360_v6 = vmul.f32 %v5513_v50, %v5472_v37  ;;  %v361_v12 = vmul.f32 %v5513_v50, %v5478_v39  ;;  %vm316_vm10 = vmand %vm314_vm1, %vm315_vm3 }
  0x29   :  { %v349_v7 = vsel %vm16328_vm4, %v345_v59, %v347_v2  ;;  %v362_v8 = vmul.f32 %v5513_v50, %v5480_v40  ;;  %v227_v9 = vmul.f32 %v5363_v10, %v74_v46  ;;  %v237_v4 = vmul.f32 %v5365_v11, %v80_v49  ;;  %461 = vxpose.xlu2.b32.cont [2/16] %v5470_v36, 128 }
  0x2a   :  { %v363_v16 = vadd.f32 12582912.0, %v359_v3  ;;  %v364_v19 = vadd.f32 12582912.0, %v360_v6  ;;  %v365_v20 = vadd.f32 12582912.0, %v361_v12  ;;  %v110_v22 = vstv %s5486_s18 }
  0x2b   :  { %v366_v23 = vadd.f32 12582912.0, %v362_v8  ;;  %v238_v24 = vmul.f32 %v5367_v13, %v80_v49  ;;  %v239_v26 = vmul.f32 %v5369_v14, %v86_v51  ;;  %v240_v27 = vmul.f32 %v5371_v15, %v86_v51 }
  0x2c   :  { %vm350_vm5 = vcmp.ne.s32.totalorder %v349_v7, 0  ;;  %v5209_v28 = vadd.f32 -12582912.0, %v363_v16  ;;  %v5210_v30 = vadd.f32 -12582912.0, %v364_v19  ;;  %v5211_v31 = vadd.f32 -12582912.0, %v365_v20 }
  0x2d   :  { %v241_v10 = vadd.f32 %v237_v4, %v224_v62  ;;  %v5212_v32 = vadd.f32 -12582912.0, %v366_v23  ;;  %v242_v11 = vadd.f32 %v238_v24, %v225_v63  ;;  %v243_v33 = vadd.f32 %v239_v26, %v226_v1  ;;  %vm5570_vm11 = vmand %vm316_vm10, %vm350_vm5 }
  0x2e   :  { %v244_v34 = vadd.f32 %v240_v27, %v227_v9  ;;  %vm5217_vm6 = vcmp.lt.s32.totalorder %v5209_v28, 0  ;;  %v5218_v38 = vceil.f32 %v5209_v28  ;;  %v5219_v42 = vfloor.f32 %v5209_v28 }
  0x2f   :  { %vm5222_vm7 = vcmp.lt.s32.totalorder %v5210_v30, 0  ;;  %v5223_v43 = vceil.f32 %v5210_v30  ;;  %v5224_v44 = vfloor.f32 %v5210_v30  ;;  %vm5227_vm8 = vcmp.lt.s32.totalorder %v5211_v31, 0 }
  0x30   :  { %v5228_v13 = vceil.f32 %v5211_v31  ;;  %v5220_v14 = vsel %vm5217_vm6, %v5218_v38, %v5219_v42  ;;  %v5229_v45 = vfloor.f32 %v5211_v31  ;;  %vm5232_vm9 = vcmp.lt.s32.totalorder %v5212_v32, 0 }
  0x31   :  { %v5233_v15 = vceil.f32 %v5212_v32  ;;  %v5537_v46 = vcvt.f32.s32 %v5220_v14  ;;  %v5225_v47 = vsel %vm5222_vm7, %v5223_v43, %v5224_v44  ;;  %v5234_v48 = vfloor.f32 %v5212_v32  ;;  %462 = vxpose.xlu2.b32.cont [3/16] %v5470_v36, 128 }
  0x32   :  { %v254_v49 = vmul.f32 %v5373_v17, %v92_v55  ;;  %v5540_v51 = vcvt.f32.s32 %v5225_v47  ;;  %v5230_v52 = vsel %vm5227_vm8, %v5228_v13, %v5229_v45  ;;  %v255_v53 = vmul.f32 %v5379_v21, %v92_v55 }
  0x33   :  { %16936 = vst [vmem:[#allocation16_spill] sm:$0xff] %v5537_v46  ;;  %v256_v54 = vmul.f32 %v5386_v25, %v98_v60  ;;  %v5545_v58 = vcvt.f32.s32 %v5230_v52  ;;  %v5235_v59 = vsel %vm5232_vm9, %v5233_v15, %v5234_v48  ;;  %v257_v62 = vmul.f32 %v5393_v29, %v98_v60 }
  0x34   :  { %16937 = vst [vmem:[#allocation17_spill] sm:$0xff] %v5540_v51  ;;  %v258_v63 = vadd.f32 %v254_v49, %v241_v10  ;;  %v5552_v17 = vcvt.f32.s32 %v5235_v59  ;;  %v1868_v21 = vrot.slane %v5540_v51, 7  ;;  %v259_v55 = vadd.f32 %v255_v53, %v242_v11 }
  0x35   :  { %16938 = vst [vmem:[#allocation18_spill] sm:$0xff] %v5545_v58  ;;  %v260_v25 = vadd.f32 %v256_v54, %v243_v33  ;;  %v1869_v1 = vrot.slane %v5545_v58, 6  ;;  %v261_v2 = vadd.f32 %v257_v62, %v244_v34  ;;  %v16943_v12 = vmov 0 }
  0x36   :  { %16939 = vst [vmem:[#allocation19_spill] sm:$0xff] %v5552_v17  ;;  %v5558_v3 = vadd.f32 %v258_v63, %v104_v61  ;;  %v1870_v29 = vrot.slane %v5552_v17, 5  ;;  %v1871_v60 = vsel %vm16330_vm0, %v5537_v46, %v1868_v21  ;;  %v5565_v0 = vadd.f32 %v259_v55, %v104_v61 }
  0x37   :  { %v5567_v6 = vadd.f32 %v260_v25, %v110_v22  ;;  %v16944_v12 = vsel %vm5570_vm11, 4294967295, %v16943_v12  ;;  %v5574_v8 = vadd.f32 %v261_v2, %v110_v22 }
  0x38   :  { %16940 = vst [vmem:[#allocation20_spill] sm:$0xff] %v5558_v3  ;;  %v375_v9 = vmul.f32 %v5513_v50, %v5558_v3  ;;  %v1872_v4 = vsel %vm16329_vm2, %v1869_v1, %v1870_v29  ;;  %v376_v16 = vmul.f32 %v5513_v50, %v5565_v0 }
  0x39   :  { %16941 = vst [vmem:[#allocation21_spill] sm:$0xff] %v5565_v0  ;;  %v377_v61 = vmul.f32 %v5513_v50, %v5567_v6  ;;  %v5584_v19 = vsel %vm16328_vm4, %v1871_v60, %v1872_v4  ;;  %v378_v7 = vmul.f32 %v5513_v50, %v5574_v8  ;;  %463 = vxpose.xlu2.b32.cont [4/16] %v5470_v36, 128 }
  0x3a   :  { %16942 = vst [vmem:[#allocation22_spill] sm:$0xff] %v5567_v6  ;;  %v379_v20 = vadd.f32 12582912.0, %v375_v9  ;;  %v1874_v22 = vsel %vm5570_vm11, %v5584_v19, 1073741824  ;;  %v380_v23 = vadd.f32 12582912.0, %v376_v16 }
  0x3b   :  { %16945 = vst [vmem:[#allocation23_spill] sm:$0xff] %v16944_v12  ;;  %v381_v24 = vadd.f32 12582912.0, %v377_v61  ;;  %v1875_v26 = vperm.slane %v1874_v22, 0  ;;  %v1876_v27 = vperm.slane %v1874_v22, 1  ;;  %v1877_v28 = vperm.slane %v1874_v22, 2 }
  0x3c   :  { %16946 = vst [vmem:[#allocation24_spill] sm:$0xff] %v5574_v8  ;;  %v1878_v30 = vperm.slane %v1874_v22, 3  ;;  %v382_v31 = vadd.f32 12582912.0, %v378_v7  ;;  %v5213_v10 = vadd.f32 -12582912.0, %v379_v20  ;;  %v5214_v32 = vadd.f32 -12582912.0, %v380_v23 }
  0x3d   :  { %16947 = vst [vmem:[#allocation25_spill] sm:$0xff] %v5584_v19  ;;  %v5215_v11 = vadd.f32 -12582912.0, %v381_v24  ;;  %v1879_v33 = vsel %vm16330_vm0, %v1875_v26, 2147483647  ;;  %v1880_v50 = vsel %vm16330_vm0, %v1876_v27, 2147483647 }
  0x3e   :  { %v1881_v34 = vsel %vm16330_vm0, %v1877_v28, 2147483647  ;;  %v1882_v38 = vsel %vm16330_vm0, %v1878_v30, 2147483647  ;;  %vm1883_vm12 = vcmp.lt.s32.totalorder %v1879_v33, %v1880_v50  ;;  %v5216_v42 = vadd.f32 -12582912.0, %v382_v31 }
  0x3f   :  { %vm5237_vm13 = vcmp.lt.s32.totalorder %v5213_v10, 0  ;;  %v1884_v43 = vsel %vm1883_vm12, %v1879_v33, %v1880_v50  ;;  %vm1885_vm14 = vcmp.lt.s32.totalorder %v1881_v34, %v1882_v38  ;;  %v5238_v44 = vceil.f32 %v5213_v10 }
  0x40   :  { %v5239_v13 = vfloor.f32 %v5213_v10  ;;  %v1886_v14 = vsel %vm1885_vm14, %v1881_v34, %v1882_v38  ;;  %vm5242_vm15 = vcmp.lt.s32.totalorder %v5214_v32, 0  ;;  %v5243_v45 = vceil.f32 %v5214_v32 }
  0x41   :  { %v5244_v15 = vfloor.f32 %v5214_v32  ;;  %vm1887_vm1 = vcmp.lt.s32.totalorder %v1884_v43, %v1886_v14  ;;  %vm5247_vm3 = vcmp.lt.s32.totalorder %v5215_v11, 0  ;;  %v5248_v47 = vceil.f32 %v5215_v11  ;;  %464 = vxpose.xlu2.b32.cont [5/16] %v5470_v36, 128 }
  0x42   :  { %v1888_v48 = vsel %vm1887_vm1, %v1884_v43, %v1886_v14  ;;  %v5240_v49 = vsel %vm5237_vm13, %v5238_v44, %v5239_v13  ;;  %v5249_v53 = vfloor.f32 %v5215_v11  ;;  %vm5252_vm5 = vcmp.lt.s32.totalorder %v5216_v42, 0 }
  0x43   :  { %v5245_v52 = vsel %vm5242_vm15, %v5243_v45, %v5244_v15  ;;  %v1890_v54 = vshra.s32 %v1888_v48, 16  ;;  %v5253_v62 = vceil.f32 %v5216_v42  ;;  %v5254_v21 = vfloor.f32 %v5216_v42 }
  0x44   :  { %v5597_v59 = vcvt.f32.s32 %v5245_v52  ;;  %v5250_v63 = vsel %vm5247_vm3, %v5248_v47, %v5249_v53  ;;  %v5599_v25 = vcvt.f32.s32 %v5240_v49  ;;  %v5629_v34 = vperm.slane %v5422_v57, 0 }
  0x45   :  { %v1892_v55 = vcvt.s32.f32 %v1890_v54  ;;  %v5601_v1 = vcvt.f32.s32 %v5250_v63  ;;  %v5255_v29 = vsel %vm5252_vm5, %v5253_v62, %v5254_v21  ;;  %v1889_v38 = vand.u32 65535, %v1888_v48 }
  0x46   :  { %16948 = vst [vmem:[#allocation26_spill] sm:$0xff] %v5597_v59  ;;  %v1907_v2 = vrot.slane %v5597_v59, 7  ;;  %v5604_v60 = vcvt.f32.s32 %v5255_v29 }
  0x47   :  { %16949 = vst [vmem:[#allocation27_spill] sm:$0xff] %v5599_v25  ;;  %1893 = vmin.xlane.f32.xlu0 %v1892_v55  ;;  %v1908_v9 = vrot.slane %v5601_v1, 6  ;;  %v1891_v42 = vcvt.s32.f32 %v1889_v38 }
  0x48   :  { %16950 = vst [vmem:[#allocation28_spill] sm:$0xff] %v5601_v1  ;;  %v1909_v4 = vrot.slane %v5604_v60, 5  ;;  %v1910_v16 = vsel %vm16330_vm0, %v5599_v25, %v1907_v2 }
  0x49   :  { %16951 = vst [vmem:[#allocation29_spill] sm:$0xff] %v5604_v60  ;;  %465 = vxpose.xlu2.b32.cont [6/16] %v5470_v36, 128 }
  0x4a   :  { %v1911_v61 = vsel %vm16329_vm2, %v1908_v9, %v1909_v4 }
  0x4b   :  { %v5613_v7 = vsel %vm16328_vm4, %v1910_v16, %v1911_v61 }
  0x4c   :  { %16952 = vst [vmem:[#allocation30_spill] sm:$0xff] %v5613_v7  ;;  %v1913_v20 = vsel %vm5570_vm11, %v5613_v7, 1073741824  ;;  %v17034_v7 = vmov 0 }
  0x4d   :  { %v1914_v22 = vperm.slane %v1913_v20, 0  ;;  %v1915_v23 = vperm.slane %v1913_v20, 1  ;;  %v1916_v24 = vperm.slane %v1913_v20, 2  ;;  %v1917_v26 = vperm.slane %v1913_v20, 3 }
  0x4f   :  { %v1918_v27 = vsel %vm16330_vm0, %v1914_v22, 2147483647  ;;  %v1919_v28 = vsel %vm16330_vm0, %v1915_v23, 2147483647  ;;  %v1920_v30 = vsel %vm16330_vm0, %v1916_v24, 2147483647 }
  0x50   :  { %v1921_v31 = vsel %vm16330_vm0, %v1917_v26, 2147483647  ;;  %vm1922_vm6 = vcmp.lt.s32.totalorder %v1918_v27, %v1919_v28 }
  0x51   :  { %v1923_v10 = vsel %vm1922_vm6, %v1918_v27, %v1919_v28  ;;  %vm1924_vm7 = vcmp.lt.s32.totalorder %v1920_v30, %v1921_v31  ;;  %466 = vxpose.xlu2.b32.cont [7/16] %v5470_v36, 128 }
  0x52   :  { %v1925_v32 = vsel %vm1924_vm7, %v1920_v30, %v1921_v31 }
  0x53   :  { %vm1926_vm8 = vcmp.lt.s32.totalorder %v1923_v10, %v1925_v32 }
  0x54   :  { %v1927_v11 = vsel %vm1926_vm8, %v1923_v10, %v1925_v32 }
  0x55   :  { %v1929_v33 = vshra.s32 %v1927_v11, 16  ;;  %v1928_v13 = vand.u32 65535, %v1927_v11 }
  0x57   :  { %v1931_v50 = vcvt.s32.f32 %v1929_v33  ;;  %v1930_v14 = vcvt.s32.f32 %v1928_v13 }
  0x59   :  { %1932 = vmin.xlane.f32.xlu0 %v1931_v50  ;;  %467 = vxpose.xlu2.b32.cont [8/16] %v5470_v36, 128 }
  0x61   :  { %468 = vxpose.xlu2.b32.cont [9/16] %v5470_v36, 128 }
  0x69   :  { %469 = vxpose.xlu2.b32.cont [10/16] %v5470_v36, 128 }
  0x71   :  { %470 = vxpose.xlu2.b32.cont [11/16] %v5470_v36, 128 }
  0x79   :  { %471 = vxpose.xlu2.b32.cont [12/16] %v5470_v36, 128 }
  0x81   :  { %472 = vxpose.xlu2.b32.cont [13/16] %v5470_v36, 128 }
  0x82   :  { %492 = vxpose.xlu0.b32.start [1/16] %v5629_v34, 128 }
  0x89   :  { %473 = vxpose.xlu2.b32.cont [14/16] %v5470_v36, 128 }
  0x8a   :  { %493 = vxpose.xlu0.b32.cont [2/16] %v5629_v34, 128 }
  0x91   :  { %474 = vxpose.xlu2.b32.cont [15/16] %v5470_v36, 128 }
  0x92   :  { %494 = vxpose.xlu0.b32.cont [3/16] %v5629_v34, 128 }
  0x99   :  { %475 = vxpose.xlu2.b32.end [16/16] %v5470_v36, 128 }
  0x9a   :  { %495 = vxpose.xlu0.b32.cont [4/16] %v5629_v34, 128 }
  0xa2   :  { %496 = vxpose.xlu0.b32.cont [5/16] %v5629_v34, 128 }
  0xaa   :  { %497 = vxpose.xlu0.b32.cont [6/16] %v5629_v34, 128 }
  0xb2   :  { %498 = vxpose.xlu0.b32.cont [7/16] %v5629_v34, 128 }
  0xba   :  { %v1894_v43 = vpop.xlane.xlu0 %1893  ;;  %499 = vxpose.xlu0.b32.cont [8/16] %v5629_v34, 128  ;;  %v5651_v47 = vpop.trf.xlu2 }
  0xbb   :  { %vm1895_vm9 = vcmp.eq.f32.partialorder %v1892_v55, %v1894_v43  ;;  %v1900_v49 = vcvt.f32.s32 %v1894_v43  ;;  %vm844_vm7 = vcmp.eq.f32.partialorder %v5651_v47, %v5470_v36 }
  0xbc   :  { %v1896_v44 = vsel %vm1895_vm9, %v1891_v42, inf  ;;  %vm588_vm9 = vcmp.gt.f32.partialorder %v5651_v47, %v5470_v36 }
  0xbd   :  { %1897 = vmin.xlane.f32.xlu1 %v1896_v44  ;;  %v1901_v53 = vshll.u32 %v1900_v49, 16 }
  0xc2   :  { %500 = vxpose.xlu0.b32.cont [9/16] %v5629_v34, 128  ;;  %v5653_v48 = vpop.trf.xlu2 }
  0xca   :  { %501 = vxpose.xlu0.b32.cont [10/16] %v5629_v34, 128  ;;  %v5655_v63 = vpop.trf.xlu2 }
  0xcc   :  { %v1933_v45 = vpop.xlane.xlu0 %1932 }
  0xcd   :  { %vm1934_vm10 = vcmp.eq.f32.partialorder %v1931_v50, %v1933_v45  ;;  %v1939_v33 = vcvt.f32.s32 %v1933_v45 }
  0xce   :  { %v1935_v15 = vsel %vm1934_vm10, %v1930_v14, inf  ;;  %vm589_vm10 = vcmp.gt.f32.partialorder %v5651_v47, %v5629_v34 }
  0xcf   :  { %1936 = vmin.xlane.f32.xlu1 %v1935_v15  ;;  %v1940_v13 = vshll.u32 %v1939_v33, 16 }
  0xd2   :  { %502 = vxpose.xlu0.b32.cont [11/16] %v5629_v34, 128  ;;  %v5678_v30 = vpop.trf.xlu2 }
  0xda   :  { %503 = vxpose.xlu0.b32.cont [12/16] %v5629_v34, 128  ;;  %v5684_v15 = vpop.trf.xlu2 }
  0xe2   :  { %504 = vxpose.xlu0.b32.cont [13/16] %v5629_v34, 128 }
  0xea   :  { %505 = vxpose.xlu0.b32.cont [14/16] %v5629_v34, 128 }
  0xf2   :  { %506 = vxpose.xlu0.b32.cont [15/16] %v5629_v34, 128 }
  0xfa   :  { %507 = vxpose.xlu0.b32.end [16/16] %v5629_v34, 128 }
 0x130   :  { %v1898_v52 = vpop.xlane.xlu1 %1897 }
 0x131   :  { %v1899_v54 = vcvt.f32.s32 %v1898_v52 }
 0x133   :  { %v1902_v62 = vadd.s32 %v1901_v53, %v1899_v54 }
 0x135   :  { %v5658_v21 = vsub.s32 %v5540_v51, %v1902_v62  ;;  %v5661_v55 = vsub.s32 %v5545_v58, %v1902_v62  ;;  %v5664_v2 = vsub.s32 %v5552_v17, %v1902_v62  ;;  %v5667_v29 = vsub.s32 %v5537_v46, %v1902_v62 }
 0x137   :  { %v1946_v9 = vrot.slane %v5658_v21, 7  ;;  %v1947_v4 = vrot.slane %v5661_v55, 6  ;;  %v1948_v16 = vrot.slane %v5664_v2, 5 }
 0x139   :  { %v1949_v61 = vsel %vm16330_vm0, %v5667_v29, %v1946_v9  ;;  %v1950_v20 = vsel %vm16329_vm2, %v1947_v4, %v1948_v16 }
 0x13a   :  { %v1951_v22 = vsel %vm16328_vm4, %v1949_v61, %v1950_v20 }
 0x13b   :  { %v1952_v23 = vsel %vm5570_vm11, %v1951_v22, 0  ;;  %v5704_v22 = vpop.trf.xlu2 }
 0x13c   :  { %v1953_v24 = vperm.slane %v1952_v23, 0  ;;  %v1954_v26 = vperm.slane %v1952_v23, 1  ;;  %v1955_v27 = vperm.slane %v1952_v23, 2  ;;  %v1956_v28 = vperm.slane %v1952_v23, 3 }
 0x13e   :  { %v1957_v31 = vsel %vm16330_vm0, %v1953_v24, 2147483648  ;;  %v1958_v10 = vsel %vm16330_vm0, %v1954_v26, 2147483648  ;;  %v1959_v32 = vsel %vm16330_vm0, %v1955_v27, 2147483648  ;;  %v1960_v11 = vsel %vm16330_vm0, %v1956_v28, 2147483648 }
 0x13f   :  { %vm1961_vm12 = vcmp.gt.s32.totalorder %v1957_v31, %v1958_v10  ;;  %vm1963_vm13 = vcmp.gt.s32.totalorder %v1959_v32, %v1960_v11 }
 0x140   :  { %v1962_v50 = vsel %vm1961_vm12, %v1957_v31, %v1958_v10  ;;  %v1964_v38 = vsel %vm1963_vm13, %v1959_v32, %v1960_v11  ;;  %vm845_vm13 = vcmp.eq.f32.partialorder %v5651_v47, %v5629_v34 }
 0x141   :  { %vm1965_vm14 = vcmp.gt.s32.totalorder %v1962_v50, %v1964_v38 }
 0x142   :  { %v1966_v42 = vsel %vm1965_vm14, %v1962_v50, %v1964_v38  ;;  %v1937_v43 = vpop.xlane.xlu1 %1936  ;;  %vm848_vm14 = vcmp.eq.f32.partialorder %v5653_v48, %v5470_v36 }
 0x143   :  { %v1968_v44 = vshra.s32 %v1966_v42, 16  ;;  %v1938_v14 = vcvt.f32.s32 %v1937_v43 }
 0x145   :  { %v1970_v49 = vcvt.s32.f32 %v1968_v44  ;;  %v1941_v52 = vadd.s32 %v1940_v13, %v1938_v14  ;;  %v5713_v13 = vpop.trf.xlu2 }
 0x147   :  { %1971 = vmax.xlane.f32.xlu2 %v1970_v49  ;;  %v5687_v53 = vsub.s32 %v5597_v59, %v1941_v52  ;;  %v5690_v54 = vsub.s32 %v5601_v1, %v1941_v52  ;;  %v5693_v45 = vsub.s32 %v5604_v60, %v1941_v52  ;;  %v5696_v62 = vsub.s32 %v5599_v25, %v1941_v52 }
 0x149   :  { %v1981_v9 = vrot.slane %v5687_v53, 7  ;;  %v1982_v4 = vrot.slane %v5690_v54, 6  ;;  %v1983_v16 = vrot.slane %v5693_v45, 5 }
 0x14b   :  { %v1984_v61 = vsel %vm16330_vm0, %v5696_v62, %v1981_v9  ;;  %v1985_v20 = vsel %vm16329_vm2, %v1982_v4, %v1983_v16 }
 0x14c   :  { %v1986_v23 = vsel %vm16328_vm4, %v1984_v61, %v1985_v20 }
 0x14d   :  { %v1987_v24 = vsel %vm5570_vm11, %v1986_v23, 0  ;;  %v5715_v52 = vpop.trf.xlu2 }
 0x14e   :  { %v1988_v26 = vperm.slane %v1987_v24, 0  ;;  %v1989_v27 = vperm.slane %v1987_v24, 1  ;;  %v1990_v28 = vperm.slane %v1987_v24, 2  ;;  %v1991_v31 = vperm.slane %v1987_v24, 3  ;;  %v5729_v24 = vpop.trf.xlu0 }
 0x14f   :  { %16953 = vst [vmem:[#allocation31_spill] sm:$0xff] %v5729_v24 }
 0x150   :  { %v1992_v10 = vsel %vm16330_vm0, %v1988_v26, 2147483648  ;;  %v1993_v32 = vsel %vm16330_vm0, %v1989_v27, 2147483648  ;;  %v1994_v11 = vsel %vm16330_vm0, %v1990_v28, 2147483648  ;;  %v1995_v33 = vsel %vm16330_vm0, %v1991_v31, 2147483648 }
 0x151   :  { %vm1996_vm15 = vcmp.gt.s32.totalorder %v1992_v10, %v1993_v32  ;;  %vm1998_vm1 = vcmp.gt.s32.totalorder %v1994_v11, %v1995_v33 }
 0x152   :  { %v1997_v50 = vsel %vm1996_vm15, %v1992_v10, %v1993_v32  ;;  %v1999_v38 = vsel %vm1998_vm1, %v1994_v11, %v1995_v33  ;;  %v1967_v10 = vand.u32 65535, %v1966_v42  ;;  %v5748_v42 = vperm.slane %v5439_v5, 0 }
 0x153   :  { %vm2000_vm3 = vcmp.gt.s32.totalorder %v1997_v50, %v1999_v38 }
 0x154   :  { %v2001_v43 = vsel %vm2000_vm3, %v1997_v50, %v1999_v38  ;;  %v1969_v11 = vcvt.s32.f32 %v1967_v10  ;;  %16962 = vst [vmem:[#allocation40_spill] sm:$0xff] %v5748_v42  ;;  %vm590_vm1 = vcmp.gt.f32.partialorder %v5651_v47, %v5748_v42  ;;  %vm846_vm3 = vcmp.eq.f32.partialorder %v5651_v47, %v5748_v42 }
 0x155   :  { %v2003_v44 = vshra.s32 %v2001_v43, 16  ;;  %v5717_v9 = vpop.trf.xlu2 }
 0x156   :  { %v5733_v27 = vpop.trf.xlu0 }
 0x157   :  { %v2005_v14 = vcvt.s32.f32 %v2003_v44  ;;  %16955 = vst [vmem:[#allocation33_spill] sm:$0xff] %v5733_v27  ;;  %v2002_v44 = vand.u32 65535, %v2001_v43 }
 0x159   :  { %2006 = vmax.xlane.f32.xlu2 %v2005_v14  ;;  %v2004_v35 = vcvt.s32.f32 %v2002_v44 }
 0x15d   :  { %v5719_v4 = vpop.trf.xlu2 }
 0x15e   :  { %v5737_v31 = vpop.trf.xlu0 }
 0x15f   :  { %16957 = vst [vmem:[#allocation35_spill] sm:$0xff] %v5737_v31 }
 0x165   :  { %v5721_v16 = vpop.trf.xlu2 }
 0x166   :  { %v5739_v50 = vpop.trf.xlu0 }
 0x167   :  { %16958 = vst [vmem:[#allocation36_spill] sm:$0xff] %v5739_v50 }
 0x16d   :  { %v5723_v61 = vpop.trf.xlu2 }
 0x16e   :  { %v5741_v38 = vpop.trf.xlu0 }
 0x16f   :  { %16959 = vst [vmem:[#allocation37_spill] sm:$0xff] %v5741_v38 }
 0x175   :  { %v5725_v20 = vpop.trf.xlu2 }
 0x176   :  { %v5743_v39 = vpop.trf.xlu0 }
 0x177   :  { %16960 = vst [vmem:[#allocation38_spill] sm:$0xff] %v5743_v39 }
 0x17d   :  { %v5727_v23 = vpop.trf.xlu2 }
 0x17e   :  { %v5745_v37 = vpop.trf.xlu0 }
 0x17f   :  { %16961 = vst [vmem:[#allocation39_spill] sm:$0xff] %v5745_v37 }
 0x185   :  { %v5731_v26 = vpop.trf.xlu2 }
 0x186   :  { %16954 = vst [vmem:[#allocation32_spill] sm:$0xff] %v5731_v26  ;;  %v17264_v26 = vmov 0 }
 0x18d   :  { %v5735_v28 = vpop.trf.xlu2 }
 0x18e   :  { %16956 = vst [vmem:[#allocation34_spill] sm:$0xff] %v5735_v28 }
 0x1ba   :  { %v1972_v32 = vpop.xlane.xlu2 %1971 }
 0x1bb   :  { %vm1973_vm5 = vcmp.eq.f32.partialorder %v1970_v49, %v1972_v32  ;;  %v5750_v49 = vpop.trf.xlu0  ;;  %v1978_v5 = vcvt.f32.s32 %v1972_v32 }
 0x1bc   :  { %v1974_v33 = vsel %vm1973_vm5, %v1969_v11, -inf  ;;  %16963 = vst [vmem:[#allocation41_spill] sm:$0xff] %v5750_v49 }
 0x1bd   :  { %1975 = vmax.xlane.f32.xlu0 %v1974_v33  ;;  %v1979_v6 = vshll.u32 %v1978_v5, 16 }
 0x1c3   :  { %v5754_v10 = vpop.trf.xlu0 }
 0x1c4   :  { %16964 = vst [vmem:[#allocation42_spill] sm:$0xff] %v5754_v10 }
 0x1cb   :  { %v5757_v43 = vpop.trf.xlu0 }
 0x1cc   :  { %v2007_v41 = vpop.xlane.xlu2 %2006  ;;  %16965 = vst [vmem:[#allocation43_spill] sm:$0xff] %v5757_v43 }
 0x1cd   :  { %vm2008_vm6 = vcmp.eq.f32.partialorder %v2005_v14, %v2007_v41  ;;  %v2013_v57 = vcvt.f32.s32 %v2007_v41 }
 0x1ce   :  { %v2009_v40 = vsel %vm2008_vm6, %v2004_v35, -inf }
 0x1cf   :  { %2010 = vmax.xlane.f32.xlu1 %v2009_v40  ;;  %v2014_v0 = vshll.u32 %v2013_v57, 16 }
 0x1d3   :  { %v5760_v35 = vpop.trf.xlu0 }
 0x1d4   :  { %16966 = vst [vmem:[#allocation44_spill] sm:$0xff] %v5760_v35  ;;  %v17302_v35 = vmov 0 }
 0x1db   :  { %v5763_v40 = vpop.trf.xlu0 }
 0x1dc   :  { %16967 = vst [vmem:[#allocation45_spill] sm:$0xff] %v5763_v40 }
 0x1e3   :  { %v5767_v14 = vpop.trf.xlu0 }
 0x1e4   :  { %16968 = vst [vmem:[#allocation46_spill] sm:$0xff] %v5767_v14 }
 0x1e6   :  { %524 = vxpose.xlu0.b32.start [1/16] %v5748_v42, 128 }
 0x1eb   :  { %v5770_v11 = vpop.trf.xlu0 }
 0x1ec   :  { %16969 = vst [vmem:[#allocation47_spill] sm:$0xff] %v5770_v11  ;;  %v17250_v11 = vmov 0 }
 0x1ee   :  { %525 = vxpose.xlu0.b32.cont [2/16] %v5748_v42, 128 }
 0x1f3   :  { %v5773_v33 = vpop.trf.xlu0 }
 0x1f4   :  { %16970 = vst [vmem:[#allocation48_spill] sm:$0xff] %v5773_v33 }
 0x1f6   :  { %526 = vxpose.xlu0.b32.cont [3/16] %v5748_v42, 128 }
 0x1fb   :  { %v5776_v44 = vpop.trf.xlu0 }
 0x1fc   :  { %16971 = vst [vmem:[#allocation49_spill] sm:$0xff] %v5776_v44 }
 0x1fe   :  { %527 = vxpose.xlu0.b32.cont [4/16] %v5748_v42, 128 }
 0x206   :  { %528 = vxpose.xlu0.b32.cont [5/16] %v5748_v42, 128 }
 0x20e   :  { %529 = vxpose.xlu0.b32.cont [6/16] %v5748_v42, 128 }
 0x216   :  { %530 = vxpose.xlu0.b32.cont [7/16] %v5748_v42, 128 }
 0x21e   :  { %531 = vxpose.xlu0.b32.cont [8/16] %v5748_v42, 128 }
 0x226   :  { %532 = vxpose.xlu0.b32.cont [9/16] %v5748_v42, 128 }
 0x22e   :  { %533 = vxpose.xlu0.b32.cont [10/16] %v5748_v42, 128 }
 0x230   :  { %v1976_v56 = vpop.xlane.xlu0 %1975 }
 0x231   :  { %v1977_v3 = vcvt.f32.s32 %v1976_v56 }
 0x233   :  { %v1980_v1 = vadd.s32 %v1979_v6, %v1977_v3 }
 0x236   :  { %534 = vxpose.xlu0.b32.cont [11/16] %v5748_v42, 128 }
 0x23e   :  { %535 = vxpose.xlu0.b32.cont [12/16] %v5748_v42, 128 }
 0x242   :  { %v2011_v8 = vpop.xlane.xlu1 %2010 }
 0x243   :  { %v2012_v60 = vcvt.f32.s32 %v2011_v8 }
 0x245   :  { %v2015_v59 = vadd.s32 %v2014_v0, %v2012_v60  ;;  %v5850_v60 = vperm.slane %v5444_v18, 0 }
 0x246   :  { %536 = vxpose.xlu0.b32.cont [13/16] %v5748_v42, 128 }
 0x247   :  { %v2016_v25 = vmul.u32 %v2015_v59, %v1980_v1  ;;  %v2022_v46 = vmul.u32 %v2015_v59, %v5658_v21  ;;  %v2023_v17 = vmul.u32 %v2015_v59, %v5661_v55  ;;  %v2024_v58 = vmul.u32 %v2015_v59, %v5664_v2 }
 0x248   :  { %v2021_v56 = vmul.u32 %v2015_v59, %v5667_v29  ;;  %v16339_v55 = vlaneseq  ;;  %vm591_vm5 = vcmp.gt.f32.partialorder %v5651_v47, %v5850_v60  ;;  %vm847_vm6 = vcmp.eq.f32.partialorder %v5651_v47, %v5850_v60 }
 0x249   :  { %v2027_v51 = vadd.s32 %v2023_v17, %v2016_v25  ;;  %v2030_v32 = vadd.s32 %v2022_v46, %v5687_v53  ;;  %v2028_v41 = vadd.s32 %v2024_v58, %v2016_v25  ;;  %v16983_v47 = vmov 0 }
 0x24a   :  { %v2029_v6 = vadd.s32 %v2021_v56, %v5696_v62  ;;  %v5865_v2 = vand.u32 127, %v16339_v55  ;;  %v5868_v29 = vshrl.u32 %v16339_v55, 7  ;;  %v16974_v62 = vmov 0 }
 0x24b   :  { %v2031_v57 = vadd.s32 %v2027_v51, %v5690_v54  ;;  %v2032_v5 = vadd.s32 %v2028_v41, %v5693_v45  ;;  %v2033_v3 = vrot.slane %v2030_v32, 7  ;;  %v16977_v32 = vmov 0 }
 0x24c   :  { %16972 = vst [vmem:[#allocation50_spill] sm:$0xff] %v5865_v2  ;;  %vm1100_vm8 = vcmp.lt.s32.totalorder %v5868_v29, %v5865_v2  ;;  %v393_v54 = vadd.s32 8, %v5868_v29  ;;  %v394_v56 = vadd.s32 16, %v5868_v29  ;;  %v16980_v41 = vmov 0 }
 0x24d   :  { %v2034_v0 = vrot.slane %v2031_v57, 6  ;;  %v2035_v8 = vrot.slane %v2032_v5, 5  ;;  %v2036_v1 = vsel %vm16330_vm0, %v2029_v6, %v2033_v3  ;;  %16973 = vst [vmem:[#allocation51_spill] sm:$0xff] %v5868_v29  ;;  %vm1356_vm12 = vmand %vm844_vm7, %vm1100_vm8  ;;  %v16986_v5 = vmov 0 }
 0x24e   :  { %537 = vxpose.xlu0.b32.cont [14/16] %v5748_v42, 128  ;;  %vm1104_vm15 = vcmp.lt.s32.totalorder %v393_v54, %v5865_v2  ;;  %vm5898_vm7 = vmor %vm588_vm9, %vm1356_vm12  ;;  %vm593_vm9 = vcmp.gt.f32.partialorder %v5653_v48, %v5629_v34  ;;  %v16989_v3 = vmov 0  ;;  %v16995_v6 = vmov 0 }
 0x24f   :  { %v2037_v17 = vsel %vm16329_vm2, %v2034_v0, %v2035_v8  ;;  %v16975_v62 = vsel %vm5898_vm7, 4294967295, %v16974_v62  ;;  %vm5902_vm8 = vmor %vm589_vm10, %vm845_vm13  ;;  %vm849_vm10 = vcmp.eq.f32.partialorder %v5653_v48, %v5629_v34  ;;  %vm594_vm13 = vcmp.gt.f32.partialorder %v5653_v48, %v5748_v42 }
 0x250   :  { %v2038_v46 = vsel %vm16328_vm4, %v2036_v1, %v2037_v17  ;;  %16976 = vst [vmem:[#allocation52_spill] sm:$0xff] %v16975_v62  ;;  %v16978_v32 = vsel %vm5902_vm8, 4294967295, %v16977_v32  ;;  %vm592_vm4 = vcmp.gt.f32.partialorder %v5653_v48, %v5470_v36  ;;  %vm1360_vm2 = vmand %vm848_vm14, %vm1104_vm15  ;;  %vm850_vm14 = vcmp.eq.f32.partialorder %v5653_v48, %v5748_v42 }
 0x251   :  { %v2039_v58 = vsel %vm5570_vm11, %v2038_v46, 4294967295  ;;  %16979 = vst [vmem:[#allocation53_spill] sm:$0xff] %v16978_v32  ;;  %vm5909_vm0 = vmor %vm590_vm1, %vm846_vm3  ;;  %vm595_vm15 = vcmp.gt.f32.partialorder %v5653_v48, %v5850_v60  ;;  %vm851_vm1 = vcmp.eq.f32.partialorder %v5653_v48, %v5850_v60  ;;  %vm1108_vm11 = vcmp.lt.s32.totalorder %v394_v56, %v5865_v2 }
 0x252   :  { %v5795_v59 = vperm.slane %v2039_v58, 0  ;;  %v5797_v51 = vperm.slane %v2039_v58, 1  ;;  %v5805_v25 = vperm.slane %v2039_v58, 3  ;;  %v5852_v21 = vperm.slane %v2039_v58, 2  ;;  %vm5917_vm12 = vmor %vm591_vm5, %vm847_vm6 }
 0x253   :  { %v16981_v41 = vsel %vm5909_vm0, 4294967295, %v16980_v41  ;;  %v16984_v47 = vsel %vm5917_vm12, 4294967295, %v16983_v47  ;;  %vm5929_vm3 = vmor %vm592_vm4, %vm1360_vm2  ;;  %vm852_vm6 = vcmp.eq.f32.partialorder %v5655_v63, %v5470_v36  ;;  %v16992_v48 = vmov 0 }
 0x254   :  { %2076 = vxpose.xlu2.b32.start [1/16] %v5797_v51, 128  ;;  %2044 = vxpose.xlu1.b32.start [1/16] %v5795_v59, 128  ;;  %16982 = vst [vmem:[#allocation54_spill] sm:$0xff] %v16981_v41  ;;  %v16987_v5 = vsel %vm5929_vm3, 4294967295, %v16986_v5  ;;  %vm5933_vm5 = vmor %vm593_vm9, %vm849_vm10  ;;  %v395_v58 = vadd.s32 24, %v5868_v29  ;;  %v17005_v54 = vmov 0  ;;  %v17014_v8 = vmov 0 }
 0x255   :  { %16985 = vst [vmem:[#allocation55_spill] sm:$0xff] %v16984_v47  ;;  %v16990_v3 = vsel %vm5933_vm5, 4294967295, %v16989_v3  ;;  %vm5943_vm0 = vmor %vm594_vm13, %vm850_vm14  ;;  %vm596_vm14 = vcmp.gt.f32.partialorder %v5655_v63, %v5470_v36  ;;  %v17017_v55 = vmov 0   ;;  %v6455_v44 = vadd.s32 128, %v5865_v2 }
 0x256   :  { %538 = vxpose.xlu0.b32.cont [15/16] %v5748_v42, 128  ;;  %16988 = vst [vmem:[#allocation56_spill] sm:$0xff] %v16987_v5  ;;  %v16993_v48 = vsel %vm5943_vm0, 4294967295, %v16992_v48  ;;  %vm5950_vm4 = vmor %vm595_vm15, %vm851_vm1  ;;  %vm853_vm1 = vcmp.eq.f32.partialorder %v5655_v63, %v5629_v34  ;;  %v7096_v40 = vadd.s32 192, %v5868_v29 }
 0x257   :  { %16991 = vst [vmem:[#allocation57_spill] sm:$0xff] %v16990_v3  ;;  %v16996_v6 = vsel %vm5950_vm4, 4294967295, %v16995_v6  ;;  %vm5955_vm10 = vmand %vm852_vm6, %vm1108_vm11 }
 0x258   :  { %16994 = vst [vmem:[#allocation58_spill] sm:$0xff] %v16993_v48 }
 0x259   :  { %16997 = vst [vmem:[#allocation59_spill] sm:$0xff] %v16996_v6 }
 0x25c   :  { %2077 = vxpose.xlu2.b32.cont [2/16] %v5797_v51, 128  ;;  %2045 = vxpose.xlu1.b32.cont [2/16] %v5795_v59, 128 }
 0x25e   :  { %539 = vxpose.xlu0.b32.end [16/16] %v5748_v42, 128 }
 0x264   :  { %2078 = vxpose.xlu2.b32.cont [3/16] %v5797_v51, 128  ;;  %2046 = vxpose.xlu1.b32.cont [3/16] %v5795_v59, 128 }
 0x266   :  { %2140 = vxpose.xlu0.b32.start [1/16] %v5805_v25, 128 }
 0x26c   :  { %2079 = vxpose.xlu2.b32.cont [4/16] %v5797_v51, 128  ;;  %2047 = vxpose.xlu1.b32.cont [4/16] %v5795_v59, 128 }
 0x26e   :  { %2141 = vxpose.xlu0.b32.cont [2/16] %v5805_v25, 128 }
 0x274   :  { %2080 = vxpose.xlu2.b32.cont [5/16] %v5797_v51, 128  ;;  %2048 = vxpose.xlu1.b32.cont [5/16] %v5795_v59, 128 }
 0x276   :  { %2142 = vxpose.xlu0.b32.cont [3/16] %v5805_v25, 128 }
 0x27c   :  { %2081 = vxpose.xlu2.b32.cont [6/16] %v5797_v51, 128  ;;  %2049 = vxpose.xlu1.b32.cont [6/16] %v5795_v59, 128 }
 0x27e   :  { %2143 = vxpose.xlu0.b32.cont [4/16] %v5805_v25, 128 }
 0x284   :  { %2082 = vxpose.xlu2.b32.cont [7/16] %v5797_v51, 128  ;;  %2050 = vxpose.xlu1.b32.cont [7/16] %v5795_v59, 128 }
 0x286   :  { %2144 = vxpose.xlu0.b32.cont [5/16] %v5805_v25, 128 }
 0x28c   :  { %2083 = vxpose.xlu2.b32.cont [8/16] %v5797_v51, 128  ;;  %2051 = vxpose.xlu1.b32.cont [8/16] %v5795_v59, 128 }
 0x28e   :  { %2145 = vxpose.xlu0.b32.cont [6/16] %v5805_v25, 128 }
 0x294   :  { %2084 = vxpose.xlu2.b32.cont [9/16] %v5797_v51, 128  ;;  %2052 = vxpose.xlu1.b32.cont [9/16] %v5795_v59, 128 }
 0x296   :  { %2146 = vxpose.xlu0.b32.cont [7/16] %v5805_v25, 128 }
 0x29c   :  { %2085 = vxpose.xlu2.b32.cont [10/16] %v5797_v51, 128  ;;  %2053 = vxpose.xlu1.b32.cont [10/16] %v5795_v59, 128 }
 0x29e   :  { %2147 = vxpose.xlu0.b32.cont [8/16] %v5805_v25, 128 }
 0x2a4   :  { %2086 = vxpose.xlu2.b32.cont [11/16] %v5797_v51, 128  ;;  %2054 = vxpose.xlu1.b32.cont [11/16] %v5795_v59, 128 }
 0x2a6   :  { %2148 = vxpose.xlu0.b32.cont [9/16] %v5805_v25, 128 }
 0x2ac   :  { %2087 = vxpose.xlu2.b32.cont [12/16] %v5797_v51, 128  ;;  %2055 = vxpose.xlu1.b32.cont [12/16] %v5795_v59, 128 }
 0x2ae   :  { %2149 = vxpose.xlu0.b32.cont [10/16] %v5805_v25, 128 }
 0x2b4   :  { %2088 = vxpose.xlu2.b32.cont [13/16] %v5797_v51, 128  ;;  %2056 = vxpose.xlu1.b32.cont [13/16] %v5795_v59, 128 }
 0x2b6   :  { %2150 = vxpose.xlu0.b32.cont [11/16] %v5805_v25, 128 }
 0x2bc   :  { %2089 = vxpose.xlu2.b32.cont [14/16] %v5797_v51, 128  ;;  %2057 = vxpose.xlu1.b32.cont [14/16] %v5795_v59, 128 }
 0x2be   :  { %2151 = vxpose.xlu0.b32.cont [12/16] %v5805_v25, 128 }
 0x2c4   :  { %2090 = vxpose.xlu2.b32.cont [15/16] %v5797_v51, 128  ;;  %2058 = vxpose.xlu1.b32.cont [15/16] %v5795_v59, 128 }
 0x2c6   :  { %2152 = vxpose.xlu0.b32.cont [13/16] %v5805_v25, 128 }
 0x2cc   :  { %2091 = vxpose.xlu2.b32.end [16/16] %v5797_v51, 128  ;;  %2059 = vxpose.xlu1.b32.end [16/16] %v5795_v59, 128 }
 0x2ce   :  { %2153 = vxpose.xlu0.b32.cont [14/16] %v5805_v25, 128 }
 0x2d4   :  { %556 = vxpose.xlu2.b32.start [1/16] %v5850_v60, 128  ;;  %2108 = vxpose.xlu1.b32.start [1/16] %v5852_v21, 128 }
 0x2d6   :  { %2154 = vxpose.xlu0.b32.cont [15/16] %v5805_v25, 128 }
 0x2dc   :  { %557 = vxpose.xlu2.b32.cont [2/16] %v5850_v60, 128  ;;  %2109 = vxpose.xlu1.b32.cont [2/16] %v5852_v21, 128 }
 0x2de   :  { %2155 = vxpose.xlu0.b32.end [16/16] %v5805_v25, 128 }
 0x2e4   :  { %558 = vxpose.xlu2.b32.cont [3/16] %v5850_v60, 128  ;;  %2110 = vxpose.xlu1.b32.cont [3/16] %v5852_v21, 128 }
 0x2ec   :  { %559 = vxpose.xlu2.b32.cont [4/16] %v5850_v60, 128  ;;  %2111 = vxpose.xlu1.b32.cont [4/16] %v5852_v21, 128 }
 0x2ed   :  { %v5870_v53 = vpop.trf.xlu2 }
 0x2f4   :  { %560 = vxpose.xlu2.b32.cont [5/16] %v5850_v60, 128  ;;  %2112 = vxpose.xlu1.b32.cont [5/16] %v5852_v21, 128 }
 0x2f5   :  { %v5888_v45 = vpop.trf.xlu2 }
 0x2f8   :  { %v2060_v57 = vpop.trf.xlu1 }
 0x2f9   :  { %vm2172_vm12 = vcmp.eq.s32.totalorder %v2060_v57, %v5795_v59  ;;  %vm2173_vm2 = vcmp.eq.s32.totalorder %v2060_v57, %v5797_v51  ;;  %vm2174_vm9 = vcmp.eq.s32.totalorder %v2060_v57, %v5852_v21  ;;  %vm2175_vm5 = vcmp.eq.s32.totalorder %v2060_v57, %v5805_v25 }
 0x2fa   :  { %vm5962_vm13 = vmand %vm2172_vm12, %vm5898_vm7  ;;  %vm17004_vm12 = vnez %v16981_v41  ;;  %vm17007_vm7 = vnez %v16984_v47  ;;  %v17010_v57 = vmov 0  ;;  %v6029_v47 = vpop.trf.xlu0 }
 0x2fb   :  { %vm5970_vm15 = vmand %vm2173_vm2, %vm5902_vm8  ;;  %v2684_v18 = vsel %vm5962_vm13, 1, %v17017_v55  ;;  %17019 = vst [vmem:[#allocation62_spill] sm:$0xff] %v6029_v47  ;;  %v6437_v47 = vadd.s32 80, %v5868_v29 }
 0x2fc   :  { %561 = vxpose.xlu2.b32.cont [6/16] %v5850_v60, 128  ;;  %2113 = vxpose.xlu1.b32.cont [6/16] %v5852_v21, 128  ;;  %vm5981_vm6 = vmand %vm2174_vm9, %vm17004_vm12  ;;  %v2685_v1 = vsel %vm5970_vm15, 1, %v17017_v55 }
 0x2fd   :  { %v5948_v0 = vpop.trf.xlu2  ;;  %v17006_v54 = vsel %vm5981_vm6, 4294967295, %v17005_v54  ;;  %vm5989_vm4 = vmand %vm2175_vm5, %vm17007_vm7 }
 0x2fe   :  { %vm5998_vm9 = vmor %vm596_vm14, %vm5955_vm10  ;;  %vm17013_vm10 = vcmp.gt.f32.partialorder %v5655_v63, %v5629_v34  ;;  %v2687_v48 = vsel %vm5989_vm4, 1, %v17017_v55 }
 0x2ff   :  { %v17011_v57 = vsel %vm5998_vm9, 4294967295, %v17010_v57  ;;  %vm6014_vm14 = vmor %vm17013_vm10, %vm853_vm1  ;;  %vm17023_vm1 = vnez %v16996_v6  ;;  %vm17024_vm10 = vcmp.lt.s32.totalorder %v395_v58, %v5865_v2  ;;  %v396_v58 = vadd.s32 32, %v5868_v29 }
 0x300   :  { %v2061_v46 = vpop.trf.xlu1  ;;  %17012 = vst [vmem:[#allocation60_spill] sm:$0xff] %v17011_v57  ;;  %v17015_v8 = vsel %vm6014_vm14, 4294967295, %v17014_v8  ;;  %vm17020_vm13 = vmmov %vm5943_vm0  ;;  %vm17022_vm0 = vnez %v17006_v54 }
 0x301   :  { %vm2176_vm2 = vcmp.eq.s32.totalorder %v2061_v46, %v5795_v59  ;;  %vm2177_vm8 = vcmp.eq.s32.totalorder %v2061_v46, %v5797_v51  ;;  %vm2179_vm12 = vcmp.eq.s32.totalorder %v2061_v46, %v5805_v25  ;;  %17016 = vst [vmem:[#allocation61_spill] sm:$0xff] %v17015_v8  ;;  %v2686_v32 = vsel %vm17022_vm0, 1, %v17017_v55 }
 0x302   :  { %vm2432_vm6 = vmand %vm2176_vm2, %vm5929_vm3  ;;  %vm17018_vm2 = vnez %v16990_v3  ;;  %v397_v8 = vadd.s32 40, %v5868_v29 }
 0x303   :  { %vm2433_vm5 = vmand %vm2177_vm8, %vm17018_vm2  ;;  %v2688_v5 = vsel %vm2432_vm6, 1, %v17017_v55  ;;  %vm17021_vm8 = vcmp.eq.s32.totalorder %v2061_v46, %v5852_v21  ;;  %v17028_v46 = vmov 0 }
 0x304   :  { %562 = vxpose.xlu2.b32.cont [7/16] %v5850_v60, 128  ;;  %2114 = vxpose.xlu1.b32.cont [7/16] %v5852_v21, 128  ;;  %vm2434_vm6 = vmand %vm17021_vm8, %vm17020_vm13  ;;  %v2689_v3 = vsel %vm2433_vm5, 1, %v17017_v55  ;;  %vm17026_vm5 = vcmp.eq.f32.partialorder %v5655_v63, %v5748_v42  ;;  %vm17027_vm13 = vcmp.gt.f32.partialorder %v5655_v63, %v5748_v42 }
 0x305   :  { %v6039_v41 = vpop.trf.xlu2  ;;  %vm2435_vm15 = vmand %vm2179_vm12, %vm17023_vm1  ;;  %v2690_v17 = vsel %vm2434_vm6, 1, %v17017_v55  ;;  %vm3075_vm8 = vcmp.gt.s32.totalorder %v2685_v1, %v2689_v3  ;;  %vm17025_vm12 = vcmp.eq.f32.partialorder %v5678_v30, %v5470_v36 }
 0x306   :  { %v2691_v62 = vsel %vm2435_vm15, 1, %v17017_v55  ;;  %vm3210_vm11 = vcmp.gt.s32.totalorder %v2686_v32, %v2690_v17  ;;  %vm1368_vm6 = vmand %vm17025_vm12, %vm17024_vm10  ;;  %vm17031_vm15 = vcmp.gt.s32.totalorder %v2684_v18, %v2688_v5  ;;  %v3076_v56 = vsel %vm3075_vm8, %v2685_v1, %v2689_v3 }
 0x307   :  { %vm3345_vm1 = vcmp.gt.s32.totalorder %v2687_v48, %v2691_v62  ;;  %vm6070_vm4 = vmor %vm17027_vm13, %vm17026_vm5  ;;  %v2941_v54 = vsel %vm17031_vm15, %v2684_v18, %v2688_v5  ;;  %vm17032_vm10 = vcmp.eq.f32.partialorder %v5655_v63, %v5850_v60  ;;  %vm17033_vm12 = vcmp.gt.f32.partialorder %v5655_v63, %v5850_v60 }
 0x308   :  { %v17029_v46 = vsel %vm6070_vm4, 4294967295, %v17028_v46  ;;  %v2062_v6 = vpop.trf.xlu1  ;;  %vm6082_vm0 = vmor %vm17033_vm12, %vm17032_vm10  ;;  %v3211_v19 = vsel %vm3210_vm11, %v2686_v32, %v2690_v17  ;;  %v3346_v12 = vsel %vm3345_vm1, %v2687_v48, %v2691_v62  ;;  %vm17037_vm15 = vcmp.gt.f32.partialorder %v5678_v30, %v5470_v36  ;;  %v6137_v48 = vpop.trf.xlu0 }
 0x309   :  { %17030 = vst [vmem:[#allocation63_spill] sm:$0xff] %v17029_v46  ;;  %v17035_v7 = vsel %vm6082_vm0, 4294967295, %v17034_v7  ;;  %vm2180_vm13 = vcmp.eq.s32.totalorder %v2062_v6, %v5795_v59  ;;  %vm2181_vm5 = vcmp.eq.s32.totalorder %v2062_v6, %v5797_v51  ;;  %vm2182_vm8 = vcmp.eq.s32.totalorder %v2062_v6, %v5852_v21  ;;  %vm6092_vm2 = vmor %vm17037_vm15, %vm1368_vm6 }
 0x30a   :  { %17036 = vst [vmem:[#allocation64_spill] sm:$0xff] %v17035_v7  ;;  %v17038_v18 = vmov 0  ;;  %vm2436_vm12 = vmand %vm2180_vm13, %vm5998_vm9  ;;  %vm17041_vm11 = vcmp.eq.f32.partialorder %v5678_v30, %v5629_v34  ;;  %vm17042_vm1 = vcmp.gt.f32.partialorder %v5678_v30, %v5629_v34  ;;  %v17043_v63 = vmov 0 }
 0x30b   :  { %v17039_v18 = vsel %vm6092_vm2, 4294967295, %v17038_v18  ;;  %vm6105_vm3 = vmor %vm17042_vm1, %vm17041_vm11  ;;  %v2692_v62 = vsel %vm2436_vm12, 1, %v17017_v55  ;;  %vm858_vm10 = vcmp.eq.f32.partialorder %v5678_v30, %v5748_v42  ;;  %vm17046_vm13 = vcmp.eq.s32.totalorder %v2062_v6, %v5805_v25  ;;  %17047 = vst [vmem:[#allocation67_spill] sm:$0xff] %v6137_v48 }
 0x30c   :  { %17040 = vst [vmem:[#allocation65_spill] sm:$0xff] %v17039_v18  ;;  %v17044_v63 = vsel %vm6105_vm3, 4294967295, %v17043_v63  ;;  %vm2437_vm6 = vmand %vm2181_vm5, %vm6014_vm14  ;;  %563 = vxpose.xlu2.b32.cont [8/16] %v5850_v60, 128  ;;  %2115 = vxpose.xlu1.b32.cont [8/16] %v5852_v21, 128  ;;  %v17051_v6 = vmov 0  ;;  %vm17055_vm5 = vcmp.gt.f32.partialorder %v5678_v30, %v5850_v60  ;;  %v17108_v18 = vmov 0 }
 0x30d   :  { %17045 = vst [vmem:[#allocation66_spill] sm:$0xff] %v17044_v63  ;;  %vm2438_vm1 = vmand %vm2182_vm8, %vm6070_vm4  ;;  %v2693_v32 = vsel %vm2437_vm6, 1, %v17017_v55  ;;  %v6122_v5 = vpop.trf.xlu2  ;;  %vm859_vm8 = vcmp.eq.f32.partialorder %v5678_v30, %v5850_v60  ;;  %vm17050_vm6 = vcmp.gt.f32.partialorder %v5678_v30, %v5748_v42 }
 0x30e   :  { %vm2439_vm15 = vmand %vm17046_vm13, %vm6082_vm0  ;;  %v2694_v3 = vsel %vm2438_vm1, 1, %v17017_v55  ;;  %vm3077_vm11 = vcmp.gt.s32.totalorder %v3076_v56, %v2693_v32  ;;  %vm17048_vm1 = vcmp.lt.s32.totalorder %v396_v58, %v5865_v2  ;;  %vm17049_vm0 = vcmp.eq.f32.partialorder %v5684_v15, %v5470_v36 }
 0x30f   :  { %v2695_v1 = vsel %vm2439_vm15, 1, %v17017_v55  ;;  %vm3212_vm12 = vcmp.gt.s32.totalorder %v3211_v19, %v2694_v3  ;;  %vm1372_vm4 = vmand %vm17049_vm0, %vm17048_vm1  ;;  %vm17054_vm15 = vcmp.gt.s32.totalorder %v2941_v54, %v2692_v62  ;;  %v3078_v7 = vsel %vm3077_vm11, %v3076_v56, %v2693_v32 }
 0x310   :  { %vm3347_vm14 = vcmp.gt.s32.totalorder %v3346_v12, %v2695_v1  ;;  %vm6152_vm9 = vmor %vm17050_vm6, %vm858_vm10  ;;  %v2943_v17 = vsel %vm17054_vm15, %v2941_v54, %v2692_v62  ;;  %v2063_v46 = vpop.trf.xlu1  ;;  %v17056_v58 = vmov 0  ;;  %v3213_v57 = vsel %vm3212_vm12, %v3211_v19, %v2694_v3 }
 0x311   :  { %v17052_v6 = vsel %vm6152_vm9, 4294967295, %v17051_v6  ;;  %vm6161_vm13 = vmor %vm17055_vm5, %vm859_vm8  ;;  %v3348_v48 = vsel %vm3347_vm14, %v3346_v12, %v2695_v1  ;;  %vm2184_vm0 = vcmp.eq.s32.totalorder %v2063_v46, %v5795_v59  ;;  %vm2185_vm10 = vcmp.eq.s32.totalorder %v2063_v46, %v5797_v51 }
 0x312   :  { %17053 = vst [vmem:[#allocation68_spill] sm:$0xff] %v17052_v6  ;;  %v17057_v58 = vsel %vm6161_vm13, 4294967295, %v17056_v58  ;;  %vm2186_vm6 = vcmp.eq.s32.totalorder %v2063_v46, %v5852_v21  ;;  %vm17059_vm11 = vcmp.gt.f32.partialorder %v5684_v15, %v5470_v36  ;;  %v17060_v54 = vmov 0  ;;  %vm2440_vm8 = vmand %vm2184_vm0, %vm6092_vm2 }
 0x313   :  { %17058 = vst [vmem:[#allocation69_spill] sm:$0xff] %v17057_v58  ;;  %vm6171_vm1 = vmor %vm17059_vm11, %vm1372_vm4  ;;  %vm2187_vm5 = vcmp.eq.s32.totalorder %v2063_v46, %v5805_v25  ;;  %vm17063_vm12 = vcmp.eq.f32.partialorder %v5684_v15, %v5629_v34  ;;  %vm17064_vm15 = vcmp.gt.f32.partialorder %v5684_v15, %v5629_v34  ;;  %v17065_v12 = vmov 0 }
 0x314   :  { %v17061_v54 = vsel %vm6171_vm1, 4294967295, %v17060_v54  ;;  %vm6186_vm7 = vmor %vm17064_vm15, %vm17063_vm12  ;;  %v2696_v19 = vsel %vm2440_vm8, 1, %v17017_v55  ;;  %564 = vxpose.xlu2.b32.cont [9/16] %v5850_v60, 128  ;;  %2116 = vxpose.xlu1.b32.cont [9/16] %v5852_v21, 128  ;;  %vm1120_vm12 = vcmp.lt.s32.totalorder %v397_v8, %v5865_v2  ;;  %vm862_vm8 = vcmp.eq.f32.partialorder %v5684_v15, %v5748_v42 }
 0x315   :  { %17062 = vst [vmem:[#allocation70_spill] sm:$0xff] %v17061_v54  ;;  %v17066_v12 = vsel %vm6186_vm7, 4294967295, %v17065_v12  ;;  %vm2441_vm4 = vmand %vm2185_vm10, %vm6105_vm3  ;;  %vm2944_vm10 = vcmp.gt.s32.totalorder %v2943_v17, %v2696_v19  ;;  %v6203_v56 = vpop.trf.xlu2  ;;  %v398_v8 = vadd.s32 48, %v5868_v29 }
 0x316   :  { %17067 = vst [vmem:[#allocation71_spill] sm:$0xff] %v17066_v12  ;;  %vm2442_vm15 = vmand %vm2186_vm6, %vm6152_vm9  ;;  %v2697_v30 = vsel %vm2441_vm4, 1, %v17017_v55  ;;  %v6214_v32 = vsel %vm2944_vm10, %v2943_v17, %v2696_v19  ;;  %vm17070_vm4 = vcmp.gt.f32.partialorder %v5684_v15, %v5748_v42  ;;  %v17071_v17 = vmov 0  ;;  %v6240_v19 = vpop.trf.xlu0 }
 0x317   :  { %17068 = vst [vmem:[#allocation72_spill] sm:$0xff] %v6203_v56  ;;  %vm2443_vm0 = vmand %vm2187_vm5, %vm6161_vm13  ;;  %v2698_v62 = vsel %vm2442_vm15, 1, %v17017_v55  ;;  %vm3079_vm6 = vcmp.gt.s32.totalorder %v3078_v7, %v2697_v30  ;;  %vm17069_vm5 = vcmp.eq.f32.partialorder %v5704_v22, %v5470_v36  ;;  %v6365_v12 = vadd.s32 64, %v5868_v29 }
 0x318   :  { %v2699_v3 = vsel %vm2443_vm0, 1, %v17017_v55  ;;  %v6219_v1 = vsel %vm3079_vm6, %v3078_v7, %v2697_v30  ;;  %vm3214_vm11 = vcmp.gt.s32.totalorder %v3213_v57, %v2698_v62  ;;  %vm1376_vm15 = vmand %vm17069_vm5, %vm1120_vm12  ;;  %v2064_v7 = vpop.trf.xlu1  ;;  %vm865_vm0 = vcmp.eq.f32.partialorder %v5704_v22, %v5629_v34  ;;  %17074 = vst [vmem:[#allocation74_spill] sm:$0xff] %v6240_v19 }
 0x319   :  { %v6228_v46 = vsel %vm3214_vm11, %v3213_v57, %v2698_v62  ;;  %vm3349_vm10 = vcmp.gt.s32.totalorder %v3348_v48, %v2699_v3  ;;  %vm6233_vm13 = vmor %vm17070_vm4, %vm862_vm8  ;;  %vm17075_vm11 = vcmp.eq.f32.partialorder %v5684_v15, %v5850_v60  ;;  %vm17076_vm12 = vcmp.gt.f32.partialorder %v5684_v15, %v5850_v60 }
 0x31a   :  { %v17072_v17 = vsel %vm6233_vm13, 4294967295, %v17071_v17  ;;  %v6242_v30 = vsel %vm3349_vm10, %v3348_v48, %v2699_v3  ;;  %vm6250_vm8 = vmor %vm17076_vm12, %vm17075_vm11  ;;  %v17077_v57 = vmov 0  ;;  %vm2188_vm6 = vcmp.eq.s32.totalorder %v2064_v7, %v5795_v59 }
 0x31b   :  { %17073 = vst [vmem:[#allocation73_spill] sm:$0xff] %v17072_v17  ;;  %v17078_v57 = vsel %vm6250_vm8, 4294967295, %v17077_v57  ;;  %vm2189_vm4 = vcmp.eq.s32.totalorder %v2064_v7, %v5797_v51  ;;  %vm2190_vm5 = vcmp.eq.s32.totalorder %v2064_v7, %v5852_v21  ;;  %vm17080_vm10 = vcmp.gt.f32.partialorder %v5704_v22, %v5470_v36  ;;  %vm6267_vm11 = vmand %vm2188_vm6, %vm6171_vm1 }
 0x31c   :  { %17079 = vst [vmem:[#allocation75_spill] sm:$0xff] %v17078_v57  ;;  %vm6260_vm14 = vmor %vm17080_vm10, %vm1376_vm15  ;;  %v17081_v48 = vmov 0  ;;  %vm17086_vm15 = vcmp.gt.f32.partialorder %v5704_v22, %v5629_v34  ;;  %v17087_v62 = vmov 0  ;;  %v6283_v3 = vadd.s32 56, %v5868_v29  ;;  %565 = vxpose.xlu2.b32.cont [10/16] %v5850_v60, 128  ;;  %2117 = vxpose.xlu1.b32.cont [10/16] %v5852_v21, 128 }
 0x31d   :  { %v17082_v48 = vsel %vm6260_vm14, 4294967295, %v17081_v48  ;;  %vm6278_vm10 = vmor %vm17086_vm15, %vm865_vm0  ;;  %vm1124_vm15 = vcmp.lt.s32.totalorder %v398_v8, %v5865_v2  ;;  %v2700_v17 = vsel %vm6267_vm11, 1, %v17017_v55  ;;  %v6323_v58 = vpop.trf.xlu2  ;;  %vm17098_vm11 = vcmp.eq.f32.partialorder %v5713_v13, %v5470_v36 }
 0x31e   :  { %17083 = vst [vmem:[#allocation76_spill] sm:$0xff] %v17082_v48  ;;  %v17088_v62 = vsel %vm6278_vm10, 4294967295, %v17087_v62  ;;  %vm6287_vm6 = vmand %vm2189_vm4, %vm6186_vm7  ;;  %vm17094_vm7 = vcmp.eq.s32.totalorder %v2064_v7, %v5805_v25  ;;  %v17103_v57 = vmov 0  ;;  %v6385_v8 = vadd.s32 72, %v5868_v29  ;;  %v6403_v19 = vpop.trf.xlu0 }
 0x31f   :  { %17089 = vst [vmem:[#allocation77_spill] sm:$0xff] %v17088_v62  ;;  %vm6300_vm12 = vmand %vm2190_vm5, %vm6233_vm13  ;;  %v2701_v7 = vsel %vm6287_vm6, 1, %v17017_v55  ;;  %vm17101_vm6 = vcmp.eq.f32.partialorder %v5704_v22, %v5748_v42  ;;  %v17118_v15 = vmov 0  ;;  %v6452_v62 = vadd.s32 88, %v5868_v29 }
 0x320   :  { %vm6316_vm5 = vmand %vm17094_vm7, %vm6250_vm8  ;;  %17097 = vst [vmem:[#allocation78_spill] sm:$0xff] %v6323_v58  ;;  %v2702_v54 = vsel %vm6300_vm12, 1, %v17017_v55  ;;  %vm17102_vm7 = vcmp.gt.f32.partialorder %v5704_v22, %v5748_v42  ;;  %v2065_v6 = vpop.trf.xlu1 }
 0x321   :  { %vm6339_vm4 = vmand %vm17098_vm11, %vm1124_vm15  ;;  %v2703_v63 = vsel %vm6316_vm5, 1, %v17017_v55  ;;  %vm2192_vm3 = vcmp.eq.s32.totalorder %v2065_v6, %v5795_v59  ;;  %vm2193_vm12 = vcmp.eq.s32.totalorder %v2065_v6, %v5797_v51  ;;  %17115 = vst [vmem:[#allocation82_spill] sm:$0xff] %v6403_v19  ;;  %vm17127_vm11 = vcmp.eq.f32.partialorder %v5715_v52, %v5470_v36 }
 0x322   :  { %vm6356_vm15 = vmor %vm17102_vm7, %vm17101_vm6  ;;  %vm17106_vm7 = vcmp.eq.f32.partialorder %v5704_v22, %v5850_v60  ;;  %vm17107_vm6 = vcmp.gt.f32.partialorder %v5704_v22, %v5850_v60  ;;  %v17112_v22 = vmov 0  ;;  %vm3351_vm0 = vcmp.gt.s32.totalorder %v6242_v30, %v2703_v63 }
 0x323   :  { %v17104_v57 = vsel %vm6356_vm15, 4294967295, %v17103_v57  ;;  %vm6377_vm9 = vmor %vm17107_vm6, %vm17106_vm7  ;;  %vm17111_vm7 = vcmp.gt.f32.partialorder %v5713_v13, %v5470_v36  ;;  %v3352_v58 = vsel %vm3351_vm0, %v6242_v30, %v2703_v63  ;;  %vm17131_vm0 = vcmp.eq.f32.partialorder %v5713_v13, %v5748_v42 }
 0x324   :  { %17105 = vst [vmem:[#allocation79_spill] sm:$0xff] %v17104_v57  ;;  %v17109_v18 = vsel %vm6377_vm9, 4294967295, %v17108_v18  ;;  %vm6395_vm6 = vmor %vm17111_vm7, %vm6339_vm4  ;;  %vm17116_vm4 = vcmp.eq.f32.partialorder %v5713_v13, %v5629_v34  ;;  %vm17117_vm7 = vcmp.gt.f32.partialorder %v5713_v13, %v5629_v34  ;;  %566 = vxpose.xlu2.b32.cont [11/16] %v5850_v60, 128  ;;  %2118 = vxpose.xlu1.b32.cont [11/16] %v5852_v21, 128  ;;  %v6466_v57 = vadd.s32 128, %v5868_v29 }
 0x325   :  { %17110 = vst [vmem:[#allocation80_spill] sm:$0xff] %v17109_v18  ;;  %v17113_v22 = vsel %vm6395_vm6, 4294967295, %v17112_v22  ;;  %vm2448_vm13 = vmand %vm2192_vm3, %vm6260_vm14  ;;  %vm17121_vm3 = vcmp.gt.s32.totalorder %v6214_v32, %v2700_v17  ;;  %v17133_v63 = vmov 0  ;;  %v6502_v18 = vadd.s32 96, %v5868_v29 }
 0x326   :  { %17114 = vst [vmem:[#allocation81_spill] sm:$0xff] %v17113_v22  ;;  %vm6415_vm1 = vmor %vm17117_vm7, %vm17116_vm4  ;;  %v2947_v48 = vsel %vm17121_vm3, %v6214_v32, %v2700_v17  ;;  %v2704_v19 = vsel %vm2448_vm13, 1, %v17017_v55  ;;  %vm17122_vm3 = vcmp.gt.s32.totalorder %v6219_v1, %v2701_v7  ;;  %vm17123_vm13 = vcmp.eq.s32.totalorder %v2065_v6, %v5852_v21 }
 0x327   :  { %v17119_v15 = vsel %vm6415_vm1, 4294967295, %v17118_v15  ;;  %vm2449_vm5 = vmand %vm2193_vm12, %vm6278_vm10  ;;  %v3082_v32 = vsel %vm17122_vm3, %v6219_v1, %v2701_v7  ;;  %vm17124_vm3 = vcmp.gt.s32.totalorder %v6228_v46, %v2702_v54 }
 0x328   :  { %17120 = vst [vmem:[#allocation83_spill] sm:$0xff] %v17119_v15  ;;  %vm2450_vm12 = vmand %vm17123_vm13, %vm6356_vm15  ;;  %v2705_v17 = vsel %vm2449_vm5, 1, %v17017_v55  ;;  %v3217_v1 = vsel %vm17124_vm3, %v6228_v46, %v2702_v54  ;;  %vm17125_vm5 = vcmp.eq.s32.totalorder %v2065_v6, %v5805_v25  ;;  %vm17126_vm3 = vcmp.lt.s32.totalorder %v6283_v3, %v5865_v2  ;;  %v6484_v46 = vpop.trf.xlu2  ;;  %v2066_v54 = vpop.trf.xlu1 }
 0x329   :  { %vm2451_vm13 = vmand %vm17125_vm5, %vm6377_vm9  ;;  %v2706_v7 = vsel %vm2450_vm12, 1, %v17017_v55  ;;  %vm3083_vm4 = vcmp.gt.s32.totalorder %v3082_v32, %v2705_v17  ;;  %17130 = vst [vmem:[#allocation84_spill] sm:$0xff] %v6484_v46  ;;  %v6505_v46 = vadd.s32 136, %v5868_v29  ;;  %vm2197_vm15 = vcmp.eq.s32.totalorder %v2066_v54, %v5797_v51  ;;  %v6590_v15 = vpop.trf.xlu0 }
 0x32a   :  { %v2707_v28 = vsel %vm2451_vm13, 1, %v17017_v55  ;;  %vm3218_vm7 = vcmp.gt.s32.totalorder %v3217_v1, %v2706_v7  ;;  %vm6478_vm5 = vmand %vm17127_vm11, %vm17126_vm3  ;;  %vm17132_vm13 = vcmp.gt.f32.partialorder %v5713_v13, %v5748_v42  ;;  %vm17136_vm11 = vcmp.gt.s32.totalorder %v2947_v48, %v2704_v19  ;;  %17158 = vst [vmem:[#allocation92_spill] sm:$0xff] %v6590_v15 }
 0x32b   :  { %vm3353_vm8 = vcmp.gt.s32.totalorder %v3352_v58, %v2707_v28  ;;  %vm6492_vm9 = vmor %vm17132_vm13, %vm17131_vm0  ;;  %v2949_v30 = vsel %vm17136_vm11, %v2947_v48, %v2704_v19  ;;  %v3084_v3 = vsel %vm3083_vm4, %v3082_v32, %v2705_v17  ;;  %vm17137_vm0 = vcmp.eq.f32.partialorder %v5713_v13, %v5850_v60 }
 0x32c   :  { %v17134_v63 = vsel %vm6492_vm9, 4294967295, %v17133_v63  ;;  %vm17138_vm13 = vcmp.gt.f32.partialorder %v5713_v13, %v5850_v60  ;;  %v17139_v19 = vmov 0  ;;  %v3219_v48 = vsel %vm3218_vm7, %v3217_v1, %v2706_v7  ;;  %567 = vxpose.xlu2.b32.cont [12/16] %v5850_v60, 128  ;;  %2119 = vxpose.xlu1.b32.cont [12/16] %v5852_v21, 128 }
 0x32d   :  { %17135 = vst [vmem:[#allocation85_spill] sm:$0xff] %v17134_v63  ;;  %vm6513_vm4 = vmor %vm17138_vm13, %vm17137_vm0  ;;  %v3354_v32 = vsel %vm3353_vm8, %v3352_v58, %v2707_v28  ;;  %vm2196_vm11 = vcmp.eq.s32.totalorder %v2066_v54, %v5795_v59  ;;  %vm17142_vm0 = vcmp.gt.f32.partialorder %v5715_v52, %v5470_v36  ;;  %v17143_v13 = vmov 0 }
 0x32e   :  { %v17140_v19 = vsel %vm6513_vm4, 4294967295, %v17139_v19  ;;  %vm6529_vm13 = vmor %vm17142_vm0, %vm6478_vm5  ;;  %v6538_v28 = vadd.s32 104, %v5868_v29  ;;  %v6541_v58 = vadd.s32 112, %v5868_v29  ;;  %vm17147_vm7 = vcmp.eq.f32.partialorder %v5715_v52, %v5629_v34 }
 0x32f   :  { %17141 = vst [vmem:[#allocation86_spill] sm:$0xff] %v17140_v19  ;;  %v17144_v13 = vsel %vm6529_vm13, 4294967295, %v17143_v13  ;;  %vm2452_vm8 = vmand %vm2196_vm11, %vm6395_vm6  ;;  %vm17148_vm12 = vcmp.gt.f32.partialorder %v5715_v52, %v5629_v34  ;;  %v17149_v17 = vmov 0  ;;  %v6561_v1 = vadd.s32 120, %v5868_v29 }
 0x330   :  { %17145 = vst [vmem:[#allocation87_spill] sm:$0xff] %v17144_v13  ;;  %vm6556_vm10 = vmor %vm17148_vm12, %vm17147_vm7  ;;  %v2708_v7 = vsel %vm2452_vm8, 1, %v17017_v55  ;;  %vm17153_vm7 = vcmp.eq.f32.partialorder %v5715_v52, %v5748_v42  ;;  %vm17154_vm5 = vcmp.gt.f32.partialorder %v5715_v52, %v5748_v42  ;;  %v17155_v6 = vmov 0  ;;  %v2067_v33 = vpop.trf.xlu1 }
 0x331   :  { %17146 = vst [vmem:[#allocation88_spill] sm:$0xff] %v6541_v58  ;;  %v17150_v17 = vsel %vm6556_vm10, 4294967295, %v17149_v17  ;;  %vm2453_vm12 = vmand %vm2197_vm15, %vm6415_vm1  ;;  %vm17159_vm11 = vcmp.eq.s32.totalorder %v2066_v54, %v5852_v21  ;;  %vm17160_vm8 = vcmp.eq.f32.partialorder %v5715_v52, %v5850_v60  ;;  %vm17161_vm0 = vcmp.gt.f32.partialorder %v5715_v52, %v5850_v60 }
 0x332   :  { %17151 = vst [vmem:[#allocation89_spill] sm:$0xff] %v17150_v17  ;;  %vm6582_vm3 = vmor %vm17154_vm5, %vm17153_vm7  ;;  %v2709_v22 = vsel %vm2453_vm12, 1, %v17017_v55  ;;  %v17162_v15 = vmov 0  ;;  %v6618_v63 = vadd.s32 144, %v5868_v29  ;;  %vm17166_vm15 = vcmp.lt.s32.totalorder %v6365_v12, %v5865_v2 }
 0x333   :  { %17152 = vst [vmem:[#allocation90_spill] sm:$0xff] %v6561_v1  ;;  %v17156_v6 = vsel %vm6582_vm3, 4294967295, %v17155_v6  ;;  %vm2454_vm1 = vmand %vm17159_vm11, %vm6492_vm9  ;;  %vm17165_vm11 = vcmp.eq.s32.totalorder %v2066_v54, %v5805_v25  ;;  %vm3085_vm7 = vcmp.gt.s32.totalorder %v3084_v3, %v2709_v22  ;;  %vm17167_vm9 = vcmp.eq.f32.partialorder %v5717_v9, %v5470_v36 }
 0x334   :  { %17157 = vst [vmem:[#allocation91_spill] sm:$0xff] %v17156_v6  ;;  %vm6611_vm6 = vmor %vm17161_vm0, %vm17160_vm8  ;;  %v2710_v1 = vsel %vm2454_vm1, 1, %v17017_v55  ;;  %vm17170_vm8 = vcmp.gt.s32.totalorder %v2949_v30, %v2708_v7  ;;  %v6649_v12 = vsel %vm3085_vm7, %v3084_v3, %v2709_v22  ;;  %vm17171_vm1 = vcmp.lt.s32.totalorder %v6385_v8, %v5865_v2  ;;  %568 = vxpose.xlu2.b32.cont [13/16] %v5850_v60, 128 }
 0x335   :  { %v17163_v15 = vsel %vm6611_vm6, 4294967295, %v17162_v15  ;;  %vm2455_vm12 = vmand %vm17165_vm11, %vm6513_vm4  ;;  %vm3220_vm5 = vcmp.gt.s32.totalorder %v3219_v48, %v2710_v1  ;;  %v6647_v19 = vsel %vm17170_vm8, %v2949_v30, %v2708_v7  ;;  %vm17172_vm11 = vcmp.eq.f32.partialorder %v5719_v4, %v5470_v36  ;;  %2120 = vxpose.xlu1.b32.cont [13/16] %v5852_v21, 128 }
 0x336   :  { %17164 = vst [vmem:[#allocation93_spill] sm:$0xff] %v17163_v15  ;;  %v2711_v52 = vsel %vm2455_vm12, 1, %v17017_v55  ;;  %vm6636_vm14 = vmand %vm17167_vm9, %vm17166_vm15  ;;  %vm17175_vm7 = vcmp.lt.s32.totalorder %v6466_v57, %v6455_v44  ;;  %vm17176_vm8 = vcmp.eq.f32.partialorder %v5729_v24, %v5629_v34  ;;  %v6676_v30 = vadd.s32 152, %v5868_v29 }
 0x337   :  { %vm3355_vm0 = vcmp.gt.s32.totalorder %v3354_v32, %v2711_v52  ;;  %vm6661_vm12 = vmand %vm17172_vm11, %vm17171_vm1  ;;  %v6678_v8 = vsel %vm3220_vm5, %v3219_v48, %v2710_v1  ;;  %v6701_v48 = vpop.trf.xlu2  ;;  %vm2201_vm11 = vcmp.eq.s32.totalorder %v2067_v33, %v5797_v51  ;;  %vm17189_vm5 = vcmp.eq.f32.partialorder %v5717_v9, %v5629_v34 }
 0x338   :  { %vm6671_vm9 = vmand %vm17176_vm8, %vm17175_vm7  ;;  %v6680_v3 = vsel %vm3355_vm0, %v3354_v32, %v2711_v52  ;;  %vm17179_vm7 = vcmp.lt.s32.totalorder %v6505_v46, %v6455_v44  ;;  %vm17180_vm8 = vcmp.eq.f32.partialorder %v5733_v27, %v5629_v34  ;;  %17183 = vst [vmem:[#allocation94_spill] sm:$0xff] %v6701_v48  ;;  %v17185_v46 = vmov 0  ;;  %v2068_v58 = vpop.trf.xlu1 }
 0x339   :  { %vm6693_vm4 = vmand %vm17180_vm8, %vm17179_vm7  ;;  %vm17184_vm7 = vcmp.gt.f32.partialorder %v5717_v9, %v5470_v36  ;;  %vm17190_vm0 = vcmp.gt.f32.partialorder %v5717_v9, %v5629_v34  ;;  %v17191_v32 = vmov 0  ;;  %v17196_v7 = vmov 0 }
 0x33a   :  { %vm6710_vm8 = vmor %vm17184_vm7, %vm6636_vm14  ;;  %vm17188_vm7 = vcmp.eq.s32.totalorder %v2067_v33, %v5795_v59  ;;  %vm17200_vm15 = vcmp.eq.f32.partialorder %v5717_v9, %v5850_v60  ;;  %v17202_v54 = vmov 0  ;;  %v17208_v17 = vmov 0 }
 0x33b   :  { %v17186_v46 = vsel %vm6710_vm8, 4294967295, %v17185_v46  ;;  %vm2456_vm8 = vmand %vm17188_vm7, %vm6529_vm13  ;;  %v6820_v22 = vadd.s32 160, %v5868_v29  ;;  %v17218_v13 = vmov 0 }
 0x33c   :  { %17187 = vst [vmem:[#allocation95_spill] sm:$0xff] %v17186_v46  ;;  %vm6735_vm1 = vmor %vm17190_vm0, %vm17189_vm5  ;;  %v2712_v1 = vsel %vm2456_vm8, 1, %v17017_v55  ;;  %vm17194_vm5 = vcmp.eq.f32.partialorder %v5717_v9, %v5748_v42  ;;  %vm17195_vm0 = vcmp.gt.f32.partialorder %v5717_v9, %v5748_v42  ;;  %569 = vxpose.xlu2.b32.cont [14/16] %v5850_v60, 128 }
 0x33d   :  { %v17192_v32 = vsel %vm6735_vm1, 4294967295, %v17191_v32  ;;  %vm2457_vm7 = vmand %vm2201_vm11, %vm6556_vm10  ;;  %vm17199_vm10 = vcmp.eq.s32.totalorder %v2067_v33, %v5852_v21  ;;  %vm17201_vm11 = vcmp.gt.f32.partialorder %v5717_v9, %v5850_v60  ;;  %v6794_v9 = vpop.trf.xlu0  ;;  %2121 = vxpose.xlu1.b32.cont [14/16] %v5852_v21, 128 }
 0x33e   :  { %17193 = vst [vmem:[#allocation96_spill] sm:$0xff] %v17192_v32  ;;  %vm6756_vm2 = vmor %vm17195_vm0, %vm17194_vm5  ;;  %v2713_v52 = vsel %vm2457_vm7, 1, %v17017_v55  ;;  %vm17205_vm7 = vcmp.eq.s32.totalorder %v2067_v33, %v5805_v25  ;;  %v17213_v33 = vmov 0  ;;  %vm17216_vm0 = vcmp.lt.s32.totalorder %v6437_v47, %v5865_v2 }
 0x33f   :  { %v17197_v7 = vsel %vm6756_vm2, 4294967295, %v17196_v7  ;;  %vm2458_vm5 = vmand %vm17199_vm10, %vm6582_vm3  ;;  %17206 = vst [vmem:[#allocation99_spill] sm:$0xff] %v6794_v9  ;;  %v17222_v9 = vmov 0  ;;  %v6849_v47 = vadd.s32 168, %v5868_v29  ;;  %vm17226_vm3 = vcmp.gt.s32.totalorder %v6649_v12, %v2713_v52 }
 0x340   :  { %17198 = vst [vmem:[#allocation97_spill] sm:$0xff] %v17197_v7  ;;  %vm6780_vm13 = vmor %vm17201_vm11, %vm17200_vm15  ;;  %v2714_v6 = vsel %vm2458_vm5, 1, %v17017_v55  ;;  %vm17207_vm11 = vcmp.gt.f32.partialorder %v5729_v24, %v5629_v34  ;;  %vm17212_vm5 = vcmp.gt.f32.partialorder %v5729_v24, %v5748_v42  ;;  %vm17220_vm15 = vcmp.eq.f32.partialorder %v5729_v24, %v5850_v60 }
 0x341   :  { %v17203_v54 = vsel %vm6780_vm13, 4294967295, %v17202_v54  ;;  %vm2459_vm14 = vmand %vm17205_vm7, %vm6611_vm6  ;;  %vm17211_vm7 = vcmp.eq.f32.partialorder %v5729_v24, %v5748_v42  ;;  %v6860_v56 = vsel %vm17226_vm3, %v6649_v12, %v2713_v52  ;;  %vm17231_vm3 = vcmp.lt.s32.totalorder %v6618_v63, %v6455_v44  ;;  %v6982_v52 = vpop.trf.xlu2 }
 0x342   :  { %17204 = vst [vmem:[#allocation98_spill] sm:$0xff] %v17203_v54  ;;  %vm6803_vm10 = vmor %vm17207_vm11, %vm6671_vm9  ;;  %v2715_v15 = vsel %vm2459_vm14, 1, %v17017_v55  ;;  %vm3222_vm9 = vcmp.gt.s32.totalorder %v6678_v8, %v2714_v6  ;;  %vm17221_vm14 = vcmp.gt.f32.partialorder %v5729_v24, %v5850_v60  ;;  %vm17227_vm11 = vcmp.gt.f32.partialorder %v5733_v27, %v5629_v34 }
 0x343   :  { %v17209_v17 = vsel %vm6803_vm10, 4294967295, %v17208_v17  ;;  %vm6813_vm8 = vmor %vm17212_vm5, %vm17211_vm7  ;;  %vm17217_vm7 = vcmp.eq.f32.partialorder %v5721_v16, %v5470_v36  ;;  %v6888_v57 = vsel %vm3222_vm9, %v6678_v8, %v2714_v6  ;;  %v17237_v63 = vmov 0  ;;  %17260 = vst [vmem:[#allocation108_spill] sm:$0xff] %v6982_v52 }
 0x344   :  { %17210 = vst [vmem:[#allocation100_spill] sm:$0xff] %v17209_v17  ;;  %v17214_v33 = vsel %vm6813_vm8, 4294967295, %v17213_v33  ;;  %vm6832_vm5 = vmand %vm17217_vm7, %vm17216_vm0  ;;  %vm3357_vm0 = vcmp.gt.s32.totalorder %v6680_v3, %v2715_v15  ;;  %vm17225_vm7 = vcmp.gt.s32.totalorder %v6647_v19, %v2712_v1  ;;  %vm17240_vm9 = vcmp.lt.s32.totalorder %v6676_v30, %v6455_v44  ;;  %570 = vxpose.xlu2.b32.cont [15/16] %v5850_v60, 128 }
 0x345   :  { %17215 = vst [vmem:[#allocation101_spill] sm:$0xff] %v17214_v33  ;;  %v17219_v13 = vsel %vm6832_vm5, 4294967295, %v17218_v13  ;;  %vm6842_vm6 = vmor %vm17221_vm14, %vm17220_vm15  ;;  %v6855_v48 = vsel %vm17225_vm7, %v6647_v19, %v2712_v1  ;;  %v17228_v19 = vmov 0  ;;  %vm17232_vm7 = vcmp.eq.f32.partialorder %v5737_v31, %v5629_v34  ;;  %2122 = vxpose.xlu1.b32.cont [15/16] %v5852_v21, 128 }
 0x346   :  { %v17223_v9 = vsel %vm6842_vm6, 4294967295, %v17222_v9  ;;  %vm6871_vm5 = vmor %vm17227_vm11, %vm6693_vm4  ;;  %v6891_v1 = vsel %vm3357_vm0, %v6680_v3, %v2715_v15  ;;  %vm17236_vm14 = vcmp.gt.f32.partialorder %v5733_v27, %v5748_v42  ;;  %vm17241_vm0 = vcmp.eq.f32.partialorder %v5739_v50, %v5629_v34 }
 0x347   :  { %17224 = vst [vmem:[#allocation102_spill] sm:$0xff] %v17223_v9  ;;  %v17229_v19 = vsel %vm6871_vm5, 4294967295, %v17228_v19  ;;  %vm6881_vm6 = vmand %vm17232_vm7, %vm17231_vm3  ;;  %vm17235_vm7 = vcmp.eq.f32.partialorder %v5733_v27, %v5748_v42  ;;  %v6921_v6 = vadd.s32 176, %v5868_v29  ;;  %vm17244_vm4 = vcmp.gt.f32.partialorder %v5719_v4, %v5470_v36 }
 0x348   :  { %17230 = vst [vmem:[#allocation103_spill] sm:$0xff] %v17229_v19  ;;  %vm6904_vm15 = vmor %vm17236_vm14, %vm17235_vm7  ;;  %v17245_v30 = vmov 0  ;;  %vm17248_vm3 = vcmp.eq.f32.partialorder %v5733_v27, %v5850_v60  ;;  %vm17249_vm7 = vcmp.gt.f32.partialorder %v5733_v27, %v5850_v60  ;;  %vm17254_vm5 = vcmp.eq.s32.totalorder %v2068_v58, %v5795_v59 }
 0x349   :  { %v17238_v63 = vsel %vm6904_vm15, 4294967295, %v17237_v63  ;;  %vm6914_vm11 = vmand %vm17241_vm0, %vm17240_vm9  ;;  %v17257_v8 = vmov 0  ;;  %v6980_v3 = vadd.s32 184, %v5868_v29  ;;  %vm17262_vm0 = vcmp.eq.f32.partialorder %v5719_v4, %v5748_v42 }
 0x34a   :  { %17239 = vst [vmem:[#allocation104_spill] sm:$0xff] %v17238_v63  ;;  %vm6930_vm15 = vmor %vm17244_vm4, %vm6661_vm12  ;;  %v17268_v32 = vmov 0  ;;  %v17274_v52 = vmov 0  ;;  %v17279_v7 = vmov 0  ;;  %v17289_v54 = vmov 0 }
 0x34b   :  { %v17246_v30 = vsel %vm6930_vm15, 4294967295, %v17245_v30  ;;  %vm6944_vm14 = vmor %vm17249_vm7, %vm17248_vm3  ;;  %vm17253_vm15 = vnez %v17186_v46  ;;  %vm17255_vm3 = vcmp.eq.f32.partialorder %v5719_v4, %v5629_v34  ;;  %vm17256_vm7 = vcmp.gt.f32.partialorder %v5719_v4, %v5629_v34 }
 0x34c   :  { %17247 = vst [vmem:[#allocation105_spill] sm:$0xff] %v17246_v30  ;;  %v17251_v11 = vsel %vm6944_vm14, 4294967295, %v17250_v11  ;;  %vm2460_vm8 = vmand %vm17254_vm5, %vm17253_vm15  ;;  %vm17263_vm5 = vcmp.gt.f32.partialorder %v5719_v4, %v5748_v42  ;;  %v17316_v17 = vmov 0  ;;  %571 = vxpose.xlu2.b32.end [16/16] %v5850_v60, 128 }
 0x34d   :  { %17252 = vst [vmem:[#allocation106_spill] sm:$0xff] %v17251_v11  ;;  %vm6965_vm12 = vmor %vm17256_vm7, %vm17255_vm3  ;;  %vm17261_vm3 = vcmp.eq.s32.totalorder %v2068_v58, %v5797_v51  ;;  %v2716_v46 = vsel %vm2460_vm8, 1, %v17017_v55  ;;  %vm17278_vm8 = vcmp.gt.f32.partialorder %v5737_v31, %v5748_v42  ;;  %v17367_v11 = vmov 0  ;;  %2123 = vxpose.xlu1.b32.end [16/16] %v5852_v21, 128 }
 0x34e   :  { %v17258_v8 = vsel %vm6965_vm12, 4294967295, %v17257_v8  ;;  %vm2461_vm7 = vmand %vm17261_vm3, %vm6735_vm1  ;;  %vm17271_vm3 = vcmp.eq.s32.totalorder %v2068_v58, %v5852_v21 }
 0x34f   :  { %17259 = vst [vmem:[#allocation107_spill] sm:$0xff] %v17258_v8  ;;  %vm6997_vm4 = vmor %vm17263_vm5, %vm17262_vm0  ;;  %vm17267_vm0 = vcmp.gt.f32.partialorder %v5737_v31, %v5629_v34  ;;  %v2717_v12 = vsel %vm2461_vm7, 1, %v17017_v55  ;;  %vm17277_vm7 = vcmp.eq.f32.partialorder %v5737_v31, %v5748_v42  ;;  %v17372_v8 = vmov 0 }
 0x350   :  { %v17265_v26 = vsel %vm6997_vm4, 4294967295, %v17264_v26  ;;  %vm7014_vm5 = vmor %vm17267_vm0, %vm6881_vm6  ;;  %vm17272_vm6 = vcmp.eq.f32.partialorder %v5719_v4, %v5850_v60  ;;  %vm17273_vm0 = vcmp.gt.f32.partialorder %v5719_v4, %v5850_v60  ;;  %v17284_v4 = vmov 0 }
 0x351   :  { %17266 = vst [vmem:[#allocation109_spill] sm:$0xff] %v17265_v26  ;;  %v17269_v32 = vsel %vm7014_vm5, 4294967295, %v17268_v32  ;;  %vm2462_vm9 = vmand %vm17271_vm3, %vm6756_vm2  ;;  %vm17288_vm3 = vcmp.gt.f32.partialorder %v5739_v50, %v5629_v34  ;;  %v17535_v26 = vmov 0 }
 0x352   :  { %17270 = vst [vmem:[#allocation110_spill] sm:$0xff] %v17269_v32  ;;  %vm7034_vm5 = vmor %vm17273_vm0, %vm17272_vm6  ;;  %vm17282_vm6 = vcmp.eq.f32.partialorder %v5737_v31, %v5850_v60  ;;  %vm17283_vm0 = vcmp.gt.f32.partialorder %v5737_v31, %v5850_v60  ;;  %v2718_v14 = vsel %vm2462_vm9, 1, %v17017_v55  ;;  %vm17292_vm9 = vcmp.lt.s32.totalorder %v6820_v22, %v6455_v44 }
 0x353   :  { %v17275_v52 = vsel %vm7034_vm5, 4294967295, %v17274_v52  ;;  %vm7048_vm1 = vmor %vm17278_vm8, %vm17277_vm7  ;;  %vm17287_vm8 = vcmp.eq.s32.totalorder %v2068_v58, %v5805_v25  ;;  %v17298_v22 = vmov 0 }
 0x354   :  { %17276 = vst [vmem:[#allocation111_spill] sm:$0xff] %v17275_v52  ;;  %v17280_v7 = vsel %vm7048_vm1, 4294967295, %v17279_v7  ;;  %vm7058_vm15 = vmor %vm17283_vm0, %vm17282_vm6  ;;  %vm17296_vm0 = vcmp.lt.s32.totalorder %v6452_v62, %v5865_v2  ;;  %vm17297_vm6 = vcmp.eq.f32.partialorder %v5723_v61, %v5470_v36  ;;  %v17306_v62 = vmov 0 }
 0x355   :  { %17281 = vst [vmem:[#allocation112_spill] sm:$0xff] %v17280_v7  ;;  %v17285_v4 = vsel %vm7058_vm15, 4294967295, %v17284_v4  ;;  %vm2463_vm7 = vmand %vm17287_vm8, %vm6780_vm13  ;;  %vm17293_vm8 = vcmp.eq.f32.partialorder %v5741_v38, %v5629_v34  ;;  %v17400_v52 = vmov 0 }
 0x356   :  { %17286 = vst [vmem:[#allocation113_spill] sm:$0xff] %v17285_v4  ;;  %vm7081_vm2 = vmor %vm17288_vm3, %vm6914_vm11  ;;  %v2719_v15 = vsel %vm2463_vm7, 1, %v17017_v55  ;;  %vm17301_vm7 = vcmp.eq.s32.totalorder %v5870_v53, %v5795_v59  ;;  %vm17305_vm3 = vcmp.eq.s32.totalorder %v5870_v53, %v5797_v51 }
 0x357   :  { %v17290_v54 = vsel %vm7081_vm2, 4294967295, %v17289_v54  ;;  %vm7091_vm1 = vmand %vm17293_vm8, %vm17292_vm9  ;;  %vm17300_vm8 = vcmp.gt.f32.partialorder %v5729_v24, %v5470_v36  ;;  %v17311_v24 = vmov 0  ;;  %vm17355_vm2 = vcmp.eq.f32.partialorder %v5721_v16, %v5629_v34 }
 0x358   :  { %17291 = vst [vmem:[#allocation114_spill] sm:$0xff] %v17290_v54  ;;  %vm7108_vm9 = vmand %vm17297_vm6, %vm17296_vm0  ;;  %vm17309_vm6 = vnez %v17214_v33  ;;  %vm17310_vm0 = vcmp.eq.s32.totalorder %v5870_v53, %v5852_v21 }
 0x359   :  { %v17299_v22 = vsel %vm7108_vm9, 4294967295, %v17298_v22  ;;  %vm7118_vm11 = vmand %vm17301_vm7, %vm17300_vm8  ;;  %vm17314_vm7 = vcmp.eq.f32.partialorder %v5739_v50, %v5748_v42  ;;  %vm17320_vm8 = vcmp.gt.s32.totalorder %v6860_v56, %v2717_v12 }
 0x35a   :  { %v17303_v35 = vsel %vm7118_vm11, 4294967295, %v17302_v35  ;;  %vm7127_vm13 = vmand %vm17305_vm3, %vm6803_vm10  ;;  %vm17315_vm3 = vcmp.gt.f32.partialorder %v5739_v50, %v5748_v42 }
 0x35b   :  { %17304 = vst [vmem:[#allocation115_spill] sm:$0xff] %v17303_v35  ;;  %v17307_v62 = vsel %vm7127_vm13, 4294967295, %v17306_v62  ;;  %vm7136_vm9 = vmand %vm17310_vm0, %vm17309_vm6  ;;  %vm3359_vm13 = vcmp.gt.s32.totalorder %v6891_v1, %v2719_v15  ;;  %vm17319_vm0 = vcmp.gt.s32.totalorder %v6855_v48, %v2716_v46  ;;  %v7167_v35 = vpop.trf.xlu0  ;;  %vm17326_vm6 = vcmp.gt.f32.partialorder %v5733_v27, %v5470_v36 }
 0x35c   :  { %17308 = vst [vmem:[#allocation116_spill] sm:$0xff] %v17307_v62  ;;  %v17312_v24 = vsel %vm7136_vm9, 4294967295, %v17311_v24  ;;  %vm7148_vm10 = vmor %vm17315_vm3, %vm17314_vm7  ;;  %v7156_v33 = vsel %vm17319_vm0, %v6855_v48, %v2716_v46  ;;  %v2069_v62 = vpop.trf.xlu1  ;;  %vm17322_vm3 = vnez %v17223_v9  ;;  %vm17323_vm0 = vcmp.eq.s32.totalorder %v5870_v53, %v5805_v25 }
 0x35d   :  { %17313 = vst [vmem:[#allocation117_spill] sm:$0xff] %v17312_v24  ;;  %v17317_v17 = vsel %vm7148_vm10, 4294967295, %v17316_v17  ;;  %v7161_v24 = vsel %vm17320_vm8, %v6860_v56, %v2717_v12  ;;  %vm7174_vm9 = vmand %vm17323_vm0, %vm17322_vm3  ;;  %v17324_v48 = vmov 0  ;;  %vm17327_vm7 = vcmp.eq.s32.totalorder %v5888_v45, %v5795_v59 }
 0x35e   :  { %17318 = vst [vmem:[#allocation118_spill] sm:$0xff] %v17317_v17  ;;  %v17325_v48 = vsel %vm7174_vm9, 4294967295, %v17324_v48  ;;  %vm7186_vm11 = vmand %vm17327_vm7, %vm17326_vm6  ;;  %v17328_v56 = vmov 0  ;;  %vm17330_vm10 = vcmp.eq.f32.partialorder %v5739_v50, %v5850_v60  ;;  %vm17331_vm0 = vcmp.gt.f32.partialorder %v5739_v50, %v5850_v60 }
 0x35f   :  { %17321 = vst [vmem:[#allocation119_spill] sm:$0xff] %v7167_v35  ;;  %v17329_v56 = vsel %vm7186_vm11, 4294967295, %v17328_v56  ;;  %vm7196_vm3 = vmor %vm17331_vm0, %vm17330_vm10  ;;  %v17332_v53 = vmov 0  ;;  %vm17335_vm6 = vcmp.gt.s32.totalorder %v6888_v57, %v2718_v14  ;;  %v7210_v12 = vsel %vm3359_vm13, %v6891_v1, %v2719_v15 }
 0x360   :  { %v17333_v53 = vsel %vm7196_vm3, 4294967295, %v17332_v53  ;;  %v7207_v46 = vsel %vm17335_vm6, %v6888_v57, %v2718_v14  ;;  %vm17336_vm8 = vnez %v17229_v19  ;;  %vm17337_vm9 = vcmp.eq.s32.totalorder %v5888_v45, %v5797_v51 }
 0x361   :  { %17334 = vst [vmem:[#allocation120_spill] sm:$0xff] %v17333_v53  ;;  %vm7222_vm11 = vmand %vm17337_vm9, %vm17336_vm8  ;;  %v17338_v27 = vmov 0  ;;  %v7231_v14 = vadd.s32 200, %v5868_v29  ;;  %vm17340_vm7 = vnez %v17219_v13  ;;  %vm17341_vm9 = vcmp.gt.f32.partialorder %v5721_v16, %v5470_v36 }
 0x362   :  { %v17339_v27 = vsel %vm7222_vm11, 4294967295, %v17338_v27  ;;  %vm7240_vm8 = vmor %vm17341_vm9, %vm17340_vm7  ;;  %v17342_v57 = vmov 0  ;;  %vm17345_vm11 = vnez %v17238_v63  ;;  %vm17346_vm0 = vcmp.eq.s32.totalorder %v5888_v45, %v5852_v21 }
 0x363   :  { %v17343_v57 = vsel %vm7240_vm8, 4294967295, %v17342_v57  ;;  %vm7253_vm10 = vmand %vm17346_vm0, %vm17345_vm11  ;;  %v17347_v13 = vmov 0  ;;  %vm17349_vm13 = vcmp.lt.s32.totalorder %v6849_v47, %v6455_v44  ;;  %vm17350_vm6 = vcmp.eq.f32.partialorder %v5743_v39, %v5629_v34 }
 0x364   :  { %17344 = vst [vmem:[#allocation121_spill] sm:$0xff] %v17343_v57  ;;  %v17348_v13 = vsel %vm7253_vm10, 4294967295, %v17347_v13  ;;  %vm7267_vm8 = vmand %vm17350_vm6, %vm17349_vm13  ;;  %vm17353_vm9 = vnez %v17246_v30  ;;  %vm17354_vm10 = vcmp.eq.s32.totalorder %v2069_v62, %v5795_v59  ;;  %vm17356_vm13 = vcmp.gt.f32.partialorder %v5721_v16, %v5629_v34 }
 0x365   :  { %vm2464_vm3 = vmand %vm17354_vm10, %vm17353_vm9  ;;  %v17357_v47 = vmov 0  ;;  %vm17360_vm0 = vcmp.eq.s32.totalorder %v5888_v45, %v5805_v25  ;;  %v17361_v15 = vmov 0  ;;  %v7308_v30 = vadd.s32 208, %v5868_v29 }
 0x366   :  { %vm7286_vm6 = vmor %vm17356_vm13, %vm17355_vm2  ;;  %v2720_v45 = vsel %vm2464_vm3, 1, %v17017_v55  ;;  %vm17365_vm2 = vcmp.eq.f32.partialorder %v5721_v16, %v5748_v42  ;;  %vm17366_vm13 = vcmp.gt.f32.partialorder %v5721_v16, %v5748_v42  ;;  %v17377_v63 = vmov 0 }
 0x367   :  { %v17358_v47 = vsel %vm7286_vm6, 4294967295, %v17357_v47  ;;  %vm7295_vm11 = vmand %vm17360_vm0, %vm6944_vm14  ;;  %17363 = vst [vmem:[#allocation123_spill] sm:$0xff] %v7308_v30  ;;  %vm17364_vm0 = vcmp.eq.s32.totalorder %v2069_v62, %v5797_v51  ;;  %vm17380_vm10 = vnez %v17269_v32  ;;  %vm17381_vm3 = vcmp.eq.s32.totalorder %v5948_v0, %v5797_v51  ;;  %v7389_v32 = vpop.trf.xlu2 }
 0x368   :  { %17359 = vst [vmem:[#allocation122_spill] sm:$0xff] %v17358_v47  ;;  %v17362_v15 = vsel %vm7295_vm11, 4294967295, %v17361_v15  ;;  %vm2465_vm9 = vmand %vm17364_vm0, %vm6965_vm12  ;;  %vm17370_vm0 = vcmp.gt.f32.partialorder %v5737_v31, %v5470_v36  ;;  %vm17371_vm12 = vcmp.eq.s32.totalorder %v5948_v0, %v5795_v59  ;;  %vm17374_vm11 = vcmp.eq.s32.totalorder %v2069_v62, %v5852_v21  ;;  %v17480_v47 = vld [vmem:[#allocation32_spill] sm:$0xff] }
 0x369   :  { %vm7323_vm7 = vmor %vm17366_vm13, %vm17365_vm2  ;;  %v2721_v31 = vsel %vm2465_vm9, 1, %v17017_v55  ;;  %vm17375_vm2 = vcmp.eq.f32.partialorder %v5721_v16, %v5850_v60  ;;  %vm17376_vm13 = vcmp.gt.f32.partialorder %v5721_v16, %v5850_v60  ;;  %v17385_v16 = vmov 0  ;;  %17388 = vst [vmem:[#allocation127_spill] sm:$0xff] %v7389_v32 }
 0x36a   :  { %v17368_v11 = vsel %vm7323_vm7, 4294967295, %v17367_v11  ;;  %vm7337_vm14 = vmand %vm17371_vm12, %vm17370_vm0  ;;  %vm17389_vm9 = vcmp.eq.s32.totalorder %v2069_v62, %v5805_v25  ;;  %v7398_v19 = vadd.s32 216, %v5868_v29  ;;  %vm17392_vm0 = vcmp.eq.s32.totalorder %v5948_v0, %v5852_v21 }
 0x36b   :  { %17369 = vst [vmem:[#allocation124_spill] sm:$0xff] %v17368_v11  ;;  %v17373_v8 = vsel %vm7337_vm14, 4294967295, %v17372_v8  ;;  %vm2466_vm12 = vmand %vm17374_vm11, %vm6997_vm4  ;;  %v17393_v9 = vmov 0  ;;  %v17396_v62 = vmov 0  ;;  %v17409_v35 = vmov 0 }
 0x36c   :  { %vm7361_vm14 = vmor %vm17376_vm13, %vm17375_vm2  ;;  %vm17384_vm2 = vcmp.gt.f32.partialorder %v5741_v38, %v5629_v34  ;;  %v2722_v58 = vsel %vm2466_vm12, 1, %v17017_v55  ;;  %17390 = vst [vmem:[#allocation128_spill] sm:$0xff] %v7398_v19  ;;  %v17631_v1 = vmov 0 }
 0x36d   :  { %v17378_v63 = vsel %vm7361_vm14, 4294967295, %v17377_v63  ;;  %vm7370_vm11 = vmand %vm17381_vm3, %vm17380_vm10  ;;  %vm17404_vm10 = vcmp.eq.f32.partialorder %v5725_v20, %v5470_v36 }
 0x36e   :  { %17379 = vst [vmem:[#allocation125_spill] sm:$0xff] %v17378_v63  ;;  %vm7381_vm13 = vmor %vm17384_vm2, %vm7091_vm1  ;;  %vm17391_vm2 = vnez %v17280_v7  ;;  %v17405_v7 = vmov 0  ;;  %vm17411_vm1 = vnez %v17290_v54 }
 0x36f   :  { %v17386_v16 = vsel %vm7381_vm13, 4294967295, %v17385_v16  ;;  %vm2467_vm4 = vmand %vm17389_vm9, %vm7034_vm5  ;;  %vm17395_vm9 = vcmp.eq.s32.totalorder %v5948_v0, %v5805_v25  ;;  %vm17398_vm5 = vcmp.eq.f32.partialorder %v5741_v38, %v5748_v42  ;;  %v7433_v0 = vadd.s32 224, %v5868_v29 }
 0x370   :  { %17387 = vst [vmem:[#allocation126_spill] sm:$0xff] %v17386_v16  ;;  %vm7405_vm3 = vmand %vm17392_vm0, %vm17391_vm2  ;;  %vm17399_vm0 = vcmp.gt.f32.partialorder %v5741_v38, %v5748_v42  ;;  %v2723_v4 = vsel %vm2467_vm4, 1, %v17017_v55  ;;  %vm17407_vm4 = vcmp.gt.f32.partialorder %v5739_v50, %v5470_v36  ;;  %v17418_v50 = vmov 0 }
 0x371   :  { %v17394_v9 = vsel %vm7405_vm3, 4294967295, %v17393_v9  ;;  %vm7414_vm12 = vmand %vm17395_vm9, %vm7058_vm15  ;;  %vm17403_vm15 = vcmp.lt.s32.totalorder %v6502_v18, %v5865_v2  ;;  %v17413_v18 = vmov 0  ;;  %v17514_v16 = vmov 0 }
 0x372   :  { %v17397_v62 = vsel %vm7414_vm12, 4294967295, %v17396_v62  ;;  %vm7426_vm2 = vmor %vm17399_vm0, %vm17398_vm5  ;;  %vm17408_vm0 = vcmp.eq.s32.totalorder %v6039_v41, %v5795_v59  ;;  %vm17412_vm12 = vcmp.eq.s32.totalorder %v6039_v41, %v5797_v51 }
 0x373   :  { %v17401_v52 = vsel %vm7426_vm2, 4294967295, %v17400_v52  ;;  %vm7443_vm5 = vmand %vm17404_vm10, %vm17403_vm15  ;;  %vm17416_vm15 = vcmp.eq.f32.partialorder %v5741_v38, %v5850_v60  ;;  %vm17417_vm10 = vcmp.gt.f32.partialorder %v5741_v38, %v5850_v60 }
 0x374   :  { %17402 = vst [vmem:[#allocation129_spill] sm:$0xff] %v17401_v52  ;;  %v17406_v7 = vsel %vm7443_vm5, 4294967295, %v17405_v7  ;;  %vm7453_vm9 = vmand %vm17408_vm0, %vm17407_vm4  ;;  %vm3361_vm0 = vcmp.gt.s32.totalorder %v7210_v12, %v2723_v4  ;;  %vm17423_vm4 = vnez %v17317_v17  ;;  %v7533_v17 = vadd.s32 232, %v5868_v29 }
 0x375   :  { %v17410_v35 = vsel %vm7453_vm9, 4294967295, %v17409_v35  ;;  %vm7462_vm3 = vmand %vm17412_vm12, %vm17411_vm1  ;;  %vm17421_vm12 = vcmp.gt.s32.totalorder %v7156_v33, %v2720_v45  ;;  %vm17422_vm1 = vcmp.gt.s32.totalorder %v7161_v24, %v2721_v31 }
 0x376   :  { %v17414_v18 = vsel %vm7462_vm3, 4294967295, %v17413_v18  ;;  %vm7472_vm5 = vmor %vm17417_vm10, %vm17416_vm15  ;;  %v7482_v54 = vsel %vm17421_vm12, %v7156_v33, %v2720_v45  ;;  %v7487_v32 = vsel %vm17422_vm1, %v7161_v24, %v2721_v31  ;;  %vm17424_vm3 = vcmp.eq.s32.totalorder %v6039_v41, %v5852_v21  ;;  %v17451_v31 = vld [vmem:[#allocation117_spill] sm:$0xff] }
 0x377   :  { %17415 = vst [vmem:[#allocation130_spill] sm:$0xff] %v17414_v18  ;;  %v17419_v50 = vsel %vm7472_vm5, 4294967295, %v17418_v50  ;;  %v7489_v18 = vpop.trf.xlu1  ;;  %vm7500_vm12 = vmand %vm17424_vm3, %vm17423_vm4  ;;  %v17425_v33 = vmov 0  ;;  %vm17427_vm15 = vcmp.lt.s32.totalorder %v6921_v6, %v6455_v44  ;;  %vm17428_vm10 = vcmp.eq.f32.partialorder %v5745_v37, %v5629_v34 }
 0x378   :  { %17420 = vst [vmem:[#allocation131_spill] sm:$0xff] %v17419_v50  ;;  %v17426_v33 = vsel %vm7500_vm12, 4294967295, %v17425_v33  ;;  %vm7514_vm5 = vmand %vm17428_vm10, %vm17427_vm15  ;;  %v17429_v24 = vmov 0  ;;  %vm17433_vm1 = vcmp.gt.s32.totalorder %v7207_v46, %v2722_v58  ;;  %v7528_v6 = vsel %vm3361_vm0, %v7210_v12, %v2723_v4 }
 0x379   :  { %v17430_v24 = vsel %vm7514_vm5, 4294967295, %v17429_v24  ;;  %v7525_v45 = vsel %vm17433_vm1, %v7207_v46, %v2722_v58  ;;  %vm17434_vm4 = vnez %v17333_v53  ;;  %vm17435_vm1 = vcmp.eq.s32.totalorder %v6039_v41, %v5805_v25  ;;  %v17445_v53 = vld [vmem:[#allocation115_spill] sm:$0xff]  ;;  %v17448_v46 = vld [vmem:[#allocation116_spill] sm:$0xff] }
 0x37a   :  { %17431 = vst [vmem:[#allocation132_spill] sm:$0xff] %v17430_v24  ;;  %vm7544_vm9 = vmand %vm17435_vm1, %vm17434_vm4  ;;  %v17436_v4 = vmov 0  ;;  %vm17439_vm4 = vnez %v17299_v22  ;;  %vm17440_vm0 = vcmp.gt.f32.partialorder %v5723_v61, %v5470_v36  ;;  %v17441_v41 = vmov 0  ;;  %v7579_v22 = vpop.trf.xlu0 }
 0x37b   :  { %v17437_v4 = vsel %vm7544_vm9, 4294967295, %v17436_v4  ;;  %vm7565_vm9 = vmor %vm17440_vm0, %vm17439_vm4  ;;  %v7574_v12 = vadd.s32 240, %v5868_v29  ;;  %v7577_v58 = vadd.s32 248, %v5868_v29  ;;  %17444 = vst [vmem:[#allocation134_spill] sm:$0xff] %v7579_v22  ;;  %vm17446_vm4 = vnez %v17445_v53  ;;  %v17481_v22 = vld [vmem:[#allocation88_spill] sm:$0xff] }
 0x37c   :  { %v17442_v41 = vsel %vm7565_vm9, 4294967295, %v17441_v41  ;;  %v7584_v19 = vsel %vm17446_vm4, 1, %v17017_v55  ;;  %vm17449_vm0 = vnez %v17448_v46  ;;  %vm17452_vm10 = vnez %v17451_v31  ;;  %v17460_v31 = vld [vmem:[#allocation46_spill] sm:$0xff] }
 0x37d   :  { %17443 = vst [vmem:[#allocation133_spill] sm:$0xff] %v17442_v41  ;;  %v7589_v30 = vsel %vm17449_vm0, 1, %v17017_v55  ;;  %v7594_v24 = vsel %vm17452_vm10, 1, %v17017_v55  ;;  %vm17454_vm3 = vcmp.gt.f32.partialorder %v5741_v38, %v5470_v36  ;;  %vm17455_vm15 = vcmp.eq.s32.totalorder %v6122_v5, %v5795_v59 }
 0x37e   :  { %17447 = vst [vmem:[#allocation115_spill] sm:$0xff] %v7584_v19  ;;  %vm7602_vm1 = vmand %vm17455_vm15, %vm17454_vm3  ;;  %v17456_v53 = vmov 0  ;;  %vm17458_vm5 = vnez %v17343_v57  ;;  %vm17459_vm9 = vcmp.eq.s32.totalorder %v7489_v18, %v5795_v59  ;;  %vm17461_vm4 = vcmp.eq.f32.partialorder %v5723_v61, %v5629_v34 }
 0x37f   :  { %17450 = vst [vmem:[#allocation116_spill] sm:$0xff] %v7589_v30  ;;  %v17457_v53 = vsel %vm7602_vm1, 4294967295, %v17456_v53  ;;  %vm2468_vm12 = vmand %vm17459_vm9, %vm17458_vm5  ;;  %vm17462_vm0 = vcmp.gt.f32.partialorder %v5723_v61, %v5629_v34  ;;  %v17463_v46 = vmov 0  ;;  %vm17466_vm10 = vnez %v17325_v48 }
 0x380   :  { %17453 = vst [vmem:[#allocation117_spill] sm:$0xff] %v7594_v24  ;;  %vm7627_vm1 = vmor %vm17462_vm0, %vm17461_vm4  ;;  %v7634_v57 = vsel %vm17466_vm10, 1, %v17017_v55  ;;  %vm17468_vm9 = vnez %v17329_v56  ;;  %vm17471_vm3 = vcmp.eq.f32.partialorder %v5750_v49, %v5629_v34  ;;  %v17472_v48 = vmov 0 }
 0x381   :  { %v17464_v46 = vsel %vm7627_vm1, 4294967295, %v17463_v46  ;;  %17467 = vst [vmem:[#allocation136_spill] sm:$0xff] %v7634_v57  ;;  %v7639_v38 = vsel %vm17468_vm9, 1, %v17017_v55  ;;  %vm17470_vm9 = vcmp.lt.s32.totalorder %v6980_v3, %v6455_v44  ;;  %vm17474_vm0 = vcmp.eq.s32.totalorder %v7489_v18, %v5797_v51 }
 0x382   :  { %17465 = vst [vmem:[#allocation135_spill] sm:$0xff] %v17464_v46  ;;  %vm7659_vm1 = vmand %vm17471_vm3, %vm17470_vm9  ;;  %v2724_v56 = vsel %vm2468_vm12, 1, %v17017_v55  ;;  %vm17475_vm5 = vcmp.eq.f32.partialorder %v5723_v61, %v5748_v42  ;;  %vm17476_vm3 = vcmp.gt.f32.partialorder %v5723_v61, %v5748_v42  ;;  %v17477_v3 = vmov 0 }
 0x383   :  { %17469 = vst [vmem:[#allocation137_spill] sm:$0xff] %v7639_v38  ;;  %v17473_v48 = vsel %vm7659_vm1, 4294967295, %v17472_v48  ;;  %vm2469_vm4 = vmand %vm17474_vm0, %vm7286_vm6  ;;  %vm17482_vm0 = vnez %v17339_v27  ;;  %vm17485_vm10 = vcmp.eq.f32.partialorder %v5754_v10, %v5629_v34  ;;  %v17486_v24 = vmov 0  ;;  %v7829_v38 = vpop.trf.xlu1 }
 0x384   :  { %vm7677_vm9 = vmor %vm17476_vm3, %vm17475_vm5  ;;  %v7688_v57 = vsel %vm17482_vm0, 1, %v17017_v55  ;;  %vm17484_vm3 = vcmp.lt.s32.totalorder %v7096_v40, %v6455_v44  ;;  %vm17488_vm0 = vcmp.eq.s32.totalorder %v7489_v18, %v5852_v21  ;;  %v2725_v27 = vsel %vm2469_vm4, 1, %v17017_v55 }
 0x385   :  { %v17478_v3 = vsel %vm7677_vm9, 4294967295, %v17477_v3  ;;  %17483 = vst [vmem:[#allocation32_spill] sm:$0xff] %v7688_v57  ;;  %vm7700_vm6 = vmand %vm17485_vm10, %vm17484_vm3  ;;  %vm17489_vm15 = vcmp.eq.f32.partialorder %v5723_v61, %v5850_v60  ;;  %vm17490_vm1 = vcmp.gt.f32.partialorder %v5723_v61, %v5850_v60  ;;  %v17491_v40 = vmov 0 }
 0x386   :  { %17479 = vst [vmem:[#allocation138_spill] sm:$0xff] %v17478_v3  ;;  %v17487_v24 = vsel %vm7700_vm6, 4294967295, %v17486_v24  ;;  %vm2470_vm12 = vmand %vm17488_vm0, %vm7323_vm7  ;;  %vm17494_vm3 = vnez %v17348_v13  ;;  %vm17496_vm0 = vcmp.gt.f32.partialorder %v5743_v39, %v5629_v34  ;;  %v17497_v57 = vmov 0  ;;  %v17608_v3 = vld [vmem:[#allocation48_spill] sm:$0xff] }
 0x387   :  { %vm7717_vm10 = vmor %vm17490_vm1, %vm17489_vm15  ;;  %v7724_v11 = vsel %vm17494_vm3, 1, %v17017_v55  ;;  %vm17500_vm3 = vcmp.eq.s32.totalorder %v7489_v18, %v5805_v25  ;;  %v2726_v61 = vsel %vm2470_vm12, 1, %v17017_v55  ;;  %vm17507_vm12 = vcmp.gt.f32.partialorder %v5743_v39, %v5748_v42 }
 0x388   :  { %v17492_v40 = vsel %vm7717_vm10, 4294967295, %v17491_v40  ;;  %17495 = vst [vmem:[#allocation139_spill] sm:$0xff] %v7724_v11  ;;  %vm7733_vm5 = vmor %vm17496_vm0, %vm7267_vm8  ;;  %vm17501_vm8 = vnez %v17362_v15  ;;  %vm17503_vm0 = vcmp.eq.s32.totalorder %v6122_v5, %v5797_v51  ;;  %v17508_v18 = vmov 0  ;;  %v17511_v15 = vld [vmem:[#allocation72_spill] sm:$0xff] }
 0x389   :  { %17493 = vst [vmem:[#allocation88_spill] sm:$0xff] %v17492_v40  ;;  %v17498_v57 = vsel %vm7733_vm5, 4294967295, %v17497_v57  ;;  %vm2471_vm4 = vmand %vm17500_vm3, %vm7361_vm14  ;;  %v7751_v13 = vsel %vm17501_vm8, 1, %v17017_v55  ;;  %vm17506_vm3 = vcmp.eq.f32.partialorder %v5743_v39, %v5748_v42  ;;  %vm17516_vm7 = vnez %v17373_v8  ;;  %v7816_v8 = vpop.trf.xlu2 }
 0x38a   :  { %17499 = vst [vmem:[#allocation140_spill] sm:$0xff] %v17498_v57  ;;  %vm7758_vm1 = vmand %vm17503_vm0, %vm7381_vm13  ;;  %v2727_v63 = vsel %vm2471_vm4, 1, %v17017_v55  ;;  %vm17518_vm4 = vcmp.eq.s32.totalorder %v6122_v5, %v5852_v21  ;;  %vm17527_vm14 = vcmp.gt.s32.totalorder %v7487_v32, %v2725_v27  ;;  %v7838_v30 = vsel %vm7370_vm11, 1, %v17017_v55 }
 0x38b   :  { %17502 = vst [vmem:[#allocation141_spill] sm:$0xff] %v7751_v13  ;;  %vm7768_vm15 = vmor %vm17507_vm12, %vm17506_vm3  ;;  %vm17512_vm3 = vcmp.lt.s32.totalorder %v6538_v28, %v5865_v2  ;;  %vm17513_vm12 = vcmp.eq.f32.partialorder %v5727_v23, %v5470_v36  ;;  %v7795_v13 = vsel %vm17516_vm7, 1, %v17017_v55  ;;  %v17523_v28 = vmov 0 }
 0x38c   :  { %v17509_v18 = vsel %vm7768_vm15, 4294967295, %v17508_v18  ;;  %vm7788_vm8 = vmand %vm17513_vm12, %vm17512_vm3  ;;  %17517 = vst [vmem:[#allocation72_spill] sm:$0xff] %v7795_v13  ;;  %vm17521_vm3 = vcmp.eq.f32.partialorder %v5743_v39, %v5850_v60  ;;  %vm17522_vm12 = vcmp.gt.f32.partialorder %v5743_v39, %v5850_v60  ;;  %vm3363_vm7 = vcmp.gt.s32.totalorder %v7528_v6, %v2727_v63 }
 0x38d   :  { %17510 = vst [vmem:[#allocation142_spill] sm:$0xff] %v17509_v18  ;;  %v17515_v16 = vsel %vm7788_vm8, 4294967295, %v17514_v16  ;;  %vm7802_vm13 = vmand %vm17518_vm4, %vm7426_vm2  ;;  %vm17526_vm4 = vcmp.gt.s32.totalorder %v7482_v54, %v2724_v56  ;;  %v7827_v13 = vsel %vm17527_vm14, %v7487_v32, %v2725_v27  ;;  %vm17530_vm2 = vcmp.eq.s32.totalorder %v6122_v5, %v5805_v25 }
 0x38e   :  { %vm7812_vm0 = vmor %vm17522_vm12, %vm17521_vm3  ;;  %v7822_v52 = vsel %vm17526_vm4, %v7482_v54, %v2724_v56  ;;  %17528 = vst [vmem:[#allocation144_spill] sm:$0xff] %v7838_v30  ;;  %vm17529_vm4 = vnez %v17419_v50  ;;  %v17531_v32 = vmov 0  ;;  %vm17533_vm8 = vcmp.lt.s32.totalorder %v7231_v14, %v6455_v44 }
 0x38f   :  { %v17524_v28 = vsel %vm7812_vm0, 4294967295, %v17523_v28  ;;  %vm7845_vm14 = vmand %vm17530_vm2, %vm17529_vm4  ;;  %vm17534_vm11 = vcmp.eq.f32.partialorder %v5757_v43, %v5629_v34  ;;  %vm17537_vm2 = vcmp.gt.s32.totalorder %v7525_v45, %v2726_v61  ;;  %v7869_v54 = vsel %vm3363_vm7, %v7528_v6, %v2727_v63 }
 0x390   :  { %17525 = vst [vmem:[#allocation143_spill] sm:$0xff] %v17524_v28  ;;  %v17532_v32 = vsel %vm7845_vm14, 4294967295, %v17531_v32  ;;  %vm7859_vm0 = vmand %vm17534_vm11, %vm17533_vm8  ;;  %v7866_v5 = vsel %vm17537_vm2, %v7525_v45, %v2726_v61  ;;  %vm17538_vm11 = vnez %v17394_v9  ;;  %vm17540_vm2 = vnez %v17397_v62  ;;  %v17546_v9 = vld [vmem:[#allocation47_spill] sm:$0xff]  ;;  %v17568_v61 = vld [vmem:[#allocation132_spill] sm:$0xff] }
 0x391   :  { %v17536_v26 = vsel %vm7859_vm0, 4294967295, %v17535_v26  ;;  %v7880_v14 = vsel %vm17538_vm11, 1, %v17017_v55  ;;  %v7885_v45 = vsel %vm17540_vm2, 1, %v17017_v55  ;;  %vm17542_vm7 = vcmp.gt.f32.partialorder %v5743_v39, %v5470_v36 }
 0x392   :  { %17539 = vst [vmem:[#allocation145_spill] sm:$0xff] %v7880_v14  ;;  %vm17543_vm12 = vcmp.eq.s32.totalorder %v17511_v15, %v5795_v59  ;;  %v17544_v63 = vmov 0  ;;  %vm17547_vm0 = vnez %v17406_v7  ;;  %v17549_v62 = vmov 0  ;;  %v17554_v7 = vld [vmem:[#allocation130_spill] sm:$0xff] }
 0x393   :  { %17541 = vst [vmem:[#allocation146_spill] sm:$0xff] %v7885_v45  ;;  %vm7893_vm3 = vmand %vm17543_vm12, %vm17542_vm7  ;;  %vm17548_vm12 = vcmp.gt.f32.partialorder %v5725_v20, %v5470_v36  ;;  %vm17552_vm2 = vnez %v17410_v35  ;;  %vm17555_vm4 = vnez %v17554_v7  ;;  %vm17562_vm8 = vcmp.gt.f32.partialorder %v5725_v20, %v5629_v34 }
 0x394   :  { %v17545_v63 = vsel %vm7893_vm3, 4294967295, %v17544_v63  ;;  %vm7910_vm7 = vmor %vm17548_vm12, %vm17547_vm0  ;;  %v7921_v6 = vsel %vm17552_vm2, 1, %v17017_v55  ;;  %v7926_v56 = vsel %vm17555_vm4, 1, %v17017_v55  ;;  %vm17557_vm0 = vnez %v17426_v33 }
 0x395   :  { %v17550_v62 = vsel %vm7910_vm7, 4294967295, %v17549_v62  ;;  %17553 = vst [vmem:[#allocation148_spill] sm:$0xff] %v7921_v6  ;;  %v7931_v27 = vsel %vm17557_vm0, 1, %v17017_v55  ;;  %vm17559_vm7 = vnez %v17442_v41  ;;  %vm17560_vm0 = vcmp.eq.s32.totalorder %v7829_v38, %v5795_v59  ;;  %v17574_v41 = vld [vmem:[#allocation44_spill] sm:$0xff] }
 0x396   :  { %17551 = vst [vmem:[#allocation147_spill] sm:$0xff] %v17550_v62  ;;  %vm2472_vm3 = vmand %vm17560_vm0, %vm17559_vm7  ;;  %vm17561_vm12 = vcmp.eq.f32.partialorder %v5725_v20, %v5629_v34  ;;  %v17563_v35 = vmov 0  ;;  %vm17566_vm11 = vnez %v17437_v4  ;;  %vm17569_vm0 = vnez %v17568_v61  ;;  %v17575_v4 = vld [vmem:[#allocation123_spill] sm:$0xff] }
 0x397   :  { %17556 = vst [vmem:[#allocation130_spill] sm:$0xff] %v7926_v56  ;;  %vm7954_vm14 = vmor %vm17562_vm8, %vm17561_vm12  ;;  %v7961_v33 = vsel %vm17566_vm11, 1, %v17017_v55  ;;  %vm17570_vm4 = vcmp.gt.f32.partialorder %v5745_v37, %v5629_v34  ;;  %v17571_v7 = vmov 0  ;;  %v17578_v61 = vmov 0  ;;  %v17628_v56 = vld [vmem:[#allocation78_spill] sm:$0xff] }
 0x398   :  { %17558 = vst [vmem:[#allocation149_spill] sm:$0xff] %v7931_v27  ;;  %v17564_v35 = vsel %vm7954_vm14, 4294967295, %v17563_v35  ;;  %vm7970_vm7 = vmor %vm17570_vm4, %vm17569_vm0  ;;  %vm17576_vm4 = vcmp.lt.s32.totalorder %v17575_v4, %v6455_v44  ;;  %vm17577_vm0 = vcmp.eq.f32.partialorder %v17574_v41, %v5629_v34  ;;  %vm17580_vm12 = vnez %v17464_v46  ;;  %v8013_v46 = vpop.trf.xlu0  ;;  %v17594_v27 = vld [vmem:[#allocation45_spill] sm:$0xff] }
 0x399   :  { %17565 = vst [vmem:[#allocation150_spill] sm:$0xff] %v17564_v35  ;;  %v17572_v7 = vsel %vm7970_vm7, 4294967295, %v17571_v7  ;;  %vm7990_vm7 = vmand %vm17577_vm0, %vm17576_vm4  ;;  %vm17581_vm11 = vcmp.eq.s32.totalorder %v7829_v38, %v5797_v51  ;;  %v2728_v39 = vsel %vm2472_vm3, 1, %v17017_v55  ;;  %vm17582_vm14 = vcmp.eq.f32.partialorder %v5725_v20, %v5748_v42 }
 0x39a   :  { %17567 = vst [vmem:[#allocation151_spill] sm:$0xff] %v7961_v33  ;;  %v17579_v61 = vsel %vm7990_vm7, 4294967295, %v17578_v61  ;;  %vm2473_vm8 = vmand %vm17581_vm11, %vm17580_vm12  ;;  %vm17583_vm2 = vcmp.gt.f32.partialorder %v5725_v20, %v5748_v42  ;;  %v17584_v4 = vmov 0  ;;  %v8011_v50 = vadd.s32 256, %v5865_v2 }
 0x39b   :  { %17573 = vst [vmem:[#allocation132_spill] sm:$0xff] %v17572_v7  ;;  %vm8006_vm6 = vmor %vm17583_vm2, %vm17582_vm14  ;;  %vm17589_vm3 = vcmp.eq.f32.partialorder %v5745_v37, %v5748_v42  ;;  %vm17590_vm4 = vcmp.gt.f32.partialorder %v5745_v37, %v5748_v42  ;;  %v17591_v33 = vmov 0  ;;  %vm17597_vm7 = vcmp.eq.f32.partialorder %v17594_v27, %v5629_v34 }
 0x39c   :  { %v17585_v4 = vsel %vm8006_vm6, 4294967295, %v17584_v4  ;;  %17587 = vst [vmem:[#allocation152_spill] sm:$0xff] %v8011_v50  ;;  %vm8023_vm0 = vmor %vm17590_vm4, %vm17589_vm3  ;;  %v17598_v45 = vmov 0  ;;  %vm17600_vm3 = vcmp.eq.s32.totalorder %v7829_v38, %v5852_v21  ;;  %v2729_v50 = vsel %vm2473_vm8, 1, %v17017_v55 }
 0x39d   :  { %17586 = vst [vmem:[#allocation123_spill] sm:$0xff] %v17585_v4  ;;  %v17592_v33 = vsel %vm8023_vm0, 4294967295, %v17591_v33  ;;  %vm8048_vm4 = vmand %vm17600_vm3, %vm7677_vm9  ;;  %vm17603_vm12 = vcmp.eq.f32.partialorder %v5725_v20, %v5850_v60  ;;  %v8069_v14 = vadd.s32 256, %v5868_v29  ;;  %vm17610_vm8 = vnez %v17457_v53 }
 0x39e   :  { %17588 = vst [vmem:[#allocation153_spill] sm:$0xff] %v8013_v46  ;;  %v17595_v46 = vld [vmem:[#allocation128_spill] sm:$0xff]  ;;  %v8074_v6 = vsel %vm17610_vm8, 1, %v17017_v55  ;;  %vm17613_vm3 = vcmp.gt.f32.partialorder %v5745_v37, %v5850_v60  ;;  %v17619_v53 = vmov 0  ;;  %vm17621_vm8 = vcmp.eq.s32.totalorder %v7829_v38, %v5805_v25 }
 0x39f   :  { %17593 = vst [vmem:[#allocation154_spill] sm:$0xff] %v17592_v33  ;;  %vm17596_vm11 = vcmp.lt.s32.totalorder %v17595_v46, %v6455_v44  ;;  %v17605_v46 = vmov 0  ;;  %vm2475_vm14 = vmand %vm17621_vm8, %vm7717_vm10  ;;  %v2730_v29 = vsel %vm8048_vm4, 1, %v17017_v55  ;;  %v8122_v40 = vsel %vm7758_vm1, 1, %v17017_v55 }
 0x3a0   :  { %vm8039_vm6 = vmand %vm17597_vm7, %vm17596_vm11  ;;  %vm17604_vm7 = vcmp.gt.f32.partialorder %v5725_v20, %v5850_v60  ;;  %17609 = vst [vmem:[#allocation155_spill] sm:$0xff] %v8069_v14  ;;  %v17614_v20 = vmov 0  ;;  %vm17625_vm8 = vcmp.eq.s32.totalorder %v17511_v15, %v5797_v51  ;;  %vm17629_vm9 = vnez %v17473_v48 }
 0x3a1   :  { %v17599_v45 = vsel %vm8039_vm6, 4294967295, %v17598_v45  ;;  %vm8060_vm11 = vmor %vm17604_vm7, %vm17603_vm12  ;;  %17611 = vst [vmem:[#allocation156_spill] sm:$0xff] %v8074_v6  ;;  %vm17612_vm7 = vcmp.eq.f32.partialorder %v5745_v37, %v5850_v60  ;;  %vm17617_vm6 = vcmp.lt.s32.totalorder %v7433_v0, %v6455_v44  ;;  %v17622_v0 = vld [vmem:[#allocation34_spill] sm:$0xff]  ;;  %vm17634_vm1 = vcmp.eq.f32.partialorder %v5750_v49, %v5748_v42 }
 0x3a2   :  { %v17606_v46 = vsel %vm8060_vm11, 4294967295, %v17605_v46  ;;  %vm8084_vm2 = vmor %vm17613_vm3, %vm17612_vm7  ;;  %vm17618_vm3 = vcmp.eq.f32.partialorder %v17460_v31, %v5629_v34  ;;  %v17623_v6 = vld [vmem:[#allocation90_spill] sm:$0xff]  ;;  %17624 = vst [vmem:[#allocation34_spill] sm:$0xff] %v8122_v40  ;;  %v17636_v57 = vmov 0  ;;  %vm17639_vm4 = vcmp.eq.f32.partialorder %v5750_v49, %v5850_v60 }
 0x3a3   :  { %17607 = vst [vmem:[#allocation128_spill] sm:$0xff] %v17606_v46  ;;  %v17615_v20 = vsel %vm8084_vm2, 4294967295, %v17614_v20  ;;  %vm8102_vm7 = vmand %vm17618_vm3, %vm17617_vm6  ;;  %vm17630_vm6 = vcmp.gt.f32.partialorder %v5750_v49, %v5629_v34  ;;  %v17641_v48 = vmov 0  ;;  %v2731_v40 = vsel %vm2475_vm14, 1, %v17017_v55 }
 0x3a4   :  { %17616 = vst [vmem:[#allocation157_spill] sm:$0xff] %v17615_v20  ;;  %v17620_v53 = vsel %vm8102_vm7, 4294967295, %v17619_v53  ;;  %vm8129_vm3 = vmand %vm17625_vm8, %vm7733_vm5  ;;  %vm17635_vm8 = vcmp.gt.f32.partialorder %v5750_v49, %v5748_v42  ;;  %vm17640_vm5 = vcmp.gt.f32.partialorder %v5750_v49, %v5850_v60  ;;  %vm17645_vm7 = vcmp.eq.f32.partialorder %v17480_v47, %v5470_v36 }
 0x3a5   :  { %vm8140_vm12 = vmor %vm17630_vm6, %vm17629_vm9  ;;  %v17646_v14 = vmov 0  ;;  %v8181_v30 = vsel %vm7802_vm13, 1, %v17017_v55  ;;  %v17654_v11 = vmov 0  ;;  %vm3365_vm13 = vcmp.gt.s32.totalorder %v7869_v54, %v2731_v40 }
 0x3a6   :  { %v17632_v1 = vsel %vm8140_vm12, 4294967295, %v17631_v1  ;;  %vm8150_vm10 = vmor %vm17635_vm8, %vm17634_vm1  ;;  %vm17644_vm8 = vcmp.lt.s32.totalorder %v17481_v22, %v5865_v2  ;;  %17648 = vst [vmem:[#allocation159_spill] sm:$0xff] %v8181_v30  ;;  %vm17658_vm6 = vcmp.gt.s32.totalorder %v7827_v13, %v2729_v50  ;;  %v17693_v19 = vmov 0 }
 0x3a7   :  { %17633 = vst [vmem:[#allocation90_spill] sm:$0xff] %v17632_v1  ;;  %v17637_v57 = vsel %vm8150_vm10, 4294967295, %v17636_v57  ;;  %vm8160_vm9 = vmor %vm17640_vm5, %vm17639_vm4  ;;  %vm17649_vm5 = vcmp.eq.s32.totalorder %v17511_v15, %v5852_v21  ;;  %vm17652_vm4 = vnez %v17487_v24  ;;  %v8212_v18 = vsel %vm17658_vm6, %v7827_v13, %v2729_v50  ;;  %v2072_v24 = vpop.trf.xlu1 }
 0x3a8   :  { %17638 = vst [vmem:[#allocation78_spill] sm:$0xff] %v17637_v57  ;;  %v17642_v48 = vsel %vm8160_vm9, 4294967295, %v17641_v48  ;;  %vm8174_vm10 = vmand %vm17645_vm7, %vm17644_vm8  ;;  %vm17653_vm8 = vcmp.gt.f32.partialorder %v5754_v10, %v5629_v34  ;;  %vm17665_vm6 = vcmp.eq.f32.partialorder %v5754_v10, %v5748_v42  ;;  %vm17666_vm7 = vcmp.gt.f32.partialorder %v5754_v10, %v5748_v42 }
 0x3a9   :  { %17643 = vst [vmem:[#allocation158_spill] sm:$0xff] %v17642_v48  ;;  %v17647_v14 = vsel %vm8174_vm10, 4294967295, %v17646_v14  ;;  %vm8188_vm14 = vmand %vm17649_vm5, %vm7768_vm15  ;;  %vm17657_vm5 = vcmp.gt.s32.totalorder %v7822_v52, %v2728_v39  ;;  %vm17662_vm15 = vcmp.eq.s32.totalorder %v17511_v15, %v5805_v25  ;;  %v17667_v50 = vmov 0 }
 0x3aa   :  { %vm8199_vm1 = vmor %vm17653_vm8, %vm17652_vm4  ;;  %v8207_v22 = vsel %vm17657_vm5, %v7822_v52, %v2728_v39  ;;  %vm17659_vm8 = vnez %v17532_v32  ;;  %vm17661_vm5 = vnez %v17524_v28  ;;  %v8248_v13 = vsel %vm3365_vm13, %v7869_v54, %v2731_v40  ;;  %v8282_v32 = vpop.trf.xlu2  ;;  %v17727_v28 = vld [vmem:[#allocation94_spill] sm:$0xff] }
 0x3ab   :  { %v17655_v11 = vsel %vm8199_vm1, 4294967295, %v17654_v11  ;;  %v8221_v30 = vsel %vm17659_vm8, 1, %v17017_v55  ;;  %vm8228_vm10 = vmand %vm17662_vm15, %vm17661_vm5  ;;  %vm17670_vm8 = vcmp.gt.s32.totalorder %v7866_v5, %v2730_v29  ;;  %vm17673_vm13 = vcmp.gt.f32.partialorder %v5745_v37, %v5470_v36 }
 0x3ac   :  { %17656 = vst [vmem:[#allocation160_spill] sm:$0xff] %v17655_v11  ;;  %vm8238_vm4 = vmor %vm17666_vm7, %vm17665_vm6  ;;  %v8245_v52 = vsel %vm17670_vm8, %v7866_v5, %v2730_v29  ;;  %vm17671_vm7 = vnez %v17545_v63  ;;  %vm17674_vm8 = vcmp.eq.s32.totalorder %v17628_v56, %v5795_v59  ;;  %v17675_v29 = vmov 0  ;;  %v17696_v63 = vld [vmem:[#allocation84_spill] sm:$0xff] }
 0x3ad   :  { %17660 = vst [vmem:[#allocation161_spill] sm:$0xff] %v8221_v30  ;;  %v17668_v50 = vsel %vm8238_vm4, 4294967295, %v17667_v50  ;;  %v8258_v15 = vsel %vm17671_vm7, 1, %v17017_v55  ;;  %vm8268_vm15 = vmand %vm17674_vm8, %vm17673_vm13  ;;  %vm17677_vm5 = vcmp.eq.f32.partialorder %v5754_v10, %v5850_v60  ;;  %vm17678_vm7 = vcmp.gt.f32.partialorder %v5754_v10, %v5850_v60  ;;  %v8452_v30 = vpop.trf.xlu0 }
 0x3ae   :  { %17669 = vst [vmem:[#allocation162_spill] sm:$0xff] %v17668_v50  ;;  %v17676_v29 = vsel %vm8268_vm15, 4294967295, %v17675_v29  ;;  %vm8278_vm1 = vmor %vm17678_vm7, %vm17677_vm5  ;;  %v17679_v40 = vmov 0  ;;  %vm17682_vm13 = vnez %v17515_v16  ;;  %vm17683_vm8 = vcmp.gt.f32.partialorder %v5727_v23, %v5470_v36 }
 0x3af   :  { %17672 = vst [vmem:[#allocation163_spill] sm:$0xff] %v8258_v15  ;;  %v17680_v40 = vsel %vm8278_vm1, 4294967295, %v17679_v40  ;;  %vm8291_vm15 = vmor %vm17683_vm8, %vm17682_vm13  ;;  %v17684_v5 = vmov 0  ;;  %v8302_v54 = vsel %vm8129_vm3, 1, %v17017_v55  ;;  %v8307_v16 = vsel %vm8188_vm14, 1, %v17017_v55  ;;  %v2073_v15 = vpop.trf.xlu1 }
 0x3b0   :  { %17681 = vst [vmem:[#allocation164_spill] sm:$0xff] %v17680_v40  ;;  %v17685_v5 = vsel %vm8291_vm15, 4294967295, %v17684_v5  ;;  %vm17689_vm4 = vnez %v17550_v62  ;;  %vm17690_vm6 = vcmp.eq.s32.totalorder %v2072_v24, %v5795_v59  ;;  %vm17691_vm15 = vcmp.eq.f32.partialorder %v5727_v23, %v5629_v34 }
 0x3b1   :  { %17686 = vst [vmem:[#allocation165_spill] sm:$0xff] %v17685_v5  ;;  %vm2476_vm14 = vmand %vm17690_vm6, %vm17689_vm4  ;;  %vm17692_vm13 = vcmp.gt.f32.partialorder %v5727_v23, %v5629_v34  ;;  %vm17697_vm6 = vnez %v17536_v26  ;;  %vm17698_vm4 = vcmp.gt.f32.partialorder %v5757_v43, %v5629_v34  ;;  %v17699_v38 = vmov 0 }
 0x3b2   :  { %17687 = vst [vmem:[#allocation166_spill] sm:$0xff] %v8302_v54  ;;  %vm8328_vm8 = vmor %vm17692_vm13, %vm17691_vm15  ;;  %vm17702_vm7 = vnez %v17564_v35  ;;  %vm17703_vm5 = vcmp.eq.s32.totalorder %v2072_v24, %v5797_v51  ;;  %v2732_v26 = vsel %vm2476_vm14, 1, %v17017_v55  ;;  %v17706_v62 = vmov 0 }
 0x3b3   :  { %17688 = vst [vmem:[#allocation167_spill] sm:$0xff] %v8307_v16  ;;  %v17694_v19 = vsel %vm8328_vm8, 4294967295, %v17693_v19  ;;  %vm8343_vm1 = vmor %vm17698_vm4, %vm17697_vm6  ;;  %vm17704_vm8 = vcmp.eq.f32.partialorder %v5727_v23, %v5748_v42  ;;  %vm17705_vm4 = vcmp.gt.f32.partialorder %v5727_v23, %v5748_v42  ;;  %vm17709_vm15 = vnez %v17572_v7 }
 0x3b4   :  { %17695 = vst [vmem:[#allocation168_spill] sm:$0xff] %v17694_v19  ;;  %v17700_v38 = vsel %vm8343_vm1, 4294967295, %v17699_v38  ;;  %vm2477_vm3 = vmand %vm17703_vm5, %vm17702_vm7  ;;  %vm17710_vm13 = vcmp.eq.s32.totalorder %v17628_v56, %v5797_v51  ;;  %v17711_v35 = vmov 0  ;;  %vm17714_vm7 = vcmp.eq.f32.partialorder %v17546_v9, %v5629_v34 }
 0x3b5   :  { %17701 = vst [vmem:[#allocation84_spill] sm:$0xff] %v17700_v38  ;;  %vm8362_vm6 = vmor %vm17705_vm4, %vm17704_vm8  ;;  %vm17713_vm4 = vcmp.lt.s32.totalorder %v7533_v17, %v6455_v44  ;;  %v17715_v7 = vmov 0  ;;  %vm17718_vm5 = vcmp.eq.s32.totalorder %v2072_v24, %v5852_v21  ;;  %v2733_v37 = vsel %vm2477_vm3, 1, %v17017_v55 }
 0x3b6   :  { %v17707_v62 = vsel %vm8362_vm6, 4294967295, %v17706_v62  ;;  %vm8371_vm1 = vmand %vm17710_vm13, %vm17709_vm15  ;;  %vm17717_vm13 = vnez %v17585_v4  ;;  %vm17719_vm8 = vcmp.eq.f32.partialorder %v5727_v23, %v5850_v60  ;;  %v17721_v17 = vmov 0  ;;  %17739 = vst [vmem:[#allocation172_spill] sm:$0xff] %v8452_v30 }
 0x3b7   :  { %17708 = vst [vmem:[#allocation169_spill] sm:$0xff] %v17707_v62  ;;  %v17712_v35 = vsel %vm8371_vm1, 4294967295, %v17711_v35  ;;  %vm8387_vm6 = vmand %vm17714_vm7, %vm17713_vm4  ;;  %vm17720_vm1 = vcmp.gt.f32.partialorder %v5727_v23, %v5850_v60  ;;  %vm17724_vm7 = vcmp.eq.s32.totalorder %v17628_v56, %v5852_v21  ;;  %v17725_v4 = vmov 0 }
 0x3b8   :  { %v17716_v7 = vsel %vm8387_vm6, 4294967295, %v17715_v7  ;;  %vm2478_vm15 = vmand %vm17718_vm5, %vm17717_vm13  ;;  %v17730_v23 = vmov 0  ;;  %vm17734_vm13 = vcmp.gt.f32.partialorder %v5757_v43, %v5850_v60  ;;  %v17735_v33 = vmov 0 }
 0x3b9   :  { %vm8403_vm9 = vmor %vm17720_vm1, %vm17719_vm8  ;;  %vm17728_vm1 = vcmp.eq.f32.partialorder %v5757_v43, %v5748_v42  ;;  %vm17729_vm8 = vcmp.gt.f32.partialorder %v5757_v43, %v5748_v42  ;;  %v2734_v16 = vsel %vm2478_vm15, 1, %v17017_v55  ;;  %v8457_v54 = vsel %vm8228_vm10, 1, %v17017_v55 }
 0x3ba   :  { %v17722_v17 = vsel %vm8403_vm9, 4294967295, %v17721_v17  ;;  %vm8412_vm5 = vmand %vm17724_vm7, %vm8023_vm0  ;;  %vm17733_vm7 = vcmp.eq.f32.partialorder %v5757_v43, %v5850_v60  ;;  %17740 = vst [vmem:[#allocation173_spill] sm:$0xff] %v8457_v54  ;;  %v17742_v46 = vmov 0  ;;  %vm17744_vm15 = vcmp.gt.f32.partialorder %v5750_v49, %v5470_v36 }
 0x3bb   :  { %17723 = vst [vmem:[#allocation170_spill] sm:$0xff] %v17722_v17  ;;  %v17726_v4 = vsel %vm8412_vm5, 4294967295, %v17725_v4  ;;  %vm8426_vm14 = vmor %vm17729_vm8, %vm17728_vm1  ;;  %vm17738_vm8 = vcmp.eq.s32.totalorder %v2072_v24, %v5805_v25  ;;  %v17746_v24 = vmov 0  ;;  %vm17748_vm4 = vnez %v17579_v61 }
 0x3bc   :  { %v17731_v23 = vsel %vm8426_vm14, 4294967295, %v17730_v23  ;;  %vm8436_vm3 = vmor %vm17734_vm13, %vm17733_vm7  ;;  %vm17741_vm7 = vcmp.eq.s32.totalorder %v17628_v56, %v5805_v25  ;;  %v17750_v56 = vmov 0  ;;  %v17755_v39 = vmov 0 }
 0x3bd   :  { %17732 = vst [vmem:[#allocation94_spill] sm:$0xff] %v17731_v23  ;;  %v17736_v33 = vsel %vm8436_vm3, 4294967295, %v17735_v33  ;;  %vm2479_vm5 = vmand %vm17738_vm8, %vm8060_vm11  ;;  %vm17745_vm8 = vcmp.eq.s32.totalorder %v17696_v63, %v5795_v59  ;;  %vm17753_vm11 = vcmp.eq.f32.partialorder %v17574_v41, %v5748_v42  ;;  %vm17758_vm10 = vcmp.eq.f32.partialorder %v17574_v41, %v5850_v60 }
 0x3be   :  { %17737 = vst [vmem:[#allocation171_spill] sm:$0xff] %v17736_v33  ;;  %vm8464_vm0 = vmand %vm17741_vm7, %vm8084_vm2  ;;  %vm17749_vm7 = vcmp.gt.f32.partialorder %v17574_v41, %v5629_v34  ;;  %vm17759_vm2 = vcmp.gt.f32.partialorder %v17574_v41, %v5850_v60  ;;  %v17760_v61 = vmov 0  ;;  %v2735_v49 = vsel %vm2479_vm5, 1, %v17017_v55 }
 0x3bf   :  { %v17743_v46 = vsel %vm8464_vm0, 4294967295, %v17742_v46  ;;  %vm8474_vm1 = vmand %vm17745_vm8, %vm17744_vm15  ;;  %vm17754_vm15 = vcmp.gt.f32.partialorder %v17574_v41, %v5748_v42  ;;  %v17764_v20 = vmov 0  ;;  %v17768_v30 = vmov 0 }
 0x3c0   :  { %v17747_v24 = vsel %vm8474_vm1, 4294967295, %v17746_v24  ;;  %vm8485_vm13 = vmor %vm17749_vm7, %vm17748_vm4  ;;  %vm17770_vm5 = vnez %v17642_v48  ;;  %vm17771_vm1 = vcmp.eq.s32.totalorder %v17696_v63, %v5805_v25  ;;  %v17772_v1 = vmov 0 }
 0x3c1   :  { %v17751_v56 = vsel %vm8485_vm13, 4294967295, %v17750_v56  ;;  %vm8495_vm8 = vmor %vm17754_vm15, %vm17753_vm11  ;;  %vm17763_vm15 = vcmp.eq.s32.totalorder %v17696_v63, %v5797_v51  ;;  %v17776_v48 = vmov 0  ;;  %v17872_v17 = vmov 0 }
 0x3c2   :  { %17752 = vst [vmem:[#allocation174_spill] sm:$0xff] %v17751_v56  ;;  %v17756_v39 = vsel %vm8495_vm8, 4294967295, %v17755_v39  ;;  %vm8505_vm4 = vmor %vm17759_vm2, %vm17758_vm10  ;;  %vm17766_vm2 = vnez %v17637_v57  ;;  %vm17767_vm10 = vcmp.eq.s32.totalorder %v17696_v63, %v5852_v21  ;;  %v17781_v63 = vmov 0  ;;  %v2074_v56 = vpop.trf.xlu1 }
 0x3c3   :  { %17757 = vst [vmem:[#allocation175_spill] sm:$0xff] %v17756_v39  ;;  %v17761_v61 = vsel %vm8505_vm4, 4294967295, %v17760_v61  ;;  %vm8520_vm0 = vmand %vm17763_vm15, %vm8140_vm12  ;;  %vm3367_vm12 = vcmp.gt.s32.totalorder %v8248_v13, %v2735_v49  ;;  %vm17790_vm15 = vcmp.gt.f32.partialorder %v5754_v10, %v5470_v36  ;;  %v17882_v23 = vmov 0 }
 0x3c4   :  { %17762 = vst [vmem:[#allocation176_spill] sm:$0xff] %v17761_v61  ;;  %v17765_v20 = vsel %vm8520_vm0, 4294967295, %v17764_v20  ;;  %vm8529_vm7 = vmand %vm17767_vm10, %vm17766_vm2  ;;  %vm17774_vm10 = vnez %v17599_v45  ;;  %vm17775_vm2 = vcmp.gt.f32.partialorder %v17594_v27, %v5629_v34  ;;  %v17786_v45 = vmov 0 }
 0x3c5   :  { %v17769_v30 = vsel %vm8529_vm7, 4294967295, %v17768_v30  ;;  %vm8538_vm11 = vmand %vm17771_vm1, %vm17770_vm5  ;;  %vm17779_vm1 = vcmp.eq.f32.partialorder %v17594_v27, %v5748_v42  ;;  %vm17780_vm5 = vcmp.gt.f32.partialorder %v17594_v27, %v5748_v42  ;;  %v8636_v10 = vsel %vm3367_vm12, %v8248_v13, %v2735_v49  ;;  %v17828_v13 = vld [vmem:[#allocation127_spill] sm:$0xff] }
 0x3c6   :  { %v17773_v1 = vsel %vm8538_vm11, 4294967295, %v17772_v1  ;;  %vm8551_vm7 = vmor %vm17775_vm2, %vm17774_vm10  ;;  %vm17784_vm2 = vcmp.lt.s32.totalorder %v7574_v12, %v6455_v44  ;;  %vm17785_vm10 = vcmp.eq.f32.partialorder %v17608_v3, %v5629_v34  ;;  %v17792_v12 = vmov 0 }
 0x3c7   :  { %v17777_v48 = vsel %vm8551_vm7, 4294967295, %v17776_v48  ;;  %vm8561_vm11 = vmor %vm17780_vm5, %vm17779_vm1  ;;  %vm17788_vm5 = vcmp.gt.s32.totalorder %v8207_v22, %v2732_v26  ;;  %vm17789_vm1 = vcmp.gt.s32.totalorder %v8212_v18, %v2733_v37  ;;  %vm17799_vm7 = vcmp.eq.f32.partialorder %v17594_v27, %v5850_v60 }
 0x3c8   :  { %17778 = vst [vmem:[#allocation177_spill] sm:$0xff] %v17777_v48  ;;  %v17782_v63 = vsel %vm8561_vm11, 4294967295, %v17781_v63  ;;  %vm8574_vm0 = vmand %vm17785_vm10, %vm17784_vm2  ;;  %v8581_v57 = vsel %vm17788_vm5, %v8207_v22, %v2732_v26  ;;  %v8586_v54 = vsel %vm17789_vm1, %v8212_v18, %v2733_v37  ;;  %vm17791_vm2 = vcmp.eq.s32.totalorder %v17727_v28, %v5795_v59  ;;  %v17798_v37 = vld [vmem:[#allocation108_spill] sm:$0xff] }
 0x3c9   :  { %17783 = vst [vmem:[#allocation178_spill] sm:$0xff] %v17782_v63  ;;  %v17787_v45 = vsel %vm8574_vm0, 4294967295, %v17786_v45  ;;  %vm8594_vm10 = vmand %vm17791_vm2, %vm17790_vm15  ;;  %vm17794_vm0 = vnez %v17655_v11  ;;  %vm17795_vm5 = vcmp.eq.s32.totalorder %v17727_v28, %v5797_v51  ;;  %v17796_v22 = vmov 0 }
 0x3ca   :  { %v17793_v12 = vsel %vm8594_vm10, 4294967295, %v17792_v12  ;;  %vm8603_vm11 = vmand %vm17795_vm5, %vm17794_vm0  ;;  %vm17800_vm15 = vcmp.gt.f32.partialorder %v17594_v27, %v5850_v60  ;;  %v17801_v18 = vmov 0  ;;  %vm17804_vm5 = vnez %v17620_v53 }
 0x3cb   :  { %v17797_v22 = vsel %vm8603_vm11, 4294967295, %v17796_v22  ;;  %vm8615_vm2 = vmor %vm17800_vm15, %vm17799_vm7  ;;  %vm17805_vm0 = vcmp.gt.f32.partialorder %v17460_v31, %v5629_v34  ;;  %v17806_v26 = vmov 0  ;;  %vm17809_vm1 = vcmp.gt.s32.totalorder %v8245_v52, %v2734_v16 }
 0x3cc   :  { %v17802_v18 = vsel %vm8615_vm2, 4294967295, %v17801_v18  ;;  %vm8626_vm11 = vmor %vm17805_vm0, %vm17804_vm5  ;;  %v8633_v11 = vsel %vm17809_vm1, %v8245_v52, %v2734_v16  ;;  %vm17810_vm10 = vcmp.lt.s32.totalorder %v17623_v6, %v5865_v2  ;;  %vm17811_vm0 = vcmp.eq.f32.partialorder %v17622_v0, %v5470_v36  ;;  %v8732_v16 = vpop.trf.xlu2 }
 0x3cd   :  { %17803 = vst [vmem:[#allocation108_spill] sm:$0xff] %v17802_v18  ;;  %v17807_v26 = vsel %vm8626_vm11, 4294967295, %v17806_v26  ;;  %vm8647_vm5 = vmand %vm17811_vm0, %vm17810_vm10  ;;  %v17812_v53 = vmov 0  ;;  %vm17814_vm1 = vnez %v17676_v29  ;;  %vm17815_vm12 = vnez %v17668_v50 }
 0x3ce   :  { %17808 = vst [vmem:[#allocation179_spill] sm:$0xff] %v17807_v26  ;;  %v17813_v53 = vsel %vm8647_vm5, 4294967295, %v17812_v53  ;;  %v8654_v49 = vsel %vm17814_vm1, 1, %v17017_v55  ;;  %vm17816_vm15 = vcmp.eq.s32.totalorder %v17727_v28, %v5852_v21  ;;  %v17817_v52 = vmov 0 }
 0x3cf   :  { %vm8661_vm7 = vmand %vm17816_vm15, %vm17815_vm12  ;;  %vm17819_vm11 = vnez %v17647_v14  ;;  %vm17820_vm1 = vcmp.gt.f32.partialorder %v17480_v47, %v5470_v36  ;;  %v17821_v6 = vmov 0  ;;  %vm17824_vm10 = vnez %v17680_v40 }
 0x3d0   :  { %v17818_v52 = vsel %vm8661_vm7, 4294967295, %v17817_v52  ;;  %vm8674_vm2 = vmor %vm17820_vm1, %vm17819_vm11  ;;  %vm17825_vm5 = vcmp.eq.s32.totalorder %v17727_v28, %v5805_v25  ;;  %v17826_v14 = vmov 0  ;;  %vm17829_vm7 = vnez %v17685_v5 }
 0x3d1   :  { %v17822_v6 = vsel %vm8674_vm2, 4294967295, %v17821_v6  ;;  %vm8687_vm0 = vmand %vm17825_vm5, %vm17824_vm10  ;;  %vm17830_vm2 = vcmp.eq.s32.totalorder %v2073_v15, %v5795_v59  ;;  %vm17831_vm5 = vcmp.eq.f32.partialorder %v17480_v47, %v5629_v34  ;;  %vm17832_vm10 = vcmp.gt.f32.partialorder %v17480_v47, %v5629_v34 }
 0x3d2   :  { %17823 = vst [vmem:[#allocation180_spill] sm:$0xff] %v17822_v6  ;;  %v17827_v14 = vsel %vm8687_vm0, 4294967295, %v17826_v14  ;;  %vm2480_vm6 = vmand %vm17830_vm2, %vm17829_vm7  ;;  %v17833_v28 = vmov 0  ;;  %vm17836_vm12 = vcmp.gt.f32.partialorder %v5757_v43, %v5470_v36  ;;  %vm17837_vm2 = vcmp.eq.s32.totalorder %v17798_v37, %v5795_v59 }
 0x3d3   :  { %vm8708_vm11 = vmor %vm17832_vm10, %vm17831_vm5  ;;  %v17838_v29 = vmov 0  ;;  %vm17840_vm1 = vnez %v17694_v19  ;;  %vm17841_vm0 = vcmp.eq.s32.totalorder %v2073_v15, %v5797_v51  ;;  %v2736_v5 = vsel %vm2480_vm6, 1, %v17017_v55 }
 0x3d4   :  { %v17834_v28 = vsel %vm8708_vm11, 4294967295, %v17833_v28  ;;  %vm8722_vm7 = vmand %vm17837_vm2, %vm17836_vm12  ;;  %vm17842_vm12 = vcmp.eq.f32.partialorder %v17480_v47, %v5748_v42  ;;  %vm17843_vm2 = vcmp.gt.f32.partialorder %v17480_v47, %v5748_v42  ;;  %v17844_v43 = vmov 0 }
 0x3d5   :  { %17835 = vst [vmem:[#allocation127_spill] sm:$0xff] %v17834_v28  ;;  %v17839_v29 = vsel %vm8722_vm7, 4294967295, %v17838_v29  ;;  %vm2481_vm11 = vmand %vm17841_vm0, %vm17840_vm1  ;;  %vm17847_vm0 = vnez %v17700_v38  ;;  %vm17848_vm6 = vcmp.eq.s32.totalorder %v17798_v37, %v5797_v51  ;;  %v17849_v19 = vmov 0 }
 0x3d6   :  { %vm8745_vm10 = vmor %vm17843_vm2, %vm17842_vm12  ;;  %vm17851_vm15 = vnez %v17707_v62  ;;  %vm17852_vm7 = vcmp.eq.s32.totalorder %v2073_v15, %v5852_v21  ;;  %v2737_v38 = vsel %vm2481_vm11, 1, %v17017_v55  ;;  %v17855_v40 = vmov 0 }
 0x3d7   :  { %v17845_v43 = vsel %vm8745_vm10, 4294967295, %v17844_v43  ;;  %vm8758_vm1 = vmand %vm17848_vm6, %vm17847_vm0  ;;  %vm17853_vm6 = vcmp.eq.f32.partialorder %v17480_v47, %v5850_v60  ;;  %vm17854_vm0 = vcmp.gt.f32.partialorder %v17480_v47, %v5850_v60  ;;  %vm17858_vm11 = vcmp.eq.f32.partialorder %v17460_v31, %v5748_v42 }
 0x3d8   :  { %17846 = vst [vmem:[#allocation181_spill] sm:$0xff] %v17845_v43  ;;  %v17850_v19 = vsel %vm8758_vm1, 4294967295, %v17849_v19  ;;  %vm2482_vm5 = vmand %vm17852_vm7, %vm17851_vm15  ;;  %vm17859_vm12 = vcmp.gt.f32.partialorder %v17460_v31, %v5748_v42  ;;  %v17860_v62 = vmov 0  ;;  %vm17864_vm7 = vcmp.eq.s32.totalorder %v17798_v37, %v5852_v21 }
 0x3d9   :  { %vm8778_vm1 = vmor %vm17854_vm0, %vm17853_vm6  ;;  %vm17863_vm0 = vcmp.eq.s32.totalorder %v2073_v15, %v5805_v25  ;;  %v2738_v47 = vsel %vm2482_vm5, 1, %v17017_v55  ;;  %vm17870_vm5 = vcmp.gt.f32.partialorder %v17574_v41, %v5470_v36  ;;  %v17885_v2 = vmov 0 }
 0x3da   :  { %v17856_v40 = vsel %vm8778_vm1, 4294967295, %v17855_v40  ;;  %vm8792_vm10 = vmor %vm17859_vm12, %vm17858_vm11  ;;  %vm17867_vm12 = vcmp.eq.s32.totalorder %v17798_v37, %v5805_v25  ;;  %v17876_v37 = vmov 0  ;;  %v17892_v39 = vmov 0 }
 0x3db   :  { %17857 = vst [vmem:[#allocation182_spill] sm:$0xff] %v17856_v40  ;;  %v17861_v62 = vsel %vm8792_vm10, 4294967295, %v17860_v62  ;;  %vm2483_vm6 = vmand %vm17863_vm0, %vm8403_vm9  ;;  %vm17871_vm0 = vcmp.eq.s32.totalorder %v17828_v13, %v5795_v59  ;;  %vm17875_vm9 = vcmp.gt.f32.partialorder %v17460_v31, %v5850_v60 }
 0x3dc   :  { %17862 = vst [vmem:[#allocation183_spill] sm:$0xff] %v17861_v62  ;;  %vm8807_vm15 = vmand %vm17864_vm7, %vm8426_vm14  ;;  %vm17874_vm7 = vcmp.eq.f32.partialorder %v17460_v31, %v5850_v60  ;;  %v2739_v41 = vsel %vm2483_vm6, 1, %v17017_v55  ;;  %vm17884_vm6 = vcmp.eq.s32.totalorder %v17828_v13, %v5852_v21 }
 0x3dd   :  { %vm8816_vm11 = vmand %vm17867_vm12, %vm8436_vm3 }
 0x3de   :  { %vm8826_vm2 = vmand %vm17871_vm0, %vm17870_vm5  ;;  %vm17879_vm0 = vnez %v17712_v35  ;;  %v17888_v35 = vmov 0  ;;  %vm17891_vm5 = vcmp.gt.f32.partialorder %v17546_v9, %v5629_v34 }
 0x3df   :  { %v17873_v17 = vsel %vm8826_vm2, 4294967295, %v17872_v17  ;;  %vm8836_vm12 = vmor %vm17875_vm9, %vm17874_vm7  ;;  %v8849_v33 = vsel %vm17879_vm0, 1, %v17017_v55  ;;  %vm17881_vm9 = vcmp.eq.s32.totalorder %v17828_v13, %v5797_v51  ;;  %vm17887_vm0 = vcmp.eq.s32.totalorder %v17828_v13, %v5805_v25 }
 0x3e0   :  { %v17877_v37 = vsel %vm8836_vm12, 4294967295, %v17876_v37  ;;  %17880 = vst [vmem:[#allocation185_spill] sm:$0xff] %v8849_v33  ;;  %vm8856_vm7 = vmand %vm17881_vm9, %vm8485_vm13  ;;  %vm17890_vm9 = vnez %v17716_v7  ;;  %v8894_v33 = vpop.trf.xlu0 }
 0x3e1   :  { %17878 = vst [vmem:[#allocation184_spill] sm:$0xff] %v17877_v37  ;;  %v17883_v23 = vsel %vm8856_vm7, 4294967295, %v17882_v23  ;;  %vm8865_vm14 = vmand %vm17884_vm6, %vm8495_vm8  ;;  %vm3369_vm6 = vcmp.gt.s32.totalorder %v8636_v10, %v2739_v41  ;;  %vm17895_vm8 = vcmp.gt.s32.totalorder %v8581_v57, %v2736_v5  ;;  %vm17908_vm7 = vcmp.eq.s32.totalorder %v7816_v8, %v5852_v21 }
 0x3e2   :  { %v17886_v2 = vsel %vm8865_vm14, 4294967295, %v17885_v2  ;;  %vm8874_vm3 = vmand %vm17887_vm0, %vm8505_vm4  ;;  %v2965_v61 = vsel %vm17895_vm8, %v8581_v57, %v2736_v5  ;;  %vm17896_vm0 = vcmp.gt.s32.totalorder %v8586_v54, %v2737_v38  ;;  %17897 = vst [vmem:[#allocation187_spill] sm:$0xff] %v8894_v33  ;;  %vm17898_vm4 = vnez %v17726_v4 }
 0x3e3   :  { %v17889_v35 = vsel %vm8874_vm3, 4294967295, %v17888_v35  ;;  %vm8883_vm13 = vmor %vm17891_vm5, %vm17890_vm9  ;;  %v3100_v13 = vsel %vm17896_vm0, %v8586_v54, %v2737_v38  ;;  %v8899_v7 = vsel %vm17898_vm4, 1, %v17017_v55  ;;  %vm17899_vm5 = vcmp.gt.f32.partialorder %v17594_v27, %v5470_v36 }
 0x3e4   :  { %v17893_v39 = vsel %vm8883_vm13, 4294967295, %v17892_v39  ;;  %vm17900_vm9 = vcmp.eq.s32.totalorder %v7816_v8, %v5795_v59  ;;  %v17901_v57 = vmov 0  ;;  %vm17903_vm8 = vnez %v17777_v48 }
 0x3e5   :  { %17894 = vst [vmem:[#allocation186_spill] sm:$0xff] %v17893_v39  ;;  %vm8907_vm3 = vmand %vm17900_vm9, %vm17899_vm5  ;;  %vm17904_vm0 = vcmp.eq.s32.totalorder %v7816_v8, %v5797_v51  ;;  %v17905_v5 = vmov 0  ;;  %vm17907_vm4 = vnez %v17782_v63  ;;  %v17909_v4 = vmov 0 }
 0x3e6   :  { %v17902_v57 = vsel %vm8907_vm3, 4294967295, %v17901_v57  ;;  %vm8916_vm14 = vmand %vm17904_vm0, %vm17903_vm8  ;;  %vm17911_vm5 = vcmp.eq.f32.partialorder %v17546_v9, %v5748_v42  ;;  %vm17912_vm9 = vcmp.gt.f32.partialorder %v17546_v9, %v5748_v42  ;;  %v17913_v54 = vmov 0 }
 0x3e7   :  { %v17906_v5 = vsel %vm8916_vm14, 4294967295, %v17905_v5  ;;  %vm8925_vm2 = vmand %vm17908_vm7, %vm17907_vm4  ;;  %vm17916_vm0 = vcmp.gt.s32.totalorder %v8633_v11, %v2738_v47  ;;  %v3370_v63 = vsel %vm3369_vm6, %v8636_v10, %v2739_v41  ;;  %vm2228_vm7 = vcmp.eq.s32.totalorder %v2074_v56, %v5795_v59 }
 0x3e8   :  { %v17910_v4 = vsel %vm8925_vm2, 4294967295, %v17909_v4  ;;  %vm8935_vm3 = vmor %vm17912_vm9, %vm17911_vm5  ;;  %v3235_v38 = vsel %vm17916_vm0, %v8633_v11, %v2738_v47  ;;  %vm17917_vm4 = vnez %v17743_v46  ;;  %vm17918_vm8 = vnez %v17747_v24  ;;  %v9172_v50 = vpop.trf.xlu0 }
 0x3e9   :  { %v17914_v54 = vsel %vm8935_vm3, 4294967295, %v17913_v54  ;;  %v8947_v48 = vsel %vm17917_vm4, 1, %v17017_v55  ;;  %v8952_v27 = vsel %vm17918_vm8, 1, %v17017_v55  ;;  %vm17919_vm5 = vnez %v17802_v18  ;;  %v2075_v18 = vpop.trf.xlu1  ;;  %17991 = vst [vmem:[#allocation195_spill] sm:$0xff] %v9172_v50 }
 0x3ea   :  { %17915 = vst [vmem:[#allocation188_spill] sm:$0xff] %v17914_v54  ;;  %vm17920_vm9 = vcmp.eq.s32.totalorder %v7816_v8, %v5805_v25  ;;  %v17921_v11 = vmov 0  ;;  %vm17923_vm6 = vcmp.gt.f32.partialorder %v17460_v31, %v5470_v36  ;;  %vm17924_vm4 = vcmp.eq.s32.totalorder %v8282_v32, %v5795_v59 }
 0x3eb   :  { %vm8959_vm0 = vmand %vm17920_vm9, %vm17919_vm5  ;;  %v17925_v10 = vmov 0  ;;  %vm17927_vm8 = vnez %v17807_v26  ;;  %vm17928_vm14 = vcmp.eq.s32.totalorder %v8282_v32, %v5797_v51  ;;  %v17929_v41 = vmov 0 }
 0x3ec   :  { %v17922_v11 = vsel %vm8959_vm0, 4294967295, %v17921_v11  ;;  %vm8969_vm2 = vmand %vm17924_vm4, %vm17923_vm6  ;;  %vm17931_vm9 = vcmp.eq.f32.partialorder %v17546_v9, %v5850_v60  ;;  %vm17932_vm5 = vcmp.gt.f32.partialorder %v17546_v9, %v5850_v60  ;;  %v17933_v8 = vmov 0 }
 0x3ed   :  { %v17926_v10 = vsel %vm8969_vm2, 4294967295, %v17925_v10  ;;  %vm8978_vm3 = vmand %vm17928_vm14, %vm17927_vm8  ;;  %vm2229_vm6 = vcmp.eq.s32.totalorder %v2074_v56, %v5797_v51  ;;  %vm17936_vm14 = vnez %v17765_v20  ;;  %vm17937_vm8 = vnez %v17769_v30 }
 0x3ee   :  { %v17930_v41 = vsel %vm8978_vm3, 4294967295, %v17929_v41  ;;  %vm8988_vm0 = vmor %vm17932_vm5, %vm17931_vm9  ;;  %v8997_v46 = vsel %vm17936_vm14, 1, %v17017_v55  ;;  %v9002_v24 = vsel %vm17937_vm8, 1, %v17017_v55  ;;  %vm17938_vm5 = vnez %v17773_v1 }
 0x3ef   :  { %v17934_v8 = vsel %vm8988_vm0, 4294967295, %v17933_v8  ;;  %v9007_v47 = vsel %vm17938_vm5, 1, %v17017_v55  ;;  %vm17939_vm9 = vnez %v17787_v45  ;;  %vm17940_vm4 = vcmp.gt.f32.partialorder %v17608_v3, %v5629_v34 }
 0x3f0   :  { %17935 = vst [vmem:[#allocation189_spill] sm:$0xff] %v17934_v8  ;;  %vm9014_vm3 = vmor %vm17940_vm4, %vm17939_vm9  ;;  %v17941_v26 = vmov 0  ;;  %vm17944_vm2 = vnez %v17822_v6  ;;  %vm17945_vm0 = vnez %v17793_v12  ;;  %vm17946_vm5 = vnez %v17797_v22 }
 0x3f1   :  { %v17942_v26 = vsel %vm9014_vm3, 4294967295, %v17941_v26  ;;  %vm2484_vm8 = vmand %vm2228_vm7, %vm17944_vm2  ;;  %v9024_v30 = vsel %vm17945_vm0, 1, %v17017_v55  ;;  %v9029_v20 = vsel %vm17946_vm5, 1, %v17017_v55  ;;  %vm17947_vm9 = vnez %v17834_v28 }
 0x3f2   :  { %17943 = vst [vmem:[#allocation190_spill] sm:$0xff] %v17942_v26  ;;  %vm2485_vm3 = vmand %vm2229_vm6, %vm17947_vm9  ;;  %v2740_v1 = vsel %vm2484_vm8, 1, %v17017_v55  ;;  %vm17948_vm7 = vnez %v17813_v53  ;;  %vm17949_vm14 = vcmp.gt.f32.partialorder %v17622_v0, %v5470_v36  ;;  %v17950_v45 = vmov 0 }
 0x3f3   :  { %vm9041_vm0 = vmor %vm17949_vm14, %vm17948_vm7  ;;  %vm17953_vm5 = vnez %v17818_v52  ;;  %vm17954_vm6 = vnez %v17845_v43  ;;  %vm17955_vm8 = vcmp.eq.s32.totalorder %v2074_v56, %v5852_v21  ;;  %v2741_v22 = vsel %vm2485_vm3, 1, %v17017_v55  ;;  %v9074_v43 = vpop.trf.xlu2 }
 0x3f4   :  { %v17951_v45 = vsel %vm9041_vm0, 4294967295, %v17950_v45  ;;  %v9048_v12 = vsel %vm17953_vm5, 1, %v17017_v55  ;;  %vm2486_vm9 = vmand %vm17955_vm8, %vm17954_vm6  ;;  %vm17956_vm14 = vcmp.eq.f32.partialorder %v17622_v0, %v5629_v34  ;;  %vm17957_vm7 = vcmp.gt.f32.partialorder %v17622_v0, %v5629_v34 }
 0x3f5   :  { %17952 = vst [vmem:[#allocation191_spill] sm:$0xff] %v17951_v45  ;;  %vm9063_vm0 = vmor %vm17957_vm7, %vm17956_vm14  ;;  %v17958_v53 = vmov 0  ;;  %vm17961_vm5 = vnez %v17827_v14  ;;  %vm17962_vm3 = vcmp.eq.s32.totalorder %v2074_v56, %v5805_v25  ;;  %v2742_v28 = vsel %vm2486_vm9, 1, %v17017_v55 }
 0x3f6   :  { %v17959_v53 = vsel %vm9063_vm0, 4294967295, %v17958_v53  ;;  %v9070_v52 = vsel %vm17961_vm5, 1, %v17017_v55  ;;  %vm2487_vm2 = vmand %vm17962_vm3, %vm8778_vm1  ;;  %vm17963_vm7 = vcmp.eq.f32.partialorder %v17622_v0, %v5748_v42  ;;  %vm17964_vm5 = vcmp.gt.f32.partialorder %v17622_v0, %v5748_v42 }
 0x3f7   :  { %17960 = vst [vmem:[#allocation192_spill] sm:$0xff] %v17959_v53  ;;  %vm9087_vm4 = vmor %vm17964_vm5, %vm17963_vm7  ;;  %v17965_v14 = vmov 0  ;;  %vm17968_vm8 = vnez %v17839_v29  ;;  %vm17969_vm9 = vcmp.eq.s32.totalorder %v8282_v32, %v5852_v21  ;;  %v2743_v6 = vsel %vm2487_vm2, 1, %v17017_v55 }
 0x3f8   :  { %v17966_v14 = vsel %vm9087_vm4, 4294967295, %v17965_v14  ;;  %v9094_v40 = vsel %vm17968_vm8, 1, %v17017_v55  ;;  %vm9101_vm3 = vmand %vm17969_vm9, %vm8792_vm10  ;;  %vm3236_vm5 = vcmp.gt.s32.totalorder %v3235_v38, %v2742_v28  ;;  %vm17972_vm14 = vcmp.eq.f32.partialorder %v17622_v0, %v5850_v60 }
 0x3f9   :  { %17967 = vst [vmem:[#allocation193_spill] sm:$0xff] %v17966_v14  ;;  %vm17973_vm8 = vcmp.gt.f32.partialorder %v17622_v0, %v5850_v60  ;;  %v17974_v29 = vmov 0  ;;  %vm17977_vm9 = vnez %v17850_v19  ;;  %vm17978_vm2 = vcmp.eq.s32.totalorder %v8282_v32, %v5805_v25 }
 0x3fa   :  { %vm9114_vm1 = vmor %vm17973_vm8, %vm17972_vm14  ;;  %v9121_v62 = vsel %vm17977_vm9, 1, %v17017_v55  ;;  %vm2291_vm14 = vcmp.eq.s32.totalorder %v8732_v16, %v5805_v25  ;;  %vm3371_vm8 = vcmp.gt.s32.totalorder %v3370_v63, %v2743_v6  ;;  %vm17981_vm6 = vcmp.gt.s32.totalorder %v2965_v61, %v2740_v1 }
 0x3fb   :  { %v17975_v29 = vsel %vm9114_vm1, 4294967295, %v17974_v29  ;;  %vm9128_vm7 = vmand %vm17978_vm2, %vm8836_vm12  ;;  %v2967_v0 = vsel %vm17981_vm6, %v2965_v61, %v2740_v1  ;;  %vm17982_vm9 = vcmp.eq.s32.totalorder %v8732_v16, %v5797_v51  ;;  %vm17985_vm12 = vcmp.gt.s32.totalorder %v3100_v13, %v2741_v22 }
 0x3fc   :  { %17976 = vst [vmem:[#allocation194_spill] sm:$0xff] %v17975_v29  ;;  %vm9140_vm10 = vmand %vm17982_vm9, %vm8883_vm13  ;;  %v3102_v32 = vsel %vm17985_vm12, %v3100_v13, %v2741_v22  ;;  %v3237_v37 = vsel %vm3236_vm5, %v3235_v38, %v2742_v28  ;;  %v3372_v33 = vsel %vm3371_vm8, %v3370_v63, %v2743_v6  ;;  %v9150_v61 = vsel %vm8807_vm15, 1, %v17017_v55  ;;  %v18016_v13 = vld [vmem:[#allocation116_spill] sm:$0xff]  ;;  %v18017_v29 = vld [vmem:[#allocation137_spill] sm:$0xff] }
 0x3fd   :  { %v9155_v1 = vsel %vm8816_vm11, 1, %v17017_v55  ;;  %vm17986_vm6 = vnez %v17873_v17  ;;  %vm17987_vm9 = vnez %v17914_v54  ;;  %vm17988_vm12 = vcmp.eq.s32.totalorder %v8732_v16, %v5852_v21 }
 0x3fe   :  { %v9160_v39 = vsel %vm17986_vm6, 1, %v17017_v55  ;;  %vm9167_vm5 = vmand %vm17988_vm12, %vm17987_vm9  ;;  %vm17992_vm11 = vnez %v17883_v23  ;;  %vm17993_vm8 = vnez %v17886_v2  ;;  %vm17994_vm6 = vnez %v17889_v35 }
 0x3ff   :  { %v9177_v6 = vsel %vm17992_vm11, 1, %v17017_v55  ;;  %v9182_v17 = vsel %vm17993_vm8, 1, %v17017_v55  ;;  %v9187_v28 = vsel %vm17994_vm6, 1, %v17017_v55  ;;  %vm17995_vm12 = vnez %v17934_v8 }
 0x400   :  { %vm9194_vm15 = vmand %vm2291_vm14, %vm17995_vm12  ;;  %vm17998_vm8 = vnez %v17902_v57  ;;  %vm18000_vm6 = vnez %v17906_v5  ;;  %vm18001_vm2 = vnez %v17910_v4  ;;  %vm18002_vm14 = vnez %v17942_v26 }
 0x401   :  { %v9202_v2 = vsel %vm17998_vm8, 1, %v17017_v55  ;;  %v9207_v23 = vsel %vm18000_vm6, 1, %v17017_v55  ;;  %v9212_v35 = vsel %vm18001_vm2, 1, %v17017_v55  ;;  %vm18003_vm11 = vcmp.eq.s32.totalorder %v9074_v43, %v5797_v51 }
 0x402   :  { %17999 = vst [vmem:[#allocation196_spill] sm:$0xff] %v9202_v2  ;;  %vm9219_vm12 = vmand %vm18003_vm11, %vm18002_vm14  ;;  %vm18006_vm6 = vnez %v17922_v11  ;;  %vm18007_vm2 = vnez %v17926_v10  ;;  %vm18009_vm9 = vnez %v17930_v41  ;;  %vm2235_vm11 = vcmp.eq.s32.totalorder %v2075_v18, %v5805_v25  ;;  %v18012_v41 = vld [vmem:[#allocation49_spill] sm:$0xff] }
 0x403   :  { %v9227_v57 = vsel %vm18006_vm6, 1, %v17017_v55  ;;  %v9232_v5 = vsel %vm18007_vm2, 1, %v17017_v55  ;;  %v9237_v4 = vsel %vm18009_vm9, 1, %v17017_v55  ;;  %vm18010_vm14 = vnez %v17951_v45  ;;  %v18015_v45 = vld [vmem:[#allocation115_spill] sm:$0xff] }
 0x404   :  { %18008 = vst [vmem:[#allocation197_spill] sm:$0xff] %v9232_v5  ;;  %vm18011_vm8 = vcmp.eq.s32.totalorder %v2075_v18, %v5795_v59  ;;  %v9247_v38 = vsel %vm9101_vm3, 1, %v17017_v55  ;;  %v9252_v11 = vsel %vm9128_vm7, 1, %v17017_v55  ;;  %v9257_v10 = vsel %vm9140_vm10, 1, %v17017_v55  ;;  %vm2491_vm10 = vmand %vm2235_vm11, %vm9114_vm1  ;;  %v18030_v5 = vld [vmem:[#allocation155_spill] sm:$0xff] }
 0x405   :  { %vm2488_vm13 = vmand %vm18011_vm8, %vm18010_vm14  ;;  %vm969_vm9 = vcmp.eq.f32.partialorder %v18012_v41, %v5629_v34  ;;  %vm1225_vm8 = vcmp.lt.s32.totalorder %v7577_v58, %v6455_v44  ;;  %vm18013_vm3 = vcmp.eq.s32.totalorder %v2075_v18, %v5797_v51  ;;  %v9271_v22 = vsel %vm9167_vm5, 1, %v17017_v55 }
 0x406   :  { %vm2489_vm6 = vmand %vm18013_vm3, %vm9063_vm0  ;;  %v2744_v31 = vsel %vm2488_vm13, 1, %v17017_v55  ;;  %v9276_v56 = vsel %vm9194_vm15, 1, %v17017_v55  ;;  %vm18014_vm13 = vcmp.eq.s32.totalorder %v2075_v18, %v5852_v21  ;;  %v9294_v63 = vsel %vm9219_vm12, 1, %v17017_v55  ;;  %v9309_v18 = vpop.trf.xlu2 }
 0x407   :  { %vm2490_vm2 = vmand %vm18014_vm13, %vm9087_vm4  ;;  %v2745_v19 = vsel %vm2489_vm6, 1, %v17017_v55  ;;  %vm2968_vm5 = vcmp.gt.s32.totalorder %v2967_v0, %v2744_v31  ;;  %vm713_vm13 = vcmp.gt.f32.partialorder %v18012_v41, %v5629_v34  ;;  %v2747_v53 = vsel %vm2491_vm10, 1, %v17017_v55 }
 0x408   :  { %v2746_v15 = vsel %vm2490_vm2, 1, %v17017_v55  ;;  %v2969_v14 = vsel %vm2968_vm5, %v2967_v0, %v2744_v31  ;;  %vm3103_vm6 = vcmp.gt.s32.totalorder %v3102_v32, %v2745_v19  ;;  %vm3373_vm2 = vcmp.gt.s32.totalorder %v3372_v33, %v2747_v53 }
 0x409   :  { %vm2970_vm3 = vcmp.gt.s32.totalorder %v2969_v14, %v18015_v45  ;;  %v3104_v26 = vsel %vm3103_vm6, %v3102_v32, %v2745_v19  ;;  %vm3238_vm15 = vcmp.gt.s32.totalorder %v3237_v37, %v2746_v15  ;;  %v18018_v19 = vld [vmem:[#allocation117_spill] sm:$0xff]  ;;  %v3374_v8 = vsel %vm3373_vm2, %v3372_v33, %v2747_v53  ;;  %v18023_v53 = vld [vmem:[#allocation139_spill] sm:$0xff] }
 0x40a   :  { %v2971_v0 = vsel %vm2970_vm3, %v2969_v14, %v18015_v45  ;;  %vm3105_vm11 = vcmp.gt.s32.totalorder %v3104_v26, %v18016_v13  ;;  %v3239_v31 = vsel %vm3238_vm15, %v3237_v37, %v2746_v15  ;;  %v18019_v45 = vld [vmem:[#allocation32_spill] sm:$0xff]  ;;  %v9324_v15 = vpop.trf.xlu0  ;;  %v18039_v44 = vmov 0 }
 0x40b   :  { %vm2972_vm5 = vcmp.gt.s32.totalorder %v2971_v0, %v18017_v29  ;;  %v3106_v32 = vsel %vm3105_vm11, %v3104_v26, %v18016_v13  ;;  %vm3240_vm6 = vcmp.gt.s32.totalorder %v3239_v31, %v18018_v19  ;;  %v18020_v14 = vld [vmem:[#allocation136_spill] sm:$0xff]  ;;  %18021 = vst [vmem:[#allocation115_spill] sm:$0xff] %v9324_v15 }
 0x40c   :  { %v2973_v54 = vsel %vm2972_vm5, %v2971_v0, %v18017_v29  ;;  %vm3107_vm3 = vcmp.gt.s32.totalorder %v3106_v32, %v18019_v45  ;;  %v3241_v37 = vsel %vm3240_vm6, %v3239_v31, %v18018_v19  ;;  %vm3375_vm15 = vcmp.gt.s32.totalorder %v3374_v8, %v18020_v14  ;;  %v18022_v26 = vld [vmem:[#allocation72_spill] sm:$0xff]  ;;  %v18025_v19 = vld [vmem:[#allocation141_spill] sm:$0xff] }
 0x40d   :  { %vm2974_vm11 = vcmp.gt.s32.totalorder %v2973_v54, %v18022_v26  ;;  %v3108_v33 = vsel %vm3107_vm3, %v3106_v32, %v18019_v45  ;;  %vm3242_vm2 = vcmp.gt.s32.totalorder %v3241_v37, %v18023_v53  ;;  %v3376_v13 = vsel %vm3375_vm15, %v3374_v8, %v18020_v14  ;;  %v18024_v0 = vld [vmem:[#allocation144_spill] sm:$0xff]  ;;  %v18027_v32 = vld [vmem:[#allocation145_spill] sm:$0xff]  ;;  %v18028_v8 = vld [vmem:[#allocation62_spill] sm:$0xff] }
 0x40e   :  { %v2975_v29 = vsel %vm2974_vm11, %v2973_v54, %v18022_v26  ;;  %vm3109_vm6 = vcmp.gt.s32.totalorder %v3108_v33, %v18024_v0  ;;  %v3243_v31 = vsel %vm3242_vm2, %v3241_v37, %v18023_v53  ;;  %vm3377_vm12 = vcmp.gt.s32.totalorder %v3376_v13, %v18025_v19  ;;  %v18026_v15 = vld [vmem:[#allocation148_spill] sm:$0xff]  ;;  %v18031_v37 = vld [vmem:[#allocation130_spill] sm:$0xff]  ;;  %vm9360_vm15 = vmand %vm969_vm9, %vm1225_vm8 }
 0x40f   :  { %vm2976_vm10 = vcmp.gt.s32.totalorder %v2975_v29, %v18026_v15  ;;  %v3110_v50 = vsel %vm3109_vm6, %v3108_v33, %v18024_v0  ;;  %vm3244_vm3 = vcmp.gt.s32.totalorder %v3243_v31, %v18027_v32  ;;  %v3378_v45 = vsel %vm3377_vm12, %v3376_v13, %v18025_v19  ;;  %v18029_v14 = vld [vmem:[#allocation152_spill] sm:$0xff]  ;;  %v18032_v33 = vld [vmem:[#allocation146_spill] sm:$0xff]  ;;  %v18043_v19 = vld [vmem:[#allocation151_spill] sm:$0xff] }
 0x410   :  { %v2977_v54 = vsel %vm2976_vm10, %v2975_v29, %v18026_v15  ;;  %vm3111_vm6 = vcmp.gt.s32.totalorder %v3110_v50, %v18031_v37  ;;  %v3245_v26 = vsel %vm3244_vm3, %v3243_v31, %v18027_v32  ;;  %vm3379_vm12 = vcmp.gt.s32.totalorder %v3378_v45, %v18032_v33  ;;  %v18035_v15 = vld [vmem:[#allocation156_spill] sm:$0xff]  ;;  %v18036_v29 = vld [vmem:[#allocation149_spill] sm:$0xff]  ;;  %v18042_v31 = vld [vmem:[#allocation34_spill] sm:$0xff] }
 0x411   :  { %vm2978_vm10 = vcmp.gt.s32.totalorder %v2977_v54, %v18035_v15  ;;  %v3112_v13 = vsel %vm3111_vm6, %v3110_v50, %v18031_v37  ;;  %vm3246_vm3 = vcmp.gt.s32.totalorder %v3245_v26, %v18036_v29  ;;  %v3380_v0 = vsel %vm3379_vm12, %v3378_v45, %v18032_v33  ;;  %v18049_v45 = vld [vmem:[#allocation163_spill] sm:$0xff] }
 0x412   :  { %vm18037_vm2 = vcmp.eq.f32.partialorder %v17608_v3, %v5748_v42  ;;  %vm18038_vm9 = vcmp.gt.f32.partialorder %v17608_v3, %v5748_v42  ;;  %v2979_v58 = vsel %vm2978_vm10, %v2977_v54, %v18035_v15  ;;  %vm3113_vm5 = vcmp.gt.s32.totalorder %v3112_v13, %v18042_v31  ;;  %v18050_v37 = vld [vmem:[#allocation159_spill] sm:$0xff] }
 0x413   :  { %vm9376_vm8 = vmor %vm18038_vm9, %vm18037_vm2  ;;  %v3247_v50 = vsel %vm3246_vm3, %v3245_v26, %v18036_v29  ;;  %vm3381_vm6 = vcmp.gt.s32.totalorder %v3380_v0, %v18043_v19  ;;  %vm18044_vm11 = vcmp.eq.f32.partialorder %v17608_v3, %v5850_v60  ;;  %vm18045_vm2 = vcmp.gt.f32.partialorder %v17608_v3, %v5850_v60 }
 0x414   :  { %v18040_v44 = vsel %vm9376_vm8, 4294967295, %v18039_v44  ;;  %vm9392_vm9 = vmor %vm18045_vm2, %vm18044_vm11  ;;  %v18046_v32 = vmov 0  ;;  %vm2980_vm10 = vcmp.gt.s32.totalorder %v2979_v58, %v18049_v45  ;;  %v3114_v54 = vsel %vm3113_vm5, %v3112_v13, %v18042_v31  ;;  %v18054_v13 = vld [vmem:[#allocation166_spill] sm:$0xff]  ;;  %v18061_v31 = vld [vmem:[#allocation167_spill] sm:$0xff] }
 0x415   :  { %18041 = vst [vmem:[#allocation116_spill] sm:$0xff] %v18040_v44  ;;  %v18047_v32 = vsel %vm9392_vm9, 4294967295, %v18046_v32  ;;  %vm3248_vm3 = vcmp.gt.s32.totalorder %v3247_v50, %v18050_v37  ;;  %v3382_v26 = vsel %vm3381_vm6, %v3380_v0, %v18043_v19  ;;  %vm9409_vm11 = vmor %vm713_vm13, %vm9360_vm15  ;;  %v18051_v33 = vmov 0  ;;  %v18055_v0 = vld [vmem:[#allocation161_spill] sm:$0xff]  ;;  %v18084_v19 = vld [vmem:[#allocation51_spill] sm:$0xff] }
 0x416   :  { %18048 = vst [vmem:[#allocation137_spill] sm:$0xff] %v18047_v32  ;;  %v18052_v33 = vsel %vm9409_vm11, 4294967295, %v18051_v33  ;;  %v2981_v15 = vsel %vm2980_vm10, %v2979_v58, %v18049_v45  ;;  %vm3115_vm5 = vcmp.gt.s32.totalorder %v3114_v54, %v18054_v13  ;;  %v3249_v29 = vsel %vm3248_vm3, %v3247_v50, %v18050_v37  ;;  %v18065_v37 = vld [vmem:[#allocation185_spill] sm:$0xff] }
 0x417   :  { %18053 = vst [vmem:[#allocation117_spill] sm:$0xff] %v18052_v33  ;;  %vm3383_vm6 = vcmp.gt.s32.totalorder %v3382_v26, %v18055_v0  ;;  %vm18056_vm2 = vcmp.eq.f32.partialorder %v18012_v41, %v5748_v42  ;;  %vm18057_vm12 = vcmp.gt.f32.partialorder %v18012_v41, %v5748_v42  ;;  %v18058_v53 = vmov 0 }
 0x418   :  { %vm9423_vm7 = vmor %vm18057_vm12, %vm18056_vm2  ;;  %vm2982_vm13 = vcmp.gt.s32.totalorder %v2981_v15, %v8654_v49  ;;  %v3116_v58 = vsel %vm3115_vm5, %v3114_v54, %v18054_v13  ;;  %vm3250_vm15 = vcmp.gt.s32.totalorder %v3249_v29, %v18061_v31  ;;  %v3384_v50 = vsel %vm3383_vm6, %v3382_v26, %v18055_v0  ;;  %v18066_v54 = vld [vmem:[#allocation173_spill] sm:$0xff]  ;;  %v9446_v26 = vpop.trf.xlu0 }
 0x419   :  { %v18059_v53 = vsel %vm9423_vm7, 4294967295, %v18058_v53  ;;  %vm18062_vm10 = vcmp.eq.s32.totalorder %v9074_v43, %v5852_v21  ;;  %v2983_v45 = vsel %vm2982_vm13, %v2981_v15, %v8654_v49  ;;  %vm3117_vm12 = vcmp.gt.s32.totalorder %v3116_v58, %v18065_v37  ;;  %18067 = vst [vmem:[#allocation136_spill] sm:$0xff] %v9446_v26 }
 0x41a   :  { %18060 = vst [vmem:[#allocation32_spill] sm:$0xff] %v18059_v53  ;;  %vm9436_vm3 = vmand %vm18062_vm10, %vm9376_vm8  ;;  %v3251_v2 = vsel %vm3250_vm15, %v3249_v29, %v18061_v31  ;;  %vm3385_vm5 = vcmp.gt.s32.totalorder %v3384_v50, %v18066_v54  ;;  %vm18068_vm2 = vcmp.eq.s32.totalorder %v9074_v43, %v5805_v25  ;;  %vm2984_vm13 = vcmp.gt.s32.totalorder %v2983_v45, %v8952_v27 }
 0x41b   :  { %vm9453_vm10 = vmand %vm18068_vm2, %vm9392_vm9  ;;  %v3118_v49 = vsel %vm3117_vm12, %v3116_v58, %v18065_v37  ;;  %vm3252_vm15 = vcmp.gt.s32.totalorder %v3251_v2, %v8899_v7  ;;  %v3386_v15 = vsel %vm3385_vm5, %v3384_v50, %v18066_v54  ;;  %vm18071_vm6 = vcmp.eq.s32.totalorder %v9309_v18, %v5797_v51 }
 0x41c   :  { %vm9466_vm1 = vmand %vm18071_vm6, %vm9409_vm11  ;;  %v9471_v0 = vsel %vm2984_vm13, %v2983_v45, %v8952_v27  ;;  %vm3119_vm2 = vcmp.gt.s32.totalorder %v3118_v49, %v8997_v46  ;;  %v3253_v58 = vsel %vm3252_vm15, %v3251_v2, %v8899_v7  ;;  %vm3387_vm12 = vcmp.gt.s32.totalorder %v3386_v15, %v8947_v48 }
 0x41d   :  { %vm18074_vm5 = vcmp.eq.s32.totalorder %v9309_v18, %v5852_v21  ;;  %v3120_v27 = vsel %vm3119_vm2, %v3118_v49, %v8997_v46  ;;  %vm3254_vm13 = vcmp.gt.s32.totalorder %v3253_v58, %v9002_v24  ;;  %v3388_v7 = vsel %vm3387_vm12, %v3386_v15, %v8947_v48 }
 0x41e   :  { %vm9481_vm4 = vmand %vm18074_vm5, %vm9423_vm7  ;;  %v9493_v2 = vsel %vm9436_vm3, 1, %v17017_v55  ;;  %vm3121_vm15 = vcmp.gt.s32.totalorder %v3120_v27, %v9029_v20  ;;  %v3255_v50 = vsel %vm3254_vm13, %v3253_v58, %v9002_v24  ;;  %vm3389_vm5 = vcmp.gt.s32.totalorder %v3388_v7, %v9007_v47 }
 0x41f   :  { %vm18077_vm6 = vcmp.lt.s32.totalorder %v18030_v5, %v18029_v14  ;;  %vm18078_vm2 = vcmp.eq.f32.partialorder %v18028_v8, %v5748_v42  ;;  %v9507_v48 = vsel %vm9453_vm10, 1, %v17017_v55  ;;  %vm18079_vm3 = vcmp.eq.f32.partialorder %v18012_v41, %v5850_v60  ;;  %v9521_v5 = vpop.trf.xlu1 }
 0x420   :  { %vm1486_vm0 = vmand %vm18078_vm2, %vm18077_vm6  ;;  %vm18080_vm12 = vcmp.gt.f32.partialorder %v18012_v41, %v5850_v60  ;;  %v18081_v46 = vmov 0  ;;  %vm3256_vm14 = vcmp.gt.s32.totalorder %v3255_v50, %v9048_v12  ;;  %v3390_v24 = vsel %vm3389_vm5, %v3388_v7, %v9007_v47 }
 0x421   :  { %vm9515_vm13 = vmor %vm18080_vm12, %vm18079_vm3  ;;  %v9524_v45 = vadd.s32 264, %v18084_v19  ;;  %vm18085_vm10 = vcmp.eq.s32.totalorder %v9309_v18, %v5805_v25  ;;  %v9538_v54 = vsel %vm9466_vm1, 1, %v17017_v55  ;;  %vm3391_vm5 = vcmp.gt.s32.totalorder %v3390_v24, %v9070_v52 }
 0x422   :  { %v18082_v46 = vsel %vm9515_vm13, 4294967295, %v18081_v46  ;;  %vm9531_vm6 = vmand %vm18085_vm10, %vm9515_vm13  ;;  %v3122_v47 = vsel %vm3121_vm15, %v3120_v27, %v9029_v20  ;;  %v3257_v13 = vsel %vm3256_vm14, %v3255_v50, %v9048_v12  ;;  %v9546_v49 = vsel %vm9481_vm4, 1, %v17017_v55  ;;  %v9600_v27 = vpop.trf.xlu0 }
 0x423   :  { %18083 = vst [vmem:[#allocation72_spill] sm:$0xff] %v18082_v46  ;;  %vm18088_vm2 = vcmp.gt.f32.partialorder %v18028_v8, %v5748_v42  ;;  %v18089_v15 = vmov 0  ;;  %vm3123_vm1 = vcmp.gt.s32.totalorder %v3122_v47, %v9121_v62  ;;  %vm3258_vm12 = vcmp.gt.s32.totalorder %v3257_v13, %v9150_v61 }
 0x424   :  { %vm9551_vm3 = vmor %vm18088_vm2, %vm1486_vm0  ;;  %v3392_v20 = vsel %vm3391_vm5, %v3390_v24, %v9070_v52  ;;  %vm18092_vm14 = vcmp.eq.f32.partialorder %v18028_v8, %v5850_v60  ;;  %vm18093_vm4 = vcmp.gt.f32.partialorder %v18028_v8, %v5850_v60  ;;  %v18094_v12 = vmov 0 }
 0x425   :  { %v18090_v15 = vsel %vm9551_vm3, 4294967295, %v18089_v15  ;;  %vm9564_vm15 = vmor %vm18093_vm4, %vm18092_vm14  ;;  %v3124_v29 = vsel %vm3123_vm1, %v3122_v47, %v9121_v62  ;;  %v3259_v58 = vsel %vm3258_vm12, %v3257_v13, %v9150_v61  ;;  %vm3393_vm0 = vcmp.gt.s32.totalorder %v3392_v20, %v9155_v1 }
 0x426   :  { %18091 = vst [vmem:[#allocation139_spill] sm:$0xff] %v18090_v15  ;;  %v18095_v12 = vsel %vm9564_vm15, 4294967295, %v18094_v12  ;;  %vm2301_vm10 = vcmp.eq.s32.totalorder %v9521_v5, %v5797_v51  ;;  %vm3125_vm2 = vcmp.gt.s32.totalorder %v3124_v29, %v9177_v6  ;;  %vm3260_vm13 = vcmp.gt.s32.totalorder %v3259_v58, %v9182_v17 }
 0x427   :  { %18096 = vst [vmem:[#allocation144_spill] sm:$0xff] %v18095_v12  ;;  %v3394_v52 = vsel %vm3393_vm0, %v3392_v20, %v9155_v1  ;;  %vm2302_vm14 = vcmp.eq.s32.totalorder %v9521_v5, %v5852_v21  ;;  %vm18097_vm1 = vcmp.gt.f32.partialorder %v18028_v8, %v5629_v34  ;;  %v3126_v61 = vsel %vm3125_vm2, %v3124_v29, %v9177_v6  ;;  %v2125_v62 = vpop.trf.xlu1 }
 0x428   :  { %vm9583_vm12 = vmand %vm2301_vm10, %vm18097_vm1  ;;  %v3261_v31 = vsel %vm3260_vm13, %v3259_v58, %v9182_v17  ;;  %vm3395_vm5 = vcmp.gt.s32.totalorder %v3394_v52, %v9187_v28  ;;  %vm2303_vm0 = vcmp.eq.s32.totalorder %v9521_v5, %v5805_v25  ;;  %vm16634_vm10 = vcmp.gt.f32.partialorder %v17546_v9, %v5470_v36 }
 0x429   :  { %vm9596_vm7 = vmand %vm2302_vm14, %vm9551_vm3  ;;  %v2811_v6 = vsel %vm9531_vm6, 1, %v17017_v55  ;;  %vm3127_vm13 = vcmp.gt.s32.totalorder %v3126_v61, %v9207_v23  ;;  %vm3262_vm1 = vcmp.gt.s32.totalorder %v3261_v31, %v9212_v35  ;;  %v3396_v17 = vsel %vm3395_vm5, %v3394_v52, %v9187_v28 }
 0x42a   :  { %vm2559_vm14 = vmand %vm2303_vm0, %vm9564_vm15  ;;  %vm16639_vm4 = vcmp.gt.f32.partialorder %v17608_v3, %v5470_v36  ;;  %v3128_v7 = vsel %vm3127_vm13, %v3126_v61, %v9207_v23  ;;  %v3263_v50 = vsel %vm3262_vm1, %v3261_v31, %v9212_v35  ;;  %vm3397_vm2 = vcmp.gt.s32.totalorder %v3396_v17, %v9227_v57 }
 0x42b   :  { %v2813_v24 = vsel %vm9583_vm12, 1, %v17017_v55  ;;  %vm16638_vm6 = vcmp.gt.f32.partialorder %v18012_v41, %v5470_v36  ;;  %vm3129_vm5 = vcmp.gt.s32.totalorder %v3128_v7, %v9237_v4  ;;  %vm3264_vm0 = vcmp.gt.s32.totalorder %v3263_v50, %v9247_v38 }
 0x42c   :  { %v3398_v28 = vsel %vm3397_vm2, %v3396_v17, %v9227_v57  ;;  %v2814_v23 = vsel %vm9596_vm7, 1, %v17017_v55  ;;  %v3130_v35 = vsel %vm3129_vm5, %v3128_v7, %v9237_v4  ;;  %v3265_v37 = vsel %vm3264_vm0, %v3263_v50, %v9247_v38 }
 0x42d   :  { %vm3399_vm13 = vcmp.gt.s32.totalorder %v3398_v28, %v9252_v11  ;;  %v2815_v47 = vsel %vm2559_vm14, 1, %v17017_v55  ;;  %vm3131_vm12 = vcmp.gt.s32.totalorder %v3130_v35, %v9257_v10  ;;  %vm3266_vm1 = vcmp.gt.s32.totalorder %v3265_v37, %v9271_v22 }
 0x42e   :  { %v3400_v13 = vsel %vm3399_vm13, %v3398_v28, %v9252_v11  ;;  %vm18102_vm2 = vcmp.gt.s32.totalorder %v9471_v0, %v9024_v30  ;;  %v3132_v4 = vsel %vm3131_vm12, %v3130_v35, %v9257_v10  ;;  %v3267_v38 = vsel %vm3266_vm1, %v3265_v37, %v9271_v22  ;;  %v9742_v35 = vpop.trf.xlu2 }
 0x42f   :  { %v2987_v57 = vsel %vm18102_vm2, %v9471_v0, %v9024_v30  ;;  %vm3401_vm7 = vcmp.gt.s32.totalorder %v3400_v13, %v9276_v56  ;;  %vm3133_vm5 = vcmp.gt.s32.totalorder %v3132_v4, %v9294_v63  ;;  %vm3268_vm0 = vcmp.gt.s32.totalorder %v3267_v38, %v9493_v2  ;;  %v18106_v0 = vld [vmem:[#allocation196_spill] sm:$0xff]  ;;  %18119 = vst [vmem:[#allocation145_spill] sm:$0xff] %v9742_v35 }
 0x430   :  { %vm2988_vm14 = vcmp.gt.s32.totalorder %v2987_v57, %v9094_v40  ;;  %v3402_v11 = vsel %vm3401_vm7, %v3400_v13, %v9276_v56  ;;  %v3134_v29 = vsel %vm3133_vm5, %v3132_v4, %v9294_v63  ;;  %v3269_v30 = vsel %vm3268_vm0, %v3267_v38, %v9493_v2  ;;  %v9671_v2 = vpop.trf.xlu0  ;;  %v18120_v13 = vld [vmem:[#allocation74_spill] sm:$0xff] }
 0x431   :  { %v2989_v20 = vsel %vm2988_vm14, %v2987_v57, %v9094_v40  ;;  %vm3403_vm13 = vcmp.gt.s32.totalorder %v3402_v11, %v9507_v48  ;;  %vm3135_vm1 = vcmp.gt.s32.totalorder %v3134_v29, %v9538_v54  ;;  %vm3270_vm2 = vcmp.gt.s32.totalorder %v3269_v30, %v9546_v49 }
 0x432   :  { %vm2990_vm12 = vcmp.gt.s32.totalorder %v2989_v20, %v9160_v39  ;;  %v3404_v10 = vsel %vm3403_vm13, %v3402_v11, %v9507_v48  ;;  %vm18103_vm7 = vcmp.eq.s32.totalorder %v8732_v16, %v5795_v59  ;;  %v3136_v56 = vsel %vm3135_vm1, %v3134_v29, %v9538_v54  ;;  %v18109_v48 = vld [vmem:[#allocation197_spill] sm:$0xff]  ;;  %v18110_v54 = vld [vmem:[#allocation67_spill] sm:$0xff]  ;;  %v2126_v11 = vpop.trf.xlu1 }
 0x433   :  { %v2991_v22 = vsel %vm2990_vm12, %v2989_v20, %v9160_v39  ;;  %vm9664_vm14 = vmand %vm18103_vm7, %vm16634_vm10  ;;  %v3271_v63 = vsel %vm3270_vm2, %v3269_v30, %v9546_v49  ;;  %vm3405_vm5 = vcmp.gt.s32.totalorder %v3404_v10, %v2811_v6  ;;  %vm18107_vm13 = vcmp.eq.s32.totalorder %v9074_v43, %v5795_v59 }
 0x434   :  { %vm2992_vm0 = vcmp.gt.s32.totalorder %v2991_v22, %v18106_v0  ;;  %vm2548_vm12 = vmand %vm18107_vm13, %vm16639_vm4  ;;  %v3406_v39 = vsel %vm3405_vm5, %v3404_v10, %v2811_v6  ;;  %vm3137_vm7 = vcmp.gt.s32.totalorder %v3136_v56, %v2813_v24  ;;  %vm3272_vm10 = vcmp.gt.s32.totalorder %v3271_v63, %v2814_v23 }
 0x435   :  { %v2993_v16 = vsel %vm2992_vm0, %v2991_v22, %v18106_v0  ;;  %vm18108_vm1 = vcmp.eq.s32.totalorder %v9309_v18, %v5795_v59  ;;  %vm3407_vm9 = vcmp.gt.s32.totalorder %v3406_v39, %v2815_v47  ;;  %vm978_vm8 = vcmp.eq.f32.partialorder %v18110_v54, %v5748_v42 }
 0x436   :  { %vm2552_vm2 = vmand %vm18108_vm1, %vm16638_vm6  ;;  %vm2994_vm11 = vcmp.gt.s32.totalorder %v2993_v16, %v18109_v48  ;;  %vm1234_vm5 = vcmp.lt.s32.totalorder %v9524_v45, %v18029_v14  ;;  %v2800_v43 = vsel %vm9664_vm14, 1, %v17017_v55  ;;  %vm2300_vm0 = vcmp.eq.s32.totalorder %v9521_v5, %v5795_v59 }
 0x437   :  { %v2995_v49 = vsel %vm2994_vm11, %v2993_v16, %v18109_v48  ;;  %v2804_v18 = vsel %vm2548_vm12, 1, %v17017_v55  ;;  %v2808_v58 = vsel %vm2552_vm2, 1, %v17017_v55  ;;  %vm16640_vm1 = vcmp.gt.f32.partialorder %v18028_v8, %v5470_v36  ;;  %vm9701_vm6 = vmand %vm978_vm8, %vm1234_vm5 }
 0x438   :  { %vm2996_vm13 = vcmp.gt.s32.totalorder %v2995_v49, %v2800_v43  ;;  %vm2556_vm14 = vmand %vm2300_vm0, %vm16640_vm1  ;;  %vm722_vm11 = vcmp.gt.f32.partialorder %v18110_v54, %v5748_v42  ;;  %v3138_v5 = vsel %vm3137_vm7, %v3136_v56, %v2813_v24  ;;  %v3273_v61 = vsel %vm3272_vm10, %v3271_v63, %v2814_v23  ;;  %v9734_v28 = vpop.trf.xlu0  ;;  %v9785_v56 = vpop.trf.xlu2 }
 0x439   :  { %v2997_v52 = vsel %vm2996_vm13, %v2995_v49, %v2800_v43  ;;  %vm723_vm8 = vcmp.gt.f32.partialorder %v18110_v54, %v5850_v60  ;;  %vm979_vm12 = vcmp.eq.f32.partialorder %v18110_v54, %v5850_v60  ;;  %v3408_v1 = vsel %vm3407_vm9, %v3406_v39, %v2815_v47  ;;  %vm9721_vm7 = vmor %vm722_vm11, %vm9701_vm6  ;;  %18127 = vst [vmem:[#allocation130_spill] sm:$0xff] %v9785_v56 }
 0x43a   :  { %vm2998_vm4 = vcmp.gt.s32.totalorder %v2997_v52, %v2804_v18  ;;  %vm2304_vm5 = vcmp.eq.s32.totalorder %v2125_v62, %v5795_v59  ;;  %v2812_v6 = vsel %vm2556_vm14, 1, %v17017_v55  ;;  %v18113_v7 = vmov 0  ;;  %vm9729_vm0 = vmor %vm723_vm8, %vm979_vm12  ;;  %v2127_v45 = vpop.trf.xlu1 }
 0x43b   :  { %v2999_v31 = vsel %vm2998_vm4, %v2997_v52, %v2804_v18  ;;  %v18114_v7 = vsel %vm9721_vm7, 4294967295, %v18113_v7  ;;  %vm2305_vm4 = vcmp.eq.s32.totalorder %v2125_v62, %v5797_v51  ;;  %v426_v50 = vadd.s32 272, %v18084_v19  ;;  %v18128_v52 = vld [vmem:[#allocation82_spill] sm:$0xff] }
 0x43c   :  { %vm3000_vm2 = vcmp.gt.s32.totalorder %v2999_v31, %v2808_v58  ;;  %18115 = vst [vmem:[#allocation141_spill] sm:$0xff] %v18114_v7  ;;  %vm16641_vm9 = vcmp.gt.f32.partialorder %v18110_v54, %v5470_v36  ;;  %v18116_v24 = vmov 0  ;;  %vm2306_vm13 = vcmp.eq.s32.totalorder %v2125_v62, %v5852_v21 }
 0x43d   :  { %v3001_v17 = vsel %vm3000_vm2, %v2999_v31, %v2808_v58  ;;  %v18117_v24 = vsel %vm9729_vm0, 4294967295, %v18116_v24  ;;  %vm16642_vm6 = vcmp.gt.f32.partialorder %v18110_v54, %v5629_v34  ;;  %vm2307_vm14 = vcmp.eq.s32.totalorder %v2125_v62, %v5805_v25  ;;  %vm2560_vm11 = vmand %vm2304_vm5, %vm16641_vm9 }
 0x43e   :  { %vm3002_vm10 = vcmp.gt.s32.totalorder %v3001_v17, %v2812_v6  ;;  %18118 = vst [vmem:[#allocation148_spill] sm:$0xff] %v18117_v24  ;;  %vm2561_vm8 = vmand %vm2305_vm4, %vm16642_vm6  ;;  %v2816_v37 = vsel %vm2560_vm11, 1, %v17017_v55  ;;  %vm982_vm1 = vcmp.eq.f32.partialorder %v18120_v13, %v5748_v42  ;;  %vm1238_vm5 = vcmp.lt.s32.totalorder %v426_v50, %v18029_v14 }
 0x43f   :  { %v3003_v23 = vsel %vm3002_vm10, %v3001_v17, %v2812_v6  ;;  %vm2562_vm12 = vmand %vm2306_vm13, %vm9721_vm7  ;;  %v2817_v47 = vsel %vm2561_vm8, 1, %v17017_v55  ;;  %vm726_vm11 = vcmp.gt.f32.partialorder %v18120_v13, %v5748_v42  ;;  %vm727_vm6 = vcmp.gt.f32.partialorder %v18120_v13, %v5850_v60 }
 0x440   :  { %vm3004_vm2 = vcmp.gt.s32.totalorder %v3003_v23, %v2816_v37  ;;  %vm2563_vm10 = vmand %vm2307_vm14, %vm9729_vm0  ;;  %v2818_v57 = vsel %vm2562_vm12, 1, %v17017_v55  ;;  %vm3139_vm9 = vcmp.gt.s32.totalorder %v3138_v5, %v2817_v47  ;;  %vm983_vm14 = vcmp.eq.f32.partialorder %v18120_v13, %v5850_v60  ;;  %v9777_v40 = vpop.trf.xlu0 }
 0x441   :  { %v2819_v4 = vsel %vm2563_vm10, 1, %v17017_v55  ;;  %vm3274_vm4 = vcmp.gt.s32.totalorder %v3273_v61, %v2818_v57  ;;  %v3140_v38 = vsel %vm3139_vm9, %v3138_v5, %v2817_v47  ;;  %vm1494_vm8 = vmand %vm982_vm1, %vm1238_vm5  ;;  %v3005_v29 = vsel %vm3004_vm2, %v3003_v23, %v2816_v37  ;;  %v9811_v5 = vpop.trf.xlu2 }
 0x442   :  { %vm3409_vm13 = vcmp.gt.s32.totalorder %v3408_v1, %v2819_v4  ;;  %v3275_v20 = vsel %vm3274_vm4, %v3273_v61, %v2818_v57  ;;  %vm2308_vm12 = vcmp.eq.s32.totalorder %v2126_v11, %v5795_v59  ;;  %vm9765_vm10 = vmor %vm726_vm11, %vm1494_vm8  ;;  %v18121_v10 = vmov 0  ;;  %18129 = vst [vmem:[#allocation146_spill] sm:$0xff] %v9811_v5 }
 0x443   :  { %v3410_v30 = vsel %vm3409_vm13, %v3408_v1, %v2819_v4  ;;  %v18122_v10 = vsel %vm9765_vm10, 4294967295, %v18121_v10  ;;  %vm2309_vm9 = vcmp.eq.s32.totalorder %v2126_v11, %v5797_v51  ;;  %vm16644_vm1 = vcmp.gt.f32.partialorder %v18120_v13, %v5470_v36  ;;  %vm9772_vm5 = vmor %vm727_vm6, %vm983_vm14 }
 0x444   :  { %18123 = vst [vmem:[#allocation152_spill] sm:$0xff] %v18122_v10  ;;  %v18124_v22 = vmov 0  ;;  %vm2310_vm2 = vcmp.eq.s32.totalorder %v2126_v11, %v5852_v21  ;;  %vm16645_vm4 = vcmp.gt.f32.partialorder %v18120_v13, %v5629_v34  ;;  %vm2311_vm13 = vcmp.eq.s32.totalorder %v2126_v11, %v5805_v25  ;;  %vm2564_vm11 = vmand %vm2308_vm12, %vm16644_vm1 }
 0x445   :  { %v18125_v22 = vsel %vm9772_vm5, 4294967295, %v18124_v22  ;;  %vm2565_vm6 = vmand %vm2309_vm9, %vm16645_vm4  ;;  %v2820_v63 = vsel %vm2564_vm11, 1, %v17017_v55  ;;  %v427_v16 = vadd.s32 280, %v18084_v19  ;;  %v18130_v61 = vmov 0 }
 0x446   :  { %18126 = vst [vmem:[#allocation155_spill] sm:$0xff] %v18125_v22  ;;  %vm2566_vm8 = vmand %vm2310_vm2, %vm9765_vm10  ;;  %v2821_v0 = vsel %vm2565_vm6, 1, %v17017_v55  ;;  %vm3006_vm14 = vcmp.gt.s32.totalorder %v3005_v29, %v2820_v63  ;;  %vm986_vm2 = vcmp.eq.f32.partialorder %v18128_v52, %v5748_v42  ;;  %vm731_vm6 = vcmp.gt.f32.partialorder %v18128_v52, %v5850_v60 }
 0x447   :  { %vm2567_vm0 = vmand %vm2311_vm13, %vm9772_vm5  ;;  %v2822_v39 = vsel %vm2566_vm8, 1, %v17017_v55  ;;  %vm3141_vm12 = vcmp.gt.s32.totalorder %v3140_v38, %v2821_v0  ;;  %v3007_v49 = vsel %vm3006_vm14, %v3005_v29, %v2820_v63  ;;  %vm1242_vm11 = vcmp.lt.s32.totalorder %v427_v16, %v18029_v14  ;;  %v18139_v63 = vld [vmem:[#allocation50_spill] sm:$0xff]  ;;  %v9866_v16 = vpop.trf.xlu1 }
 0x448   :  { %v2823_v48 = vsel %vm2567_vm0, 1, %v17017_v55  ;;  %vm3276_vm1 = vcmp.gt.s32.totalorder %v3275_v20, %v2822_v39  ;;  %v3142_v43 = vsel %vm3141_vm12, %v3140_v38, %v2821_v0  ;;  %vm730_vm13 = vcmp.gt.f32.partialorder %v18128_v52, %v5748_v42  ;;  %v9808_v62 = vpop.trf.xlu0  ;;  %vm1498_vm8 = vmand %vm986_vm2, %vm1242_vm11 }
 0x449   :  { %vm3411_vm9 = vcmp.gt.s32.totalorder %v3410_v30, %v2823_v48  ;;  %v3277_v18 = vsel %vm3276_vm1, %v3275_v20, %v2822_v39  ;;  %vm987_vm0 = vcmp.eq.f32.partialorder %v18128_v52, %v5850_v60  ;;  %vm2312_vm1 = vcmp.eq.s32.totalorder %v2127_v45, %v5795_v59  ;;  %vm9813_vm14 = vmor %vm730_vm13, %vm1498_vm8  ;;  %v9852_v38 = vpop.trf.xlu2 }
 0x44a   :  { %v3412_v58 = vsel %vm3411_vm9, %v3410_v30, %v2823_v48  ;;  %v18131_v61 = vsel %vm9813_vm14, 4294967295, %v18130_v61  ;;  %vm2313_vm12 = vcmp.eq.s32.totalorder %v2127_v45, %v5797_v51  ;;  %vm16649_vm9 = vcmp.gt.f32.partialorder %v18128_v52, %v5470_v36  ;;  %vm9820_vm4 = vmor %vm731_vm6, %vm987_vm0  ;;  %18136 = vst [vmem:[#allocation34_spill] sm:$0xff] %v9852_v38 }
 0x44b   :  { %18132 = vst [vmem:[#allocation156_spill] sm:$0xff] %v18131_v61  ;;  %v18133_v31 = vmov 0  ;;  %vm2314_vm5 = vcmp.eq.s32.totalorder %v2127_v45, %v5852_v21  ;;  %vm16648_vm2 = vcmp.gt.f32.partialorder %v18128_v52, %v5629_v34  ;;  %vm2315_vm11 = vcmp.eq.s32.totalorder %v2127_v45, %v5805_v25  ;;  %vm2568_vm13 = vmand %vm2312_vm1, %vm16649_vm9 }
 0x44c   :  { %v18134_v31 = vsel %vm9820_vm4, 4294967295, %v18133_v31  ;;  %vm2569_vm8 = vmand %vm2313_vm12, %vm16648_vm2  ;;  %v2824_v1 = vsel %vm2568_vm13, 1, %v17017_v55  ;;  %v9863_v0 = vadd.s32 384, %v18139_v63  ;;  %v440_v39 = vadd.s32 384, %v18084_v19 }
 0x44d   :  { %18135 = vst [vmem:[#allocation149_spill] sm:$0xff] %v18134_v31  ;;  %vm2570_vm6 = vmand %vm2314_vm5, %vm9813_vm14  ;;  %v2825_v6 = vsel %vm2569_vm8, 1, %v17017_v55  ;;  %vm3008_vm0 = vcmp.gt.s32.totalorder %v3007_v49, %v2824_v1  ;;  %v441_v48 = vadd.s32 392, %v18084_v19  ;;  %vm1039_vm5 = vcmp.eq.f32.partialorder %v9742_v35, %v5850_v60 }
 0x44e   :  { %vm2571_vm10 = vmand %vm2315_vm11, %vm9820_vm4  ;;  %v2826_v17 = vsel %vm2570_vm6, 1, %v17017_v55  ;;  %v9841_v50 = vsel %vm3008_vm0, %v3007_v49, %v2824_v1  ;;  %vm3143_vm1 = vcmp.gt.s32.totalorder %v3142_v43, %v2825_v6  ;;  %vm1043_vm8 = vcmp.eq.f32.partialorder %v9785_v56, %v5850_v60 }
 0x44f   :  { %v2827_v23 = vsel %vm2571_vm10, 1, %v17017_v55  ;;  %v9844_v37 = vsel %vm3143_vm1, %v3142_v43, %v2825_v6  ;;  %vm3278_vm12 = vcmp.gt.s32.totalorder %v3277_v18, %v2826_v17  ;;  %vm1295_vm10 = vcmp.lt.s32.totalorder %v440_v39, %v9863_v0 }
 0x450   :  { %v9846_v47 = vsel %vm3278_vm12, %v3277_v18, %v2826_v17  ;;  %vm3413_vm13 = vcmp.gt.s32.totalorder %v3412_v58, %v2827_v23  ;;  %v9850_v4 = vpop.trf.xlu0  ;;  %v442_v43 = vadd.s32 400, %v18084_v19  ;;  %vm1299_vm11 = vcmp.lt.s32.totalorder %v441_v48, %v9863_v0  ;;  %vm1551_vm0 = vmand %vm1039_vm5, %vm1295_vm10  ;;  %v9910_v17 = vpop.trf.xlu1 }
 0x451   :  { %v9848_v57 = vsel %vm3413_vm13, %v3412_v58, %v2827_v23  ;;  %v9856_v20 = vpop.trf.xlu2  ;;  %v443_v49 = vadd.s32 408, %v18084_v19  ;;  %vm783_vm6 = vcmp.gt.f32.partialorder %v9742_v35, %v5850_v60  ;;  %vm9896_vm5 = vmand %vm1043_vm8, %vm1299_vm11  ;;  %v18143_v1 = vmov 0 }
 0x452   :  { %18137 = vst [vmem:[#allocation151_spill] sm:$0xff] %v9856_v20  ;;  %vm1303_vm12 = vcmp.lt.s32.totalorder %v442_v43, %v9863_v0  ;;  %vm9900_vm1 = vmor %vm783_vm6, %vm1551_vm0  ;;  %v444_v6 = vadd.s32 416, %v18084_v19  ;;  %vm2365_vm11 = vcmp.eq.s32.totalorder %v9734_v28, %v5797_v51  ;;  %vm2366_vm8 = vcmp.eq.s32.totalorder %v9734_v28, %v5852_v21 }
 0x453   :  { %v18144_v1 = vsel %vm9900_vm1, 4294967295, %v18143_v1  ;;  %vm18146_vm9 = vcmp.eq.f32.partialorder %v9811_v5, %v5850_v60  ;;  %vm2367_vm2 = vcmp.eq.s32.totalorder %v9734_v28, %v5805_v25  ;;  %vm2368_vm4 = vcmp.eq.s32.totalorder %v9777_v40, %v5795_v59 }
 0x454   :  { %18145 = vst [vmem:[#allocation166_spill] sm:$0xff] %v18144_v1  ;;  %vm9925_vm13 = vmand %vm18146_vm9, %vm1303_vm12  ;;  %vm2369_vm6 = vcmp.eq.s32.totalorder %v9777_v40, %v5797_v51  ;;  %vm18149_vm0 = vcmp.gt.f32.partialorder %v9742_v35, %v5470_v36  ;;  %vm18150_vm10 = vcmp.eq.s32.totalorder %v9734_v28, %v5795_v59  ;;  %vm18153_vm9 = vcmp.gt.f32.partialorder %v9742_v35, %v5629_v34 }
 0x455   :  { %vm9941_vm14 = vmand %vm18150_vm10, %vm18149_vm0  ;;  %vm18156_vm15 = vcmp.gt.f32.partialorder %v9785_v56, %v5850_v60  ;;  %v18157_v28 = vmov 0  ;;  %v18163_v43 = vmov 0  ;;  %v18166_v45 = vmov 0 }
 0x456   :  { %vm9948_vm12 = vmand %vm2365_vm11, %vm18153_vm9  ;;  %vm18160_vm11 = vcmp.gt.f32.partialorder %v9742_v35, %v5748_v42  ;;  %vm18169_vm7 = vcmp.eq.f32.partialorder %v9852_v38, %v5850_v60  ;;  %v18173_v35 = vmov 0  ;;  %v18181_v23 = vmov 0 }
 0x457   :  { %vm9959_vm3 = vmor %vm18156_vm15, %vm9896_vm5  ;;  %vm18165_vm15 = vcmp.gt.f32.partialorder %v9785_v56, %v5470_v36  ;;  %v18183_v46 = vmov 0  ;;  %v445_v53 = vadd.s32 424, %v18084_v19  ;;  %v18196_v33 = vmov 0 }
 0x458   :  { %v9854_v11 = vpop.trf.xlu0  ;;  %v18158_v28 = vsel %vm9959_vm3, 4294967295, %v18157_v28  ;;  %vm9968_vm0 = vmand %vm2366_vm8, %vm18160_vm11  ;;  %vm2373_vm11 = vcmp.eq.s32.totalorder %v9808_v62, %v5797_v51  ;;  %v18198_v1 = vmov 0  ;;  %v18209_v41 = vmov 0  ;;  %v10163_v3 = vpop.trf.xlu1 }
 0x459   :  { %v9860_v30 = vpop.trf.xlu2  ;;  %18159 = vst [vmem:[#allocation161_spill] sm:$0xff] %v18158_v28  ;;  %vm9974_vm9 = vmand %vm2367_vm2, %vm9900_vm1  ;;  %vm18168_vm2 = vcmp.lt.s32.totalorder %v443_v49, %v9863_v0  ;;  %v18176_v49 = vmov 0  ;;  %v18189_v28 = vmov 0  ;;  %v428_v32 = vadd.s32 288, %v18084_v19 }
 0x45a   :  { %18138 = vst [vmem:[#allocation163_spill] sm:$0xff] %v9860_v30  ;;  %v18164_v43 = vsel %vm9974_vm9, 4294967295, %v18163_v43  ;;  %vm9981_vm5 = vmand %vm2368_vm4, %vm18165_vm15  ;;  %vm2371_vm4 = vcmp.eq.s32.totalorder %v9777_v40, %v5805_v25  ;;  %vm18172_vm15 = vcmp.gt.f32.partialorder %v9785_v56, %v5629_v34  ;;  %v18214_v44 = vmov 0 }
 0x45b   :  { %v18167_v45 = vsel %vm9981_vm5, 4294967295, %v18166_v45  ;;  %vm9996_vm1 = vmand %vm18169_vm7, %vm18168_vm2  ;;  %vm18175_vm7 = vcmp.gt.f32.partialorder %v9811_v5, %v5850_v60  ;;  %vm2374_vm5 = vcmp.eq.s32.totalorder %v9808_v62, %v5852_v21  ;;  %v18225_v9 = vmov 0 }
 0x45c   :  { %vm10005_vm10 = vmand %vm2369_vm6, %vm18172_vm15  ;;  %vm2372_vm15 = vcmp.eq.s32.totalorder %v9808_v62, %v5795_v59  ;;  %vm18200_vm6 = vcmp.lt.s32.totalorder %v444_v6, %v9863_v0  ;;  %v10203_v31 = vsel %vm9941_vm14, 1, %v17017_v55  ;;  %v10208_v61 = vsel %vm9948_vm12, 1, %v17017_v55 }
 0x45d   :  { %v18174_v35 = vsel %vm10005_vm10, 4294967295, %v18173_v35  ;;  %vm10016_vm2 = vmor %vm18175_vm7, %vm9925_vm13  ;;  %vm18179_vm10 = vcmp.gt.f32.partialorder %v9785_v56, %v5748_v42  ;;  %vm18180_vm13 = vcmp.eq.s32.totalorder %v9777_v40, %v5852_v21  ;;  %v10221_v63 = vsel %vm9968_vm0, 1, %v17017_v55 }
 0x45e   :  { %v18177_v49 = vsel %vm10016_vm2, 4294967295, %v18176_v49  ;;  %vm10033_vm7 = vmand %vm18180_vm13, %vm18179_vm10  ;;  %vm2375_vm10 = vcmp.eq.s32.totalorder %v9808_v62, %v5805_v25  ;;  %vm18185_vm13 = vcmp.gt.f32.partialorder %v9811_v5, %v5470_v36  ;;  %v18192_v62 = vmov 0 }
 0x45f   :  { %18178 = vst [vmem:[#allocation167_spill] sm:$0xff] %v18177_v49  ;;  %v18182_v23 = vsel %vm10033_vm7, 4294967295, %v18181_v23  ;;  %vm10039_vm8 = vmand %vm2371_vm4, %vm9959_vm3  ;;  %vm18188_vm4 = vcmp.gt.f32.partialorder %v9811_v5, %v5629_v34  ;;  %v18205_v49 = vmov 0  ;;  %vm18232_vm14 = vnez %v18164_v43 }
 0x460   :  { %v9858_v29 = vpop.trf.xlu0  ;;  %v18184_v46 = vsel %vm10039_vm8, 4294967295, %v18183_v46  ;;  %vm10053_vm7 = vmand %vm2372_vm15, %vm18185_vm13  ;;  %vm18191_vm8 = vcmp.gt.f32.partialorder %v9852_v38, %v5850_v60  ;;  %vm2376_vm15 = vcmp.eq.s32.totalorder %v9850_v4, %v5795_v59  ;;  %v10226_v39 = vsel %vm18232_vm14, 1, %v17017_v55 }
 0x461   :  { %v9886_v58 = vpop.trf.xlu2  ;;  %vm10060_vm3 = vmand %vm2373_vm11, %vm18188_vm4  ;;  %vm18195_vm11 = vcmp.gt.f32.partialorder %v9811_v5, %v5748_v42  ;;  %vm18233_vm12 = vnez %v18167_v45  ;;  %vm16687_vm0 = vcmp.gt.f32.partialorder %v9860_v30, %v5470_v36  ;;  %vm16689_vm14 = vcmp.gt.f32.partialorder %v9860_v30, %v5629_v34 }
 0x462   :  { %18140 = vst [vmem:[#allocation159_spill] sm:$0xff] %v9886_v58  ;;  %v18190_v28 = vsel %vm10060_vm3, 4294967295, %v18189_v28  ;;  %vm10071_vm9 = vmor %vm18191_vm8, %vm9996_vm1  ;;  %vm18204_vm1 = vcmp.gt.f32.partialorder %v9852_v38, %v5470_v36  ;;  %vm2381_vm8 = vcmp.eq.s32.totalorder %v9854_v11, %v5797_v51  ;;  %v446_v43 = vadd.s32 432, %v18084_v19 }
 0x463   :  { %v18193_v62 = vsel %vm10071_vm9, 4294967295, %v18192_v62  ;;  %vm10082_vm13 = vmand %vm2374_vm5, %vm18195_vm11  ;;  %vm18201_vm5 = vcmp.eq.f32.partialorder %v9856_v20, %v5850_v60  ;;  %v429_v52 = vadd.s32 296, %v18084_v19  ;;  %v18287_v5 = vmov 0 }
 0x464   :  { %18194 = vst [vmem:[#allocation185_spill] sm:$0xff] %v18193_v62  ;;  %v18197_v33 = vsel %vm10082_vm13, 4294967295, %v18196_v33  ;;  %vm10088_vm4 = vmand %vm2375_vm10, %vm10016_vm2  ;;  %vm2377_vm10 = vcmp.eq.s32.totalorder %v9850_v4, %v5797_v51  ;;  %vm2378_vm2 = vcmp.eq.s32.totalorder %v9850_v4, %v5852_v21  ;;  %vm18208_vm13 = vcmp.gt.f32.partialorder %v9852_v38, %v5629_v34  ;;  %v18220_v62 = vld [vmem:[#allocation92_spill] sm:$0xff] }
 0x465   :  { %v18199_v1 = vsel %vm10088_vm4, 4294967295, %v18198_v1  ;;  %vm10101_vm11 = vmand %vm18201_vm5, %vm18200_vm6  ;;  %vm2379_vm5 = vcmp.eq.s32.totalorder %v9850_v4, %v5805_v25  ;;  %vm2380_vm6 = vcmp.eq.s32.totalorder %v9854_v11, %v5795_v59  ;;  %v18280_v4 = vmov 0 }
 0x466   :  { %vm10112_vm4 = vmand %vm2376_vm15, %vm18204_vm1  ;;  %vm18216_vm15 = vcmp.gt.f32.partialorder %v9856_v20, %v5850_v60  ;;  %vm18221_vm1 = vcmp.gt.f32.partialorder %v9856_v20, %v5470_v36  ;;  %v18311_v8 = vmov 0 }
 0x467   :  { %v18206_v49 = vsel %vm10112_vm4, 4294967295, %v18205_v49  ;;  %vm10127_vm3 = vmand %vm2377_vm10, %vm18208_vm13  ;;  %vm18211_vm4 = vcmp.gt.f32.partialorder %v9852_v38, %v5748_v42  ;;  %v18217_v38 = vmov 0 }
 0x468   :  { %v9877_v18 = vpop.trf.xlu0  ;;  %v18210_v41 = vsel %vm10127_vm3, 4294967295, %v18209_v41  ;;  %vm10142_vm13 = vmand %vm2378_vm2, %vm18211_vm4  ;;  %vm2382_vm4 = vcmp.eq.s32.totalorder %v9854_v11, %v5852_v21  ;;  %vm2384_vm2 = vcmp.eq.s32.totalorder %v9858_v29, %v5795_v59 }
 0x469   :  { %v10120_v6 = vpop.trf.xlu2  ;;  %vm10148_vm10 = vmand %vm2379_vm5, %vm10071_vm9  ;;  %v10404_v7 = vsel %vm10142_vm13, 1, %v17017_v55 }
 0x46a   :  { %18207 = vst [vmem:[#allocation173_spill] sm:$0xff] %v10120_v6  ;;  %v18215_v44 = vsel %vm10148_vm10, 4294967295, %v18214_v44  ;;  %vm10159_vm3 = vmor %vm18216_vm15, %vm10101_vm11  ;;  %vm18224_vm11 = vcmp.gt.f32.partialorder %v9856_v20, %v5629_v34  ;;  %vm18229_vm10 = vcmp.gt.f32.partialorder %v9856_v20, %v5748_v42  ;;  %v10231_v20 = vsel %vm18233_vm12, 1, %v17017_v55 }
 0x46b   :  { %v18218_v38 = vsel %vm10159_vm3, 4294967295, %v18217_v38  ;;  %vm10174_vm9 = vmand %vm2380_vm6, %vm18221_vm1  ;;  %vm803_vm6 = vcmp.gt.f32.partialorder %v9860_v30, %v5850_v60  ;;  %vm18227_vm1 = vcmp.lt.s32.totalorder %v445_v53, %v9863_v0  ;;  %vm734_vm12 = vcmp.gt.f32.partialorder %v18220_v62, %v5748_v42  ;;  %18275 = vst [vmem:[#allocation201_spill] sm:$0xff] %v10404_v7 }
 0x46c   :  { %18219 = vst [vmem:[#allocation51_spill] sm:$0xff] %v18218_v38  ;;  %vm10181_vm15 = vmand %vm2381_vm8, %vm18224_vm11  ;;  %vm18228_vm8 = vcmp.eq.f32.partialorder %v9860_v30, %v5850_v60  ;;  %v449_v7 = vadd.s32 456, %v18084_v19 }
 0x46d   :  { %v18226_v9 = vsel %vm10181_vm15, 4294967295, %v18225_v9  ;;  %vm1571_vm11 = vmand %vm18228_vm8, %vm18227_vm1  ;;  %vm1246_vm1 = vcmp.lt.s32.totalorder %v428_v32, %v18029_v14  ;;  %vm18237_vm8 = vnez %v18174_v35  ;;  %vm18241_vm15 = vnez %v18182_v23 }
 0x46e   :  { %vm10213_vm5 = vmand %vm2382_vm4, %vm18229_vm10  ;;  %vm18234_vm10 = vcmp.eq.s32.totalorder %v9854_v11, %v5805_v25  ;;  %v10247_v48 = vsel %vm18237_vm8, 1, %v17017_v55  ;;  %v18238_v11 = vmov 0  ;;  %v10264_v35 = vsel %vm18241_vm15, 1, %v17017_v55 }
 0x46f   :  { %vm10238_vm4 = vmand %vm18234_vm10, %vm10159_vm3  ;;  %vm18242_vm8 = vnez %v18184_v46  ;;  %v10286_v46 = vsel %vm10053_vm7, 1, %v17017_v55  ;;  %vm18246_vm15 = vnez %v18190_v28  ;;  %vm2319_vm3 = vcmp.eq.s32.totalorder %v9866_v16, %v5805_v25 }
 0x470   :  { %v10077_v56 = vpop.trf.xlu0  ;;  %vm10256_vm10 = vmor %vm803_vm6, %vm1571_vm11  ;;  %v10269_v45 = vsel %vm18242_vm8, 1, %v17017_v55  ;;  %vm18243_vm6 = vcmp.eq.f32.partialorder %v18220_v62, %v5748_v42  ;;  %v10291_v22 = vsel %vm18246_vm15, 1, %v17017_v55  ;;  %vm18249_vm15 = vnez %v18197_v33 }
 0x471   :  { %v18239_v11 = vsel %vm10256_vm10, 4294967295, %v18238_v11  ;;  %vm10276_vm11 = vmand %vm18243_vm6, %vm1246_vm1  ;;  %v10312_v28 = vsel %vm18249_vm15, 1, %v17017_v55  ;;  %vm18253_vm6 = vcmp.eq.s32.totalorder %v9858_v29, %v5797_v51  ;;  %vm18256_vm15 = vcmp.gt.f32.partialorder %v9860_v30, %v5748_v42 }
 0x472   :  { %18240 = vst [vmem:[#allocation196_spill] sm:$0xff] %v18239_v11  ;;  %vm10299_vm1 = vmand %vm2384_vm2, %vm16687_vm0  ;;  %vm18250_vm2 = vnez %v18199_v1  ;;  %vm18252_vm0 = vnez %v18206_v49  ;;  %v10346_v1 = vpop.trf.xlu2  ;;  %v18264_v30 = vmov 0  ;;  %v18274_v11 = vld [vmem:[#allocation99_spill] sm:$0xff]  ;;  %vm18283_vm13 = vnez %v18226_v9 }
 0x473   :  { %v10317_v40 = vsel %vm18250_vm2, 1, %v17017_v55  ;;  %v10322_v13 = vsel %vm18252_vm0, 1, %v17017_v55  ;;  %vm10330_vm8 = vmand %vm18253_vm6, %vm16689_vm14  ;;  %vm18257_vm2 = vcmp.eq.s32.totalorder %v9858_v29, %v5852_v21  ;;  %18260 = vst [vmem:[#allocation50_spill] sm:$0xff] %v10346_v1  ;;  %vm18261_vm6 = vcmp.eq.s32.totalorder %v9858_v29, %v5805_v25 }
 0x474   :  { %18251 = vst [vmem:[#allocation197_spill] sm:$0xff] %v10317_v40  ;;  %vm10340_vm7 = vmand %vm18257_vm2, %vm18256_vm15  ;;  %vm18269_vm2 = vcmp.eq.f32.partialorder %v18220_v62, %v5850_v60  ;;  %v18271_v29 = vmov 0  ;;  %v10433_v12 = vsel %vm18283_vm13, 1, %v17017_v55  ;;  %v10438_v15 = vsel %vm10213_vm5, 1, %v17017_v55 }
 0x475   :  { %vm10353_vm14 = vmand %vm18261_vm6, %vm10256_vm10  ;;  %vm18270_vm6 = vcmp.gt.f32.partialorder %v18220_v62, %v5850_v60  ;;  %18284 = vst [vmem:[#allocation204_spill] sm:$0xff] %v10433_v12  ;;  %v18290_v9 = vmov 0  ;;  %vm807_vm5 = vcmp.gt.f32.partialorder %v9886_v58, %v5850_v60  ;;  %vm18292_vm13 = vcmp.lt.s32.totalorder %v446_v43, %v9863_v0 }
 0x476   :  { %vm10362_vm15 = vmor %vm734_vm12, %vm10276_vm11  ;;  %vm18267_vm12 = vnez %v18210_v41  ;;  %v10395_v41 = vpop.trf.xlu1  ;;  %vm18279_vm11 = vcmp.eq.s32.totalorder %v9866_v16, %v5795_v59  ;;  %18285 = vst [vmem:[#allocation205_spill] sm:$0xff] %v10438_v15  ;;  %v10469_v53 = vsel %vm10238_vm4, 1, %v17017_v55  ;;  %v18299_v43 = vmov 0 }
 0x477   :  { %v18265_v30 = vsel %vm10362_vm15, 4294967295, %v18264_v30  ;;  %v10378_v38 = vsel %vm18267_vm12, 1, %v17017_v55  ;;  %vm10388_vm0 = vmor %vm18270_vm6, %vm18269_vm2  ;;  %vm18276_vm2 = vnez %v18215_v44  ;;  %vm16700_vm6 = vcmp.gt.f32.partialorder %v18220_v62, %v5629_v34  ;;  %18294 = vst [vmem:[#allocation206_spill] sm:$0xff] %v10469_v53 }
 0x478   :  { %v10281_v23 = vpop.trf.xlu0  ;;  %18266 = vst [vmem:[#allocation198_spill] sm:$0xff] %v18265_v30  ;;  %v18272_v29 = vsel %vm10388_vm0, 4294967295, %v18271_v29  ;;  %v10409_v54 = vsel %vm18276_vm2, 1, %v17017_v55  ;;  %vm18278_vm12 = vcmp.gt.f32.partialorder %v18220_v62, %v5470_v36  ;;  %v10428_v44 = vsel %vm10174_vm9, 1, %v17017_v55  ;;  %v18485_v62 = vld [vmem:[#allocation172_spill] sm:$0xff] }
 0x479   :  { %18268 = vst [vmem:[#allocation199_spill] sm:$0xff] %v10378_v38  ;;  %vm10421_vm10 = vmand %vm18279_vm11, %vm18278_vm12  ;;  %vm18286_vm11 = vcmp.eq.s32.totalorder %v9866_v16, %v5797_v51  ;;  %vm18289_vm9 = vcmp.eq.s32.totalorder %v9866_v16, %v5852_v21  ;;  %v447_v16 = vadd.s32 440, %v18084_v19  ;;  %v10552_v53 = vsel %vm10299_vm1, 1, %v17017_v55 }
 0x47a   :  { %18273 = vst [vmem:[#allocation200_spill] sm:$0xff] %v18272_v29  ;;  %v18281_v4 = vsel %vm10421_vm10, 4294967295, %v18280_v4  ;;  %vm10446_vm12 = vmand %vm18286_vm11, %vm16700_vm6  ;;  %vm18293_vm11 = vcmp.eq.f32.partialorder %v9886_v58, %v5850_v60  ;;  %v18302_v29 = vmov 0  ;;  %v18316_v15 = vmov 0 }
 0x47b   :  { %18277 = vst [vmem:[#allocation202_spill] sm:$0xff] %v10409_v54  ;;  %v18288_v5 = vsel %vm10446_vm12, 4294967295, %v18287_v5  ;;  %vm10455_vm2 = vmand %vm18289_vm9, %vm10362_vm15  ;;  %vm738_vm15 = vcmp.gt.f32.partialorder %v18274_v11, %v5748_v42  ;;  %vm18296_vm12 = vcmp.eq.f32.partialorder %v18274_v11, %v5748_v42  ;;  %vm18319_vm9 = vcmp.eq.s32.totalorder %v9910_v17, %v5797_v51  ;;  %v10579_v54 = vpop.trf.xlu2 }
 0x47c   :  { %18282 = vst [vmem:[#allocation203_spill] sm:$0xff] %v10428_v44  ;;  %v18291_v9 = vsel %vm10455_vm2, 4294967295, %v18290_v9  ;;  %vm1575_vm6 = vmand %vm18293_vm11, %vm18292_vm13  ;;  %vm18295_vm2 = vcmp.lt.s32.totalorder %v429_v52, %v18029_v14  ;;  %v430_v52 = vadd.s32 304, %v18084_v19  ;;  %v10593_v12 = vsel %vm10340_vm7, 1, %v17017_v55 }
 0x47d   :  { %vm1506_vm10 = vmand %vm18296_vm12, %vm18295_vm2  ;;  %vm18310_vm12 = vcmp.gt.f32.partialorder %v18274_v11, %v5850_v60  ;;  %18314 = vst [vmem:[#allocation210_spill] sm:$0xff] %v10552_v53  ;;  %v18322_v53 = vld [vmem:[#allocation119_spill] sm:$0xff]  ;;  %v10623_v49 = vsel %vm10353_vm14, 1, %v17017_v55  ;;  %vm18341_vm14 = vcmp.lt.s32.totalorder %v447_v16, %v9863_v0  ;;  %vm18342_vm7 = vcmp.eq.f32.partialorder %v10120_v6, %v5850_v60 }
 0x47e   :  { %vm10483_vm13 = vmand %vm2319_vm3, %vm10388_vm0  ;;  %vm16711_vm3 = vcmp.gt.f32.partialorder %v18274_v11, %v5470_v36  ;;  %18323 = vst [vmem:[#allocation211_spill] sm:$0xff] %v10579_v54  ;;  %v18366_v32 = vmov 0  ;;  %v18371_v16 = vmov 0  ;;  %v18381_v38 = vmov 0 }
 0x47f   :  { %vm10496_vm2 = vmor %vm807_vm5, %vm1575_vm6  ;;  %vm18309_vm5 = vcmp.eq.f32.partialorder %v18274_v11, %v5850_v60  ;;  %18325 = vst [vmem:[#allocation213_spill] sm:$0xff] %v10593_v12  ;;  %v18339_v12 = vmov 0  ;;  %v18492_v44 = vmov 0 }
 0x480   :  { %v18300_v43 = vsel %vm10496_vm2, 4294967295, %v18299_v43  ;;  %vm10508_vm0 = vmor %vm738_vm15, %vm1506_vm10  ;;  %v10520_v30 = vpop.trf.xlu0  ;;  %vm18305_vm10 = vcmp.gt.f32.partialorder %v9886_v58, %v5470_v36  ;;  %vm18306_vm15 = vcmp.eq.s32.totalorder %v9877_v18, %v5795_v59  ;;  %18333 = vst [vmem:[#allocation214_spill] sm:$0xff] %v10623_v49  ;;  %v431_v49 = vadd.s32 312, %v18084_v19 }
 0x481   :  { %18301 = vst [vmem:[#allocation207_spill] sm:$0xff] %v18300_v43  ;;  %v18303_v29 = vsel %vm10508_vm0, 4294967295, %v18302_v29  ;;  %vm10528_vm11 = vmand %vm18306_vm15, %vm18305_vm10  ;;  %vm18318_vm10 = vcmp.gt.f32.partialorder %v18274_v11, %v5629_v34  ;;  %v10588_v11 = vsel %vm10330_vm8, 1, %v17017_v55  ;;  %vm18330_vm8 = vcmp.eq.s32.totalorder %v9910_v17, %v5852_v21 }
 0x482   :  { %18304 = vst [vmem:[#allocation208_spill] sm:$0xff] %v18303_v29  ;;  %vm10538_vm6 = vmor %vm18310_vm12, %vm18309_vm5  ;;  %vm18315_vm12 = vcmp.eq.s32.totalorder %v9910_v17, %v5795_v59  ;;  %v18336_v29 = vmov 0  ;;  %v448_v43 = vadd.s32 448, %v18084_v19 }
 0x483   :  { %v18312_v8 = vsel %vm10538_vm6, 4294967295, %v18311_v8  ;;  %vm10560_vm5 = vmand %vm18315_vm12, %vm16711_vm3  ;;  %18324 = vst [vmem:[#allocation212_spill] sm:$0xff] %v10588_v11  ;;  %v18353_v11 = vld [vmem:[#allocation134_spill] sm:$0xff] }
 0x484   :  { %18313 = vst [vmem:[#allocation209_spill] sm:$0xff] %v18312_v8  ;;  %v18317_v15 = vsel %vm10560_vm5, 4294967295, %v18316_v15  ;;  %vm10570_vm15 = vmand %vm18319_vm9, %vm18318_vm10  ;;  %vm18326_vm9 = vcmp.gt.f32.partialorder %v9886_v58, %v5629_v34  ;;  %vm18327_vm10 = vcmp.eq.s32.totalorder %v9877_v18, %v5797_v51  ;;  %v18357_v8 = vmov 0 }
 0x485   :  { %vm10601_vm3 = vmand %vm18327_vm10, %vm18326_vm9  ;;  %vm18334_vm10 = vcmp.gt.f32.partialorder %v9886_v58, %v5748_v42  ;;  %vm18338_vm9 = vcmp.eq.s32.totalorder %v9877_v18, %v5805_v25 }
 0x486   :  { %vm10610_vm5 = vmand %vm18330_vm8, %vm10508_vm0  ;;  %vm18335_vm8 = vcmp.eq.s32.totalorder %v9877_v18, %v5852_v21  ;;  %v10659_v18 = vpop.trf.xlu1  ;;  %vm18346_vm0 = vcmp.eq.f32.partialorder %v18322_v53, %v5748_v42 }
 0x487   :  { %vm10631_vm4 = vmand %vm18335_vm8, %vm18334_vm10  ;;  %vm18349_vm10 = vnez %v18281_v4  ;;  %vm18356_vm8 = vcmp.gt.f32.partialorder %v10120_v6, %v5850_v60  ;;  %v2834_v10 = vsel %vm10610_vm5, 1, %v17017_v55 }
 0x488   :  { %v18337_v29 = vsel %vm10631_vm4, 4294967295, %v18336_v29  ;;  %vm10640_vm1 = vmand %vm18338_vm9, %vm10496_vm2  ;;  %vm18345_vm2 = vcmp.lt.s32.totalorder %v430_v52, %v18029_v14  ;;  %v2828_v52 = vsel %vm18349_vm10, 1, %v17017_v55  ;;  %vm18354_vm10 = vnez %v18288_v5 }
 0x489   :  { %v18340_v12 = vsel %vm10640_vm1, 4294967295, %v18339_v12  ;;  %vm10649_vm12 = vmand %vm18342_vm7, %vm18341_vm14  ;;  %v2829_v4 = vsel %vm18354_vm10, 1, %v17017_v55  ;;  %vm18355_vm14 = vnez %v18291_v9  ;;  %v2831_v5 = vsel %vm10483_vm13, 1, %v17017_v55 }
 0x48a   :  { %vm10666_vm7 = vmand %vm18346_vm0, %vm18345_vm2  ;;  %vm18350_vm0 = vcmp.eq.s32.totalorder %v9910_v17, %v5805_v25  ;;  %v2830_v17 = vsel %vm18355_vm14, 1, %v17017_v55  ;;  %vm18360_vm1 = vcmp.gt.f32.partialorder %v18322_v53, %v5748_v42  ;;  %v18361_v9 = vmov 0 }
 0x48b   :  { %vm10685_vm2 = vmand %vm18350_vm0, %vm10538_vm6  ;;  %vm3010_vm0 = vcmp.gt.s32.totalorder %v9841_v50, %v2828_v52  ;;  %vm18364_vm10 = vcmp.eq.f32.partialorder %v18322_v53, %v5850_v60  ;;  %vm18365_vm14 = vcmp.gt.f32.partialorder %v18322_v53, %v5850_v60  ;;  %vm18374_vm9 = vcmp.eq.s32.totalorder %v10163_v3, %v5795_v59 }
 0x48c   :  { %vm10706_vm6 = vmor %vm18356_vm8, %vm10649_vm12  ;;  %v10749_v24 = vsel %vm3010_vm0, %v9841_v50, %v2828_v52  ;;  %v10780_v50 = vpop.trf.xlu0  ;;  %vm18379_vm0 = vcmp.gt.f32.partialorder %v18322_v53, %v5629_v34  ;;  %vm18415_vm5 = vnez %v18340_v12  ;;  %v18423_v12 = vmov 0 }
 0x48d   :  { %v18358_v8 = vsel %vm10706_vm6, 4294967295, %v18357_v8  ;;  %vm10722_vm12 = vmor %vm18360_vm1, %vm10666_vm7  ;;  %vm18373_vm7 = vcmp.gt.f32.partialorder %v18322_v53, %v5470_v36  ;;  %vm18380_vm1 = vcmp.eq.s32.totalorder %v10163_v3, %v5797_v51  ;;  %v18403_v53 = vmov 0 }
 0x48e   :  { %18359 = vst [vmem:[#allocation215_spill] sm:$0xff] %v18358_v8  ;;  %v18362_v9 = vsel %vm10722_vm12, 4294967295, %v18361_v9  ;;  %vm10737_vm4 = vmor %vm18365_vm14, %vm18364_vm10  ;;  %vm18369_vm14 = vcmp.gt.f32.partialorder %v10120_v6, %v5470_v36  ;;  %vm18370_vm10 = vcmp.eq.s32.totalorder %v10077_v56, %v5795_v59  ;;  %v10916_v58 = vsel %vm18415_vm5, 1, %v17017_v55 }
 0x48f   :  { %18363 = vst [vmem:[#allocation216_spill] sm:$0xff] %v18362_v9  ;;  %v18367_v32 = vsel %vm10737_vm4, 4294967295, %v18366_v32  ;;  %vm10757_vm13 = vmand %vm18370_vm10, %vm18369_vm14  ;;  %vm18389_vm10 = vcmp.eq.s32.totalorder %v10077_v56, %v5797_v51  ;;  %vm18422_vm5 = vcmp.gt.f32.partialorder %v18353_v11, %v5748_v42 }
 0x490   :  { %18368 = vst [vmem:[#allocation217_spill] sm:$0xff] %v18367_v32  ;;  %v18372_v16 = vsel %vm10757_vm13, 4294967295, %v18371_v16  ;;  %vm10767_vm8 = vmand %vm18374_vm9, %vm18373_vm7  ;;  %vm18377_vm9 = vcmp.gt.s32.totalorder %v9844_v37, %v2829_v4  ;;  %vm18378_vm7 = vcmp.gt.s32.totalorder %v9846_v47, %v2830_v17  ;;  %vm18383_vm13 = vcmp.eq.s32.totalorder %v10163_v3, %v5852_v21 }
 0x491   :  { %v3146_v52 = vsel %vm18377_vm9, %v9844_v37, %v2829_v4  ;;  %v3281_v40 = vsel %vm18378_vm7, %v9846_v47, %v2830_v17  ;;  %vm10794_vm14 = vmand %vm18380_vm1, %vm18379_vm0  ;;  %v18384_v37 = vmov 0  ;;  %v10818_v47 = vsel %vm10528_vm11, 1, %v17017_v55  ;;  %18416 = vst [vmem:[#allocation222_spill] sm:$0xff] %v10916_v58 }
 0x492   :  { %v18382_v38 = vsel %vm10794_vm14, 4294967295, %v18381_v38  ;;  %vm10803_vm9 = vmand %vm18383_vm13, %vm10722_vm12  ;;  %18386 = vst [vmem:[#allocation218_spill] sm:$0xff] %v10818_v47  ;;  %vm18387_vm13 = vcmp.gt.s32.totalorder %v9848_v57, %v2831_v5  ;;  %vm18388_vm7 = vcmp.gt.f32.partialorder %v10120_v6, %v5629_v34  ;;  %vm18392_vm0 = vcmp.gt.f32.partialorder %v10120_v6, %v5748_v42  ;;  %v10855_v6 = vpop.trf.xlu2 }
 0x493   :  { %v18385_v37 = vsel %vm10803_vm9, 4294967295, %v18384_v37  ;;  %v3416_v4 = vsel %vm18387_vm13, %v9848_v57, %v2831_v5  ;;  %vm10829_vm12 = vmand %vm18389_vm10, %vm18388_vm7  ;;  %vm18393_vm11 = vcmp.eq.s32.totalorder %v10077_v56, %v5852_v21  ;;  %vm18396_vm13 = vcmp.lt.s32.totalorder %v448_v43, %v9863_v0  ;;  %18400 = vst [vmem:[#allocation219_spill] sm:$0xff] %v10855_v6 }
 0x494   :  { %vm10839_vm1 = vmand %vm18393_vm11, %vm18392_vm0  ;;  %vm18397_vm9 = vcmp.eq.f32.partialorder %v10346_v1, %v5850_v60  ;;  %v432_v5 = vadd.s32 320, %v18084_v19  ;;  %vm18401_vm7 = vnez %v18317_v15  ;;  %v2833_v43 = vsel %vm10570_vm15, 1, %v17017_v55 }
 0x495   :  { %vm10848_vm14 = vmand %vm18397_vm9, %vm18396_vm13  ;;  %v2832_v9 = vsel %vm18401_vm7, 1, %v17017_v55  ;;  %vm18402_vm9 = vcmp.eq.s32.totalorder %v10077_v56, %v5805_v25  ;;  %vm18405_vm11 = vcmp.lt.s32.totalorder %v431_v49, %v18029_v14  ;;  %vm18406_vm13 = vcmp.eq.f32.partialorder %v18353_v11, %v5748_v42 }
 0x496   :  { %vm10868_vm0 = vmand %vm18402_vm9, %vm10706_vm6  ;;  %v10888_v56 = vsel %vm10601_vm3, 1, %v17017_v55  ;;  %v2835_v49 = vsel %vm10685_vm2, 1, %v17017_v55  ;;  %vm18410_vm9 = vcmp.eq.s32.totalorder %v10163_v3, %v5805_v25  ;;  %vm18413_vm3 = vnez %v18337_v29  ;;  %v18421_v29 = vld [vmem:[#allocation153_spill] sm:$0xff] }
 0x497   :  { %v18404_v53 = vsel %vm10868_vm0, 4294967295, %v18403_v53  ;;  %vm10877_vm10 = vmand %vm18406_vm13, %vm18405_vm11  ;;  %18409 = vst [vmem:[#allocation220_spill] sm:$0xff] %v10888_v56  ;;  %v10906_v56 = vpop.trf.xlu1  ;;  %v10911_v33 = vsel %vm18413_vm3, 1, %v17017_v55  ;;  %vm18417_vm2 = vcmp.gt.f32.partialorder %v10346_v1, %v5850_v60  ;;  %v18418_v3 = vmov 0 }
 0x498   :  { %vm10901_vm11 = vmand %vm18410_vm9, %vm10737_vm4  ;;  %18414 = vst [vmem:[#allocation221_spill] sm:$0xff] %v10911_v33  ;;  %vm18426_vm15 = vcmp.eq.f32.partialorder %v18353_v11, %v5850_v60  ;;  %vm18427_vm4 = vcmp.gt.f32.partialorder %v18353_v11, %v5850_v60  ;;  %v18428_v57 = vmov 0  ;;  %vm18431_vm9 = vcmp.gt.f32.partialorder %v10346_v1, %v5470_v36 }
 0x499   :  { %vm10923_vm13 = vmor %vm18417_vm2, %vm10848_vm14  ;;  %vm18432_vm2 = vcmp.eq.s32.totalorder %v10281_v23, %v5795_v59  ;;  %v18433_v15 = vmov 0  ;;  %v18437_v32 = vmov 0  ;;  %vm18440_vm14 = vcmp.gt.s32.totalorder %v10749_v24, %v2832_v9 }
 0x49a   :  { %v18419_v3 = vsel %vm10923_vm13, 4294967295, %v18418_v3  ;;  %vm10937_vm6 = vmor %vm18422_vm5, %vm10877_vm10  ;;  %v3013_v33 = vsel %vm18440_vm14, %v10749_v24, %v2832_v9  ;;  %vm18441_vm3 = vcmp.gt.f32.partialorder %v18353_v11, %v5629_v34  ;;  %vm18446_vm0 = vcmp.gt.s32.totalorder %v3416_v4, %v2835_v49 }
 0x49b   :  { %18420 = vst [vmem:[#allocation223_spill] sm:$0xff] %v18419_v3  ;;  %v18424_v12 = vsel %vm10937_vm6, 4294967295, %v18423_v12  ;;  %vm10952_vm10 = vmor %vm18427_vm4, %vm18426_vm15  ;;  %vm18435_vm4 = vcmp.gt.f32.partialorder %v18353_v11, %v5470_v36  ;;  %vm18436_vm15 = vcmp.eq.s32.totalorder %v10395_v41, %v5795_v59  ;;  %v3418_v24 = vsel %vm18446_vm0, %v3416_v4, %v2835_v49  ;;  %v11039_v4 = vpop.trf.xlu0  ;;  %v11100_v11 = vpop.trf.xlu2 }
 0x49c   :  { %18425 = vst [vmem:[#allocation224_spill] sm:$0xff] %v18424_v12  ;;  %v18429_v57 = vsel %vm10952_vm10, 4294967295, %v18428_v57  ;;  %vm10966_vm7 = vmand %vm18432_vm2, %vm18431_vm9  ;;  %vm18442_vm9 = vcmp.eq.s32.totalorder %v10395_v41, %v5797_v51  ;;  %vm18445_vm2 = vcmp.gt.s32.totalorder %v3281_v40, %v2834_v10  ;;  %v2836_v49 = vsel %vm10767_vm8, 1, %v17017_v55 }
 0x49d   :  { %18430 = vst [vmem:[#allocation225_spill] sm:$0xff] %v18429_v57  ;;  %v18434_v15 = vsel %vm10966_vm7, 4294967295, %v18433_v15  ;;  %vm10976_vm5 = vmand %vm18436_vm15, %vm18435_vm4  ;;  %vm18439_vm15 = vcmp.gt.s32.totalorder %v3146_v52, %v2833_v43  ;;  %v3283_v9 = vsel %vm18445_vm2, %v3281_v40, %v2834_v10  ;;  %vm18451_vm4 = vcmp.eq.s32.totalorder %v10395_v41, %v5852_v21 }
 0x49e   :  { %v18438_v32 = vsel %vm10976_vm5, 4294967295, %v18437_v32  ;;  %v3148_v58 = vsel %vm18439_vm15, %v3146_v52, %v2833_v43  ;;  %vm11001_vm5 = vmand %vm18442_vm9, %vm18441_vm3  ;;  %vm18447_vm3 = vcmp.gt.f32.partialorder %v10346_v1, %v5629_v34  ;;  %vm18448_vm9 = vcmp.eq.s32.totalorder %v10281_v23, %v5797_v51  ;;  %18473 = vst [vmem:[#allocation227_spill] sm:$0xff] %v11100_v11 }
 0x49f   :  { %vm11021_vm7 = vmand %vm18448_vm9, %vm18447_vm3  ;;  %v11037_v40 = vadd.s32 328, %v18084_v19  ;;  %vm18454_vm2 = vnez %v18372_v16  ;;  %vm18457_vm3 = vcmp.eq.s32.totalorder %v10281_v23, %v5852_v21  ;;  %v18458_v12 = vmov 0  ;;  %v11143_v57 = vpop.trf.xlu1 }
 0x4a0   :  { %vm11030_vm14 = vmand %vm18451_vm4, %vm10937_vm6  ;;  %v11044_v10 = vsel %vm18454_vm2, 1, %v17017_v55  ;;  %vm18456_vm4 = vcmp.gt.f32.partialorder %v10346_v1, %v5748_v42  ;;  %vm18460_vm2 = vcmp.eq.s32.totalorder %v10281_v23, %v5805_v25  ;;  %v18461_v16 = vmov 0 }
 0x4a1   :  { %18455 = vst [vmem:[#allocation226_spill] sm:$0xff] %v11044_v10  ;;  %vm11055_vm9 = vmand %vm18457_vm3, %vm18456_vm4  ;;  %vm18463_vm8 = vcmp.lt.s32.totalorder %v449_v7, %v9863_v0  ;;  %vm18464_vm0 = vcmp.eq.f32.partialorder %v10579_v54, %v5850_v60  ;;  %v2839_v3 = vsel %vm10901_vm11, 1, %v17017_v55  ;;  %v11110_v8 = vsel %vm10839_vm1, 1, %v17017_v55 }
 0x4a2   :  { %v18459_v12 = vsel %vm11055_vm9, 4294967295, %v18458_v12  ;;  %vm11064_vm15 = vmand %vm18460_vm2, %vm10923_vm13  ;;  %vm18467_vm2 = vnez %v18382_v38  ;;  %vm18468_vm13 = vnez %v18385_v37  ;;  %v450_v38 = vadd.s32 464, %v18084_v19  ;;  %18475 = vst [vmem:[#allocation229_spill] sm:$0xff] %v11110_v8 }
 0x4a3   :  { %v18462_v16 = vsel %vm11064_vm15, 4294967295, %v18461_v16  ;;  %vm11073_vm6 = vmand %vm18464_vm0, %vm18463_vm8  ;;  %v2837_v23 = vsel %vm18467_vm2, 1, %v17017_v55  ;;  %v2838_v7 = vsel %vm18468_vm13, 1, %v17017_v55  ;;  %vm18469_vm0 = vcmp.lt.s32.totalorder %v432_v5, %v18029_v14 }
 0x4a4   :  { %vm18470_vm8 = vcmp.eq.f32.partialorder %v18421_v29, %v5748_v42  ;;  %v11105_v37 = vsel %vm10829_vm12, 1, %v17017_v55  ;;  %vm18476_vm11 = vcmp.eq.s32.totalorder %v10395_v41, %v5805_v25  ;;  %v18482_v41 = vmov 0 }
 0x4a5   :  { %vm11095_vm4 = vmand %vm18470_vm8, %vm18469_vm0  ;;  %18474 = vst [vmem:[#allocation228_spill] sm:$0xff] %v11105_v37  ;;  %vm18479_vm0 = vnez %v18404_v53  ;;  %vm18481_vm8 = vcmp.gt.f32.partialorder %v10579_v54, %v5850_v60  ;;  %v18487_v53 = vmov 0  ;;  %vm18490_vm12 = vcmp.gt.f32.partialorder %v10579_v54, %v5470_v36 }
 0x4a6   :  { %vm11117_vm13 = vmand %vm18476_vm11, %vm10952_vm10  ;;  %v11128_v17 = vsel %vm18479_vm0, 1, %v17017_v55  ;;  %vm18491_vm0 = vcmp.eq.s32.totalorder %v10520_v30, %v5795_v59  ;;  %vm18494_vm10 = vcmp.eq.f32.partialorder %v18421_v29, %v5850_v60  ;;  %v18496_v1 = vmov 0 }
 0x4a7   :  { %18480 = vst [vmem:[#allocation230_spill] sm:$0xff] %v11128_v17  ;;  %vm11135_vm11 = vmor %vm18481_vm8, %vm11073_vm6  ;;  %vm18486_vm6 = vcmp.gt.f32.partialorder %v18421_v29, %v5748_v42  ;;  %vm18500_vm2 = vcmp.gt.f32.partialorder %v18421_v29, %v5470_v36  ;;  %vm18501_vm3 = vcmp.eq.s32.totalorder %v10659_v18, %v5795_v59  ;;  %v18502_v8 = vmov 0 }
 0x4a8   :  { %v18483_v41 = vsel %vm11135_vm11, 4294967295, %v18482_v41  ;;  %vm11152_vm8 = vmor %vm18486_vm6, %vm11095_vm4  ;;  %vm18495_vm4 = vcmp.gt.f32.partialorder %v18421_v29, %v5850_v60  ;;  %v18506_v37 = vmov 0  ;;  %v451_v47 = vadd.s32 472, %v18084_v19 }
 0x4a9   :  { %18484 = vst [vmem:[#allocation231_spill] sm:$0xff] %v18483_v41  ;;  %v18488_v53 = vsel %vm11152_vm8, 4294967295, %v18487_v53  ;;  %vm11164_vm1 = vmand %vm18491_vm0, %vm18490_vm12  ;;  %vm18504_vm12 = vcmp.gt.f32.partialorder %v18421_v29, %v5629_v34  ;;  %vm18505_vm0 = vcmp.eq.s32.totalorder %v10659_v18, %v5797_v51  ;;  %v11304_v41 = vpop.trf.xlu0  ;;  %v11309_v43 = vsel %vm11021_vm7, 1, %v17017_v55 }
 0x4aa   :  { %18489 = vst [vmem:[#allocation232_spill] sm:$0xff] %v18488_v53  ;;  %v18493_v44 = vsel %vm11164_vm1, 4294967295, %v18492_v44  ;;  %vm11174_vm6 = vmor %vm18495_vm4, %vm18494_vm10  ;;  %vm18499_vm4 = vcmp.gt.s32.totalorder %v3013_v33, %v2836_v49  ;;  %vm18511_vm10 = vcmp.gt.f32.partialorder %v10579_v54, %v5629_v34  ;;  %v11391_v53 = vpop.trf.xlu1  ;;  %v452_v10 = vadd.s32 480, %v18084_v19 }
 0x4ab   :  { %v18497_v1 = vsel %vm11174_vm6, 4294967295, %v18496_v1  ;;  %v3015_v17 = vsel %vm18499_vm4, %v3013_v33, %v2836_v49  ;;  %vm11196_vm15 = vmand %vm18501_vm3, %vm18500_vm2  ;;  %vm18510_vm4 = vcmp.gt.s32.totalorder %v3418_v24, %v2839_v3  ;;  %vm18512_vm3 = vcmp.eq.s32.totalorder %v10520_v30, %v5797_v51  ;;  %18536 = vst [vmem:[#allocation235_spill] sm:$0xff] %v11309_v43 }
 0x4ac   :  { %18498 = vst [vmem:[#allocation233_spill] sm:$0xff] %v18497_v1  ;;  %v18503_v8 = vsel %vm11196_vm15, 4294967295, %v18502_v8  ;;  %vm11206_vm1 = vmand %vm18505_vm0, %vm18504_vm12  ;;  %vm18508_vm0 = vcmp.gt.s32.totalorder %v3148_v58, %v2837_v23  ;;  %v3420_v29 = vsel %vm18510_vm4, %v3418_v24, %v2839_v3  ;;  %vm18515_vm12 = vcmp.eq.s32.totalorder %v10659_v18, %v5852_v21  ;;  %v18548_v1 = vld [vmem:[#allocation187_spill] sm:$0xff] }
 0x4ad   :  { %v18507_v37 = vsel %vm11206_vm1, 4294967295, %v18506_v37  ;;  %v3150_v33 = vsel %vm18508_vm0, %v3148_v58, %v2837_v23  ;;  %vm18509_vm1 = vcmp.gt.s32.totalorder %v3283_v9, %v2838_v7  ;;  %vm11231_vm9 = vmand %vm18512_vm3, %vm18511_vm10  ;;  %vm18518_vm4 = vnez %v18434_v15  ;;  %v18611_v24 = vld [vmem:[#allocation195_spill] sm:$0xff] }
 0x4ae   :  { %v3285_v49 = vsel %vm18509_vm1, %v3283_v9, %v2838_v7  ;;  %vm11240_vm0 = vmand %vm18515_vm12, %vm11152_vm8  ;;  %v11249_v3 = vsel %vm18518_vm4, 1, %v17017_v55  ;;  %vm18520_vm10 = vnez %v18438_v32  ;;  %vm18521_vm3 = vcmp.gt.f32.partialorder %v10579_v54, %v5748_v42 }
 0x4af   :  { %18519 = vst [vmem:[#allocation234_spill] sm:$0xff] %v11249_v3  ;;  %v2840_v9 = vsel %vm18520_vm10, 1, %v17017_v55  ;;  %vm18522_vm12 = vcmp.eq.s32.totalorder %v10520_v30, %v5852_v21  ;;  %vm18525_vm4 = vcmp.eq.s32.totalorder %v10520_v30, %v5805_v25  ;;  %v18526_v15 = vmov 0 }
 0x4b0   :  { %vm11260_vm15 = vmand %vm18522_vm12, %vm18521_vm3  ;;  %vm18528_vm10 = vcmp.lt.s32.totalorder %v450_v38, %v9863_v0  ;;  %vm18529_vm1 = vcmp.eq.f32.partialorder %v10855_v6, %v5850_v60  ;;  %v434_v23 = vadd.s32 336, %v18084_v19  ;;  %v2841_v30 = vsel %vm11001_vm5, 1, %v17017_v55 }
 0x4b1   :  { %vm11269_vm2 = vmand %vm18525_vm4, %vm11135_vm11  ;;  %v2842_v7 = vsel %vm11030_vm14, 1, %v17017_v55  ;;  %vm18532_vm12 = vcmp.lt.s32.totalorder %v11037_v40, %v18029_v14  ;;  %v2843_v40 = vsel %vm11117_vm13, 1, %v17017_v55  ;;  %vm18537_vm5 = vcmp.eq.s32.totalorder %v10659_v18, %v5805_v25 }
 0x4b2   :  { %v18527_v15 = vsel %vm11269_vm2, 4294967295, %v18526_v15  ;;  %vm11278_vm8 = vmand %vm18529_vm1, %vm18528_vm10  ;;  %vm18533_vm1 = vcmp.eq.f32.partialorder %v18485_v62, %v5748_v42  ;;  %vm18542_vm13 = vnez %v18462_v16  ;;  %vm18544_vm10 = vcmp.gt.f32.partialorder %v10855_v6, %v5850_v60 }
 0x4b3   :  { %vm11297_vm4 = vmand %vm18533_vm1, %vm18532_vm12  ;;  %vm18540_vm1 = vnez %v18459_v12  ;;  %v11335_v5 = vsel %vm18542_vm13, 1, %v17017_v55  ;;  %v18545_v18 = vmov 0  ;;  %v11348_v12 = vpop.trf.xlu2  ;;  %vm18550_vm13 = vcmp.gt.f32.partialorder %v18485_v62, %v5748_v42 }
 0x4b4   :  { %vm11319_vm14 = vmand %vm18537_vm5, %vm11174_vm6  ;;  %v11330_v52 = vsel %vm18540_vm1, 1, %v17017_v55  ;;  %18543 = vst [vmem:[#allocation237_spill] sm:$0xff] %v11335_v5  ;;  %v18551_v16 = vmov 0  ;;  %vm18554_vm3 = vcmp.gt.f32.partialorder %v10855_v6, %v5470_v36  ;;  %vm18555_vm1 = vcmp.eq.s32.totalorder %v10780_v50, %v5795_v59 }
 0x4b5   :  { %18541 = vst [vmem:[#allocation236_spill] sm:$0xff] %v11330_v52  ;;  %vm11342_vm12 = vmor %vm18544_vm10, %vm11278_vm8  ;;  %v18556_v32 = vmov 0  ;;  %v18560_v38 = vmov 0  ;;  %vm18563_vm11 = vcmp.gt.s32.totalorder %v3015_v17, %v2840_v9  ;;  %vm18568_vm2 = vcmp.gt.s32.totalorder %v3150_v33, %v2841_v30 }
 0x4b6   :  { %v18546_v18 = vsel %vm11342_vm12, 4294967295, %v18545_v18  ;;  %18549 = vst [vmem:[#allocation239_spill] sm:$0xff] %v11348_v12  ;;  %vm11355_vm5 = vmor %vm18550_vm13, %vm11297_vm4  ;;  %vm18558_vm4 = vcmp.eq.f32.partialorder %v18485_v62, %v5850_v60  ;;  %vm18559_vm13 = vcmp.gt.f32.partialorder %v18485_v62, %v5850_v60  ;;  %v3017_v5 = vsel %vm18563_vm11, %v3015_v17, %v2840_v9 }
 0x4b7   :  { %18547 = vst [vmem:[#allocation238_spill] sm:$0xff] %v18546_v18  ;;  %v18552_v16 = vsel %vm11355_vm5, 4294967295, %v18551_v16  ;;  %vm11370_vm6 = vmand %vm18555_vm1, %vm18554_vm3  ;;  %v3152_v17 = vsel %vm18568_vm2, %v3150_v33, %v2841_v30  ;;  %vm18571_vm10 = vcmp.eq.s32.totalorder %v10906_v56, %v5797_v51  ;;  %vm18574_vm1 = vcmp.eq.s32.totalorder %v10906_v56, %v5852_v21 }
 0x4b8   :  { %18553 = vst [vmem:[#allocation240_spill] sm:$0xff] %v18552_v16  ;;  %v18557_v32 = vsel %vm11370_vm6, 4294967295, %v18556_v32  ;;  %vm11380_vm8 = vmor %vm18559_vm13, %vm18558_vm4  ;;  %vm18564_vm4 = vcmp.gt.f32.partialorder %v18485_v62, %v5470_v36  ;;  %vm18565_vm13 = vcmp.eq.s32.totalorder %v10906_v56, %v5795_v59  ;;  %v18575_v3 = vmov 0 }
 0x4b9   :  { %v18561_v38 = vsel %vm11380_vm8, 4294967295, %v18560_v38  ;;  %vm11400_vm7 = vmand %vm18565_vm13, %vm18564_vm4  ;;  %vm18569_vm4 = vcmp.gt.s32.totalorder %v3285_v49, %v2842_v7  ;;  %vm18570_vm13 = vcmp.gt.f32.partialorder %v18485_v62, %v5629_v34  ;;  %vm18577_vm11 = vnez %v18493_v44 }
 0x4ba   :  { %18562 = vst [vmem:[#allocation241_spill] sm:$0xff] %v18561_v38  ;;  %v3287_v9 = vsel %vm18569_vm4, %v3285_v49, %v2842_v7  ;;  %vm11422_vm3 = vmand %vm18571_vm10, %vm18570_vm13  ;;  %v11446_v33 = vsel %vm18577_vm11, 1, %v17017_v55  ;;  %vm18580_vm2 = vcmp.eq.s32.totalorder %v10780_v50, %v5797_v51  ;;  %v18581_v30 = vmov 0  ;;  %v11553_v38 = vpop.trf.xlu0 }
 0x4bb   :  { %vm11431_vm6 = vmand %vm18574_vm1, %vm11355_vm5  ;;  %vm18578_vm1 = vcmp.gt.s32.totalorder %v3420_v29, %v2843_v40  ;;  %vm18579_vm5 = vcmp.gt.f32.partialorder %v10855_v6, %v5629_v34  ;;  %vm18583_vm13 = vcmp.gt.f32.partialorder %v10855_v6, %v5748_v42  ;;  %vm18584_vm10 = vcmp.eq.s32.totalorder %v10780_v50, %v5852_v21  ;;  %v11583_v7 = vpop.trf.xlu2 }
 0x4bc   :  { %v18576_v3 = vsel %vm11431_vm6, 4294967295, %v18575_v3  ;;  %v3422_v49 = vsel %vm18578_vm1, %v3420_v29, %v2843_v40  ;;  %vm11455_vm4 = vmand %vm18580_vm2, %vm18579_vm5  ;;  %vm18587_vm1 = vcmp.eq.s32.totalorder %v10780_v50, %v5805_v25  ;;  %v18588_v29 = vmov 0  ;;  %18621 = vst [vmem:[#allocation248_spill] sm:$0xff] %v11583_v7 }
 0x4bd   :  { %v18582_v30 = vsel %vm11455_vm4, 4294967295, %v18581_v30  ;;  %vm11465_vm11 = vmand %vm18584_vm10, %vm18583_vm13  ;;  %vm18590_vm5 = vcmp.lt.s32.totalorder %v451_v47, %v9863_v0  ;;  %vm18591_vm2 = vcmp.eq.f32.partialorder %v11100_v11, %v5850_v60  ;;  %v435_v40 = vadd.s32 344, %v18084_v19 }
 0x4be   :  { %vm11474_vm6 = vmand %vm18587_vm1, %vm11342_vm12  ;;  %vm18594_vm13 = vnez %v18503_v8  ;;  %vm18595_vm1 = vnez %v18507_v37  ;;  %vm18596_vm12 = vcmp.lt.s32.totalorder %v434_v23, %v18029_v14  ;;  %v11512_v37 = vsel %vm11231_vm9, 1, %v17017_v55 }
 0x4bf   :  { %v18589_v29 = vsel %vm11474_vm6, 4294967295, %v18588_v29  ;;  %vm11483_vm4 = vmand %vm18591_vm2, %vm18590_vm5  ;;  %v2844_v50 = vsel %vm18594_vm13, 1, %v17017_v55  ;;  %v2845_v47 = vsel %vm18595_vm1, 1, %v17017_v55  ;;  %vm18597_vm5 = vcmp.eq.f32.partialorder %v18548_v1, %v5748_v42  ;;  %18600 = vst [vmem:[#allocation242_spill] sm:$0xff] %v11512_v37 }
 0x4c0   :  { %vm11501_vm2 = vmand %vm18597_vm5, %vm18596_vm12  ;;  %v2846_v8 = vsel %vm11240_vm0, 1, %v17017_v55  ;;  %v2847_v23 = vsel %vm11319_vm14, 1, %v17017_v55  ;;  %vm18601_vm12 = vcmp.eq.s32.totalorder %v10906_v56, %v5805_v25  ;;  %v11533_v58 = vsel %vm11260_vm15, 1, %v17017_v55 }
 0x4c1   :  { %vm11525_vm13 = vmand %vm18601_vm12, %vm11380_vm8  ;;  %18604 = vst [vmem:[#allocation243_spill] sm:$0xff] %v11533_v58  ;;  %vm18605_vm9 = vnez %v18527_v15  ;;  %vm18607_vm0 = vcmp.gt.f32.partialorder %v11100_v11, %v5850_v60  ;;  %v18608_v56 = vmov 0  ;;  %v18613_v15 = vmov 0 }
 0x4c2   :  { %v11538_v54 = vsel %vm18605_vm9, 1, %v17017_v55  ;;  %vm11545_vm14 = vmor %vm18607_vm0, %vm11483_vm4  ;;  %vm18612_vm9 = vcmp.gt.f32.partialorder %v18548_v1, %v5748_v42  ;;  %vm18616_vm5 = vcmp.eq.f32.partialorder %v18548_v1, %v5850_v60  ;;  %vm18617_vm12 = vcmp.gt.f32.partialorder %v18548_v1, %v5850_v60 }
 0x4c3   :  { %18606 = vst [vmem:[#allocation244_spill] sm:$0xff] %v11538_v54  ;;  %v18609_v56 = vsel %vm11545_vm14, 4294967295, %v18608_v56  ;;  %vm11560_vm6 = vmor %vm18612_vm9, %vm11501_vm2  ;;  %v18618_v18 = vmov 0  ;;  %vm18622_vm1 = vcmp.gt.f32.partialorder %v11100_v11, %v5470_v36  ;;  %vm18623_vm0 = vcmp.eq.s32.totalorder %v11039_v4, %v5795_v59 }
 0x4c4   :  { %18610 = vst [vmem:[#allocation245_spill] sm:$0xff] %v18609_v56  ;;  %v18614_v15 = vsel %vm11560_vm6, 4294967295, %v18613_v15  ;;  %vm11575_vm2 = vmor %vm18617_vm12, %vm18616_vm5  ;;  %vm18626_vm5 = vcmp.gt.f32.partialorder %v18548_v1, %v5470_v36  ;;  %vm18627_vm12 = vcmp.eq.s32.totalorder %v11143_v57, %v5795_v59  ;;  %v18628_v62 = vmov 0 }
 0x4c5   :  { %18615 = vst [vmem:[#allocation246_spill] sm:$0xff] %v18614_v15  ;;  %v18619_v18 = vsel %vm11575_vm2, 4294967295, %v18618_v18  ;;  %vm11591_vm10 = vmand %vm18623_vm0, %vm18622_vm1  ;;  %vm18632_vm4 = vcmp.gt.f32.partialorder %v18548_v1, %v5629_v34  ;;  %vm18633_vm15 = vcmp.eq.s32.totalorder %v11143_v57, %v5797_v51  ;;  %vm18639_vm8 = vcmp.gt.s32.totalorder %v3422_v49, %v2847_v23 }
 0x4c6   :  { %18620 = vst [vmem:[#allocation247_spill] sm:$0xff] %v18619_v18  ;;  %vm11601_vm9 = vmand %vm18627_vm12, %vm18626_vm5  ;;  %vm18630_vm12 = vcmp.gt.s32.totalorder %v3152_v17, %v2845_v47  ;;  %vm18640_vm0 = vcmp.gt.f32.partialorder %v11100_v11, %v5629_v34  ;;  %vm18641_vm5 = vcmp.eq.s32.totalorder %v11039_v4, %v5797_v51  ;;  %v2851_v56 = vsel %vm11525_vm13, 1, %v17017_v55 }
 0x4c7   :  { %v18629_v62 = vsel %vm11601_vm9, 4294967295, %v18628_v62  ;;  %v3154_v54 = vsel %vm18630_vm12, %v3152_v17, %v2845_v47  ;;  %vm18631_vm9 = vcmp.gt.s32.totalorder %v3017_v5, %v2844_v50  ;;  %vm11624_vm1 = vmand %vm18633_vm15, %vm18632_vm4  ;;  %vm18636_vm15 = vnez %v18557_v32 }
 0x4c8   :  { %v3019_v58 = vsel %vm18631_vm9, %v3017_v5, %v2844_v50  ;;  %v11634_v5 = vpop.trf.xlu1  ;;  %v11641_v17 = vsel %vm18636_vm15, 1, %v17017_v55  ;;  %vm18638_vm4 = vcmp.gt.s32.totalorder %v3287_v9, %v2846_v8  ;;  %v3424_v47 = vsel %vm18639_vm8, %v3422_v49, %v2847_v23  ;;  %vm11651_vm12 = vmand %vm18641_vm5, %vm18640_vm0 }
 0x4c9   :  { %18637 = vst [vmem:[#allocation249_spill] sm:$0xff] %v11641_v17  ;;  %v3289_v50 = vsel %vm18638_vm4, %v3287_v9, %v2846_v8  ;;  %vm18644_vm15 = vcmp.eq.s32.totalorder %v11143_v57, %v5852_v21  ;;  %v18645_v32 = vmov 0  ;;  %v11665_v9 = vadd.s32 352, %v18084_v19 }
 0x4ca   :  { %vm11660_vm9 = vmand %vm18644_vm15, %vm11560_vm6  ;;  %v2848_v49 = vsel %vm11400_vm7, 1, %v17017_v55  ;;  %vm18647_vm0 = vcmp.gt.f32.partialorder %v11100_v11, %v5748_v42  ;;  %vm18648_vm5 = vcmp.eq.s32.totalorder %v11039_v4, %v5852_v21  ;;  %vm18651_vm15 = vcmp.eq.s32.totalorder %v11039_v4, %v5805_v25 }
 0x4cb   :  { %v18646_v32 = vsel %vm11660_vm9, 4294967295, %v18645_v32  ;;  %vm11678_vm4 = vmand %vm18648_vm5, %vm18647_vm0  ;;  %v18652_v23 = vmov 0  ;;  %vm18654_vm7 = vcmp.lt.s32.totalorder %v452_v10, %v9863_v0  ;;  %vm18655_vm6 = vcmp.eq.f32.partialorder %v11348_v12, %v5850_v60 }
 0x4cc   :  { %vm11687_vm8 = vmand %vm18651_vm15, %vm11545_vm14  ;;  %v2849_v4 = vsel %vm11422_vm3, 1, %v17017_v55  ;;  %vm18658_vm14 = vnez %v18576_v3  ;;  %v453_v43 = vadd.s32 488, %v18084_v19  ;;  %vm18663_vm3 = vnez %v18582_v30 }
 0x4cd   :  { %v18653_v23 = vsel %vm11687_vm8, 4294967295, %v18652_v23  ;;  %vm11696_vm9 = vmand %vm18655_vm6, %vm18654_vm7  ;;  %v2850_v10 = vsel %vm18658_vm14, 1, %v17017_v55  ;;  %vm18659_vm6 = vcmp.lt.s32.totalorder %v435_v40, %v18029_v14  ;;  %vm18660_vm7 = vcmp.eq.f32.partialorder %v18611_v24, %v5748_v42 }
 0x4ce   :  { %vm11720_vm5 = vmand %vm18660_vm7, %vm18659_vm6  ;;  %v11728_v3 = vsel %vm18663_vm3, 1, %v17017_v55  ;;  %v11733_v6 = vsel %vm11465_vm11, 1, %v17017_v55  ;;  %vm18666_vm13 = vnez %v18589_v29  ;;  %vm18668_vm14 = vcmp.eq.s32.totalorder %v11143_v57, %v5805_v25  ;;  %v18675_v57 = vld [vmem:[#allocation115_spill] sm:$0xff]  ;;  %v11779_v29 = vpop.trf.xlu0 }
 0x4cf   :  { %18664 = vst [vmem:[#allocation250_spill] sm:$0xff] %v11728_v3  ;;  %v11738_v40 = vsel %vm18666_vm13, 1, %v17017_v55  ;;  %vm11745_vm6 = vmand %vm18668_vm14, %vm11575_vm2  ;;  %vm18671_vm11 = vcmp.gt.f32.partialorder %v11348_v12, %v5850_v60  ;;  %v18672_v30 = vmov 0  ;;  %v18677_v44 = vmov 0 }
 0x4d0   :  { %18665 = vst [vmem:[#allocation251_spill] sm:$0xff] %v11733_v6  ;;  %vm11756_vm13 = vmor %vm18671_vm11, %vm11696_vm9  ;;  %vm18676_vm9 = vcmp.gt.f32.partialorder %v18611_v24, %v5748_v42  ;;  %vm18680_vm0 = vcmp.gt.f32.partialorder %v11348_v12, %v5470_v36  ;;  %vm18681_vm2 = vcmp.eq.s32.totalorder %v11304_v41, %v5795_v59  ;;  %v18682_v11 = vmov 0 }
 0x4d1   :  { %18667 = vst [vmem:[#allocation252_spill] sm:$0xff] %v11738_v40  ;;  %v18673_v30 = vsel %vm11756_vm13, 4294967295, %v18672_v30  ;;  %vm11771_vm11 = vmor %vm18676_vm9, %vm11720_vm5  ;;  %vm18684_vm5 = vcmp.eq.f32.partialorder %v18611_v24, %v5850_v60  ;;  %vm18685_vm9 = vcmp.gt.f32.partialorder %v18611_v24, %v5850_v60  ;;  %v18686_v52 = vmov 0 }
 0x4d2   :  { %18674 = vst [vmem:[#allocation253_spill] sm:$0xff] %v18673_v30  ;;  %v18678_v44 = vsel %vm11771_vm11, 4294967295, %v18677_v44  ;;  %vm11787_vm3 = vmand %vm18681_vm2, %vm18680_vm0  ;;  %vm18690_vm14 = vcmp.gt.f32.partialorder %v18611_v24, %v5470_v36  ;;  %vm18691_vm7 = vcmp.eq.s32.totalorder %v11391_v53, %v5795_v59  ;;  %v18692_v40 = vmov 0 }
 0x4d3   :  { %18679 = vst [vmem:[#allocation254_spill] sm:$0xff] %v18678_v44  ;;  %v18683_v11 = vsel %vm11787_vm3, 4294967295, %v18682_v11  ;;  %vm11797_vm15 = vmor %vm18685_vm9, %vm18684_vm5  ;;  %vm18689_vm9 = vcmp.gt.s32.totalorder %v3019_v58, %v2848_v49  ;;  %vm18695_vm0 = vcmp.gt.s32.totalorder %v3154_v54, %v2849_v4  ;;  %vm18698_vm2 = vcmp.gt.f32.partialorder %v11348_v12, %v5629_v34 }
 0x4d4   :  { %v18687_v52 = vsel %vm11797_vm15, 4294967295, %v18686_v52  ;;  %v3021_v18 = vsel %vm18689_vm9, %v3019_v58, %v2848_v49  ;;  %vm11819_vm8 = vmand %vm18691_vm7, %vm18690_vm14  ;;  %v11829_v58 = vpop.trf.xlu2  ;;  %v3156_v49 = vsel %vm18695_vm0, %v3154_v54, %v2849_v4  ;;  %vm18696_vm7 = vcmp.gt.s32.totalorder %v3289_v50, %v2850_v10 }
 0x4d5   :  { %18688 = vst [vmem:[#allocation255_spill] sm:$0xff] %v18687_v52  ;;  %v18693_v40 = vsel %vm11819_vm8, 4294967295, %v18692_v40  ;;  %v3291_v6 = vsel %vm18696_vm7, %v3289_v50, %v2850_v10  ;;  %vm18697_vm14 = vcmp.gt.s32.totalorder %v3424_v47, %v2851_v56  ;;  %vm18699_vm3 = vcmp.eq.s32.totalorder %v11304_v41, %v5797_v51 }
 0x4d6   :  { %18694 = vst [vmem:[#allocation256_spill] sm:$0xff] %v11829_v58  ;;  %v3426_v3 = vsel %vm18697_vm14, %v3424_v47, %v2851_v56  ;;  %vm11842_vm8 = vmand %vm18699_vm3, %vm18698_vm2  ;;  %vm18702_vm5 = vcmp.gt.f32.partialorder %v18611_v24, %v5629_v34  ;;  %vm18703_vm0 = vcmp.eq.s32.totalorder %v11391_v53, %v5797_v51  ;;  %vm18706_vm7 = vcmp.eq.s32.totalorder %v11391_v53, %v5852_v21 }
 0x4d7   :  { %vm11852_vm9 = vmand %vm18703_vm0, %vm18702_vm5  ;;  %v11872_v50 = vsel %vm11591_vm10, 1, %v17017_v55  ;;  %vm18709_vm5 = vnez %v18629_v62  ;;  %vm18710_vm0 = vcmp.gt.f32.partialorder %v11348_v12, %v5748_v42  ;;  %v18712_v4 = vmov 0  ;;  %v11898_v12 = vpop.trf.xlu1 }
 0x4d8   :  { %vm11861_vm14 = vmand %vm18706_vm7, %vm11771_vm11  ;;  %v2852_v47 = vsel %vm18709_vm5, 1, %v17017_v55  ;;  %vm18711_vm7 = vcmp.eq.s32.totalorder %v11304_v41, %v5852_v21  ;;  %vm18714_vm2 = vcmp.lt.s32.totalorder %v453_v43, %v9863_v0  ;;  %vm18715_vm10 = vcmp.eq.f32.partialorder %v11583_v7, %v5850_v60 }
 0x4d9   :  { %vm11883_vm11 = vmand %vm18711_vm7, %vm18710_vm0  ;;  %v454_v62 = vadd.s32 496, %v18084_v19  ;;  %v437_v10 = vadd.s32 360, %v18084_v19  ;;  %v2853_v44 = vsel %vm11624_vm1, 1, %v17017_v55  ;;  %vm18718_vm5 = vcmp.eq.s32.totalorder %v11304_v41, %v5805_v25 }
 0x4da   :  { %v18713_v4 = vsel %vm11883_vm11, 4294967295, %v18712_v4  ;;  %vm11892_vm3 = vmand %vm18715_vm10, %vm18714_vm2  ;;  %v18719_v43 = vmov 0  ;;  %vm18721_vm2 = vcmp.lt.s32.totalorder %v11665_v9, %v18029_v14  ;;  %vm18722_vm7 = vcmp.eq.f32.partialorder %v18675_v57, %v5748_v42 }
 0x4db   :  { %vm11908_vm0 = vmand %vm18718_vm5, %vm11756_vm13  ;;  %v11931_v41 = vsel %vm11651_vm12, 1, %v17017_v55  ;;  %v2855_v9 = vsel %vm11745_vm6, 1, %v17017_v55  ;;  %v18728_v30 = vmov 0  ;;  %v11953_v1 = vsel %vm11678_vm4, 1, %v17017_v55 }
 0x4dc   :  { %v18720_v43 = vsel %vm11908_vm0, 4294967295, %v18719_v43  ;;  %vm11918_vm10 = vmand %vm18722_vm7, %vm18721_vm2  ;;  %18725 = vst [vmem:[#allocation257_spill] sm:$0xff] %v11931_v41  ;;  %vm18726_vm2 = vnez %v18646_v32  ;;  %vm18727_vm7 = vcmp.eq.s32.totalorder %v11391_v53, %v5805_v25  ;;  %vm18731_vm6 = vnez %v18653_v23 }
 0x4dd   :  { %v2854_v37 = vsel %vm18726_vm2, 1, %v17017_v55  ;;  %vm11944_vm11 = vmand %vm18727_vm7, %vm11797_vm15  ;;  %18730 = vst [vmem:[#allocation258_spill] sm:$0xff] %v11953_v1  ;;  %v11958_v15 = vsel %vm18731_vm6, 1, %v17017_v55  ;;  %vm3022_vm2 = vcmp.gt.s32.totalorder %v3021_v18, %v2852_v47  ;;  %vm18733_vm7 = vcmp.gt.f32.partialorder %v11583_v7, %v5850_v60 }
 0x4de   :  { %v18729_v30 = vsel %vm11944_vm11, 4294967295, %v18728_v30  ;;  %18732 = vst [vmem:[#allocation259_spill] sm:$0xff] %v11958_v15  ;;  %vm11965_vm5 = vmor %vm18733_vm7, %vm11892_vm3  ;;  %v18734_v53 = vmov 0  ;;  %vm18737_vm6 = vcmp.gt.f32.partialorder %v18675_v57, %v5748_v42  ;;  %v18738_v32 = vmov 0 }
 0x4df   :  { %v18735_v53 = vsel %vm11965_vm5, 4294967295, %v18734_v53  ;;  %vm11976_vm1 = vmor %vm18737_vm6, %vm11918_vm10  ;;  %vm18741_vm12 = vcmp.eq.f32.partialorder %v18675_v57, %v5850_v60  ;;  %vm18742_vm4 = vcmp.gt.f32.partialorder %v18675_v57, %v5850_v60  ;;  %v18743_v24 = vmov 0 }
 0x4e0   :  { %18736 = vst [vmem:[#allocation260_spill] sm:$0xff] %v18735_v53  ;;  %v18739_v32 = vsel %vm11976_vm1, 4294967295, %v18738_v32  ;;  %vm11990_vm11 = vmor %vm18742_vm4, %vm18741_vm12  ;;  %v11998_v8 = vsel %vm3022_vm2, %v3021_v18, %v2852_v47  ;;  %vm18746_vm7 = vcmp.gt.f32.partialorder %v11583_v7, %v5470_v36  ;;  %vm18747_vm0 = vcmp.eq.s32.totalorder %v11553_v38, %v5795_v59  ;;  %v12030_v18 = vpop.trf.xlu0 }
 0x4e1   :  { %18740 = vst [vmem:[#allocation261_spill] sm:$0xff] %v18739_v32  ;;  %v18744_v24 = vsel %vm11990_vm11, 4294967295, %v18743_v24  ;;  %vm12006_vm15 = vmand %vm18747_vm0, %vm18746_vm7  ;;  %vm18750_vm12 = vcmp.gt.f32.partialorder %v18675_v57, %v5470_v36  ;;  %vm18751_vm4 = vcmp.eq.s32.totalorder %v11634_v5, %v5795_v59  ;;  %v18752_v16 = vmov 0 }
 0x4e2   :  { %18745 = vst [vmem:[#allocation262_spill] sm:$0xff] %v18744_v24  ;;  %vm12016_vm10 = vmand %vm18751_vm4, %vm18750_vm12  ;;  %vm18754_vm12 = vcmp.gt.s32.totalorder %v3156_v49, %v2853_v44  ;;  %vm18755_vm4 = vcmp.gt.f32.partialorder %v11583_v7, %v5629_v34  ;;  %vm18756_vm2 = vcmp.eq.s32.totalorder %v11553_v38, %v5797_v51  ;;  %v18757_v52 = vmov 0 }
 0x4e3   :  { %v18753_v16 = vsel %vm12016_vm10, 4294967295, %v18752_v16  ;;  %v3158_v47 = vsel %vm18754_vm12, %v3156_v49, %v2853_v44  ;;  %vm12039_vm6 = vmand %vm18756_vm2, %vm18755_vm4  ;;  %vm18759_vm0 = vcmp.gt.f32.partialorder %v18675_v57, %v5629_v34  ;;  %vm18760_vm3 = vcmp.eq.s32.totalorder %v11634_v5, %v5797_v51 }
 0x4e4   :  { %v18758_v52 = vsel %vm12039_vm6, 4294967295, %v18757_v52  ;;  %vm12049_vm7 = vmand %vm18760_vm3, %vm18759_vm0  ;;  %v18761_v15 = vmov 0  ;;  %vm18763_vm12 = vcmp.eq.s32.totalorder %v11634_v5, %v5852_v21  ;;  %v18764_v44 = vmov 0 }
 0x4e5   :  { %v18762_v15 = vsel %vm12049_vm7, 4294967295, %v18761_v15  ;;  %vm12058_vm13 = vmand %vm18763_vm12, %vm11976_vm1  ;;  %vm18766_vm4 = vcmp.lt.s32.totalorder %v454_v62, %v9863_v0  ;;  %vm18767_vm3 = vcmp.eq.f32.partialorder %v11829_v58, %v5850_v60  ;;  %v455_v32 = vadd.s32 504, %v18084_v19 }
 0x4e6   :  { %v18765_v44 = vsel %vm12058_vm13, 4294967295, %v18764_v44  ;;  %vm12069_vm0 = vmand %vm18767_vm3, %vm18766_vm4  ;;  %vm18770_vm1 = vnez %v18683_v11  ;;  %vm18771_vm4 = vcmp.gt.s32.totalorder %v3291_v6, %v2854_v37  ;;  %vm18772_vm3 = vcmp.gt.s32.totalorder %v3426_v3, %v2855_v9 }
 0x4e7   :  { %v12083_v62 = vsel %vm18770_vm1, 1, %v17017_v55  ;;  %v3293_v57 = vsel %vm18771_vm4, %v3291_v6, %v2854_v37  ;;  %v3428_v1 = vsel %vm18772_vm3, %v3426_v3, %v2855_v9  ;;  %vm18773_vm7 = vcmp.gt.f32.partialorder %v11583_v7, %v5748_v42  ;;  %v12106_v3 = vpop.trf.xlu2  ;;  %v12169_v7 = vpop.trf.xlu1 }
 0x4e8   :  { %vm18774_vm12 = vcmp.eq.s32.totalorder %v11553_v38, %v5852_v21  ;;  %v18775_v41 = vmov 0  ;;  %vm18777_vm2 = vcmp.lt.s32.totalorder %v437_v10, %v18029_v14  ;;  %vm18778_vm1 = vcmp.eq.f32.partialorder %v9446_v26, %v5748_v42  ;;  %18781 = vst [vmem:[#allocation263_spill] sm:$0xff] %v12106_v3 }
 0x4e9   :  { %vm12093_vm13 = vmand %vm18774_vm12, %vm18773_vm7  ;;  %v12109_v6 = vadd.s32 368, %v18084_v19  ;;  %vm18782_vm12 = vnez %v18693_v40  ;;  %v18784_v10 = vmov 0  ;;  %vm18786_vm3 = vcmp.eq.s32.totalorder %v11634_v5, %v5805_v25 }
 0x4ea   :  { %v18776_v41 = vsel %vm12093_vm13, 4294967295, %v18775_v41  ;;  %vm12102_vm6 = vmand %vm18778_vm1, %vm18777_vm2  ;;  %v2856_v37 = vsel %vm18782_vm12, 1, %v17017_v55  ;;  %vm18783_vm2 = vcmp.eq.s32.totalorder %v11553_v38, %v5805_v25  ;;  %v18787_v9 = vmov 0 }
 0x4eb   :  { %vm12121_vm4 = vmand %vm18783_vm2, %vm11965_vm5  ;;  %v12149_v38 = vsel %vm11842_vm8, 1, %v17017_v55  ;;  %v2857_v5 = vsel %vm11852_vm9, 1, %v17017_v55  ;;  %v2858_v40 = vsel %vm11861_vm14, 1, %v17017_v55  ;;  %vm18789_vm5 = vnez %v18729_v30 }
 0x4ec   :  { %v18785_v10 = vsel %vm12121_vm4, 4294967295, %v18784_v10  ;;  %vm12130_vm1 = vmand %vm18786_vm3, %vm11990_vm11  ;;  %v2859_v53 = vsel %vm18789_vm5, 1, %v17017_v55  ;;  %vm18790_vm3 = vcmp.gt.f32.partialorder %v11829_v58, %v5850_v60  ;;  %v18791_v17 = vmov 0 }
 0x4ed   :  { %v18788_v9 = vsel %vm12130_vm1, 4294967295, %v18787_v9  ;;  %vm12165_vm4 = vmor %vm18790_vm3, %vm12069_vm0  ;;  %vm18794_vm14 = vnez %v18713_v4  ;;  %vm18795_vm5 = vcmp.gt.f32.partialorder %v9446_v26, %v5748_v42  ;;  %v18796_v54 = vmov 0 }
 0x4ee   :  { %v18792_v17 = vsel %vm12165_vm4, 4294967295, %v18791_v17  ;;  %v12178_v30 = vsel %vm18794_vm14, 1, %v17017_v55  ;;  %vm12185_vm0 = vmor %vm18795_vm5, %vm12102_vm6  ;;  %vm1099_vm9 = vcmp.eq.f32.partialorder %v12106_v3, %v5850_v60  ;;  %vm18798_vm14 = vnez %v18720_v43 }
 0x4ef   :  { %18793 = vst [vmem:[#allocation264_spill] sm:$0xff] %v18792_v17  ;;  %v18797_v54 = vsel %vm12185_vm0, 4294967295, %v18796_v54  ;;  %v12197_v56 = vsel %vm18798_vm14, 1, %v17017_v55  ;;  %vm3024_vm2 = vcmp.gt.s32.totalorder %v11998_v8, %v2856_v37  ;;  %vm18799_vm6 = vcmp.eq.f32.partialorder %v9446_v26, %v5850_v60 }
 0x4f0   :  { %vm18800_vm5 = vcmp.gt.f32.partialorder %v9446_v26, %v5850_v60  ;;  %v18801_v4 = vmov 0  ;;  %vm3159_vm14 = vcmp.gt.s32.totalorder %v3158_v47, %v2857_v5  ;;  %vm3294_vm12 = vcmp.gt.s32.totalorder %v3293_v57, %v2858_v40 }
 0x4f1   :  { %vm12206_vm7 = vmor %vm18800_vm5, %vm18799_vm6  ;;  %vm3429_vm11 = vcmp.gt.s32.totalorder %v3428_v1, %v2859_v53  ;;  %vm18804_vm4 = vcmp.gt.f32.partialorder %v9446_v26, %v5470_v36  ;;  %vm18805_vm1 = vcmp.eq.s32.totalorder %v11898_v12, %v5795_v59  ;;  %vm843_vm8 = vcmp.gt.f32.partialorder %v12106_v3, %v5850_v60 }
 0x4f2   :  { %v18802_v4 = vsel %vm12206_vm7, 4294967295, %v18801_v4  ;;  %vm12220_vm13 = vmand %vm18805_vm1, %vm18804_vm4  ;;  %vm18808_vm7 = vcmp.lt.s32.totalorder %v455_v32, %v9863_v0  ;;  %v3025_v11 = vsel %vm3024_vm2, %v11998_v8, %v2856_v37  ;;  %vm18811_vm1 = vcmp.gt.f32.partialorder %v9446_v26, %v5629_v34 }
 0x4f3   :  { %18803 = vst [vmem:[#allocation265_spill] sm:$0xff] %v18802_v4  ;;  %vm12234_vm10 = vmand %vm1099_vm9, %vm18808_vm7  ;;  %vm18812_vm3 = vcmp.eq.s32.totalorder %v11898_v12, %v5797_v51  ;;  %v3160_v0 = vsel %vm3159_vm14, %v3158_v47, %v2857_v5  ;;  %v3295_v32 = vsel %vm3294_vm12, %v3293_v57, %v2858_v40  ;;  %v3430_v8 = vsel %vm3429_vm11, %v3428_v1, %v2859_v53 }
 0x4f4   :  { %vm12247_vm5 = vmand %vm18812_vm3, %vm18811_vm1  ;;  %vm18815_vm2 = vcmp.gt.f32.partialorder %v11829_v58, %v5470_v36  ;;  %vm18816_vm3 = vcmp.eq.s32.totalorder %v11779_v29, %v5795_v59  ;;  %vm18819_vm7 = vcmp.eq.s32.totalorder %v11898_v12, %v5852_v21  ;;  %v12281_v57 = vsel %vm12006_vm15, 1, %v17017_v55 }
 0x4f5   :  { %vm12263_vm1 = vmand %vm18816_vm3, %vm18815_vm2  ;;  %vm18822_vm12 = vnez %v18753_v16  ;;  %vm18823_vm14 = vcmp.gt.f32.partialorder %v11829_v58, %v5629_v34  ;;  %v18827_v23 = vmov 0  ;;  %vm18834_vm3 = vcmp.eq.s32.totalorder %v11779_v29, %v5852_v21 }
 0x4f6   :  { %vm12272_vm9 = vmand %vm18819_vm7, %vm12185_vm0  ;;  %v2860_v1 = vsel %vm18822_vm12, 1, %v17017_v55  ;;  %vm18824_vm7 = vcmp.eq.s32.totalorder %v11779_v29, %v5797_v51  ;;  %v18835_v40 = vmov 0  ;;  %vm18838_vm4 = vcmp.eq.s32.totalorder %v11898_v12, %v5805_v25 }
 0x4f7   :  { %vm12292_vm2 = vmand %vm18824_vm7, %vm18823_vm14  ;;  %vm18830_vm14 = vnez %v18758_v52  ;;  %vm18831_vm7 = vnez %v18762_v15  ;;  %vm18841_vm11 = vnez %v18776_v41  ;;  %v18845_v12 = vmov 0 }
 0x4f8   :  { %vm12301_vm15 = vmor %vm843_vm8, %vm12234_vm10  ;;  %v12312_v16 = vsel %vm18830_vm14, 1, %v17017_v55  ;;  %v2861_v47 = vsel %vm18831_vm7, 1, %v17017_v55  ;;  %vm18832_vm10 = vnez %v18765_v44  ;;  %vm18833_vm8 = vcmp.gt.f32.partialorder %v11829_v58, %v5748_v42 }
 0x4f9   :  { %v18828_v23 = vsel %vm12301_vm15, 4294967295, %v18827_v23  ;;  %v2862_v5 = vsel %vm18832_vm10, 1, %v17017_v55  ;;  %vm12326_vm12 = vmand %vm18834_vm3, %vm18833_vm8  ;;  %vm18837_vm14 = vnez %v18802_v4  ;;  %v12344_v15 = vsel %vm18841_vm11, 1, %v17017_v55 }
 0x4fa   :  { %18829 = vst [vmem:[#allocation266_spill] sm:$0xff] %v18828_v23  ;;  %v18836_v40 = vsel %vm12326_vm12, 4294967295, %v18835_v40  ;;  %vm12335_vm7 = vmand %vm18838_vm4, %vm18837_vm14  ;;  %vm18842_vm3 = vnez %v18788_v9  ;;  %vm18843_vm8 = vnez %v18792_v17  ;;  %vm18844_vm4 = vcmp.eq.s32.totalorder %v11779_v29, %v5805_v25 }
 0x4fb   :  { %v2863_v44 = vsel %vm18842_vm3, 1, %v17017_v55  ;;  %vm12354_vm6 = vmand %vm18844_vm4, %vm18843_vm8  ;;  %vm18847_vm10 = vcmp.gt.f32.partialorder %v12106_v3, %v5470_v36  ;;  %vm18848_vm11 = vcmp.eq.s32.totalorder %v12030_v18, %v5795_v59  ;;  %v18849_v41 = vmov 0 }
 0x4fc   :  { %v18846_v12 = vsel %vm12354_vm6, 4294967295, %v18845_v12  ;;  %vm12364_vm14 = vmand %vm18848_vm11, %vm18847_vm10  ;;  %vm18851_vm3 = vcmp.gt.f32.partialorder %v12106_v3, %v5629_v34  ;;  %vm18852_vm0 = vcmp.eq.s32.totalorder %v12030_v18, %v5797_v51  ;;  %v18853_v29 = vmov 0 }
 0x4fd   :  { %v18850_v41 = vsel %vm12364_vm14, 4294967295, %v18849_v41  ;;  %vm12374_vm4 = vmand %vm18852_vm0, %vm18851_vm3  ;;  %v439_v9 = vadd.s32 376, %v18084_v19  ;;  %vm18855_vm10 = vnez %v18785_v10  ;;  %vm18856_vm14 = vcmp.gt.f32.partialorder %v12106_v3, %v5748_v42  ;;  %v12415_v10 = vpop.trf.xlu1 }
 0x4fe   :  { %v18854_v29 = vsel %vm12374_vm4, 4294967295, %v18853_v29  ;;  %v12384_v49 = vsel %vm18855_vm10, 1, %v17017_v55  ;;  %vm18857_vm0 = vcmp.eq.s32.totalorder %v12030_v18, %v5852_v21  ;;  %v18858_v17 = vmov 0 }
 0x4ff   :  { %vm12392_vm3 = vmand %vm18857_vm0, %vm18856_vm14  ;;  %vm18860_vm8 = vcmp.eq.s32.totalorder %v12030_v18, %v5805_v25  ;;  %v18861_v19 = vmov 0  ;;  %vm18863_vm10 = vcmp.lt.s32.totalorder %v12109_v6, %v18029_v14  ;;  %vm18864_vm11 = vcmp.eq.f32.partialorder %v9600_v27, %v5748_v42 }
 0x500   :  { %v18859_v17 = vsel %vm12392_vm3, 4294967295, %v18858_v17  ;;  %vm12401_vm4 = vmand %vm18860_vm8, %vm12301_vm15  ;;  %vm3161_vm3 = vcmp.gt.s32.totalorder %v3160_v0, %v2861_v47  ;;  %vm3296_vm8 = vcmp.gt.s32.totalorder %v3295_v32, %v2862_v5  ;;  %v2864_v18 = vsel %vm12220_vm13, 1, %v17017_v55 }
 0x501   :  { %v18862_v19 = vsel %vm12401_vm4, 4294967295, %v18861_v19  ;;  %vm1542_vm6 = vmand %vm18864_vm11, %vm18863_vm10  ;;  %vm18865_vm15 = vcmp.gt.f32.partialorder %v9600_v27, %v5748_v42  ;;  %v18866_v6 = vmov 0  ;;  %v2865_v23 = vsel %vm12247_vm5, 1, %v17017_v55 }
 0x502   :  { %vm12423_vm4 = vmor %vm18865_vm15, %vm1542_vm6  ;;  %v2866_v43 = vsel %vm12272_vm9, 1, %v17017_v55  ;;  %vm18868_vm13 = vcmp.eq.f32.partialorder %v9600_v27, %v5850_v60  ;;  %vm18869_vm6 = vcmp.gt.f32.partialorder %v9600_v27, %v5850_v60  ;;  %v18870_v3 = vmov 0 }
 0x503   :  { %v18867_v6 = vsel %vm12423_vm4, 4294967295, %v18866_v6  ;;  %vm12443_vm15 = vmor %vm18869_vm6, %vm18868_vm13  ;;  %v2867_v26 = vsel %vm12335_vm7, 1, %v17017_v55  ;;  %vm18872_vm9 = vcmp.gt.s32.totalorder %v3025_v11, %v2860_v1  ;;  %vm18873_vm14 = vcmp.gt.f32.partialorder %v9600_v27, %v5470_v36 }
 0x504   :  { %v18871_v3 = vsel %vm12443_vm15, 4294967295, %v18870_v3  ;;  %v3027_v24 = vsel %vm18872_vm9, %v3025_v11, %v2860_v1  ;;  %vm18874_vm13 = vcmp.eq.s32.totalorder %v12169_v7, %v5795_v59  ;;  %v3162_v58 = vsel %vm3161_vm3, %v3160_v0, %v2861_v47 }
 0x505   :  { %vm2612_vm6 = vmand %vm18874_vm13, %vm18873_vm14  ;;  %v3297_v4 = vsel %vm3296_vm8, %v3295_v32, %v2862_v5  ;;  %vm3028_vm5 = vcmp.gt.s32.totalorder %v3027_v24, %v2864_v18  ;;  %vm18875_vm7 = vcmp.gt.f32.partialorder %v9600_v27, %v5629_v34  ;;  %vm18876_vm9 = vcmp.eq.s32.totalorder %v12169_v7, %v5797_v51 }
 0x506   :  { %vm2613_vm0 = vmand %vm18876_vm9, %vm18875_vm7  ;;  %vm2361_vm14 = vcmp.eq.s32.totalorder %v12415_v10, %v5797_v51  ;;  %vm18877_vm13 = vcmp.gt.s32.totalorder %v3430_v8, %v2863_v44  ;;  %vm3163_vm10 = vcmp.gt.s32.totalorder %v3162_v58, %v2865_v23  ;;  %vm3298_vm12 = vcmp.gt.s32.totalorder %v3297_v4, %v2866_v43 }
 0x507   :  { %v3432_v11 = vsel %vm18877_vm13, %v3430_v8, %v2863_v44  ;;  %vm18878_vm3 = vcmp.eq.s32.totalorder %v12169_v7, %v5852_v21  ;;  %v2868_v0 = vsel %vm2612_vm6, 1, %v17017_v55  ;;  %vm18879_vm7 = vcmp.eq.s32.totalorder %v12169_v7, %v5805_v25 }
 0x508   :  { %vm2614_vm8 = vmand %vm18878_vm3, %vm12423_vm4  ;;  %vm3433_vm11 = vcmp.gt.s32.totalorder %v3432_v11, %v2867_v26  ;;  %v2869_v32 = vsel %vm2613_vm0, 1, %v17017_v55  ;;  %v12493_v1 = vsel %vm12263_vm1, 1, %v17017_v55  ;;  %v3029_v5 = vsel %vm3028_vm5, %v3027_v24, %v2864_v18 }
 0x509   :  { %vm2615_vm9 = vmand %vm18879_vm7, %vm12443_vm15  ;;  %v2870_v8 = vsel %vm2614_vm8, 1, %v17017_v55  ;;  %vm18880_vm6 = vcmp.lt.s32.totalorder %v439_v9, %v18029_v14  ;;  %vm18881_vm3 = vcmp.eq.f32.partialorder %v9671_v2, %v5748_v42  ;;  %v12506_v7 = vsel %vm12292_vm2, 1, %v17017_v55 }
 0x50a   :  { %v2871_v47 = vsel %vm2615_vm9, 1, %v17017_v55  ;;  %vm1546_vm7 = vmand %vm18881_vm3, %vm18880_vm6  ;;  %v3164_v37 = vsel %vm3163_vm10, %v3162_v58, %v2865_v23  ;;  %v3299_v52 = vsel %vm3298_vm12, %v3297_v4, %v2866_v43  ;;  %vm3030_vm1 = vcmp.gt.s32.totalorder %v3029_v5, %v2868_v0 }
 0x50b   :  { %vm18882_vm5 = vcmp.gt.f32.partialorder %v9671_v2, %v5748_v42  ;;  %v18883_v14 = vmov 0  ;;  %vm18885_vm9 = vnez %v18836_v40  ;;  %v3434_v9 = vsel %vm3433_vm11, %v3432_v11, %v2867_v26 }
 0x50c   :  { %vm12511_vm8 = vmor %vm18882_vm5, %vm1546_vm7  ;;  %v12518_v44 = vsel %vm18885_vm9, 1, %v17017_v55  ;;  %vm3165_vm6 = vcmp.gt.s32.totalorder %v3164_v37, %v2869_v32  ;;  %vm3300_vm2 = vcmp.gt.s32.totalorder %v3299_v52, %v2870_v8  ;;  %vm18886_vm12 = vcmp.eq.f32.partialorder %v9671_v2, %v5850_v60 }
 0x50d   :  { %v18884_v14 = vsel %vm12511_vm8, 4294967295, %v18883_v14  ;;  %vm18887_vm10 = vcmp.gt.f32.partialorder %v9671_v2, %v5850_v60  ;;  %v18888_v58 = vmov 0  ;;  %vm18890_vm7 = vnez %v18846_v12 }
 0x50e   :  { %vm12527_vm3 = vmor %vm18887_vm10, %vm18886_vm12  ;;  %v12534_v4 = vsel %vm18890_vm7, 1, %v17017_v55  ;;  %vm18891_vm11 = vnez %v18850_v41  ;;  %vm18892_vm5 = vnez %v18854_v29  ;;  %vm3435_vm9 = vcmp.gt.s32.totalorder %v3434_v9, %v2871_v47 }
 0x50f   :  { %v18889_v58 = vsel %vm12527_vm3, 4294967295, %v18888_v58  ;;  %v12539_v53 = vsel %vm18891_vm11, 1, %v17017_v55  ;;  %v12544_v23 = vsel %vm18892_vm5, 1, %v17017_v55  ;;  %vm18893_vm12 = vcmp.gt.f32.partialorder %v9671_v2, %v5470_v36 }
 0x510   :  { %vm18894_vm10 = vcmp.eq.s32.totalorder %v12415_v10, %v5795_v59  ;;  %vm18895_vm7 = vnez %v18859_v17  ;;  %vm18896_vm11 = vnez %v18862_v19  ;;  %vm18897_vm5 = vcmp.gt.f32.partialorder %v9671_v2, %v5629_v34 }
 0x511   :  { %vm2616_vm0 = vmand %vm18894_vm10, %vm18893_vm12  ;;  %v12555_v60 = vsel %vm18895_vm7, 1, %v17017_v55  ;;  %v12560_v40 = vsel %vm18896_vm11, 1, %v17017_v55  ;;  %v3031_v12 = vsel %vm3030_vm1, %v3029_v5, %v2868_v0  ;;  %v3166_v41 = vsel %vm3165_vm6, %v3164_v37, %v2869_v32  ;;  %v18902_v5 = vld [vmem:[#allocation203_spill] sm:$0xff]  ;;  %v18903_v37 = vld [vmem:[#allocation201_spill] sm:$0xff] }
 0x512   :  { %vm2617_vm13 = vmand %vm2361_vm14, %vm18897_vm5  ;;  %v2872_v59 = vsel %vm2616_vm0, 1, %v17017_v55  ;;  %v3301_v17 = vsel %vm3300_vm2, %v3299_v52, %v2870_v8  ;;  %vm18898_vm12 = vcmp.eq.s32.totalorder %v12415_v10, %v5852_v21  ;;  %v3436_v19 = vsel %vm3435_vm9, %v3434_v9, %v2871_v47  ;;  %v18900_v47 = vld [vmem:[#allocation199_spill] sm:$0xff]  ;;  %v18904_v9 = vld [vmem:[#allocation204_spill] sm:$0xff] }
 0x513   :  { %vm2618_vm10 = vmand %vm18898_vm12, %vm12511_vm8  ;;  %v2873_v29 = vsel %vm2617_vm13, 1, %v17017_v55  ;;  %vm3032_vm7 = vcmp.gt.s32.totalorder %v3031_v12, %v2872_v59  ;;  %vm18899_vm14 = vcmp.eq.s32.totalorder %v12415_v10, %v5805_v25 }
 0x514   :  { %vm2619_vm0 = vmand %vm18899_vm14, %vm12527_vm3  ;;  %v2874_v51 = vsel %vm2618_vm10, 1, %v17017_v55  ;;  %v3033_v18 = vsel %vm3032_vm7, %v3031_v12, %v2872_v59  ;;  %vm3167_vm1 = vcmp.gt.s32.totalorder %v3166_v41, %v2873_v29  ;;  %v18906_v59 = vld [vmem:[#allocation210_spill] sm:$0xff]  ;;  %v18907_v12 = vld [vmem:[#allocation205_spill] sm:$0xff] }
 0x515   :  { %v2875_v43 = vsel %vm2619_vm0, 1, %v17017_v55  ;;  %vm3034_vm6 = vcmp.gt.s32.totalorder %v3033_v18, %v10203_v31  ;;  %v3168_v21 = vsel %vm3167_vm1, %v3166_v41, %v2873_v29  ;;  %vm3302_vm2 = vcmp.gt.s32.totalorder %v3301_v17, %v2874_v51  ;;  %v18908_v29 = vld [vmem:[#allocation212_spill] sm:$0xff] }
 0x516   :  { %v3035_v26 = vsel %vm3034_vm6, %v3033_v18, %v10203_v31  ;;  %vm3169_vm13 = vcmp.gt.s32.totalorder %v3168_v21, %v10208_v61  ;;  %v3303_v24 = vsel %vm3302_vm2, %v3301_v17, %v2874_v51  ;;  %vm3437_vm9 = vcmp.gt.s32.totalorder %v3436_v19, %v2875_v43  ;;  %v18909_v51 = vld [vmem:[#allocation206_spill] sm:$0xff] }
 0x517   :  { %vm3036_vm11 = vcmp.gt.s32.totalorder %v3035_v26, %v10231_v20  ;;  %v3170_v25 = vsel %vm3169_vm13, %v3168_v21, %v10208_v61  ;;  %vm3304_vm5 = vcmp.gt.s32.totalorder %v3303_v24, %v10221_v63  ;;  %v3438_v10 = vsel %vm3437_vm9, %v3436_v19, %v2875_v43  ;;  %v18910_v18 = vld [vmem:[#allocation218_spill] sm:$0xff]  ;;  %v18911_v21 = vld [vmem:[#allocation213_spill] sm:$0xff] }
 0x518   :  { %v3037_v11 = vsel %vm3036_vm11, %v3035_v26, %v10231_v20  ;;  %vm3171_vm12 = vcmp.gt.s32.totalorder %v3170_v25, %v10247_v48  ;;  %v3305_v0 = vsel %vm3304_vm5, %v3303_v24, %v10221_v63  ;;  %vm3439_vm10 = vcmp.gt.s32.totalorder %v3438_v10, %v10226_v39 }
 0x519   :  { %vm3038_vm7 = vcmp.gt.s32.totalorder %v3037_v11, %v10286_v46  ;;  %v3172_v31 = vsel %vm3171_vm12, %v3170_v25, %v10247_v48  ;;  %vm3306_vm14 = vcmp.gt.s32.totalorder %v3305_v0, %v10264_v35  ;;  %v3440_v32 = vsel %vm3439_vm10, %v3438_v10, %v10226_v39  ;;  %v18912_v25 = vld [vmem:[#allocation220_spill] sm:$0xff] }
 0x51a   :  { %v3039_v61 = vsel %vm3038_vm7, %v3037_v11, %v10286_v46  ;;  %vm3173_vm0 = vcmp.gt.s32.totalorder %v3172_v31, %v10291_v22  ;;  %v3307_v20 = vsel %vm3306_vm14, %v3305_v0, %v10264_v35  ;;  %vm3441_vm1 = vcmp.gt.s32.totalorder %v3440_v32, %v10269_v45  ;;  %v18901_v46 = vld [vmem:[#allocation197_spill] sm:$0xff]  ;;  %v18913_v11 = vld [vmem:[#allocation214_spill] sm:$0xff] }
 0x51b   :  { %vm3040_vm6 = vcmp.gt.s32.totalorder %v3039_v61, %v10322_v13  ;;  %v3174_v63 = vsel %vm3173_vm0, %v3172_v31, %v10291_v22  ;;  %vm3308_vm2 = vcmp.gt.s32.totalorder %v3307_v20, %v10312_v28  ;;  %v3442_v48 = vsel %vm3441_vm1, %v3440_v32, %v10269_v45  ;;  %v18905_v45 = vld [vmem:[#allocation202_spill] sm:$0xff]  ;;  %v18915_v32 = vld [vmem:[#allocation221_spill] sm:$0xff] }
 0x51c   :  { %v3041_v8 = vsel %vm3040_vm6, %v3039_v61, %v10322_v13  ;;  %vm3175_vm13 = vcmp.gt.s32.totalorder %v3174_v63, %v18900_v47  ;;  %v3309_v39 = vsel %vm3308_vm2, %v3307_v20, %v10312_v28  ;;  %vm3443_vm9 = vcmp.gt.s32.totalorder %v3442_v48, %v18901_v46  ;;  %v18914_v0 = vld [vmem:[#allocation226_spill] sm:$0xff] }
 0x51d   :  { %vm3042_vm11 = vcmp.gt.s32.totalorder %v3041_v8, %v18902_v5  ;;  %v3176_v35 = vsel %vm3175_vm13, %v3174_v63, %v18900_v47  ;;  %vm3310_vm5 = vcmp.gt.s32.totalorder %v3309_v39, %v18903_v37  ;;  %v3444_v22 = vsel %vm3443_vm9, %v3442_v48, %v18901_v46  ;;  %v18916_v63 = vld [vmem:[#allocation228_spill] sm:$0xff]  ;;  %v18918_v47 = vld [vmem:[#allocation234_spill] sm:$0xff]  ;;  %v18919_v46 = vld [vmem:[#allocation229_spill] sm:$0xff] }
 0x51e   :  { %v3043_v52 = vsel %vm3042_vm11, %v3041_v8, %v18902_v5  ;;  %vm3177_vm12 = vcmp.gt.s32.totalorder %v3176_v35, %v18904_v9  ;;  %v3311_v13 = vsel %vm3310_vm5, %v3309_v39, %v18903_v37  ;;  %vm3445_vm10 = vcmp.gt.s32.totalorder %v3444_v22, %v18905_v45  ;;  %v18917_v8 = vld [vmem:[#allocation222_spill] sm:$0xff]  ;;  %v18920_v37 = vld [vmem:[#allocation235_spill] sm:$0xff] }
 0x51f   :  { %vm3044_vm7 = vcmp.gt.s32.totalorder %v3043_v52, %v18906_v59  ;;  %v3178_v28 = vsel %vm3177_vm12, %v3176_v35, %v18904_v9  ;;  %vm3312_vm14 = vcmp.gt.s32.totalorder %v3311_v13, %v18907_v12  ;;  %v3446_v41 = vsel %vm3445_vm10, %v3444_v22, %v18905_v45 }
 0x520   :  { %v3045_v17 = vsel %vm3044_vm7, %v3043_v52, %v18906_v59  ;;  %vm3179_vm0 = vcmp.gt.s32.totalorder %v3178_v28, %v18908_v29  ;;  %v3313_v19 = vsel %vm3312_vm14, %v3311_v13, %v18907_v12  ;;  %vm3447_vm1 = vcmp.gt.s32.totalorder %v3446_v41, %v18909_v51  ;;  %v18921_v52 = vld [vmem:[#allocation230_spill] sm:$0xff]  ;;  %v18922_v13 = vld [vmem:[#allocation236_spill] sm:$0xff] }
 0x521   :  { %vm3046_vm6 = vcmp.gt.s32.totalorder %v3045_v17, %v18910_v18  ;;  %v3180_v43 = vsel %vm3179_vm0, %v3178_v28, %v18908_v29  ;;  %vm3314_vm2 = vcmp.gt.s32.totalorder %v3313_v19, %v18911_v21  ;;  %v3448_v26 = vsel %vm3447_vm1, %v3446_v41, %v18909_v51  ;;  %v18923_v28 = vld [vmem:[#allocation242_spill] sm:$0xff]  ;;  %v18924_v41 = vld [vmem:[#allocation237_spill] sm:$0xff] }
 0x522   :  { %v3047_v24 = vsel %vm3046_vm6, %v3045_v17, %v18910_v18  ;;  %vm3181_vm13 = vcmp.gt.s32.totalorder %v3180_v43, %v18912_v25  ;;  %v3315_v10 = vsel %vm3314_vm2, %v3313_v19, %v18911_v21  ;;  %vm3449_vm9 = vcmp.gt.s32.totalorder %v3448_v26, %v18913_v11  ;;  %v18925_v17 = vld [vmem:[#allocation249_spill] sm:$0xff]  ;;  %v18926_v19 = vld [vmem:[#allocation243_spill] sm:$0xff]  ;;  %v18928_v21 = vld [vmem:[#allocation244_spill] sm:$0xff] }
 0x523   :  { %vm3048_vm11 = vcmp.gt.s32.totalorder %v3047_v24, %v18914_v0  ;;  %v3182_v31 = vsel %vm3181_vm13, %v3180_v43, %v18912_v25  ;;  %vm3316_vm5 = vcmp.gt.s32.totalorder %v3315_v10, %v18915_v32  ;;  %v3450_v61 = vsel %vm3449_vm9, %v3448_v26, %v18913_v11  ;;  %v18927_v43 = vld [vmem:[#allocation250_spill] sm:$0xff]  ;;  %v18930_v11 = vld [vmem:[#allocation257_spill] sm:$0xff] }
 0x524   :  { %v3049_v20 = vsel %vm3048_vm11, %v3047_v24, %v18914_v0  ;;  %vm3183_vm12 = vcmp.gt.s32.totalorder %v3182_v31, %v18916_v63  ;;  %v3317_v48 = vsel %vm3316_vm5, %v3315_v10, %v18915_v32  ;;  %vm3451_vm10 = vcmp.gt.s32.totalorder %v3450_v61, %v18917_v8  ;;  %v18929_v24 = vld [vmem:[#allocation251_spill] sm:$0xff] }
 0x525   :  { %vm3050_vm7 = vcmp.gt.s32.totalorder %v3049_v20, %v18918_v47  ;;  %v3184_v39 = vsel %vm3183_vm12, %v3182_v31, %v18916_v63  ;;  %vm3318_vm14 = vcmp.gt.s32.totalorder %v3317_v48, %v18919_v46  ;;  %v3452_v5 = vsel %vm3451_vm10, %v3450_v61, %v18917_v8  ;;  %v18931_v31 = vld [vmem:[#allocation252_spill] sm:$0xff]  ;;  %v18932_v61 = vld [vmem:[#allocation258_spill] sm:$0xff] }
 0x526   :  { %v3051_v35 = vsel %vm3050_vm7, %v3049_v20, %v18918_v47  ;;  %vm3185_vm0 = vcmp.gt.s32.totalorder %v3184_v39, %v18920_v37  ;;  %v3319_v22 = vsel %vm3318_vm14, %v3317_v48, %v18919_v46  ;;  %vm3453_vm1 = vcmp.gt.s32.totalorder %v3452_v5, %v18921_v52  ;;  %v18933_v48 = vld [vmem:[#allocation259_spill] sm:$0xff] }
 0x527   :  { %vm3052_vm6 = vcmp.gt.s32.totalorder %v3051_v35, %v11446_v33  ;;  %v3186_v9 = vsel %vm3185_vm0, %v3184_v39, %v18920_v37  ;;  %vm3320_vm2 = vcmp.gt.s32.totalorder %v3319_v22, %v18922_v13  ;;  %v3454_v45 = vsel %vm3453_vm1, %v3452_v5, %v18921_v52 }
 0x528   :  { %v3053_v59 = vsel %vm3052_vm6, %v3051_v35, %v11446_v33  ;;  %vm3187_vm13 = vcmp.gt.s32.totalorder %v3186_v9, %v18923_v28  ;;  %v3321_v12 = vsel %vm3320_vm2, %v3319_v22, %v18922_v13  ;;  %vm3455_vm9 = vcmp.gt.s32.totalorder %v3454_v45, %v18924_v41 }
 0x529   :  { %vm3054_vm11 = vcmp.gt.s32.totalorder %v3053_v59, %v18925_v17  ;;  %v3188_v29 = vsel %vm3187_vm13, %v3186_v9, %v18923_v28  ;;  %vm3322_vm5 = vcmp.gt.s32.totalorder %v3321_v12, %v18926_v19  ;;  %v3456_v51 = vsel %vm3455_vm9, %v3454_v45, %v18924_v41 }
 0x52a   :  { %v3055_v18 = vsel %vm3054_vm11, %v3053_v59, %v18925_v17  ;;  %vm3189_vm12 = vcmp.gt.s32.totalorder %v3188_v29, %v18927_v43  ;;  %v3323_v33 = vsel %vm3322_vm5, %v3321_v12, %v18926_v19  ;;  %vm3457_vm10 = vcmp.gt.s32.totalorder %v3456_v51, %v18928_v21 }
 0x52b   :  { %vm3056_vm7 = vcmp.gt.s32.totalorder %v3055_v18, %v11872_v50  ;;  %v3190_v26 = vsel %vm3189_vm12, %v3188_v29, %v18927_v43  ;;  %vm3324_vm14 = vcmp.gt.s32.totalorder %v3323_v33, %v18929_v24  ;;  %v3458_v25 = vsel %vm3457_vm10, %v3456_v51, %v18928_v21 }
 0x52c   :  { %v3057_v10 = vsel %vm3056_vm7, %v3055_v18, %v11872_v50  ;;  %vm3191_vm0 = vcmp.gt.s32.totalorder %v3190_v26, %v18930_v11  ;;  %v3325_v0 = vsel %vm3324_vm14, %v3323_v33, %v18929_v24  ;;  %vm3459_vm1 = vcmp.gt.s32.totalorder %v3458_v25, %v18931_v31 }
 0x52d   :  { %vm3058_vm6 = vcmp.gt.s32.totalorder %v3057_v10, %v12083_v62  ;;  %v3192_v32 = vsel %vm3191_vm0, %v3190_v26, %v18930_v11  ;;  %vm3326_vm2 = vcmp.gt.s32.totalorder %v3325_v0, %v18932_v61  ;;  %v3460_v20 = vsel %vm3459_vm1, %v3458_v25, %v18931_v31 }
 0x52e   :  { %v3059_v63 = vsel %vm3058_vm6, %v3057_v10, %v12083_v62  ;;  %vm3193_vm13 = vcmp.gt.s32.totalorder %v3192_v32, %v12149_v38  ;;  %v3327_v50 = vsel %vm3326_vm2, %v3325_v0, %v18932_v61  ;;  %vm3461_vm9 = vcmp.gt.s32.totalorder %v3460_v20, %v18933_v48 }
 0x52f   :  { %vm3060_vm11 = vcmp.gt.s32.totalorder %v3059_v63, %v12281_v57  ;;  %v3194_v8 = vsel %vm3193_vm13, %v3192_v32, %v12149_v38  ;;  %vm3328_vm5 = vcmp.gt.s32.totalorder %v3327_v50, %v12178_v30  ;;  %v3462_v47 = vsel %vm3461_vm9, %v3460_v20, %v18933_v48  ;;  %v18942_v48 = vld [vmem:[#allocation25_spill] sm:$0xff] }
 0x530   :  { %v3061_v39 = vsel %vm3060_vm11, %v3059_v63, %v12281_v57  ;;  %vm3195_vm12 = vcmp.gt.s32.totalorder %v3194_v8, %v12312_v16  ;;  %v3329_v62 = vsel %vm3328_vm5, %v3327_v50, %v12178_v30  ;;  %vm3463_vm10 = vcmp.gt.s32.totalorder %v3462_v47, %v12197_v56  ;;  %v18937_v63 = vld [vmem:[#allocation23_spill] sm:$0xff] }
 0x531   :  { %v3196_v46 = vsel %vm3195_vm12, %v3194_v8, %v12312_v16  ;;  %vm3330_vm7 = vcmp.gt.s32.totalorder %v3329_v62, %v12344_v15  ;;  %v3464_v5 = vsel %vm3463_vm10, %v3462_v47, %v12197_v56  ;;  %vm3062_vm14 = vcmp.gt.s32.totalorder %v3061_v39, %v12493_v1  ;;  %v18943_v47 = vld [vmem:[#allocation30_spill] sm:$0xff] }
 0x532   :  { %vm3197_vm0 = vcmp.gt.s32.totalorder %v3196_v46, %v12506_v7  ;;  %v3331_v38 = vsel %vm3330_vm7, %v3329_v62, %v12344_v15  ;;  %vm3465_vm1 = vcmp.gt.s32.totalorder %v3464_v5, %v12384_v49  ;;  %v3063_v57 = vsel %vm3062_vm14, %v3061_v39, %v12493_v1 }
 0x533   :  { %vm3332_vm6 = vcmp.gt.s32.totalorder %v3331_v38, %v12518_v44  ;;  %v3466_v30 = vsel %vm3465_vm1, %v3464_v5, %v12384_v49  ;;  %vm3064_vm2 = vcmp.gt.s32.totalorder %v3063_v57, %v12539_v53  ;;  %v3198_v16 = vsel %vm3197_vm0, %v3196_v46, %v12506_v7 }
 0x534   :  { %vm3467_vm13 = vcmp.gt.s32.totalorder %v3466_v30, %v12534_v4  ;;  %v3065_v56 = vsel %vm3064_vm2, %v3063_v57, %v12539_v53  ;;  %vm3199_vm9 = vcmp.gt.s32.totalorder %v3198_v16, %v12544_v23  ;;  %v3333_v15 = vsel %vm3332_vm6, %v3331_v38, %v12518_v44 }
 0x535   :  { %v3066_v35 = vrot.slane %v3065_v56, 4  ;;  %v3200_v37 = vsel %vm3199_vm9, %v3198_v16, %v12544_v23  ;;  %vm3334_vm11 = vcmp.gt.s32.totalorder %v3333_v15, %v12555_v60  ;;  %v3468_v1 = vsel %vm3467_vm13, %v3466_v30, %v12534_v4 }
 0x536   :  { %v3201_v49 = vrot.slane %v3200_v37, 4  ;;  %v3335_v22 = vsel %vm3334_vm11, %v3333_v15, %v12555_v60  ;;  %vm3469_vm5 = vcmp.gt.s32.totalorder %v3468_v1, %v12560_v40  ;;  %v18939_v50 = vmov 0 }
 0x537   :  { %vm3067_vm12 = vcmp.gt.s32.totalorder %v3065_v56, %v3066_v35  ;;  %v3336_v7 = vrot.slane %v3335_v22, 4  ;;  %v3470_v53 = vsel %vm3469_vm5, %v3468_v1, %v12560_v40 }
 0x538   :  { %v3068_v52 = vsel %vm3067_vm12, %v3065_v56, %v3066_v35  ;;  %vm3202_vm10 = vcmp.gt.s32.totalorder %v3200_v37, %v3201_v49  ;;  %v3471_v9 = vrot.slane %v3470_v53, 4 }
 0x539   :  { %v3069_v44 = vrot.slane %v3068_v52, 2  ;;  %v3203_v13 = vsel %vm3202_vm10, %v3200_v37, %v3201_v49  ;;  %vm3337_vm7 = vcmp.gt.s32.totalorder %v3335_v22, %v3336_v7 }
 0x53a   :  { %v3204_v23 = vrot.slane %v3203_v13, 2  ;;  %v3338_v45 = vsel %vm3337_vm7, %v3335_v22, %v3336_v7  ;;  %vm3472_vm14 = vcmp.gt.s32.totalorder %v3470_v53, %v3471_v9  ;;  %vm16828_vm7 = vmmov 1  }
 0x53b   :  { %vm3070_vm0 = vcmp.gt.s32.totalorder %v3068_v52, %v3069_v44  ;;  %v3339_v4 = vrot.slane %v3338_v45, 2  ;;  %v3473_v59 = vsel %vm3472_vm14, %v3470_v53, %v3471_v9 }
 0x53c   :  { %v3071_v28 = vsel %vm3070_vm0, %v3068_v52, %v3069_v44  ;;  %vm3205_vm1 = vcmp.gt.s32.totalorder %v3203_v13, %v3204_v23  ;;  %v3474_v60 = vrot.slane %v3473_v59, 2 }
 0x53d   :  { %v3072_v12 = vrot.slane %v3071_v28, 1  ;;  %v3206_v41 = vsel %vm3205_vm1, %v3203_v13, %v3204_v23  ;;  %vm3340_vm6 = vcmp.gt.s32.totalorder %v3338_v45, %v3339_v4 }
 0x53e   :  { %v3207_v17 = vrot.slane %v3206_v41, 1  ;;  %v3341_v40 = vsel %vm3340_vm6, %v3338_v45, %v3339_v4  ;;  %vm3475_vm2 = vcmp.gt.s32.totalorder %v3473_v59, %v3474_v60 }
 0x53f   :  { %vm3073_vm13 = vcmp.gt.s32.totalorder %v3071_v28, %v3072_v12  ;;  %v3342_v29 = vrot.slane %v3341_v40, 1  ;;  %v3476_v19 = vsel %vm3475_vm2, %v3473_v59, %v3474_v60 }
 0x540   :  { %v3074_v51 = vsel %vm3073_vm13, %v3071_v28, %v3072_v12  ;;  %vm3208_vm9 = vcmp.gt.s32.totalorder %v3206_v41, %v3207_v17  ;;  %v3477_v18 = vrot.slane %v3476_v19, 1  ;;  %vm18934_vm13 = vcmask 1040384  }
 0x541   :  { %v3209_v43 = vsel %vm3208_vm9, %v3206_v41, %v3207_v17  ;;  %vm3343_vm11 = vcmp.gt.s32.totalorder %v3341_v40, %v3342_v29  ;;  %vm3480_vm5 = vcmp.gt.s32.totalorder %v3074_v51, 0  ;;  %vm18935_vm9 = vcmask 1042434  }
 0x542   :  { %v3344_v33 = vsel %vm3343_vm11, %v3341_v40, %v3342_v29  ;;  %vm3478_vm12 = vcmp.gt.s32.totalorder %v3476_v19, %v3477_v18  ;;  %vm3481_vm10 = vcmp.gt.s32.totalorder %v3209_v43, 0  ;;  %vm3484_vm14 = vmxor %vm3480_vm5, %vm16828_vm7  ;;  %vm18936_vm11 = vcmask 1041408  }
 0x543   :  { %v3479_v21 = vsel %vm3478_vm12, %v3476_v19, %v3477_v18  ;;  %vm3482_vm0 = vcmp.gt.s32.totalorder %v3344_v33, 0  ;;  %vm3485_vm1 = vmxor %vm3481_vm10, %vm16828_vm7  ;;  %v3488_v10 = vsel %vm3484_vm14, 1, %v17017_v55  ;;  %vm18938_vm12 = vnez %v18937_v63 }
 0x544   :  { %vm3483_vm6 = vcmp.gt.s32.totalorder %v3479_v21, 0  ;;  %vm3486_vm3 = vmxor %vm3482_vm0, %vm16828_vm7  ;;  %v3489_v26 = vsel %vm3485_vm1, 1, %v17017_v55 }
 0x545   :  { %vm3487_vm2 = vmxor %vm3483_vm6, %vm16828_vm7  ;;  %v3490_v24 = vsel %vm3486_vm3, 1, %v17017_v55  ;;  %v3492_v25 = vrot.slane %v3489_v26, 7 }
 0x546   :  { %v3491_v11 = vsel %vm3487_vm2, 1, %v17017_v55  ;;  %v3493_v0 = vrot.slane %v3490_v24, 6  ;;  %vm18944_vm3 = vmmov %vm18934_vm13 }
 0x547   :  { %v3494_v31 = vrot.slane %v3491_v11, 5  ;;  %v3495_v32 = vsel %vm18934_vm13, %v3488_v10, %v3492_v25  ;;  %vm18945_vm14 = vmmov %vm18944_vm3  ;;  %v18952_v10 = vld [vmem:[#allocation17_spill] sm:$0xff] }
 0x548   :  { %vm18946_vm0 = vmmov %vm18944_vm3 }
 0x549   :  { %v3496_v61 = vsel %vm18935_vm9, %v3493_v0, %v3494_v31  ;;  %vm18947_vm1 = vmmov %vm18946_vm0  ;;  %v18953_v0 = vld [vmem:[#allocation18_spill] sm:$0xff] }
 0x54a   :  { %v3497_v20 = vsel %vm18936_vm11, %v3495_v32, %v3496_v61  ;;  %vm18948_vm2 = vmmov %vm18946_vm0  ;;  %v18954_v32 = vld [vmem:[#allocation19_spill] sm:$0xff] }
 0x54b   :  { %vm3498_vm5 = vcmp.ne.s32.totalorder %v3497_v20, 0  ;;  %vm18949_vm13 = vmmov %vm18946_vm0  ;;  %v18955_v20 = vld [vmem:[#allocation16_spill] sm:$0xff] }
 0x54c   :  { %vm12724_vm10 = vmand %vm18938_vm12, %vm3498_vm5 }
 0x54d   :  { %v18940_v50 = vsel %vm12724_vm10, 4294967295, %v18939_v50  ;;  %v3500_v8 = vsel %vm12724_vm10, %v18942_v48, 1073741824  ;;  %v3533_v39 = vsel %vm12724_vm10, %v18943_v47, 1073741824  ;;  %vm18950_vm11 = vmmov %vm18946_vm0 }
 0x54e   :  { %18941 = vst [vmem:[#allocation199_spill] sm:$0xff] %v18940_v50  ;;  %v3501_v62 = vperm.slane %v3500_v8, 0  ;;  %v3502_v46 = vperm.slane %v3500_v8, 1  ;;  %v3503_v5 = vperm.slane %v3500_v8, 2  ;;  %v3504_v38 = vperm.slane %v3500_v8, 3  ;;  %vm18951_vm5 = vmmov %vm18946_vm0 }
 0x54f   :  { %v3534_v57 = vperm.slane %v3533_v39, 0  ;;  %v3535_v30 = vperm.slane %v3533_v39, 1  ;;  %v3536_v16 = vperm.slane %v3533_v39, 2  ;;  %v3537_v56 = vperm.slane %v3533_v39, 3 }
 0x550   :  { %v3505_v15 = vsel %vm18944_vm3, %v3501_v62, 2147483647  ;;  %v3506_v35 = vsel %vm18945_vm14, %v3502_v46, 2147483647  ;;  %v3507_v37 = vsel %vm18946_vm0, %v3503_v5, 2147483647 }
 0x551   :  { %v3508_v1 = vsel %vm18947_vm1, %v3504_v38, 2147483647  ;;  %vm3509_vm6 = vcmp.lt.s32.totalorder %v3505_v15, %v3506_v35  ;;  %v3538_v49 = vsel %vm18948_vm2, %v3534_v57, 2147483647  ;;  %v3539_v22 = vsel %vm18949_vm13, %v3535_v30, 2147483647  ;;  %vm18963_vm13 = vmmov %vm18951_vm5 }
 0x552   :  { %v3510_v7 = vsel %vm3509_vm6, %v3505_v15, %v3506_v35  ;;  %vm3511_vm9 = vcmp.lt.s32.totalorder %v3507_v37, %v3508_v1  ;;  %v3540_v53 = vsel %vm18950_vm11, %v3536_v16, 2147483647  ;;  %v3541_v52 = vsel %vm18951_vm5, %v3537_v56, 2147483647  ;;  %vm18965_vm11 = vmmov %vm18951_vm5 }
 0x553   :  { %v3512_v9 = vsel %vm3511_vm9, %v3507_v37, %v3508_v1  ;;  %vm3542_vm12 = vcmp.lt.s32.totalorder %v3538_v49, %v3539_v22  ;;  %vm3544_vm3 = vcmp.lt.s32.totalorder %v3540_v53, %v3541_v52  ;;  %vm18957_vm6 = vcmask 1042434   ;;  %v18959_v1 = vld [vmem:[#allocation27_spill] sm:$0xff]  ;;  %vm18964_vm9 = vmmov %vm18951_vm5 }
 0x554   :  { %vm3513_vm7 = vcmp.lt.s32.totalorder %v3510_v7, %v3512_v9  ;;  %v3543_v44 = vsel %vm3542_vm12, %v3538_v49, %v3539_v22  ;;  %v3545_v13 = vsel %vm3544_vm3, %v3540_v53, %v3541_v52  ;;  %v18960_v22 = vld [vmem:[#allocation26_spill] sm:$0xff]  ;;  %v18961_v53 = vld [vmem:[#allocation28_spill] sm:$0xff] }
 0x555   :  { %v3514_v23 = vsel %vm3513_vm7, %v3510_v7, %v3512_v9  ;;  %vm3546_vm14 = vcmp.lt.s32.totalorder %v3543_v44, %v3545_v13  ;;  %vm18956_vm7 = vmmov %vm18948_vm2  ;;  %vm18958_vm2 = vcmask 1041408   ;;  %v18962_v9 = vld [vmem:[#allocation29_spill] sm:$0xff] }
 0x556   :  { %v3516_v45 = vshra.s32 %v3514_v23, 16  ;;  %v3547_v59 = vsel %vm3546_vm14, %v3543_v44, %v3545_v13  ;;  %v3515_v12 = vand.u32 65535, %v3514_v23  ;;  %vm18966_vm14 = vmmov %vm18951_vm5 }
 0x557   :  { %v3549_v28 = vshra.s32 %v3547_v59, 16  ;;  %v3548_v29 = vand.u32 65535, %v3547_v59 }
 0x558   :  { %v3518_v4 = vcvt.s32.f32 %v3516_v45  ;;  %v3517_v17 = vcvt.s32.f32 %v3515_v12 }
 0x559   :  { %v3551_v60 = vcvt.s32.f32 %v3549_v28  ;;  %v3550_v51 = vcvt.s32.f32 %v3548_v29 }
 0x55a   :  { %3519 = vmin.xlane.f32.xlu1 %v3518_v4 }
 0x562   :  { %3552 = vmin.xlane.f32.xlu1 %v3551_v60 }
 0x5cd   :  { %v3520_v41 = vpop.xlane.xlu1 %3519 }
 0x5ce   :  { %vm3521_vm0 = vcmp.eq.f32.partialorder %v3518_v4, %v3520_v41  ;;  %v3526_v43 = vcvt.f32.s32 %v3520_v41 }
 0x5cf   :  { %v3522_v40 = vsel %vm3521_vm0, %v3517_v17, inf  ;;  %vm18967_vm0 = vmmov %vm18957_vm6 }
 0x5d0   :  { %3523 = vmin.xlane.f32.xlu2 %v3522_v40  ;;  %v3527_v21 = vshll.u32 %v3526_v43, 16 }
 0x5d5   :  { %v3553_v19 = vpop.xlane.xlu1 %3552 }
 0x5d6   :  { %vm3554_vm1 = vcmp.eq.f32.partialorder %v3551_v60, %v3553_v19  ;;  %v3559_v25 = vcvt.f32.s32 %v3553_v19 }
 0x5d7   :  { %v3555_v18 = vsel %vm3554_vm1, %v3550_v51, inf }
 0x5d8   :  { %3556 = vmin.xlane.f32.xlu1 %v3555_v18  ;;  %v3560_v62 = vshll.u32 %v3559_v25, 16 }
 0x643   :  { %v3524_v33 = vpop.xlane.xlu2 %3523 }
 0x644   :  { %v3525_v26 = vcvt.f32.s32 %v3524_v33 }
 0x646   :  { %v3528_v24 = vadd.s32 %v3527_v21, %v3525_v26 }
 0x648   :  { %v12743_v11 = vsub.s32 %v18952_v10, %v3528_v24  ;;  %v12746_v31 = vsub.s32 %v18953_v0, %v3528_v24  ;;  %v12749_v61 = vsub.s32 %v18954_v32, %v3528_v24  ;;  %v12752_v63 = vsub.s32 %v18955_v20, %v3528_v24 }
 0x64a   :  { %v3566_v48 = vrot.slane %v12743_v11, 7  ;;  %v3567_v8 = vrot.slane %v12746_v31, 6  ;;  %v3568_v47 = vrot.slane %v12749_v61, 5 }
 0x64b   :  { %v3557_v39 = vpop.xlane.xlu1 %3556 }
 0x64c   :  { %v3569_v46 = vsel %vm18956_vm7, %v12752_v63, %v3566_v48  ;;  %v3570_v5 = vsel %vm18957_vm6, %v3567_v8, %v3568_v47  ;;  %v3558_v38 = vcvt.f32.s32 %v3557_v39  ;;  %vm18968_vm7 = vmmov %vm18958_vm2 }
 0x64d   :  { %v3571_v57 = vsel %vm18958_vm2, %v3569_v46, %v3570_v5  ;;  %vm18969_vm6 = vmmov %vm18951_vm5 }
 0x64e   :  { %v3561_v30 = vadd.s32 %v3560_v62, %v3558_v38  ;;  %v3572_v16 = vsel %vm12724_vm10, %v3571_v57, 0  ;;  %vm18970_vm2 = vmmov %vm18951_vm5 }
 0x64f   :  { %v3573_v56 = vperm.slane %v3572_v16, 0  ;;  %v3574_v15 = vperm.slane %v3572_v16, 1  ;;  %v3575_v35 = vperm.slane %v3572_v16, 2  ;;  %v3576_v37 = vperm.slane %v3572_v16, 3 }
 0x650   :  { %v12764_v49 = vsub.s32 %v18959_v1, %v3561_v30  ;;  %v12767_v7 = vsub.s32 %v18960_v22, %v3561_v30  ;;  %v12770_v52 = vsub.s32 %v18961_v53, %v3561_v30  ;;  %v12773_v44 = vsub.s32 %v18962_v9, %v3561_v30 }
 0x651   :  { %v3577_v13 = vsel %vm18963_vm13, %v3573_v56, 2147483648  ;;  %v3578_v23 = vsel %vm18964_vm9, %v3574_v15, 2147483648  ;;  %v3579_v45 = vsel %vm18965_vm11, %v3575_v35, 2147483648  ;;  %v3580_v4 = vsel %vm18951_vm5, %v3576_v37, 2147483648  ;;  %vm18971_vm13 = vmmov %vm18970_vm2 }
 0x652   :  { %v3601_v59 = vrot.slane %v12767_v7, 7  ;;  %v3602_v28 = vrot.slane %v12770_v52, 6  ;;  %v3603_v60 = vrot.slane %v12773_v44, 5  ;;  %vm3581_vm12 = vcmp.gt.s32.totalorder %v3577_v13, %v3578_v23  ;;  %vm18972_vm9 = vmmov %vm18970_vm2 }
 0x653   :  { %v3582_v12 = vsel %vm3581_vm12, %v3577_v13, %v3578_v23  ;;  %vm3583_vm3 = vcmp.gt.s32.totalorder %v3579_v45, %v3580_v4 }
 0x654   :  { %v3604_v41 = vsel %vm18966_vm14, %v12764_v49, %v3601_v59  ;;  %v3584_v17 = vsel %vm3583_vm3, %v3579_v45, %v3580_v4  ;;  %v3605_v40 = vsel %vm18967_vm0, %v3602_v28, %v3603_v60  ;;  %vm18973_vm0 = vmmov %vm18970_vm2 }
 0x655   :  { %vm3585_vm1 = vcmp.gt.s32.totalorder %v3582_v12, %v3584_v17  ;;  %v3606_v29 = vsel %vm18968_vm7, %v3604_v41, %v3605_v40 }
 0x656   :  { %v3586_v19 = vsel %vm3585_vm1, %v3582_v12, %v3584_v17  ;;  %v3607_v51 = vsel %vm12724_vm10, %v3606_v29, 0  ;;  %vm18974_vm1 = vcmask 1042434  }
 0x657   :  { %v3588_v18 = vshra.s32 %v3586_v19, 16  ;;  %v3608_v43 = vperm.slane %v3607_v51, 0  ;;  %v3609_v33 = vperm.slane %v3607_v51, 1  ;;  %v3610_v21 = vperm.slane %v3607_v51, 2 }
 0x658   :  { %v3611_v26 = vperm.slane %v3607_v51, 3  ;;  %v3587_v62 = vand.u32 65535, %v3586_v19 }
 0x659   :  { %v3590_v24 = vcvt.s32.f32 %v3588_v18  ;;  %v3612_v25 = vsel %vm18969_vm6, %v3608_v43, 2147483648  ;;  %v3613_v10 = vsel %vm18970_vm2, %v3609_v33, 2147483648  ;;  %v3614_v0 = vsel %vm18971_vm13, %v3610_v21, 2147483648 }
 0x65a   :  { %v3615_v32 = vsel %vm18972_vm9, %v3611_v26, 2147483648  ;;  %vm3616_vm11 = vcmp.gt.s32.totalorder %v3612_v25, %v3613_v10  ;;  %v3589_v5 = vcvt.s32.f32 %v3587_v62  ;;  %v18987_v62 = vld [vmem:[#allocation57_spill] sm:$0xff] }
 0x65b   :  { %3591 = vmax.xlane.f32.xlu0 %v3590_v24  ;;  %v3617_v20 = vsel %vm3616_vm11, %v3612_v25, %v3613_v10  ;;  %vm3618_vm5 = vcmp.gt.s32.totalorder %v3614_v0, %v3615_v32  ;;  %v18975_v25 = vld [vmem:[#allocation52_spill] sm:$0xff]  ;;  %v18977_v10 = vld [vmem:[#allocation53_spill] sm:$0xff] }
 0x65c   :  { %v3619_v48 = vsel %vm3618_vm5, %v3614_v0, %v3615_v32  ;;  %vm18976_vm11 = vnez %v18975_v25  ;;  %v18979_v32 = vld [vmem:[#allocation54_spill] sm:$0xff] }
 0x65d   :  { %vm3620_vm12 = vcmp.gt.s32.totalorder %v3617_v20, %v3619_v48 }
 0x65e   :  { %v3621_v8 = vsel %vm3620_vm12, %v3617_v20, %v3619_v48  ;;  %vm18978_vm12 = vnez %v18977_v10  ;;  %v18981_v20 = vld [vmem:[#allocation55_spill] sm:$0xff] }
 0x65f   :  { %v3623_v47 = vshra.s32 %v3621_v8, 16  ;;  %v3622_v57 = vand.u32 65535, %v3621_v8 }
 0x661   :  { %v3625_v39 = vcvt.s32.f32 %v3623_v47  ;;  %v3624_v16 = vcvt.s32.f32 %v3622_v57  ;;  %v18985_v47 = vld [vmem:[#allocation56_spill] sm:$0xff] }
 0x663   :  { %3626 = vmax.xlane.f32.xlu1 %v3625_v39 }
 0x6ce   :  { %v3592_v46 = vpop.xlane.xlu0 %3591 }
 0x6cf   :  { %vm3593_vm3 = vcmp.eq.f32.partialorder %v3590_v24, %v3592_v46  ;;  %v3598_v35 = vcvt.f32.s32 %v3592_v46 }
 0x6d0   :  { %v3594_v38 = vsel %vm3593_vm3, %v3589_v5, -inf }
 0x6d1   :  { %3595 = vmax.xlane.f32.xlu1 %v3594_v38  ;;  %v3599_v53 = vshll.u32 %v3598_v35, 16  ;;  %v18989_v38 = vld [vmem:[#allocation58_spill] sm:$0xff] }
 0x6d6   :  { %v3627_v30 = vpop.xlane.xlu1 %3626 }
 0x6d7   :  { %vm3628_vm14 = vcmp.eq.f32.partialorder %v3625_v39, %v3627_v30  ;;  %v3633_v37 = vcvt.f32.s32 %v3627_v30 }
 0x6d8   :  { %v3629_v56 = vsel %vm3628_vm14, %v3624_v16, -inf  ;;  %v18991_v16 = vld [vmem:[#allocation59_spill] sm:$0xff] }
 0x6d9   :  { %3630 = vmax.xlane.f32.xlu1 %v3629_v56  ;;  %v3634_v9 = vshll.u32 %v3633_v37, 16 }
 0x744   :  { %v3596_v15 = vpop.xlane.xlu1 %3595 }
 0x745   :  { %v3597_v1 = vcvt.f32.s32 %v3596_v15 }
 0x747   :  { %v3600_v23 = vadd.s32 %v3599_v53, %v3597_v1 }
 0x74c   :  { %v3631_v22 = vpop.xlane.xlu1 %3630 }
 0x74d   :  { %v3632_v13 = vcvt.f32.s32 %v3631_v22 }
 0x74f   :  { %v3635_v45 = vadd.s32 %v3634_v9, %v3632_v13 }
 0x751   :  { %v3636_v4 = vmul.u32 %v3635_v45, %v3600_v23  ;;  %v3642_v59 = vmul.u32 %v3635_v45, %v12743_v11  ;;  %v3643_v28 = vmul.u32 %v3635_v45, %v12746_v31  ;;  %v3644_v60 = vmul.u32 %v3635_v45, %v12749_v61 }
 0x752   :  { %v3641_v17 = vmul.u32 %v3635_v45, %v12752_v63  ;;  %v18993_v45 = vld [vmem:[#allocation60_spill] sm:$0xff] }
 0x753   :  { %v3647_v12 = vadd.s32 %v3643_v28, %v3636_v4  ;;  %v3650_v41 = vadd.s32 %v3642_v59, %v12767_v7  ;;  %v3648_v40 = vadd.s32 %v3644_v60, %v3636_v4  ;;  %v18995_v4 = vld [vmem:[#allocation61_spill] sm:$0xff]  ;;  %v18997_v28 = vld [vmem:[#allocation63_spill] sm:$0xff] }
 0x754   :  { %v3649_v43 = vadd.s32 %v3641_v17, %v12764_v49 }
 0x755   :  { %v3651_v29 = vadd.s32 %v3647_v12, %v12770_v52  ;;  %v3652_v19 = vadd.s32 %v3648_v40, %v12773_v44  ;;  %v3653_v51 = vrot.slane %v3650_v41, 7  ;;  %v18999_v12 = vld [vmem:[#allocation64_spill] sm:$0xff] }
 0x757   :  { %v3654_v18 = vrot.slane %v3651_v29, 6  ;;  %v3655_v33 = vrot.slane %v3652_v19, 5  ;;  %v3656_v11 = vsel %vm18973_vm0, %v3649_v43, %v3653_v51  ;;  %vm18980_vm0 = vnez %v18979_v32 }
 0x759   :  { %v3657_v31 = vsel %vm18974_vm1, %v3654_v18, %v3655_v33 }
 0x75a   :  { %v3658_v61 = vsel %vm18968_vm7, %v3656_v11, %v3657_v31  ;;  %v19001_v11 = vld [vmem:[#allocation65_spill] sm:$0xff]  ;;  %v19003_v31 = vld [vmem:[#allocation66_spill] sm:$0xff] }
 0x75b   :  { %v3659_v7 = vsel %vm12724_vm10, %v3658_v61, 4294967295  ;;  %vm18982_vm10 = vnez %v18981_v20 }
 0x75c   :  { %v12805_v63 = vperm.slane %v3659_v7, 0  ;;  %v12807_v21 = vperm.slane %v3659_v7, 1  ;;  %v12809_v52 = vperm.slane %v3659_v7, 2  ;;  %v12859_v49 = vperm.slane %v3659_v7, 3  ;;  %v19005_v7 = vld [vmem:[#allocation68_spill] sm:$0xff] }
 0x75e   :  { %3728 = vxpose.xlu0.b32.start [1/16] %v12809_v52, 128  ;;  %3696 = vxpose.xlu2.b32.start [1/16] %v12807_v21, 128 }
 0x75f   :  { %3664 = vxpose.xlu1.b32.start [1/16] %v12805_v63, 128 }
 0x766   :  { %3729 = vxpose.xlu0.b32.cont [2/16] %v12809_v52, 128  ;;  %3697 = vxpose.xlu2.b32.cont [2/16] %v12807_v21, 128 }
 0x767   :  { %3665 = vxpose.xlu1.b32.cont [2/16] %v12805_v63, 128 }
 0x76e   :  { %3730 = vxpose.xlu0.b32.cont [3/16] %v12809_v52, 128  ;;  %3698 = vxpose.xlu2.b32.cont [3/16] %v12807_v21, 128 }
 0x76f   :  { %3666 = vxpose.xlu1.b32.cont [3/16] %v12805_v63, 128 }
 0x776   :  { %3731 = vxpose.xlu0.b32.cont [4/16] %v12809_v52, 128  ;;  %3699 = vxpose.xlu2.b32.cont [4/16] %v12807_v21, 128 }
 0x777   :  { %3667 = vxpose.xlu1.b32.cont [4/16] %v12805_v63, 128 }
 0x77e   :  { %3732 = vxpose.xlu0.b32.cont [5/16] %v12809_v52, 128  ;;  %3700 = vxpose.xlu2.b32.cont [5/16] %v12807_v21, 128 }
 0x77f   :  { %3668 = vxpose.xlu1.b32.cont [5/16] %v12805_v63, 128 }
 0x786   :  { %3733 = vxpose.xlu0.b32.cont [6/16] %v12809_v52, 128  ;;  %3701 = vxpose.xlu2.b32.cont [6/16] %v12807_v21, 128 }
 0x787   :  { %3669 = vxpose.xlu1.b32.cont [6/16] %v12805_v63, 128 }
 0x78e   :  { %3734 = vxpose.xlu0.b32.cont [7/16] %v12809_v52, 128  ;;  %3702 = vxpose.xlu2.b32.cont [7/16] %v12807_v21, 128 }
 0x78f   :  { %3670 = vxpose.xlu1.b32.cont [7/16] %v12805_v63, 128 }
 0x796   :  { %3735 = vxpose.xlu0.b32.cont [8/16] %v12809_v52, 128  ;;  %3703 = vxpose.xlu2.b32.cont [8/16] %v12807_v21, 128 }
 0x797   :  { %3671 = vxpose.xlu1.b32.cont [8/16] %v12805_v63, 128 }
 0x79e   :  { %3736 = vxpose.xlu0.b32.cont [9/16] %v12809_v52, 128  ;;  %3704 = vxpose.xlu2.b32.cont [9/16] %v12807_v21, 128 }
 0x79f   :  { %3672 = vxpose.xlu1.b32.cont [9/16] %v12805_v63, 128 }
 0x7a6   :  { %3737 = vxpose.xlu0.b32.cont [10/16] %v12809_v52, 128  ;;  %3705 = vxpose.xlu2.b32.cont [10/16] %v12807_v21, 128 }
 0x7a7   :  { %3673 = vxpose.xlu1.b32.cont [10/16] %v12805_v63, 128 }
 0x7ae   :  { %3738 = vxpose.xlu0.b32.cont [11/16] %v12809_v52, 128  ;;  %3706 = vxpose.xlu2.b32.cont [11/16] %v12807_v21, 128 }
 0x7af   :  { %3674 = vxpose.xlu1.b32.cont [11/16] %v12805_v63, 128 }
 0x7b6   :  { %3739 = vxpose.xlu0.b32.cont [12/16] %v12809_v52, 128  ;;  %3707 = vxpose.xlu2.b32.cont [12/16] %v12807_v21, 128 }
 0x7b7   :  { %3675 = vxpose.xlu1.b32.cont [12/16] %v12805_v63, 128 }
 0x7be   :  { %3740 = vxpose.xlu0.b32.cont [13/16] %v12809_v52, 128  ;;  %3708 = vxpose.xlu2.b32.cont [13/16] %v12807_v21, 128 }
 0x7bf   :  { %3676 = vxpose.xlu1.b32.cont [13/16] %v12805_v63, 128 }
 0x7c6   :  { %3741 = vxpose.xlu0.b32.cont [14/16] %v12809_v52, 128  ;;  %3709 = vxpose.xlu2.b32.cont [14/16] %v12807_v21, 128 }
 0x7c7   :  { %3677 = vxpose.xlu1.b32.cont [14/16] %v12805_v63, 128 }
 0x7ce   :  { %3742 = vxpose.xlu0.b32.cont [15/16] %v12809_v52, 128  ;;  %3710 = vxpose.xlu2.b32.cont [15/16] %v12807_v21, 128 }
 0x7cf   :  { %3678 = vxpose.xlu1.b32.cont [15/16] %v12805_v63, 128 }
 0x7d6   :  { %3743 = vxpose.xlu0.b32.end [16/16] %v12809_v52, 128  ;;  %3711 = vxpose.xlu2.b32.end [16/16] %v12807_v21, 128 }
 0x7d7   :  { %3679 = vxpose.xlu1.b32.end [16/16] %v12805_v63, 128 }
 0x7df   :  { %3760 = vxpose.xlu1.b32.start [1/16] %v12859_v49, 128 }
 0x7e7   :  { %3761 = vxpose.xlu1.b32.cont [2/16] %v12859_v49, 128 }
 0x7ef   :  { %3762 = vxpose.xlu1.b32.cont [3/16] %v12859_v49, 128 }
 0x7f7   :  { %3763 = vxpose.xlu1.b32.cont [4/16] %v12859_v49, 128  ;;  %v12867_v26 = vpop.trf.xlu2 }
 0x7ff   :  { %3764 = vxpose.xlu1.b32.cont [5/16] %v12859_v49, 128  ;;  %v12891_v8 = vpop.trf.xlu2 }
 0x802   :  { %v12879_v0 = vpop.trf.xlu0 }
 0x803   :  { %v3680_v44 = vpop.trf.xlu1 }
 0x804   :  { %vm3792_vm6 = vcmp.eq.s32.totalorder %v3680_v44, %v12805_v63  ;;  %vm3793_vm2 = vcmp.eq.s32.totalorder %v3680_v44, %v12807_v21  ;;  %vm3794_vm13 = vcmp.eq.s32.totalorder %v3680_v44, %v12809_v52  ;;  %vm3795_vm9 = vcmp.eq.s32.totalorder %v3680_v44, %v12859_v49 }
 0x805   :  { %vm4048_vm5 = vmand %vm3792_vm6, %vm18976_vm11  ;;  %vm18986_vm11 = vnez %v18985_v47 }
 0x806   :  { %vm4049_vm3 = vmand %vm3793_vm2, %vm18978_vm12  ;;  %v4304_v39 = vsel %vm4048_vm5, 1, %v17017_v55 }
 0x807   :  { %3765 = vxpose.xlu1.b32.cont [6/16] %v12859_v49, 128  ;;  %vm4050_vm1 = vmand %vm3794_vm13, %vm18980_vm0  ;;  %vm18988_vm13 = vnez %v18987_v62  ;;  %v4305_v5 = vsel %vm4049_vm3, 1, %v17017_v55  ;;  %v12916_v23 = vpop.trf.xlu2 }
 0x808   :  { %vm12886_vm8 = vmand %vm3795_vm9, %vm18982_vm10  ;;  %vm18990_vm10 = vnez %v18989_v38  ;;  %v4306_v30 = vsel %vm4050_vm1, 1, %v17017_v55  ;;  %v19011_v38 = vld [vmem:[#allocation71_spill] sm:$0xff] }
 0x809   :  { %v4307_v35 = vsel %vm12886_vm8, 1, %v17017_v55 }
 0x80a   :  { %v12913_v13 = vpop.trf.xlu0 }
 0x80b   :  { %v3681_v24 = vpop.trf.xlu1 }
 0x80c   :  { %vm3796_vm14 = vcmp.eq.s32.totalorder %v3681_v24, %v12805_v63  ;;  %vm3797_vm7 = vcmp.eq.s32.totalorder %v3681_v24, %v12807_v21  ;;  %vm3798_vm6 = vcmp.eq.s32.totalorder %v3681_v24, %v12809_v52  ;;  %vm3799_vm2 = vcmp.eq.s32.totalorder %v3681_v24, %v12859_v49  ;;  %v19007_v24 = vld [vmem:[#allocation69_spill] sm:$0xff] }
 0x80d   :  { %vm4052_vm12 = vmand %vm3796_vm14, %vm18986_vm11  ;;  %vm18992_vm14 = vnez %v18991_v16  ;;  %vm18994_vm11 = vnez %v18993_v45  ;;  %v19013_v16 = vld [vmem:[#allocation73_spill] sm:$0xff] }
 0x80e   :  { %vm4053_vm0 = vmand %vm3797_vm7, %vm18988_vm13  ;;  %v4308_v46 = vsel %vm4052_vm12, 1, %v17017_v55  ;;  %vm18996_vm13 = vnez %v18995_v4 }
 0x80f   :  { %3766 = vxpose.xlu1.b32.cont [7/16] %v12859_v49, 128  ;;  %vm4054_vm9 = vmand %vm3798_vm6, %vm18990_vm10  ;;  %v4309_v57 = vsel %vm4053_vm0, 1, %v17017_v55  ;;  %vm4560_vm15 = vcmp.gt.s32.totalorder %v4304_v39, %v4308_v46  ;;  %vm18998_vm10 = vnez %v18997_v28  ;;  %v12937_v33 = vpop.trf.xlu2  ;;  %v19017_v28 = vld [vmem:[#allocation76_spill] sm:$0xff] }
 0x810   :  { %vm4055_vm5 = vmand %vm3799_vm2, %vm18992_vm14  ;;  %v4310_v56 = vsel %vm4054_vm9, 1, %v17017_v55  ;;  %vm4695_vm7 = vcmp.gt.s32.totalorder %v4305_v5, %v4309_v57  ;;  %v4561_v15 = vsel %vm4560_vm15, %v4304_v39, %v4308_v46 }
 0x811   :  { %v4311_v37 = vsel %vm4055_vm5, 1, %v17017_v55  ;;  %vm4830_vm3 = vcmp.gt.s32.totalorder %v4306_v30, %v4310_v56  ;;  %v4696_v1 = vsel %vm4695_vm7, %v4305_v5, %v4309_v57  ;;  %vm19000_vm5 = vnez %v18999_v12  ;;  %v19009_v5 = vld [vmem:[#allocation70_spill] sm:$0xff] }
 0x812   :  { %vm4965_vm6 = vcmp.gt.s32.totalorder %v4307_v35, %v4311_v37  ;;  %v4831_v22 = vsel %vm4830_vm3, %v4306_v30, %v4310_v56  ;;  %v12934_v51 = vpop.trf.xlu0 }
 0x813   :  { %v4966_v53 = vsel %vm4965_vm6, %v4307_v35, %v4311_v37  ;;  %v3682_v9 = vpop.trf.xlu1 }
 0x814   :  { %vm3800_vm1 = vcmp.eq.s32.totalorder %v3682_v9, %v12805_v63  ;;  %vm3801_vm15 = vcmp.eq.s32.totalorder %v3682_v9, %v12807_v21  ;;  %vm3802_vm8 = vcmp.eq.s32.totalorder %v3682_v9, %v12809_v52  ;;  %vm3803_vm2 = vcmp.eq.s32.totalorder %v3682_v9, %v12859_v49 }
 0x815   :  { %vm4056_vm12 = vmand %vm3800_vm1, %vm18994_vm11 }
 0x816   :  { %vm4057_vm0 = vmand %vm3801_vm15, %vm18996_vm13  ;;  %v4312_v59 = vsel %vm4056_vm12, 1, %v17017_v55  ;;  %vm19002_vm12 = vnez %v19001_v11 }
 0x817   :  { %3767 = vxpose.xlu1.b32.cont [8/16] %v12859_v49, 128  ;;  %vm4058_vm9 = vmand %vm3802_vm8, %vm18998_vm10  ;;  %v4313_v60 = vsel %vm4057_vm0, 1, %v17017_v55  ;;  %vm4562_vm14 = vcmp.gt.s32.totalorder %v4561_v15, %v4312_v59  ;;  %vm19004_vm0 = vnez %v19003_v31  ;;  %v12958_v39 = vpop.trf.xlu2 }
 0x818   :  { %vm4059_vm7 = vmand %vm3803_vm2, %vm19000_vm5  ;;  %v4314_v41 = vsel %vm4058_vm9, 1, %v17017_v55  ;;  %vm4697_vm3 = vcmp.gt.s32.totalorder %v4696_v1, %v4313_v60  ;;  %v4563_v17 = vsel %vm4562_vm14, %v4561_v15, %v4312_v59  ;;  %vm19006_vm9 = vnez %v19005_v7  ;;  %v19015_v15 = vld [vmem:[#allocation75_spill] sm:$0xff] }
 0x819   :  { %v4315_v40 = vsel %vm4059_vm7, 1, %v17017_v55  ;;  %vm4832_vm6 = vcmp.gt.s32.totalorder %v4831_v22, %v4314_v41  ;;  %v4698_v29 = vsel %vm4697_vm3, %v4696_v1, %v4313_v60  ;;  %vm19008_vm7 = vnez %v19007_v24  ;;  %v19019_v60 = vld [vmem:[#allocation77_spill] sm:$0xff] }
 0x81a   :  { %vm4967_vm1 = vcmp.gt.s32.totalorder %v4966_v53, %v4315_v40  ;;  %v4833_v19 = vsel %vm4832_vm6, %v4831_v22, %v4314_v41  ;;  %v12955_v32 = vpop.trf.xlu0 }
 0x81b   :  { %v4968_v18 = vsel %vm4967_vm1, %v4966_v53, %v4315_v40  ;;  %v3683_v43 = vpop.trf.xlu1 }
 0x81c   :  { %vm3804_vm15 = vcmp.eq.s32.totalorder %v3683_v43, %v12805_v63  ;;  %vm3805_vm8 = vcmp.eq.s32.totalorder %v3683_v43, %v12807_v21  ;;  %vm3806_vm2 = vcmp.eq.s32.totalorder %v3683_v43, %v12809_v52  ;;  %vm3807_vm11 = vcmp.eq.s32.totalorder %v3683_v43, %v12859_v49 }
 0x81d   :  { %vm4060_vm13 = vmand %vm3804_vm15, %vm19002_vm12 }
 0x81e   :  { %vm4061_vm10 = vmand %vm3805_vm8, %vm19004_vm0  ;;  %v4316_v61 = vsel %vm4060_vm13, 1, %v17017_v55  ;;  %vm19010_vm13 = vnez %v19009_v5 }
 0x81f   :  { %3768 = vxpose.xlu1.b32.cont [9/16] %v12859_v49, 128  ;;  %vm4062_vm14 = vmand %vm3806_vm2, %vm19006_vm9  ;;  %v4317_v44 = vsel %vm4061_vm10, 1, %v17017_v55  ;;  %vm4564_vm5 = vcmp.gt.s32.totalorder %v4563_v17, %v4316_v61  ;;  %vm19012_vm10 = vnez %v19011_v38  ;;  %v12978_v1 = vpop.trf.xlu2 }
 0x820   :  { %vm4063_vm3 = vmand %vm3807_vm11, %vm19008_vm7  ;;  %v4318_v25 = vsel %vm4062_vm14, 1, %v17017_v55  ;;  %vm4699_vm6 = vcmp.gt.s32.totalorder %v4698_v29, %v4317_v44  ;;  %v4565_v10 = vsel %vm4564_vm5, %v4563_v17, %v4316_v61  ;;  %vm19014_vm14 = vnez %v19013_v16  ;;  %v19021_v17 = vld [vmem:[#allocation79_spill] sm:$0xff] }
 0x821   :  { %v4319_v20 = vsel %vm4063_vm3, 1, %v17017_v55  ;;  %vm4834_vm1 = vcmp.gt.s32.totalorder %v4833_v19, %v4318_v25  ;;  %v4700_v48 = vsel %vm4699_vm6, %v4698_v29, %v4317_v44  ;;  %vm19016_vm3 = vnez %v19015_v15  ;;  %v19023_v29 = vld [vmem:[#allocation80_spill] sm:$0xff] }
 0x822   :  { %vm4969_vm15 = vcmp.gt.s32.totalorder %v4968_v18, %v4319_v20  ;;  %v4835_v47 = vsel %vm4834_vm1, %v4833_v19, %v4318_v25  ;;  %v12970_v30 = vpop.trf.xlu0  ;;  %v19025_v25 = vld [vmem:[#allocation81_spill] sm:$0xff] }
 0x823   :  { %v4970_v62 = vsel %vm4969_vm15, %v4968_v18, %v4319_v20  ;;  %v3684_v46 = vpop.trf.xlu1 }
 0x824   :  { %vm3808_vm8 = vcmp.eq.s32.totalorder %v3684_v46, %v12805_v63  ;;  %vm3809_vm2 = vcmp.eq.s32.totalorder %v3684_v46, %v12807_v21  ;;  %vm3810_vm11 = vcmp.eq.s32.totalorder %v3684_v46, %v12809_v52  ;;  %vm3811_vm12 = vcmp.eq.s32.totalorder %v3684_v46, %v12859_v49 }
 0x825   :  { %vm4064_vm0 = vmand %vm3808_vm8, %vm19010_vm13 }
 0x826   :  { %vm4065_vm9 = vmand %vm3809_vm2, %vm19012_vm10  ;;  %v4320_v57 = vsel %vm4064_vm0, 1, %v17017_v55  ;;  %vm19018_vm0 = vnez %v19017_v28 }
 0x827   :  { %3769 = vxpose.xlu1.b32.cont [10/16] %v12859_v49, 128  ;;  %vm4066_vm5 = vmand %vm3810_vm11, %vm19014_vm14  ;;  %v4321_v56 = vsel %vm4065_vm9, 1, %v17017_v55  ;;  %vm4566_vm7 = vcmp.gt.s32.totalorder %v4565_v10, %v4320_v57  ;;  %vm19020_vm9 = vnez %v19019_v60  ;;  %v12993_v41 = vpop.trf.xlu2  ;;  %v19049_v60 = vld [vmem:[#allocation33_spill] sm:$0xff] }
 0x828   :  { %vm4067_vm6 = vmand %vm3811_vm12, %vm19016_vm3  ;;  %v4322_v35 = vsel %vm4066_vm5, 1, %v17017_v55  ;;  %vm4701_vm1 = vcmp.gt.s32.totalorder %v4700_v48, %v4321_v56  ;;  %v4567_v37 = vsel %vm4566_vm7, %v4565_v10, %v4320_v57  ;;  %vm19022_vm5 = vnez %v19021_v17  ;;  %v19027_v10 = vld [vmem:[#allocation83_spill] sm:$0xff] }
 0x829   :  { %v4323_v22 = vsel %vm4067_vm6, 1, %v17017_v55  ;;  %vm4836_vm15 = vcmp.gt.s32.totalorder %v4835_v47, %v4322_v35  ;;  %v4702_v53 = vsel %vm4701_vm1, %v4700_v48, %v4321_v56  ;;  %vm19024_vm6 = vnez %v19023_v29  ;;  %v19029_v48 = vld [vmem:[#allocation85_spill] sm:$0xff] }
 0x82a   :  { %vm4971_vm8 = vcmp.gt.s32.totalorder %v4970_v62, %v4323_v22  ;;  %v4837_v9 = vsel %vm4836_vm15, %v4835_v47, %v4322_v35  ;;  %v12985_v59 = vpop.trf.xlu0  ;;  %v19055_v29 = vmov 0 }
 0x82b   :  { %v4972_v45 = vsel %vm4971_vm8, %v4970_v62, %v4323_v22  ;;  %v3685_v4 = vpop.trf.xlu1  ;;  %v19031_v62 = vld [vmem:[#allocation86_spill] sm:$0xff]  ;;  %v19142_v22 = vmov 0 }
 0x82c   :  { %vm3812_vm2 = vcmp.eq.s32.totalorder %v3685_v4, %v12805_v63  ;;  %vm3813_vm11 = vcmp.eq.s32.totalorder %v3685_v4, %v12807_v21  ;;  %vm3814_vm12 = vcmp.eq.s32.totalorder %v3685_v4, %v12809_v52  ;;  %vm3815_vm13 = vcmp.eq.s32.totalorder %v3685_v4, %v12859_v49  ;;  %v19045_v4 = vld [vmem:[#allocation102_spill] sm:$0xff] }
 0x82d   :  { %vm4068_vm10 = vmand %vm3812_vm2, %vm19018_vm0 }
 0x82e   :  { %vm4069_vm14 = vmand %vm3813_vm11, %vm19020_vm9  ;;  %v4324_v12 = vsel %vm4068_vm10, 1, %v17017_v55  ;;  %vm19026_vm10 = vnez %v19025_v25  ;;  %v19078_v25 = vmov 0 }
 0x82f   :  { %3770 = vxpose.xlu1.b32.cont [11/16] %v12859_v49, 128  ;;  %vm4070_vm7 = vmand %vm3814_vm12, %vm19022_vm5  ;;  %v4325_v40 = vsel %vm4069_vm14, 1, %v17017_v55  ;;  %vm4568_vm3 = vcmp.gt.s32.totalorder %v4567_v37, %v4324_v12  ;;  %v13009_v24 = vpop.trf.xlu2  ;;  %vm19028_vm14 = vnez %v19027_v10  ;;  %v19080_v10 = vld [vmem:[#allocation87_spill] sm:$0xff] }
 0x830   :  { %vm4071_vm1 = vmand %vm3815_vm13, %vm19024_vm6  ;;  %v4326_v19 = vsel %vm4070_vm7, 1, %v17017_v55  ;;  %vm4703_vm15 = vcmp.gt.s32.totalorder %v4702_v53, %v4325_v40  ;;  %v4569_v18 = vsel %vm4568_vm3, %v4567_v37, %v4324_v12  ;;  %vm19030_vm7 = vnez %v19029_v48  ;;  %v19033_v37 = vld [vmem:[#allocation31_spill] sm:$0xff] }
 0x831   :  { %v4327_v43 = vsel %vm4071_vm1, 1, %v17017_v55  ;;  %vm4838_vm8 = vcmp.gt.s32.totalorder %v4837_v9, %v4326_v19  ;;  %v4704_v11 = vsel %vm4703_vm15, %v4702_v53, %v4325_v40  ;;  %vm19032_vm1 = vnez %v19031_v62  ;;  %v19053_v40 = vld [vmem:[#allocation103_spill] sm:$0xff]  ;;  %v19144_v53 = vld [vmem:[#allocation118_spill] sm:$0xff] }
 0x832   :  { %vm4973_vm2 = vcmp.gt.s32.totalorder %v4972_v45, %v4327_v43  ;;  %v4839_v31 = vsel %vm4838_vm8, %v4837_v9, %v4326_v19  ;;  %v13004_v44 = vpop.trf.xlu0  ;;  %v19041_v9 = vld [vmem:[#allocation101_spill] sm:$0xff]  ;;  %v19051_v12 = vmov 0  ;;  %v19057_v19 = vld [vmem:[#allocation104_spill] sm:$0xff]  ;;  %v19086_v48 = vmov 0 }
 0x833   :  { %v4974_v61 = vsel %vm4973_vm2, %v4972_v45, %v4327_v43  ;;  %v3686_v7 = vpop.trf.xlu1  ;;  %v19061_v43 = vld [vmem:[#allocation106_spill] sm:$0xff]  ;;  %v19091_v62 = vmov 0 }
 0x834   :  { %vm3816_vm11 = vcmp.eq.s32.totalorder %v3686_v7, %v12805_v63  ;;  %vm3817_vm12 = vcmp.eq.s32.totalorder %v3686_v7, %v12807_v21  ;;  %vm3818_vm13 = vcmp.eq.s32.totalorder %v3686_v7, %v12809_v52  ;;  %vm3819_vm0 = vcmp.eq.s32.totalorder %v3686_v7, %v12859_v49  ;;  %v19075_v7 = vld [vmem:[#allocation139_spill] sm:$0xff] }
 0x835   :  { %vm4072_vm9 = vmand %vm3816_vm11, %vm19026_vm10  ;;  %vm3859_vm10 = vcmp.eq.s32.totalorder %v12867_v26, %v12859_v49 }
 0x836   :  { %vm4073_vm5 = vmand %vm3817_vm12, %vm19028_vm14  ;;  %v4328_v20 = vsel %vm4072_vm9, 1, %v17017_v55  ;;  %vm3856_vm12 = vcmp.eq.s32.totalorder %v12867_v26, %v12805_v63  ;;  %vm3860_vm9 = vcmp.eq.s32.totalorder %v12891_v8, %v12805_v63  ;;  %vm3861_vm14 = vcmp.eq.s32.totalorder %v12891_v8, %v12807_v21 }
 0x837   :  { %3771 = vxpose.xlu1.b32.cont [12/16] %v12859_v49, 128  ;;  %vm4074_vm3 = vmand %vm3818_vm13, %vm19030_vm7  ;;  %v4329_v47 = vsel %vm4073_vm5, 1, %v17017_v55  ;;  %vm4570_vm6 = vcmp.gt.s32.totalorder %v4569_v18, %v4328_v20  ;;  %vm3857_vm13 = vcmp.eq.s32.totalorder %v12867_v26, %v12807_v21  ;;  %vm3862_vm5 = vcmp.eq.s32.totalorder %v12891_v8, %v12809_v52  ;;  %v13092_v17 = vpop.trf.xlu2 }
 0x838   :  { %vm4075_vm15 = vmand %vm3819_vm0, %vm19032_vm1  ;;  %v4330_v46 = vsel %vm4074_vm3, 1, %v17017_v55  ;;  %vm4705_vm8 = vcmp.gt.s32.totalorder %v4704_v11, %v4329_v47  ;;  %v4571_v5 = vsel %vm4570_vm6, %v4569_v18, %v4328_v20  ;;  %vm3858_vm0 = vcmp.eq.s32.totalorder %v12867_v26, %v12809_v52  ;;  %v19037_v26 = vld [vmem:[#allocation100_spill] sm:$0xff] }
 0x839   :  { %v4331_v38 = vsel %vm4075_vm15, 1, %v17017_v55  ;;  %vm4840_vm2 = vcmp.gt.s32.totalorder %v4839_v31, %v4330_v46  ;;  %v4706_v57 = vsel %vm4705_vm8, %v4704_v11, %v4329_v47  ;;  %vm19034_vm3 = vcmp.gt.f32.partialorder %v19033_v37, %v5470_v36  ;;  %v19083_v20 = vld [vmem:[#allocation144_spill] sm:$0xff]  ;;  %v19088_v47 = vld [vmem:[#allocation35_spill] sm:$0xff] }
 0x83a   :  { %vm4975_vm11 = vcmp.gt.s32.totalorder %v4974_v61, %v4331_v38  ;;  %v13024_v16 = vsel %vm4840_vm2, %v4839_v31, %v4330_v46  ;;  %v13045_v35 = vpop.trf.xlu0  ;;  %vm13050_vm6 = vmand %vm3856_vm12, %vm19034_vm3  ;;  %vm19038_vm1 = vnez %v19037_v26  ;;  %vm19042_vm3 = vnez %v19041_v9  ;;  %v19066_v31 = vld [vmem:[#allocation62_spill] sm:$0xff]  ;;  %v19101_v26 = vld [vmem:[#allocation112_spill] sm:$0xff] }
 0x83b   :  { %v13030_v56 = vsel %vm4975_vm11, %v4974_v61, %v4331_v38  ;;  %v3687_v15 = vpop.trf.xlu1  ;;  %vm13056_vm15 = vmand %vm3857_vm13, %vm19038_vm1  ;;  %vm19046_vm13 = vnez %v19045_v4  ;;  %vm19050_vm2 = vcmp.gt.f32.partialorder %v19049_v60, %v5470_v36  ;;  %v19059_v18 = vmov 0  ;;  %v19093_v46 = vld [vmem:[#allocation110_spill] sm:$0xff]  ;;  %v19098_v38 = vld [vmem:[#allocation89_spill] sm:$0xff] }
 0x83c   :  { %vm13069_vm7 = vmand %vm3858_vm0, %vm19042_vm3  ;;  %vm19063_vm3 = vcmp.eq.s32.totalorder %v12891_v8, %v12859_v49  ;;  %v19064_v11 = vmov 0  ;;  %v19069_v61 = vmov 0  ;;  %v19073_v8 = vmov 0  ;;  %v19105_v4 = vld [vmem:[#allocation91_spill] sm:$0xff]  ;;  %v19191_v9 = vld [vmem:[#allocation97_spill] sm:$0xff] }
 0x83d   :  { %vm13075_vm1 = vmand %vm3859_vm10, %vm19046_vm13  ;;  %vm19054_vm13 = vnez %v19053_v40  ;;  %vm19062_vm10 = vnez %v19061_v43  ;;  %v19108_v40 = vld [vmem:[#allocation93_spill] sm:$0xff] }
 0x83e   :  { %vm13082_vm8 = vmand %vm3860_vm9, %vm19050_vm2  ;;  %vm19058_vm2 = vnez %v19057_v19 }
 0x83f   :  { %3772 = vxpose.xlu1.b32.cont [13/16] %v12859_v49, 128  ;;  %v19052_v12 = vsel %vm13082_vm8, 4294967295, %v19051_v12  ;;  %vm13100_vm9 = vmand %vm3861_vm14, %vm19054_vm13  ;;  %vm3866_vm14 = vcmp.eq.s32.totalorder %v12916_v23, %v12809_v52  ;;  %vm19076_vm13 = vnez %v19075_v7 }
 0x840   :  { %v19056_v29 = vsel %vm13100_vm9, 4294967295, %v19055_v29  ;;  %vm13109_vm0 = vmand %vm3862_vm5, %vm19058_vm2  ;;  %vm19067_vm5 = vcmp.gt.f32.partialorder %v19066_v31, %v5470_v36  ;;  %vm19068_vm2 = vcmp.eq.s32.totalorder %v12879_v0, %v12805_v63 }
 0x841   :  { %v19060_v18 = vsel %vm13109_vm0, 4294967295, %v19059_v18  ;;  %vm13118_vm12 = vmand %vm19063_vm3, %vm19062_vm10  ;;  %vm19071_vm3 = vcmp.gt.f32.partialorder %v19066_v31, %v5629_v34  ;;  %vm19072_vm10 = vcmp.eq.s32.totalorder %v12879_v0, %v12807_v21  ;;  %v19111_v31 = vld [vmem:[#allocation113_spill] sm:$0xff] }
 0x842   :  { %v19065_v11 = vsel %vm13118_vm12, 4294967295, %v19064_v11  ;;  %vm13131_vm11 = vmand %vm19068_vm2, %vm19067_vm5  ;;  %vm19077_vm12 = vcmp.eq.s32.totalorder %v12879_v0, %v12809_v52  ;;  %vm19081_vm2 = vnez %v19080_v10  ;;  %vm19090_vm5 = vcmp.eq.s32.totalorder %v12916_v23, %v12805_v63 }
 0x843   :  { %v19070_v61 = vsel %vm13131_vm11, 4294967295, %v19069_v61  ;;  %vm13141_vm4 = vmand %vm19072_vm10, %vm19071_vm3  ;;  %vm19082_vm11 = vcmp.eq.s32.totalorder %v3687_v15, %v12805_v63  ;;  %vm19084_vm3 = vnez %v19083_v20  ;;  %vm19085_vm10 = vcmp.eq.s32.totalorder %v12879_v0, %v12859_v49  ;;  %v19116_v20 = vld [vmem:[#allocation67_spill] sm:$0xff] }
 0x844   :  { %v19074_v8 = vsel %vm13141_vm4, 4294967295, %v19073_v8  ;;  %vm13150_vm0 = vmand %vm19077_vm12, %vm19076_vm13  ;;  %vm19089_vm13 = vcmp.gt.f32.partialorder %v19088_v47, %v5470_v36  ;;  %v19096_v0 = vmov 0  ;;  %vm19099_vm12 = vnez %v19098_v38  ;;  %v13259_v47 = vpop.trf.xlu0  ;;  %v3688_v38 = vpop.trf.xlu1 }
 0x845   :  { %v19079_v25 = vsel %vm13150_vm0, 4294967295, %v19078_v25  ;;  %vm4076_vm9 = vmand %vm19082_vm11, %vm19081_vm2  ;;  %vm19094_vm11 = vnez %v19093_v46  ;;  %vm19095_vm2 = vcmp.eq.s32.totalorder %v12916_v23, %v12807_v21 }
 0x846   :  { %vm13164_vm4 = vmand %vm19085_vm10, %vm19084_vm3  ;;  %v4332_v37 = vsel %vm4076_vm9, 1, %v17017_v55  ;;  %vm19106_vm10 = vnez %v19105_v4  ;;  %vm3927_vm9 = vcmp.eq.s32.totalorder %v12913_v13, %v12859_v49  ;;  %v19132_v4 = vmov 0 }
 0x847   :  { %3773 = vxpose.xlu1.b32.cont [14/16] %v12859_v49, 128  ;;  %v19087_v48 = vsel %vm13164_vm4, 4294967295, %v19086_v48  ;;  %vm13176_vm0 = vmand %vm19090_vm5, %vm19089_vm13  ;;  %vm19100_vm4 = vcmp.eq.s32.totalorder %v3687_v15, %v12807_v21  ;;  %vm19102_vm13 = vnez %v19101_v26  ;;  %v19130_v26 = vld [vmem:[#allocation148_spill] sm:$0xff] }
 0x848   :  { %v19092_v62 = vsel %vm13176_vm0, 4294967295, %v19091_v62  ;;  %vm13185_vm3 = vmand %vm19095_vm2, %vm19094_vm11  ;;  %vm19112_vm2 = vnez %v19111_v31  ;;  %v19147_v31 = vmov 0 }
 0x849   :  { %v19097_v0 = vsel %vm13185_vm3, 4294967295, %v19096_v0  ;;  %vm4077_vm5 = vmand %vm19100_vm4, %vm19099_vm12  ;;  %vm19107_vm3 = vcmp.eq.s32.totalorder %v3687_v15, %v12809_v52  ;;  %vm4572_vm4 = vcmp.gt.s32.totalorder %v4571_v5, %v4332_v37  ;;  %vm19110_vm12 = vcmp.eq.s32.totalorder %v3687_v15, %v12859_v49 }
 0x84a   :  { %vm13198_vm0 = vmand %vm3866_vm14, %vm19102_vm13  ;;  %v4333_v60 = vsel %vm4077_vm5, 1, %v17017_v55  ;;  %vm19109_vm14 = vnez %v19108_v40  ;;  %v4573_v43 = vsel %vm4572_vm4, %v4571_v5, %v4332_v37  ;;  %vm19118_vm4 = vcmp.eq.s32.totalorder %v12913_v13, %v12805_v63  ;;  %v19134_v40 = vld [vmem:[#allocation36_spill] sm:$0xff] }
 0x84b   :  { %vm4078_vm8 = vmand %vm19107_vm3, %vm19106_vm10  ;;  %vm4707_vm11 = vcmp.gt.s32.totalorder %v4706_v57, %v4333_v60  ;;  %vm19113_vm3 = vcmp.eq.s32.totalorder %v12916_v23, %v12859_v49  ;;  %vm19122_vm5 = vcmp.eq.s32.totalorder %v12913_v13, %v12807_v21 }
 0x84c   :  { %vm4079_vm13 = vmand %vm19110_vm12, %vm19109_vm14  ;;  %v4334_v19 = vsel %vm4078_vm8, 1, %v17017_v55  ;;  %v4708_v15 = vsel %vm4707_vm11, %v4706_v57, %v4333_v60  ;;  %vm19117_vm8 = vcmp.gt.f32.partialorder %v19116_v20, %v5470_v36  ;;  %vm19121_vm11 = vcmp.gt.f32.partialorder %v19116_v20, %v5629_v34 }
 0x84d   :  { %vm13223_vm10 = vmand %vm19113_vm3, %vm19112_vm2  ;;  %v4335_v10 = vsel %vm4079_vm13, 1, %v17017_v55  ;;  %vm4842_vm14 = vcmp.gt.s32.totalorder %v13024_v16, %v4334_v19  ;;  %vm19127_vm3 = vcmp.eq.s32.totalorder %v12913_v13, %v12809_v52  ;;  %v13292_v60 = vsel %vm13056_vm15, 1, %v17017_v55 }
 0x84e   :  { %vm13237_vm12 = vmand %vm19118_vm4, %vm19117_vm8  ;;  %vm4977_vm13 = vcmp.gt.s32.totalorder %v13030_v56, %v4335_v10  ;;  %v4843_v5 = vsel %vm4842_vm14, %v13024_v16, %v4334_v19  ;;  %v19125_v16 = vld [vmem:[#allocation141_spill] sm:$0xff]  ;;  %v19139_v19 = vld [vmem:[#allocation114_spill] sm:$0xff]  ;;  %vm19145_vm15 = vnez %v19144_v53  ;;  %vm19146_vm4 = vcmp.eq.s32.totalorder %v12937_v33, %v12809_v52 }
 0x84f   :  { %3774 = vxpose.xlu1.b32.cont [15/16] %v12859_v49, 128  ;;  %vm13253_vm8 = vmand %vm19122_vm5, %vm19121_vm11  ;;  %v13262_v46 = vsel %vm4977_vm13, %v13030_v56, %v4335_v10  ;;  %vm19126_vm14 = vnez %v19125_v16  ;;  %vm19131_vm5 = vnez %v19130_v26  ;;  %v13287_v56 = vsel %vm13050_vm6, 1, %v17017_v55  ;;  %v13324_v10 = vpop.trf.xlu2 }
 0x850   :  { %vm13269_vm2 = vmand %vm19127_vm3, %vm19126_vm14  ;;  %vm19135_vm3 = vcmp.gt.f32.partialorder %v19134_v40, %v5470_v36  ;;  %vm19141_vm6 = vcmp.eq.s32.totalorder %v12937_v33, %v12807_v21  ;;  %v13329_v20 = vsel %vm13069_vm7, 1, %v17017_v55  ;;  %v13334_v16 = vsel %vm13075_vm1, 1, %v17017_v55  ;;  %v19151_v40 = vld [vmem:[#allocation120_spill] sm:$0xff] }
 0x851   :  { %vm13278_vm11 = vmand %vm3927_vm9, %vm19131_vm5  ;;  %vm19136_vm9 = vcmp.eq.s32.totalorder %v12937_v33, %v12805_v63  ;;  %vm19140_vm5 = vnez %v19139_v19  ;;  %19149 = vst [vmem:[#allocation197_spill] sm:$0xff] %v13334_v16  ;;  %v19154_v19 = vmov 0  ;;  %vm19156_vm1 = vnez %v19056_v29  ;;  %v19437_v16 = vld [vmem:[#allocation225_spill] sm:$0xff] }
 0x852   :  { %v19133_v4 = vsel %vm13278_vm11, 4294967295, %v19132_v4  ;;  %vm13300_vm14 = vmand %vm19136_vm9, %vm19135_vm3  ;;  %vm19152_vm9 = vnez %v19151_v40  ;;  %v13354_v45 = vsel %vm19156_vm1, 1, %v17017_v55  ;;  %v19165_v29 = vmov 0 }
 0x853   :  { %vm13309_vm13 = vmand %vm19141_vm6, %vm19140_vm5  ;;  %vm19153_vm5 = vcmp.eq.s32.totalorder %v12937_v33, %v12859_v49  ;;  %19157 = vst [vmem:[#allocation203_spill] sm:$0xff] %v13354_v45  ;;  %vm3825_vm1 = vcmp.eq.s32.totalorder %v3688_v38, %v12807_v21  ;;  %vm19171_vm3 = vnez %v19079_v25  ;;  %v13490_v57 = vsel %vm13269_vm2, 1, %v17017_v55 }
 0x854   :  { %v19143_v22 = vsel %vm13309_vm13, 4294967295, %v19142_v22  ;;  %vm13318_vm11 = vmand %vm19146_vm4, %vm19145_vm15  ;;  %vm19150_vm4 = vnez %v19052_v12  ;;  %vm19158_vm15 = vnez %v19060_v18  ;;  %v19162_v12 = vld [vmem:[#allocation74_spill] sm:$0xff]  ;;  %v13390_v53 = vsel %vm19171_vm3, 1, %v17017_v55  ;;  %19205 = vst [vmem:[#allocation221_spill] sm:$0xff] %v13490_v57 }
 0x855   :  { %v19148_v31 = vsel %vm13318_vm11, 4294967295, %v19147_v31  ;;  %v13339_v26 = vsel %vm19150_vm4, 1, %v17017_v55  ;;  %vm13346_vm6 = vmand %vm19153_vm5, %vm19152_vm9  ;;  %v13359_v28 = vsel %vm19158_vm15, 1, %v17017_v55  ;;  %vm19160_vm4 = vnez %v19065_v11  ;;  %19172 = vst [vmem:[#allocation205_spill] sm:$0xff] %v13390_v53  ;;  %v19217_v57 = vld [vmem:[#allocation126_spill] sm:$0xff] }
 0x856   :  { %v19155_v19 = vsel %vm13346_vm6, 4294967295, %v19154_v19  ;;  %19159 = vst [vmem:[#allocation201_spill] sm:$0xff] %v13359_v28  ;;  %v13364_v33 = vsel %vm19160_vm4, 1, %v17017_v55  ;;  %vm19163_vm9 = vcmp.gt.f32.partialorder %v19162_v12, %v5470_v36  ;;  %vm19164_vm5 = vcmp.eq.s32.totalorder %v12934_v51, %v12805_v63 }
 0x857   :  { %3775 = vxpose.xlu1.b32.end [16/16] %v12859_v49, 128  ;;  %19161 = vst [vmem:[#allocation204_spill] sm:$0xff] %v13364_v33  ;;  %vm13372_vm7 = vmand %vm19164_vm5, %vm19163_vm9  ;;  %vm19167_vm15 = vnez %v19070_v61  ;;  %vm19169_vm4 = vnez %v19074_v8  ;;  %vm19173_vm9 = vcmp.gt.f32.partialorder %v19162_v12, %v5629_v34  ;;  %vm19174_vm5 = vcmp.eq.s32.totalorder %v12934_v51, %v12807_v21  ;;  %v19183_v12 = vld [vmem:[#allocation95_spill] sm:$0xff] }
 0x858   :  { %v19166_v29 = vsel %vm13372_vm7, 4294967295, %v19165_v29  ;;  %v13380_v18 = vsel %vm19167_vm15, 1, %v17017_v55  ;;  %v13385_v11 = vsel %vm19169_vm4, 1, %v17017_v55  ;;  %vm13398_vm7 = vmand %vm19174_vm5, %vm19173_vm9  ;;  %v19175_v61 = vmov 0 }
 0x859   :  { %19168 = vst [vmem:[#allocation202_spill] sm:$0xff] %v13380_v18  ;;  %v19176_v61 = vsel %vm13398_vm7, 4294967295, %v19175_v61  ;;  %vm3826_vm15 = vcmp.eq.s32.totalorder %v3688_v38, %v12809_v52  ;;  %vm19177_vm4 = vnez %v19087_v48  ;;  %vm19179_vm3 = vnez %v19092_v62 }
 0x85a   :  { %19170 = vst [vmem:[#allocation210_spill] sm:$0xff] %v13385_v11  ;;  %v13406_v8 = vsel %vm19177_vm4, 1, %v17017_v55  ;;  %v13411_v25 = vsel %vm19179_vm3, 1, %v17017_v55  ;;  %vm19181_vm6 = vnez %v19097_v0  ;;  %vm3827_vm9 = vcmp.eq.s32.totalorder %v3688_v38, %v12859_v49  ;;  %v19188_v0 = vld [vmem:[#allocation96_spill] sm:$0xff]  ;;  %v19281_v11 = vld [vmem:[#allocation111_spill] sm:$0xff] }
 0x85b   :  { %19178 = vst [vmem:[#allocation212_spill] sm:$0xff] %v13406_v8  ;;  %v13416_v40 = vsel %vm19181_vm6, 1, %v17017_v55  ;;  %vm19184_vm5 = vnez %v19183_v12  ;;  %vm19185_vm7 = vcmp.eq.s32.totalorder %v3688_v38, %v12805_v63  ;;  %v13426_v48 = vsel %vm13198_vm0, 1, %v17017_v55  ;;  %v13464_v8 = vpop.trf.xlu0 }
 0x85c   :  { %19180 = vst [vmem:[#allocation206_spill] sm:$0xff] %v13411_v25  ;;  %vm4080_vm11 = vmand %vm19185_vm7, %vm19184_vm5  ;;  %v13431_v62 = vsel %vm13223_vm10, 1, %v17017_v55  ;;  %vm3930_vm6 = vcmp.eq.s32.totalorder %v12934_v51, %v12809_v52  ;;  %vm19189_vm4 = vnez %v19188_v0  ;;  %v13441_v38 = vsel %vm13237_vm12, 1, %v17017_v55  ;;  %v19193_v0 = vld [vmem:[#allocation98_spill] sm:$0xff] }
 0x85d   :  { %19182 = vst [vmem:[#allocation218_spill] sm:$0xff] %v13416_v40  ;;  %vm4081_vm3 = vmand %vm3825_vm1, %vm19189_vm4  ;;  %v4336_v12 = vsel %vm4080_vm11, 1, %v17017_v55  ;;  %vm19192_vm7 = vnez %v19191_v9  ;;  %vm3872_vm13 = vcmp.eq.s32.totalorder %v12958_v39, %v12805_v63  ;;  %vm19194_vm1 = vnez %v19193_v0 }
 0x85e   :  { %19186 = vst [vmem:[#allocation213_spill] sm:$0xff] %v13426_v48  ;;  %vm4082_vm10 = vmand %vm3826_vm15, %vm19192_vm7  ;;  %v4337_v7 = vsel %vm4081_vm3, 1, %v17017_v55  ;;  %vm4574_vm5 = vcmp.gt.s32.totalorder %v4573_v43, %v4336_v12  ;;  %vm3873_vm15 = vcmp.eq.s32.totalorder %v12958_v39, %v12807_v21  ;;  %vm19213_vm2 = vnez %v19143_v22  ;;  %v19223_v22 = vld [vmem:[#allocation129_spill] sm:$0xff] }
 0x85f   :  { %19187 = vst [vmem:[#allocation220_spill] sm:$0xff] %v13431_v62  ;;  %vm4083_vm11 = vmand %vm3827_vm9, %vm19194_vm1  ;;  %v4338_v50 = vsel %vm4082_vm10, 1, %v17017_v55  ;;  %vm4709_vm4 = vcmp.gt.s32.totalorder %v4708_v15, %v4337_v7  ;;  %v13453_v23 = vsel %vm4574_vm5, %v4573_v43, %v4336_v12  ;;  %v13471_v43 = vsel %vm13253_vm8, 1, %v17017_v55  ;;  %v19200_v12 = vld [vmem:[#allocation155_spill] sm:$0xff]  ;;  %v19321_v48 = vld [vmem:[#allocation157_spill] sm:$0xff] }
 0x860   :  { %19190 = vst [vmem:[#allocation214_spill] sm:$0xff] %v13441_v38  ;;  %v19195_v38 = vld [vmem:[#allocation152_spill] sm:$0xff]  ;;  %v4339_v9 = vsel %vm4083_vm11, 1, %v17017_v55  ;;  %vm4844_vm3 = vcmp.gt.s32.totalorder %v4843_v5, %v4338_v50  ;;  %v13466_v0 = vsel %vm4709_vm4, %v4708_v15, %v4337_v7  ;;  %vm19201_vm9 = vnez %v19200_v12  ;;  %v19208_v7 = vld [vmem:[#allocation37_spill] sm:$0xff] }
 0x861   :  { %vm19196_vm12 = vnez %v19195_v38  ;;  %19199 = vst [vmem:[#allocation226_spill] sm:$0xff] %v13471_v43  ;;  %vm3874_vm10 = vcmp.eq.s32.totalorder %v12958_v39, %v12809_v52  ;;  %vm4979_vm5 = vcmp.gt.s32.totalorder %v13262_v46, %v4339_v9  ;;  %v13485_v15 = vsel %vm4844_vm3, %v4843_v5, %v4338_v50  ;;  %v13509_v5 = vpop.trf.xlu2  ;;  %v19265_v50 = vld [vmem:[#allocation142_spill] sm:$0xff]  ;;  %v19336_v43 = vld [vmem:[#allocation208_spill] sm:$0xff] }
 0x862   :  { %vm13457_vm0 = vmand %vm3930_vm6, %vm19196_vm12  ;;  %vm19202_vm6 = vcmp.eq.s32.totalorder %v12934_v51, %v12859_v49  ;;  %vm19206_vm8 = vnez %v19133_v4  ;;  %vm3875_vm1 = vcmp.eq.s32.totalorder %v12958_v39, %v12859_v49  ;;  %vm19209_vm11 = vcmp.gt.f32.partialorder %v19208_v7, %v5470_v36  ;;  %v3689_v4 = vpop.trf.xlu1 }
 0x863   :  { %vm13478_vm7 = vmand %vm19202_vm6, %vm19201_vm9  ;;  %v13495_v51 = vsel %vm19206_vm8, 1, %v17017_v55  ;;  %v13512_v37 = vsel %vm4979_vm5, %v13262_v46, %v4339_v9  ;;  %v13517_v12 = vsel %vm13300_vm14, 1, %v17017_v55  ;;  %v13522_v7 = vsel %vm19213_vm2, 1, %v17017_v55 }
 0x864   :  { %19207 = vst [vmem:[#allocation228_spill] sm:$0xff] %v13495_v51  ;;  %vm13505_vm4 = vmand %vm3872_vm13, %vm19209_vm11  ;;  %vm19215_vm13 = vnez %v19148_v31  ;;  %vm19218_vm12 = vnez %v19217_v57  ;;  %vm3932_vm14 = vcmp.eq.s32.totalorder %v12955_v32, %v12805_v63  ;;  %vm19221_vm9 = vnez %v19155_v19 }
 0x865   :  { %19212 = vst [vmem:[#allocation222_spill] sm:$0xff] %v13517_v12  ;;  %v13527_v51 = vsel %vm19215_vm13, 1, %v17017_v55  ;;  %vm13534_vm3 = vmand %vm3873_vm15, %vm19218_vm12  ;;  %v13543_v13 = vsel %vm19221_vm9, 1, %v17017_v55  ;;  %vm19224_vm6 = vnez %v19223_v22  ;;  %vm3933_vm15 = vcmp.eq.s32.totalorder %v12955_v32, %v12807_v21  ;;  %v19232_v22 = vld [vmem:[#allocation131_spill] sm:$0xff] }
 0x866   :  { %19214 = vst [vmem:[#allocation234_spill] sm:$0xff] %v13522_v7  ;;  %vm13550_vm5 = vmand %vm3874_vm10, %vm19224_vm6  ;;  %vm3934_vm8 = vcmp.eq.s32.totalorder %v12955_v32, %v12809_v52  ;;  %vm3935_vm11 = vcmp.eq.s32.totalorder %v12955_v32, %v12859_v49  ;;  %vm19227_vm2 = vnez %v19166_v29  ;;  %vm19229_vm10 = vnez %v19176_v61  ;;  %v19236_v29 = vld [vmem:[#allocation82_spill] sm:$0xff]  ;;  %v19299_v7 = vld [vmem:[#allocation200_spill] sm:$0xff] }
 0x867   :  { %19216 = vst [vmem:[#allocation229_spill] sm:$0xff] %v13527_v51  ;;  %v13563_v19 = vsel %vm19227_vm2, 1, %v17017_v55  ;;  %v13568_v9 = vsel %vm19229_vm10, 1, %v17017_v55  ;;  %v13573_v57 = vsel %vm13457_vm0, 1, %v17017_v55  ;;  %vm19233_vm13 = vnez %v19232_v22  ;;  %v19244_v22 = vld [vmem:[#allocation156_spill] sm:$0xff]  ;;  %v19341_v61 = vld [vmem:[#allocation209_spill] sm:$0xff] }
 0x868   :  { %19222 = vst [vmem:[#allocation235_spill] sm:$0xff] %v13543_v13  ;;  %vm13580_vm12 = vmand %vm3875_vm1, %vm19233_vm13  ;;  %vm3828_vm9 = vcmp.eq.s32.totalorder %v3689_v4, %v12805_v63  ;;  %vm19237_vm6 = vcmp.gt.f32.partialorder %v19236_v29, %v5470_v36  ;;  %v13602_v42 = vsel %vm13478_vm7, 1, %v17017_v55  ;;  %vm19245_vm0 = vnez %v19244_v22  ;;  %v19252_v22 = vld [vmem:[#allocation105_spill] sm:$0xff]  ;;  %v19284_v13 = vld [vmem:[#allocation92_spill] sm:$0xff] }
 0x869   :  { %19228 = vst [vmem:[#allocation230_spill] sm:$0xff] %v13563_v19  ;;  %vm13588_vm2 = vmand %vm3932_vm14, %vm19237_vm6  ;;  %vm19241_vm14 = vcmp.gt.f32.partialorder %v19236_v29, %v5629_v34  ;;  %v19246_v38 = vmov 0  ;;  %v19248_v29 = vld [vmem:[#allocation149_spill] sm:$0xff]  ;;  %vm19253_vm10 = vnez %v19252_v22  ;;  %v13648_v32 = vsel %vm13505_vm4, 1, %v17017_v55 }
 0x86a   :  { %19230 = vst [vmem:[#allocation236_spill] sm:$0xff] %v13568_v9  ;;  %vm13607_vm6 = vmand %vm3933_vm15, %vm19241_vm14  ;;  %vm19249_vm15 = vnez %v19248_v29  ;;  %v19255_v29 = vld [vmem:[#allocation38_spill] sm:$0xff]  ;;  %v19263_v22 = vmov 0  ;;  %vm19266_vm4 = vnez %v19265_v50  ;;  %vm19267_vm1 = vcmp.eq.s32.totalorder %v12978_v1, %v12809_v52  ;;  %v19273_v9 = vld [vmem:[#allocation143_spill] sm:$0xff] }
 0x86b   :  { %19231 = vst [vmem:[#allocation242_spill] sm:$0xff] %v13573_v57  ;;  %vm13621_vm7 = vmand %vm3934_vm8, %vm19245_vm0  ;;  %v19260_v57 = vld [vmem:[#allocation140_spill] sm:$0xff]  ;;  %v19276_v53 = vmov 0  ;;  %v19297_v62 = vmov 0  ;;  %v19329_v31 = vmov 0  ;;  %v19365_v33 = vmov 0 }
 0x86c   :  { %19240 = vst [vmem:[#allocation237_spill] sm:$0xff] %v13602_v42  ;;  %v19247_v38 = vsel %vm13621_vm7, 4294967295, %v19246_v38  ;;  %vm13630_vm14 = vmand %vm3935_vm11, %vm19249_vm15  ;;  %vm19256_vm11 = vcmp.gt.f32.partialorder %v19255_v29, %v5470_v36  ;;  %vm19257_vm15 = vcmp.eq.s32.totalorder %v12978_v1, %v12805_v63  ;;  %v19258_v42 = vmov 0 }
 0x86d   :  { %vm4084_vm7 = vmand %vm3828_vm9, %vm19253_vm10  ;;  %19254 = vst [vmem:[#allocation249_spill] sm:$0xff] %v13648_v32  ;;  %vm19261_vm8 = vnez %v19260_v57  ;;  %vm19262_vm9 = vcmp.eq.s32.totalorder %v12978_v1, %v12807_v21  ;;  %v19268_v29 = vmov 0  ;;  %v19270_v57 = vld [vmem:[#allocation107_spill] sm:$0xff]  ;;  %v19294_v32 = vld [vmem:[#allocation198_spill] sm:$0xff]  ;;  %v19377_v19 = vmov 0 }
 0x86e   :  { %vm13656_vm13 = vmand %vm19257_vm15, %vm19256_vm11  ;;  %v4340_v50 = vsel %vm4084_vm7, 1, %v17017_v55  ;;  %vm19283_vm11 = vcmp.eq.s32.totalorder %v3689_v4, %v12859_v49  ;;  %v19393_v40 = vmov 0  ;;  %v19432_v28 = vmov 0 }
 0x86f   :  { %v19259_v42 = vsel %vm13656_vm13, 4294967295, %v19258_v42  ;;  %vm13665_vm10 = vmand %vm19262_vm9, %vm19261_vm8  ;;  %vm19271_vm8 = vnez %v19270_v57  ;;  %vm19272_vm9 = vcmp.eq.s32.totalorder %v3689_v4, %v12807_v21  ;;  %vm19274_vm13 = vnez %v19273_v9  ;;  %v19278_v57 = vld [vmem:[#allocation109_spill] sm:$0xff] }
 0x870   :  { %v19264_v22 = vsel %vm13665_vm10, 4294967295, %v19263_v22  ;;  %vm13674_vm0 = vmand %vm19267_vm1, %vm19266_vm4  ;;  %vm19275_vm1 = vcmp.eq.s32.totalorder %v12978_v1, %v12859_v49  ;;  %v13706_v1 = vpop.trf.xlu0  ;;  %v19440_v45 = vmov 0  ;;  %v19477_v12 = vmov 0 }
 0x871   :  { %v19269_v29 = vsel %vm13674_vm0, 4294967295, %v19268_v29  ;;  %vm4085_vm10 = vmand %vm19272_vm9, %vm19271_vm8  ;;  %vm19279_vm0 = vnez %v19278_v57  ;;  %vm19280_vm8 = vcmp.eq.s32.totalorder %v3689_v4, %v12809_v52  ;;  %vm4576_vm9 = vcmp.gt.s32.totalorder %v13453_v23, %v4340_v50  ;;  %v13743_v4 = vpop.trf.xlu2 }
 0x872   :  { %vm13692_vm4 = vmand %vm19275_vm1, %vm19274_vm13  ;;  %v4341_v9 = vsel %vm4085_vm10, 1, %v17017_v55  ;;  %vm19282_vm1 = vnez %v19281_v11  ;;  %v13717_v57 = vsel %vm4576_vm9, %v13453_v23, %v4340_v50  ;;  %vm19286_vm10 = vcmp.eq.s32.totalorder %v12970_v30, %v12805_v63 }
 0x873   :  { %v19277_v53 = vsel %vm13692_vm4, 4294967295, %v19276_v53  ;;  %vm4086_vm7 = vmand %vm19280_vm8, %vm19279_vm0  ;;  %vm4711_vm15 = vcmp.gt.s32.totalorder %v13466_v0, %v4341_v9  ;;  %vm19285_vm0 = vcmp.gt.f32.partialorder %v19284_v13, %v5470_v36  ;;  %v19291_v11 = vmov 0 }
 0x874   :  { %vm4087_vm4 = vmand %vm19283_vm11, %vm19282_vm1  ;;  %v4342_v18 = vsel %vm4086_vm7, 1, %v17017_v55  ;;  %vm19289_vm11 = vcmp.gt.f32.partialorder %v19284_v13, %v5629_v34  ;;  %vm19290_vm7 = vcmp.eq.s32.totalorder %v12970_v30, %v12807_v21  ;;  %v13746_v50 = vsel %vm4711_vm15, %v13466_v0, %v4341_v9  ;;  %v19304_v9 = vld [vmem:[#allocation39_spill] sm:$0xff] }
 0x875   :  { %vm13725_vm8 = vmand %vm19286_vm10, %vm19285_vm0  ;;  %v4343_v23 = vsel %vm4087_vm4, 1, %v17017_v55  ;;  %vm4846_vm0 = vcmp.gt.s32.totalorder %v13485_v15, %v4342_v18  ;;  %v13751_v13 = vsel %vm13534_vm3, 1, %v17017_v55  ;;  %vm19295_vm10 = vnez %v19294_v32  ;;  %v13777_v32 = vpop.trf.xlu1 }
 0x876   :  { %vm13735_vm1 = vmand %vm19290_vm7, %vm19289_vm11  ;;  %19293 = vst [vmem:[#allocation243_spill] sm:$0xff] %v13751_v13  ;;  %vm19296_vm11 = vcmp.eq.s32.totalorder %v12970_v30, %v12809_v52  ;;  %vm19300_vm4 = vnez %v19299_v7  ;;  %vm19301_vm15 = vcmp.eq.s32.totalorder %v12970_v30, %v12859_v49  ;;  %v19302_v0 = vmov 0  ;;  %v19309_v7 = vld [vmem:[#allocation132_spill] sm:$0xff]  ;;  %v19461_v30 = vld [vmem:[#allocation171_spill] sm:$0xff] }
 0x877   :  { %v19292_v11 = vsel %vm13735_vm1, 4294967295, %v19291_v11  ;;  %vm13758_vm7 = vmand %vm19296_vm11, %vm19295_vm10  ;;  %vm4981_vm13 = vcmp.gt.s32.totalorder %v13512_v37, %v4343_v23  ;;  %v13775_v46 = vsel %vm4846_vm0, %v13485_v15, %v4342_v18  ;;  %vm19305_vm10 = vcmp.gt.f32.partialorder %v19304_v9, %v5470_v36  ;;  %v19314_v15 = vld [vmem:[#allocation154_spill] sm:$0xff]  ;;  %v19466_v9 = vld [vmem:[#allocation153_spill] sm:$0xff] }
 0x878   :  { %v19298_v62 = vsel %vm13758_vm7, 4294967295, %v19297_v62  ;;  %vm13767_vm9 = vmand %vm19301_vm15, %vm19300_vm4  ;;  %vm19306_vm11 = vcmp.eq.s32.totalorder %v12993_v41, %v12805_v63  ;;  %vm19310_vm15 = vnez %v19309_v7  ;;  %vm19311_vm3 = vcmp.eq.s32.totalorder %v12993_v41, %v12807_v21 }
 0x879   :  { %v19303_v0 = vsel %vm13767_vm9, 4294967295, %v19302_v0  ;;  %vm13785_vm4 = vmand %vm19306_vm11, %vm19305_vm10  ;;  %vm19315_vm0 = vnez %v19314_v15  ;;  %vm19316_vm7 = vcmp.eq.s32.totalorder %v12993_v41, %v12809_v52  ;;  %v13814_v7 = vsel %vm4981_vm13, %v13512_v37, %v4343_v23  ;;  %v19326_v37 = vld [vmem:[#allocation99_spill] sm:$0xff] }
 0x87a   :  { %vm13794_vm9 = vmand %vm19311_vm3, %vm19310_vm15  ;;  %v13819_v15 = vsel %vm13550_vm5, 1, %v17017_v55  ;;  %v13824_v13 = vsel %vm13580_vm12, 1, %v17017_v55  ;;  %vm19323_vm15 = vcmp.eq.s32.totalorder %v12993_v41, %v12859_v49  ;;  %vm19327_vm13 = vcmp.gt.f32.partialorder %v19326_v37, %v5470_v36 }
 0x87b   :  { %vm13803_vm1 = vmand %vm19316_vm7, %vm19315_vm0  ;;  %19319 = vst [vmem:[#allocation250_spill] sm:$0xff] %v13819_v15  ;;  %vm19322_vm7 = vnez %v19321_v48  ;;  %vm19328_vm5 = vcmp.eq.s32.totalorder %v12985_v59, %v12805_v63  ;;  %vm19331_vm12 = vcmp.gt.f32.partialorder %v19326_v37, %v5629_v34  ;;  %vm19332_vm11 = vcmp.eq.s32.totalorder %v12985_v59, %v12807_v21  ;;  %v19362_v15 = vld [vmem:[#allocation158_spill] sm:$0xff] }
 0x87c   :  { %19320 = vst [vmem:[#allocation244_spill] sm:$0xff] %v13824_v13  ;;  %vm13831_vm0 = vmand %vm19323_vm15, %vm19322_vm7  ;;  %v19333_v41 = vmov 0  ;;  %v13862_v48 = vsel %vm13588_vm2, 1, %v17017_v55  ;;  %v19339_v23 = vmov 0  ;;  %vm19342_vm2 = vnez %v19341_v61  ;;  %v19351_v13 = vld [vmem:[#allocation90_spill] sm:$0xff] }
 0x87d   :  { %vm13841_vm3 = vmand %vm19328_vm5, %vm19327_vm13  ;;  %19335 = vst [vmem:[#allocation251_spill] sm:$0xff] %v13862_v48  ;;  %vm19337_vm13 = vnez %v19336_v43  ;;  %vm19338_vm5 = vcmp.eq.s32.totalorder %v12985_v59, %v12809_v52  ;;  %v19346_v43 = vld [vmem:[#allocation41_spill] sm:$0xff]  ;;  %v19349_v48 = vmov 0  ;;  %vm19352_vm15 = vnez %v19351_v13  ;;  %v19357_v61 = vld [vmem:[#allocation78_spill] sm:$0xff] }
 0x87e   :  { %v19330_v31 = vsel %vm13841_vm3, 4294967295, %v19329_v31  ;;  %vm13851_vm7 = vmand %vm19332_vm11, %vm19331_vm12  ;;  %vm19353_vm10 = vcmp.eq.s32.totalorder %v13009_v24, %v12807_v21  ;;  %v13918_v13 = vsel %vm13607_vm6, 1, %v17017_v55  ;;  %v19464_v18 = vmov 0 }
 0x87f   :  { %v19334_v41 = vsel %vm13851_vm7, 4294967295, %v19333_v41  ;;  %vm13869_vm11 = vmand %vm19338_vm5, %vm19337_vm13  ;;  %vm19343_vm7 = vcmp.eq.s32.totalorder %v12985_v59, %v12859_v49  ;;  %vm19347_vm13 = vcmp.gt.f32.partialorder %v19346_v43, %v5470_v36  ;;  %vm19348_vm5 = vcmp.eq.s32.totalorder %v13009_v24, %v12805_v63  ;;  %19356 = vst [vmem:[#allocation257_spill] sm:$0xff] %v13918_v13  ;;  %v19390_v13 = vld [vmem:[#allocation217_spill] sm:$0xff] }
 0x880   :  { %v19340_v23 = vsel %vm13869_vm11, 4294967295, %v19339_v23  ;;  %vm13884_vm3 = vmand %vm19343_vm7, %vm19342_vm2  ;;  %v19354_v59 = vmov 0  ;;  %v19360_v43 = vmov 0  ;;  %vm19363_vm2 = vnez %v19362_v15  ;;  %v19370_v15 = vld [vmem:[#allocation119_spill] sm:$0xff] }
 0x881   :  { %vm13894_vm12 = vmand %vm19348_vm5, %vm19347_vm13  ;;  %vm19364_vm13 = vcmp.eq.s32.totalorder %v13009_v24, %v12859_v49  ;;  %v19497_v37 = vmov 0 }
 0x882   :  { %v19350_v48 = vsel %vm13894_vm12, 4294967295, %v19349_v48  ;;  %vm13903_vm11 = vmand %vm19353_vm10, %vm19352_vm15  ;;  %vm19358_vm10 = vnez %v19357_v61  ;;  %vm19359_vm15 = vcmp.eq.s32.totalorder %v13009_v24, %v12809_v52  ;;  %v13952_v24 = vsel %vm13630_vm14, 1, %v17017_v55 }
 0x883   :  { %v19355_v59 = vsel %vm13903_vm11, 4294967295, %v19354_v59  ;;  %vm13925_vm7 = vmand %vm19359_vm15, %vm19358_vm10  ;;  %vm19367_vm15 = vnez %v19247_v38  ;;  %19369 = vst [vmem:[#allocation258_spill] sm:$0xff] %v13952_v24  ;;  %v19373_v61 = vmov 0  ;;  %vm19375_vm10 = vcmp.gt.f32.partialorder %v19370_v15, %v5629_v34  ;;  %v19379_v38 = vld [vmem:[#allocation216_spill] sm:$0xff] }
 0x884   :  { %v19361_v43 = vsel %vm13925_vm7, 4294967295, %v19360_v43  ;;  %vm13934_vm5 = vmand %vm19364_vm13, %vm19363_vm2  ;;  %v13947_v39 = vsel %vm19367_vm15, 1, %v17017_v55  ;;  %vm19371_vm2 = vcmp.gt.f32.partialorder %v19370_v15, %v5470_v36  ;;  %vm19372_vm13 = vcmp.eq.s32.totalorder %v13004_v44, %v12805_v63 }
 0x885   :  { %v19366_v33 = vsel %vm13934_vm5, 4294967295, %v19365_v33  ;;  %19368 = vst [vmem:[#allocation252_spill] sm:$0xff] %v13947_v39  ;;  %vm13960_vm11 = vmand %vm19372_vm13, %vm19371_vm2  ;;  %vm19376_vm15 = vcmp.eq.s32.totalorder %v13004_v44, %v12807_v21  ;;  %vm19380_vm14 = vnez %v19379_v38  ;;  %vm19381_vm5 = vcmp.eq.s32.totalorder %v13004_v44, %v12809_v52 }
 0x886   :  { %v19374_v61 = vsel %vm13960_vm11, 4294967295, %v19373_v61  ;;  %vm13970_vm6 = vmand %vm19376_vm15, %vm19375_vm10  ;;  %v19382_v24 = vmov 0  ;;  %vm19384_vm10 = vnez %v19259_v42  ;;  %vm19386_vm15 = vnez %v19264_v22  ;;  %v19395_v42 = vld [vmem:[#allocation42_spill] sm:$0xff] }
 0x887   :  { %v19378_v19 = vsel %vm13970_vm6, 4294967295, %v19377_v19  ;;  %vm13979_vm7 = vmand %vm19381_vm5, %vm19380_vm14  ;;  %v13990_v15 = vsel %vm19384_vm10, 1, %v17017_v55  ;;  %v13995_v38 = vsel %vm19386_vm15, 1, %v17017_v55  ;;  %vm19388_vm5 = vnez %v19269_v29  ;;  %v19400_v29 = vld [vmem:[#allocation160_spill] sm:$0xff] }
 0x888   :  { %v19383_v24 = vsel %vm13979_vm7, 4294967295, %v19382_v24  ;;  %19385 = vst [vmem:[#allocation259_spill] sm:$0xff] %v13990_v15  ;;  %v14000_v39 = vsel %vm19388_vm5, 1, %v17017_v55  ;;  %vm19391_vm14 = vnez %v19390_v13  ;;  %vm19392_vm13 = vcmp.eq.s32.totalorder %v13004_v44, %v12859_v49  ;;  %v19405_v13 = vld [vmem:[#allocation121_spill] sm:$0xff] }
 0x889   :  { %19387 = vst [vmem:[#allocation23_spill] sm:$0xff] %v13995_v38  ;;  %vm14007_vm2 = vmand %vm19392_vm13, %vm19391_vm14  ;;  %vm19396_vm10 = vcmp.gt.f32.partialorder %v19395_v42, %v5470_v36  ;;  %vm19397_vm15 = vcmp.eq.s32.totalorder %v13092_v17, %v12805_v63  ;;  %v19398_v22 = vmov 0  ;;  %vm19401_vm5 = vnez %v19400_v29  ;;  %v14037_v42 = vpop.trf.xlu0  ;;  %v19544_v38 = vld [vmem:[#allocation241_spill] sm:$0xff] }
 0x88a   :  { %19389 = vst [vmem:[#allocation25_spill] sm:$0xff] %v14000_v39  ;;  %v19394_v40 = vsel %vm14007_vm2, 4294967295, %v19393_v40  ;;  %vm14017_vm7 = vmand %vm19397_vm15, %vm19396_vm10  ;;  %vm19402_vm6 = vcmp.eq.s32.totalorder %v13092_v17, %v12807_v21  ;;  %v19403_v44 = vmov 0  ;;  %vm19406_vm14 = vnez %v19405_v13  ;;  %v19410_v39 = vld [vmem:[#allocation162_spill] sm:$0xff]  ;;  %v19415_v13 = vld [vmem:[#allocation164_spill] sm:$0xff] }
 0x88b   :  { %v19399_v22 = vsel %vm14017_vm7, 4294967295, %v19398_v22  ;;  %vm14026_vm11 = vmand %vm19402_vm6, %vm19401_vm5  ;;  %vm19407_vm10 = vcmp.eq.s32.totalorder %v13777_v32, %v12805_v63  ;;  %vm19408_vm7 = vnez %v19277_v53  ;;  %vm19411_vm6 = vnez %v19410_v39  ;;  %v19420_v53 = vld [vmem:[#allocation134_spill] sm:$0xff] }
 0x88c   :  { %v19404_v44 = vsel %vm14026_vm11, 4294967295, %v19403_v44  ;;  %vm4088_vm15 = vmand %vm19407_vm10, %vm19406_vm14  ;;  %v14042_v29 = vsel %vm19408_vm7, 1, %v17017_v55  ;;  %vm19412_vm5 = vcmp.eq.s32.totalorder %v13092_v17, %v12809_v52  ;;  %vm19416_vm13 = vnez %v19415_v13 }
 0x88d   :  { %19409 = vst [vmem:[#allocation30_spill] sm:$0xff] %v14042_v29  ;;  %vm14049_vm11 = vmand %vm19412_vm5, %vm19411_vm6  ;;  %vm19417_vm14 = vcmp.eq.s32.totalorder %v13092_v17, %v12859_v49  ;;  %v19418_v15 = vmov 0  ;;  %vm19421_vm7 = vcmp.gt.f32.partialorder %v19420_v53, %v5470_v36  ;;  %vm19422_vm2 = vcmp.eq.s32.totalorder %v13045_v35, %v12805_v63  ;;  %v19429_v29 = vld [vmem:[#allocation224_spill] sm:$0xff] }
 0x88e   :  { %vm14058_vm10 = vmand %vm19417_vm14, %vm19416_vm13  ;;  %v4344_v17 = vsel %vm4088_vm15, 1, %v17017_v55  ;;  %vm19425_vm13 = vcmp.gt.f32.partialorder %v19420_v53, %v5629_v34  ;;  %vm19426_vm14 = vcmp.eq.s32.totalorder %v13045_v35, %v12807_v21  ;;  %v14103_v53 = vpop.trf.xlu2  ;;  %vm19439_vm5 = vcmp.eq.s32.totalorder %v13045_v35, %v12859_v49 }
 0x88f   :  { %v19419_v15 = vsel %vm14058_vm10, 4294967295, %v19418_v15  ;;  %vm14068_vm12 = vmand %vm19422_vm2, %vm19421_vm7  ;;  %vm19430_vm2 = vnez %v19429_v29  ;;  %vm19431_vm7 = vcmp.eq.s32.totalorder %v13045_v35, %v12809_v52  ;;  %v14108_v29 = vsel %vm13725_vm8, 1, %v17017_v55 }
 0x890   :  { %vm14083_vm10 = vmand %vm19426_vm14, %vm19425_vm13  ;;  %vm4578_vm14 = vcmp.gt.s32.totalorder %v13717_v57, %v4344_v17  ;;  %19434 = vst [vmem:[#allocation17_spill] sm:$0xff] %v14108_v29  ;;  %v14129_v29 = vpop.trf.xlu1  ;;  %vm19442_vm8 = vnez %v19298_v62 }
 0x891   :  { %vm14092_vm6 = vmand %vm19431_vm7, %vm19430_vm2  ;;  %vm19435_vm2 = vnez %v19292_v11  ;;  %vm19438_vm7 = vnez %v19437_v16  ;;  %v14127_v51 = vsel %vm4578_vm14, %v13717_v57, %v4344_v17  ;;  %v14134_v11 = vsel %vm19442_vm8, 1, %v17017_v55  ;;  %v19446_v16 = vld [vmem:[#allocation43_spill] sm:$0xff]  ;;  %v19451_v17 = vld [vmem:[#allocation84_spill] sm:$0xff] }
 0x892   :  { %v19433_v28 = vsel %vm14092_vm6, 4294967295, %v19432_v28  ;;  %v14113_v25 = vsel %vm19435_vm2, 1, %v17017_v55  ;;  %vm14120_vm13 = vmand %vm19439_vm5, %vm19438_vm7  ;;  %19443 = vst [vmem:[#allocation19_spill] sm:$0xff] %v14134_v11  ;;  %vm19444_vm2 = vnez %v19303_v0  ;;  %vm19447_vm5 = vcmp.gt.f32.partialorder %v19446_v16, %v5470_v36  ;;  %v19580_v11 = vld [vmem:[#allocation187_spill] sm:$0xff] }
 0x893   :  { %19436 = vst [vmem:[#allocation18_spill] sm:$0xff] %v14113_v25  ;;  %v19441_v45 = vsel %vm14120_vm13, 4294967295, %v19440_v45  ;;  %v14139_v35 = vsel %vm19444_vm2, 1, %v17017_v55  ;;  %vm19448_vm7 = vcmp.eq.s32.totalorder %v13324_v10, %v12805_v63  ;;  %vm19452_vm15 = vnez %v19451_v17 }
 0x894   :  { %19445 = vst [vmem:[#allocation16_spill] sm:$0xff] %v14139_v35  ;;  %vm14147_vm14 = vmand %vm19448_vm7, %vm19447_vm5  ;;  %vm19453_vm8 = vcmp.eq.s32.totalorder %v13324_v10, %v12807_v21  ;;  %v14167_v0 = vsel %vm13785_vm4, 1, %v17017_v55  ;;  %v14172_v16 = vsel %vm13794_vm9, 1, %v17017_v55  ;;  %v14177_v17 = vsel %vm13803_vm1, 1, %v17017_v55  ;;  %v19456_v35 = vld [vmem:[#allocation94_spill] sm:$0xff] }
 0x895   :  { %vm14156_vm13 = vmand %vm19453_vm8, %vm19452_vm15  ;;  %vm19457_vm15 = vnez %v19456_v35  ;;  %vm19458_vm5 = vcmp.eq.s32.totalorder %v13324_v10, %v12809_v52  ;;  %vm19462_vm4 = vnez %v19461_v30  ;;  %vm19463_vm9 = vcmp.eq.s32.totalorder %v13324_v10, %v12859_v49 }
 0x896   :  { %vm14184_vm7 = vmand %vm19458_vm5, %vm19457_vm15  ;;  %vm19467_vm1 = vcmp.gt.f32.partialorder %v19466_v9, %v5470_v36  ;;  %vm19468_vm6 = vcmp.eq.s32.totalorder %v13259_v47, %v12805_v63  ;;  %v19469_v35 = vmov 0  ;;  %v14212_v10 = vsel %vm13831_vm0, 1, %v17017_v55  ;;  %v14421_v39 = vpop.trf.xlu2 }
 0x897   :  { %vm14193_vm8 = vmand %vm19463_vm9, %vm19462_vm4  ;;  %vm19471_vm5 = vnez %v19330_v31  ;;  %vm19473_vm4 = vnez %v19334_v41  ;;  %vm19476_vm9 = vcmp.eq.s32.totalorder %v13259_v47, %v12807_v21  ;;  %vm3897_vm0 = vcmp.eq.s32.totalorder %v13509_v5, %v12807_v21  ;;  %v19481_v41 = vld [vmem:[#allocation232_spill] sm:$0xff] }
 0x898   :  { %v19465_v18 = vsel %vm14193_vm8, 4294967295, %v19464_v18  ;;  %vm14203_vm2 = vmand %vm19468_vm6, %vm19467_vm1  ;;  %v14217_v30 = vsel %vm19471_vm5, 1, %v17017_v55  ;;  %v14222_v25 = vsel %vm19473_vm4, 1, %v17017_v55  ;;  %vm19475_vm6 = vcmp.gt.f32.partialorder %v19466_v9, %v5629_v34  ;;  %v14447_v13 = vpop.trf.xlu1  ;;  %v19673_v9 = vld [vmem:[#allocation254_spill] sm:$0xff] }
 0x899   :  { %v19470_v35 = vsel %vm14203_vm2, 4294967295, %v19469_v35  ;;  %19472 = vst [vmem:[#allocation27_spill] sm:$0xff] %v14217_v30  ;;  %vm14230_vm1 = vmand %vm19476_vm9, %vm19475_vm6  ;;  %vm19479_vm5 = vnez %v19340_v23  ;;  %vm19482_vm4 = vnez %v19481_v41  ;;  %vm19483_vm15 = vcmp.eq.s32.totalorder %v13259_v47, %v12809_v52  ;;  %v19486_v30 = vld [vmem:[#allocation233_spill] sm:$0xff]  ;;  %v19494_v41 = vld [vmem:[#allocation44_spill] sm:$0xff] }
 0x89a   :  { %19474 = vst [vmem:[#allocation26_spill] sm:$0xff] %v14222_v25  ;;  %v19478_v12 = vsel %vm14230_vm1, 4294967295, %v19477_v12  ;;  %v14239_v31 = vsel %vm19479_vm5, 1, %v17017_v55  ;;  %vm14246_vm2 = vmand %vm19483_vm15, %vm19482_vm4  ;;  %vm19487_vm6 = vnez %v19486_v30  ;;  %vm19488_vm9 = vcmp.eq.s32.totalorder %v13259_v47, %v12859_v49 }
 0x89b   :  { %19480 = vst [vmem:[#allocation28_spill] sm:$0xff] %v14239_v31  ;;  %vm14255_vm1 = vmand %vm19488_vm9, %vm19487_vm6  ;;  %v19489_v25 = vmov 0  ;;  %v14268_v23 = vsel %vm13884_vm3, 1, %v17017_v55  ;;  %vm19492_vm4 = vnez %v19350_v48  ;;  %vm19493_vm6 = vnez %v19355_v59  ;;  %v19512_v31 = vld [vmem:[#allocation175_spill] sm:$0xff] }
 0x89c   :  { %v19490_v25 = vsel %vm14255_vm1, 4294967295, %v19489_v25  ;;  %19491 = vst [vmem:[#allocation29_spill] sm:$0xff] %v14268_v23  ;;  %v14273_v47 = vsel %vm19492_vm4, 1, %v17017_v55  ;;  %v14278_v30 = vsel %vm19493_vm6, 1, %v17017_v55  ;;  %vm19495_vm9 = vcmp.gt.f32.partialorder %v19494_v41, %v5470_v36  ;;  %v19502_v41 = vld [vmem:[#allocation174_spill] sm:$0xff] }
 0x89d   :  { %vm19496_vm15 = vcmp.eq.s32.totalorder %v13509_v5, %v12805_v63  ;;  %vm19499_vm4 = vnez %v19361_v43  ;;  %vm19500_vm6 = vnez %v19366_v33  ;;  %vm19503_vm5 = vnez %v19502_v41 }
 0x89e   :  { %vm14286_vm8 = vmand %vm19496_vm15, %vm19495_vm9  ;;  %v14295_v48 = vsel %vm19499_vm4, 1, %v17017_v55  ;;  %v14300_v59 = vsel %vm19500_vm6, 1, %v17017_v55  ;;  %v19504_v23 = vmov 0  ;;  %vm19506_vm4 = vnez %v19374_v61  ;;  %v19517_v61 = vld [vmem:[#allocation176_spill] sm:$0xff] }
 0x89f   :  { %v19498_v37 = vsel %vm14286_vm8, 4294967295, %v19497_v37  ;;  %19501 = vst [vmem:[#allocation52_spill] sm:$0xff] %v14300_v59  ;;  %vm14304_vm1 = vmand %vm3897_vm0, %vm19503_vm5  ;;  %v14315_v43 = vsel %vm19506_vm4, 1, %v17017_v55  ;;  %vm19508_vm6 = vnez %v19378_v19  ;;  %vm19510_vm0 = vnez %v19383_v24  ;;  %v19522_v24 = vld [vmem:[#allocation172_spill] sm:$0xff]  ;;  %v19728_v59 = vld [vmem:[#allocation115_spill] sm:$0xff] }
 0x8a0   :  { %v19505_v23 = vsel %vm14304_vm1, 4294967295, %v19504_v23  ;;  %19507 = vst [vmem:[#allocation53_spill] sm:$0xff] %v14315_v43  ;;  %v14320_v33 = vsel %vm19508_vm6, 1, %v17017_v55  ;;  %v14325_v41 = vsel %vm19510_vm0, 1, %v17017_v55  ;;  %vm19513_vm5 = vnez %v19512_v31  ;;  %v19632_v31 = vld [vmem:[#allocation179_spill] sm:$0xff] }
 0x8a1   :  { %19509 = vst [vmem:[#allocation54_spill] sm:$0xff] %v14320_v33  ;;  %vm19514_vm9 = vcmp.eq.s32.totalorder %v13509_v5, %v12809_v52  ;;  %vm19518_vm4 = vnez %v19517_v61  ;;  %vm19519_vm6 = vcmp.eq.s32.totalorder %v13509_v5, %v12859_v49  ;;  %vm19523_vm0 = vcmp.gt.f32.partialorder %v19522_v24, %v5470_v36  ;;  %v14357_v61 = vpop.trf.xlu0 }
 0x8a2   :  { %19511 = vst [vmem:[#allocation55_spill] sm:$0xff] %v14325_v41  ;;  %vm14332_vm15 = vmand %vm19514_vm9, %vm19513_vm5  ;;  %vm19524_vm1 = vcmp.eq.s32.totalorder %v13464_v8, %v12805_v63  ;;  %vm19527_vm5 = vnez %v19394_v40  ;;  %v19542_v33 = vmov 0  ;;  %v14495_v57 = vsel %vm14184_vm7, 1, %v17017_v55  ;;  %v14679_v40 = vpop.trf.xlu2 }
 0x8a3   :  { %vm14341_vm3 = vmand %vm19519_vm6, %vm19518_vm4  ;;  %v14362_v5 = vsel %vm19527_vm5, 1, %v17017_v55  ;;  %vm19529_vm4 = vnez %v19399_v22  ;;  %vm19531_vm6 = vcmp.gt.f32.partialorder %v19522_v24, %v5629_v34  ;;  %v14389_v22 = vsel %vm14049_vm11, 1, %v17017_v55  ;;  %19570 = vst [vmem:[#allocation65_spill] sm:$0xff] %v14495_v57 }
 0x8a4   :  { %vm14351_vm8 = vmand %vm19524_vm1, %vm19523_vm0  ;;  %19528 = vst [vmem:[#allocation56_spill] sm:$0xff] %v14362_v5  ;;  %v14367_v43 = vsel %vm19529_vm4, 1, %v17017_v55  ;;  %vm19530_vm1 = vnez %v19404_v44  ;;  %vm19532_vm0 = vcmp.eq.s32.totalorder %v13464_v8, %v12807_v21  ;;  %vm19536_vm4 = vnez %v19419_v15  ;;  %v19539_v5 = vld [vmem:[#allocation240_spill] sm:$0xff] }
 0x8a5   :  { %v14372_v41 = vsel %vm19530_vm1, 1, %v17017_v55  ;;  %vm14380_vm9 = vmand %vm19532_vm0, %vm19531_vm6  ;;  %19535 = vst [vmem:[#allocation57_spill] sm:$0xff] %v14389_v22  ;;  %v14394_v44 = vsel %vm19536_vm4, 1, %v17017_v55  ;;  %v14399_v24 = vsel %vm14068_vm12, 1, %v17017_v55  ;;  %vm19540_vm1 = vnez %v19539_v5 }
 0x8a6   :  { %19537 = vst [vmem:[#allocation58_spill] sm:$0xff] %v14394_v44  ;;  %vm19541_vm6 = vcmp.eq.s32.totalorder %v13464_v8, %v12809_v52  ;;  %vm19545_vm11 = vnez %v19544_v38  ;;  %vm19546_vm4 = vcmp.eq.s32.totalorder %v13464_v8, %v12859_v49  ;;  %v19547_v15 = vmov 0  ;;  %v19552_v8 = vld [vmem:[#allocation45_spill] sm:$0xff]  ;;  %v19575_v44 = vld [vmem:[#allocation108_spill] sm:$0xff] }
 0x8a7   :  { %19538 = vst [vmem:[#allocation59_spill] sm:$0xff] %v14399_v24  ;;  %vm14406_vm0 = vmand %vm19541_vm6, %vm19540_vm1  ;;  %v14426_v5 = vsel %vm14083_vm10, 1, %v17017_v55  ;;  %vm19550_vm1 = vnez %v19433_v28  ;;  %vm19581_vm7 = vcmp.gt.f32.partialorder %v19580_v11, %v5470_v36  ;;  %v14662_v19 = vsel %vm14380_vm9, 1, %v17017_v55 }
 0x8a8   :  { %v19543_v33 = vsel %vm14406_vm0, 4294967295, %v19542_v33  ;;  %vm14415_vm5 = vmand %vm19546_vm4, %vm19545_vm11  ;;  %19549 = vst [vmem:[#allocation60_spill] sm:$0xff] %v14426_v5  ;;  %v14431_v38 = vsel %vm19550_vm1, 1, %v17017_v55  ;;  %vm19553_vm11 = vcmp.gt.f32.partialorder %v19552_v8, %v5470_v36  ;;  %vm19554_vm4 = vcmp.eq.s32.totalorder %v13743_v4, %v12805_v63 }
 0x8a9   :  { %v19548_v15 = vsel %vm14415_vm5, 4294967295, %v19547_v15  ;;  %19551 = vst [vmem:[#allocation61_spill] sm:$0xff] %v14431_v38  ;;  %vm14441_vm12 = vmand %vm19554_vm4, %vm19553_vm11  ;;  %vm19557_vm1 = vnez %v19441_v45  ;;  %v19559_v38 = vld [vmem:[#allocation177_spill] sm:$0xff]  ;;  %vm19561_vm5 = vcmp.eq.s32.totalorder %v13743_v4, %v12807_v21  ;;  %v14472_v45 = vsel %vm14147_vm14, 1, %v17017_v55 }
 0x8aa   :  { %v14452_v28 = vsel %vm19557_vm1, 1, %v17017_v55  ;;  %vm19560_vm6 = vnez %v19559_v38  ;;  %v14477_v38 = vsel %vm14156_vm13, 1, %v17017_v55  ;;  %vm19571_vm13 = vnez %v19465_v18  ;;  %19631 = vst [vmem:[#allocation80_spill] sm:$0xff] %v14662_v19  ;;  %v19641_v19 = vld [vmem:[#allocation183_spill] sm:$0xff] }
 0x8ab   :  { %19558 = vst [vmem:[#allocation63_spill] sm:$0xff] %v14452_v28  ;;  %vm14459_vm0 = vmand %vm19561_vm5, %vm19560_vm6  ;;  %v19565_v28 = vld [vmem:[#allocation178_spill] sm:$0xff]  ;;  %vm19567_vm6 = vcmp.eq.s32.totalorder %v13743_v4, %v12809_v52  ;;  %v14500_v62 = vsel %vm19571_vm13, 1, %v17017_v55  ;;  %vm19577_vm14 = vcmp.eq.s32.totalorder %v13743_v4, %v12859_v49  ;;  %vm19582_vm13 = vcmp.eq.s32.totalorder %v13706_v1, %v12805_v63 }
 0x8ac   :  { %19564 = vst [vmem:[#allocation64_spill] sm:$0xff] %v14477_v38  ;;  %vm19566_vm5 = vnez %v19565_v28  ;;  %v19578_v38 = vmov 0  ;;  %vm14522_vm4 = vmand %vm19582_vm13, %vm19581_vm7  ;;  %v19583_v18 = vmov 0  ;;  %vm19585_vm11 = vnez %v19478_v12 }
 0x8ad   :  { %vm14484_vm1 = vmand %vm19567_vm6, %vm19566_vm5  ;;  %19572 = vst [vmem:[#allocation66_spill] sm:$0xff] %v14500_v62  ;;  %vm19573_vm5 = vnez %v19470_v35  ;;  %vm19576_vm6 = vnez %v19575_v44  ;;  %v19584_v18 = vsel %vm14522_vm4, 4294967295, %v19583_v18  ;;  %v14531_v4 = vsel %vm19585_vm11, 1, %v17017_v55  ;;  %v19626_v62 = vld [vmem:[#allocation46_spill] sm:$0xff] }
 0x8ae   :  { %v14505_v28 = vsel %vm19573_vm5, 1, %v17017_v55  ;;  %vm14512_vm10 = vmand %vm19577_vm14, %vm19576_vm6  ;;  %19586 = vst [vmem:[#allocation69_spill] sm:$0xff] %v14531_v4  ;;  %vm19587_vm14 = vcmp.gt.f32.partialorder %v19580_v11, %v5629_v34  ;;  %vm19588_vm6 = vcmp.eq.s32.totalorder %v13706_v1, %v12807_v21  ;;  %v19589_v35 = vmov 0  ;;  %v19594_v11 = vld [vmem:[#allocation246_spill] sm:$0xff] }
 0x8af   :  { %19574 = vst [vmem:[#allocation68_spill] sm:$0xff] %v14505_v28  ;;  %v19579_v38 = vsel %vm14512_vm10, 4294967295, %v19578_v38  ;;  %vm14539_vm10 = vmand %vm19588_vm6, %vm19587_vm14  ;;  %v14552_v12 = vsel %vm14246_vm2, 1, %v17017_v55  ;;  %vm19592_vm14 = vnez %v19490_v25  ;;  %vm19595_vm6 = vnez %v19594_v11  ;;  %v19599_v4 = vld [vmem:[#allocation122_spill] sm:$0xff]  ;;  %v19606_v11 = vld [vmem:[#allocation247_spill] sm:$0xff] }
 0x8b0   :  { %v19590_v35 = vsel %vm14539_vm10, 4294967295, %v19589_v35  ;;  %19591 = vst [vmem:[#allocation70_spill] sm:$0xff] %v14552_v12  ;;  %v14557_v44 = vsel %vm19592_vm14, 1, %v17017_v55  ;;  %vm19596_vm7 = vcmp.eq.s32.totalorder %v13706_v1, %v12809_v52  ;;  %v19597_v28 = vmov 0 }
 0x8b1   :  { %19593 = vst [vmem:[#allocation71_spill] sm:$0xff] %v14557_v44  ;;  %vm14564_vm5 = vmand %vm19596_vm7, %vm19595_vm6  ;;  %vm19600_vm11 = vnez %v19599_v4  ;;  %vm19601_vm2 = vcmp.eq.s32.totalorder %v13777_v32, %v12807_v21  ;;  %vm19604_vm7 = vnez %v19498_v37  ;;  %vm19607_vm6 = vnez %v19606_v11  ;;  %v19611_v44 = vld [vmem:[#allocation124_spill] sm:$0xff]  ;;  %v19618_v37 = vld [vmem:[#allocation125_spill] sm:$0xff] }
 0x8b2   :  { %v19598_v28 = vsel %vm14564_vm5, 4294967295, %v19597_v28  ;;  %vm14573_vm13 = vmand %vm19601_vm2, %vm19600_vm11  ;;  %v14584_v25 = vsel %vm19604_vm7, 1, %v17017_v55  ;;  %vm19608_vm5 = vcmp.eq.s32.totalorder %v13706_v1, %v12859_v49  ;;  %v19609_v4 = vmov 0 }
 0x8b3   :  { %19605 = vst [vmem:[#allocation73_spill] sm:$0xff] %v14584_v25  ;;  %vm14591_vm11 = vmand %vm19608_vm5, %vm19607_vm6  ;;  %vm19612_vm2 = vnez %v19611_v44  ;;  %vm19613_vm14 = vcmp.eq.s32.totalorder %v13777_v32, %v12809_v52  ;;  %vm19616_vm6 = vnez %v19505_v23  ;;  %v14630_v23 = vpop.trf.xlu0  ;;  %v14635_v11 = vsel %vm14332_vm15, 1, %v17017_v55  ;;  %v19683_v44 = vld [vmem:[#allocation138_spill] sm:$0xff] }
 0x8b4   :  { %v19610_v4 = vsel %vm14591_vm11, 4294967295, %v19609_v4  ;;  %vm14600_vm10 = vmand %vm19613_vm14, %vm19612_vm2  ;;  %v14613_v1 = vsel %vm19616_vm6, 1, %v17017_v55  ;;  %vm19619_vm11 = vnez %v19618_v37  ;;  %vm19620_vm14 = vcmp.eq.s32.totalorder %v13777_v32, %v12859_v49  ;;  %19623 = vst [vmem:[#allocation76_spill] sm:$0xff] %v14635_v11  ;;  %v19646_v11 = vld [vmem:[#allocation184_spill] sm:$0xff] }
 0x8b5   :  { %19617 = vst [vmem:[#allocation75_spill] sm:$0xff] %v14613_v1  ;;  %vm14620_vm2 = vmand %vm19620_vm14, %vm19619_vm11  ;;  %v14640_v32 = vsel %vm14341_vm3, 1, %v17017_v55  ;;  %v14645_v37 = vsel %vm14351_vm8, 1, %v17017_v55  ;;  %vm19627_vm11 = vcmp.gt.f32.partialorder %v19626_v62, %v5470_v36  ;;  %vm19628_vm6 = vcmp.eq.s32.totalorder %v14103_v53, %v12805_v63  ;;  %v19667_v1 = vld [vmem:[#allocation135_spill] sm:$0xff] }
 0x8b6   :  { %19624 = vst [vmem:[#allocation77_spill] sm:$0xff] %v14640_v32  ;;  %vm14653_vm14 = vmand %vm19628_vm6, %vm19627_vm11  ;;  %vm19633_vm8 = vnez %v19632_v31  ;;  %vm19634_vm3 = vcmp.eq.s32.totalorder %v14103_v53, %v12807_v21  ;;  %vm19637_vm9 = vnez %v19543_v33  ;;  %vm19643_vm6 = vcmp.eq.s32.totalorder %v14103_v53, %v12809_v52 }
 0x8b7   :  { %19625 = vst [vmem:[#allocation79_spill] sm:$0xff] %v14645_v37  ;;  %vm14669_vm7 = vmand %vm19634_vm3, %vm19633_vm8  ;;  %v14684_v31 = vsel %vm19637_vm9, 1, %v17017_v55  ;;  %vm19639_vm8 = vnez %v19548_v15  ;;  %vm19642_vm3 = vnez %v19641_v19  ;;  %v19644_v32 = vmov 0  ;;  %v14713_v15 = vpop.trf.xlu1 }
 0x8b8   :  { %19638 = vst [vmem:[#allocation81_spill] sm:$0xff] %v14684_v31  ;;  %v14689_v37 = vsel %vm19639_vm8, 1, %v17017_v55  ;;  %vm14696_vm11 = vmand %vm19643_vm6, %vm19642_vm3  ;;  %vm19647_vm15 = vnez %v19646_v11  ;;  %vm19648_vm9 = vcmp.eq.s32.totalorder %v14103_v53, %v12859_v49  ;;  %v19649_v33 = vmov 0  ;;  %v19652_v11 = vld [vmem:[#allocation195_spill] sm:$0xff]  ;;  %v19773_v53 = vld [vmem:[#allocation48_spill] sm:$0xff] }
 0x8b9   :  { %19640 = vst [vmem:[#allocation83_spill] sm:$0xff] %v14689_v37  ;;  %v19645_v32 = vsel %vm14696_vm11, 4294967295, %v19644_v32  ;;  %vm14705_vm5 = vmand %vm19648_vm9, %vm19647_vm15  ;;  %v14718_v19 = vsel %vm14441_vm12, 1, %v17017_v55  ;;  %vm19653_vm6 = vcmp.gt.f32.partialorder %v19652_v11, %v5470_v36  ;;  %vm19654_vm15 = vcmp.eq.s32.totalorder %v14037_v42, %v12805_v63  ;;  %v19661_v37 = vld [vmem:[#allocation133_spill] sm:$0xff] }
 0x8ba   :  { %v19650_v33 = vsel %vm14705_vm5, 4294967295, %v19649_v33  ;;  %19651 = vst [vmem:[#allocation85_spill] sm:$0xff] %v14718_v19  ;;  %vm14726_vm3 = vmand %vm19654_vm15, %vm19653_vm6  ;;  %vm19657_vm9 = vcmp.gt.f32.partialorder %v19652_v11, %v5629_v34  ;;  %vm19658_vm4 = vcmp.eq.s32.totalorder %v14037_v42, %v12807_v21  ;;  %vm19662_vm12 = vnez %v19661_v37 }
 0x8bb   :  { %vm14736_vm8 = vmand %vm19658_vm4, %vm19657_vm9  ;;  %vm19663_vm5 = vcmp.eq.s32.totalorder %v14129_v29, %v12805_v63  ;;  %v14758_v37 = vsel %vm14459_vm0, 1, %v17017_v55  ;;  %v4345_v11 = vsel %vm14573_vm13, 1, %v17017_v55  ;;  %v4346_v19 = vsel %vm14600_vm10, 1, %v17017_v55 }
 0x8bc   :  { %vm14745_vm11 = vmand %vm19663_vm5, %vm19662_vm12  ;;  %19666 = vst [vmem:[#allocation86_spill] sm:$0xff] %v14758_v37  ;;  %vm19668_vm5 = vnez %v19667_v1  ;;  %vm19669_vm9 = vcmp.eq.s32.totalorder %v14129_v29, %v12807_v21  ;;  %v14780_v8 = vsel %vm14484_vm1, 1, %v17017_v55  ;;  %v4347_v12 = vsel %vm14620_vm2, 1, %v17017_v55  ;;  %v19678_v37 = vld [vmem:[#allocation255_spill] sm:$0xff] }
 0x8bd   :  { %vm14771_vm12 = vmand %vm19669_vm9, %vm19668_vm5  ;;  %19672 = vst [vmem:[#allocation31_spill] sm:$0xff] %v14780_v8  ;;  %vm19674_vm10 = vnez %v19673_v9  ;;  %vm19675_vm13 = vcmp.eq.s32.totalorder %v14037_v42, %v12809_v52  ;;  %v19676_v1 = vmov 0  ;;  %vm19679_vm9 = vnez %v19678_v37  ;;  %v19694_v8 = vld [vmem:[#allocation88_spill] sm:$0xff] }
 0x8be   :  { %vm14790_vm5 = vmand %vm19675_vm13, %vm19674_vm10  ;;  %vm19680_vm4 = vcmp.eq.s32.totalorder %v14037_v42, %v12859_v49  ;;  %v19681_v5 = vmov 0  ;;  %vm19684_vm2 = vnez %v19683_v44  ;;  %vm19685_vm15 = vcmp.eq.s32.totalorder %v14129_v29, %v12809_v52 }
 0x8bf   :  { %v19677_v1 = vsel %vm14790_vm5, 4294967295, %v19676_v1  ;;  %vm14799_vm1 = vmand %vm19680_vm4, %vm19679_vm9  ;;  %vm19688_vm4 = vnez %v19579_v38  ;;  %vm19690_vm9 = vnez %v19584_v18  ;;  %vm19696_vm13 = vcmp.eq.s32.totalorder %v14129_v29, %v12859_v49  ;;  %v19699_v38 = vld [vmem:[#allocation47_spill] sm:$0xff]  ;;  %v14993_v31 = vpop.trf.xlu1 }
 0x8c0   :  { %v19682_v5 = vsel %vm14799_vm1, 4294967295, %v19681_v5  ;;  %vm14808_vm0 = vmand %vm19685_vm15, %vm19684_vm2  ;;  %v14819_v42 = vsel %vm19688_vm4, 1, %v17017_v55  ;;  %v14824_v37 = vsel %vm19690_vm9, 1, %v17017_v55  ;;  %vm19692_vm15 = vnez %v19590_v35  ;;  %v19706_v35 = vld [vmem:[#allocation186_spill] sm:$0xff] }
 0x8c1   :  { %19689 = vst [vmem:[#allocation100_spill] sm:$0xff] %v14819_v42  ;;  %v14829_v44 = vsel %vm19692_vm15, 1, %v17017_v55  ;;  %vm19695_vm2 = vnez %v19694_v8  ;;  %vm19700_vm15 = vcmp.gt.f32.partialorder %v19699_v38, %v5470_v36  ;;  %vm19701_vm1 = vcmp.eq.s32.totalorder %v14421_v39, %v12805_v63  ;;  %v19713_v38 = vld [vmem:[#allocation188_spill] sm:$0xff] }
 0x8c2   :  { %19691 = vst [vmem:[#allocation101_spill] sm:$0xff] %v14824_v37  ;;  %vm14836_vm10 = vmand %vm19696_vm13, %vm19695_vm2  ;;  %v19702_v18 = vmov 0  ;;  %vm19704_vm4 = vnez %v19598_v28  ;;  %vm19707_vm9 = vnez %v19706_v35  ;;  %vm19714_vm6 = vnez %v19713_v38 }
 0x8c3   :  { %19693 = vst [vmem:[#allocation102_spill] sm:$0xff] %v14829_v44  ;;  %vm14850_vm5 = vmand %vm19701_vm1, %vm19700_vm15  ;;  %v14861_v29 = vsel %vm19704_vm4, 1, %v17017_v55  ;;  %vm19708_vm1 = vcmp.eq.s32.totalorder %v14421_v39, %v12807_v21  ;;  %vm19711_vm4 = vnez %v19610_v4  ;;  %v19716_v35 = vmov 0  ;;  %v14897_v4 = vpop.trf.xlu0 }
 0x8c4   :  { %v19703_v18 = vsel %vm14850_vm5, 4294967295, %v19702_v18  ;;  %19705 = vst [vmem:[#allocation33_spill] sm:$0xff] %v14861_v29  ;;  %vm14869_vm15 = vmand %vm19708_vm1, %vm19707_vm9  ;;  %v14880_v28 = vsel %vm19711_vm4, 1, %v17017_v55  ;;  %vm19715_vm5 = vcmp.eq.s32.totalorder %v14421_v39, %v12809_v52  ;;  %v14902_v38 = vsel %vm14653_vm14, 1, %v17017_v55  ;;  %v19721_v29 = vld [vmem:[#allocation189_spill] sm:$0xff] }
 0x8c5   :  { %19712 = vst [vmem:[#allocation103_spill] sm:$0xff] %v14880_v28  ;;  %vm14887_vm9 = vmand %vm19715_vm5, %vm19714_vm6  ;;  %vm19719_vm6 = vcmp.gt.s32.totalorder %v13746_v50, %v4345_v11  ;;  %vm19720_vm5 = vcmp.gt.s32.totalorder %v13775_v46, %v4346_v19  ;;  %vm19722_vm4 = vnez %v19721_v29  ;;  %vm19723_vm13 = vcmp.eq.s32.totalorder %v14421_v39, %v12859_v49 }
 0x8c6   :  { %v19717_v35 = vsel %vm14887_vm9, 4294967295, %v19716_v35  ;;  %19718 = vst [vmem:[#allocation104_spill] sm:$0xff] %v14902_v38  ;;  %v4714_v37 = vsel %vm19719_vm6, %v13746_v50, %v4345_v11  ;;  %v4849_v28 = vsel %vm19720_vm5, %v13775_v46, %v4346_v19  ;;  %vm14915_vm2 = vmand %vm19723_vm13, %vm19722_vm4  ;;  %v19724_v44 = vmov 0  ;;  %v14962_v11 = vpop.trf.xlu2  ;;  %v19756_v38 = vld [vmem:[#allocation262_spill] sm:$0xff] }
 0x8c7   :  { %v19725_v44 = vsel %vm14915_vm2, 4294967295, %v19724_v44  ;;  %v14924_v50 = vsel %vm14669_vm7, 1, %v17017_v55  ;;  %vm19727_vm6 = vcmp.gt.s32.totalorder %v13814_v7, %v4347_v12  ;;  %vm19729_vm5 = vcmp.gt.f32.partialorder %v19728_v59, %v5470_v36  ;;  %v15275_v62 = vpop.trf.xlu1  ;;  %v19904_v19 = vld [vmem:[#allocation182_spill] sm:$0xff] }
 0x8c8   :  { %19726 = vst [vmem:[#allocation106_spill] sm:$0xff] %v14924_v50  ;;  %v4984_v46 = vsel %vm19727_vm6, %v13814_v7, %v4347_v12  ;;  %vm19730_vm13 = vcmp.eq.s32.totalorder %v14357_v61, %v12805_v63  ;;  %vm19733_vm14 = vcmp.gt.f32.partialorder %v19728_v59, %v5629_v34  ;;  %vm19734_vm7 = vcmp.eq.s32.totalorder %v14357_v61, %v12807_v21  ;;  %v19737_v7 = vld [vmem:[#allocation147_spill] sm:$0xff]  ;;  %v19747_v50 = vld [vmem:[#allocation150_spill] sm:$0xff] }
 0x8c9   :  { %vm14935_vm4 = vmand %vm19730_vm13, %vm19729_vm5  ;;  %vm19738_vm6 = vnez %v19737_v7  ;;  %vm19739_vm2 = vcmp.eq.s32.totalorder %v14447_v13, %v12805_v63  ;;  %v4348_v12 = vsel %vm14745_vm11, 1, %v17017_v55  ;;  %v4349_v29 = vsel %vm14771_vm12, 1, %v17017_v55  ;;  %v19742_v7 = vld [vmem:[#allocation261_spill] sm:$0xff] }
 0x8ca   :  { %vm14945_vm1 = vmand %vm19734_vm7, %vm19733_vm14  ;;  %v4350_v59 = vsel %vm14808_vm0, 1, %v17017_v55  ;;  %vm19744_vm14 = vcmp.eq.s32.totalorder %v14357_v61, %v12809_v52  ;;  %v19745_v42 = vmov 0  ;;  %vm19749_vm11 = vcmp.eq.s32.totalorder %v14447_v13, %v12807_v21 }
 0x8cb   :  { %vm14954_vm9 = vmand %vm19739_vm2, %vm19738_vm6  ;;  %vm19743_vm2 = vnez %v19742_v7  ;;  %vm19748_vm6 = vnez %v19747_v50  ;;  %vm19752_vm0 = vnez %v19645_v32  ;;  %v4351_v7 = vsel %vm14836_vm10, 1, %v17017_v55  ;;  %v19761_v32 = vld [vmem:[#allocation123_spill] sm:$0xff] }
 0x8cc   :  { %vm14978_vm7 = vmand %vm19744_vm14, %vm19743_vm2  ;;  %v14998_v9 = vsel %vm19752_vm0, 1, %v17017_v55  ;;  %vm19754_vm2 = vnez %v19650_v33  ;;  %vm19757_vm14 = vnez %v19756_v38  ;;  %v19759_v22 = vmov 0  ;;  %v19768_v38 = vld [vmem:[#allocation128_spill] sm:$0xff] }
 0x8cd   :  { %v19746_v42 = vsel %vm14978_vm7, 4294967295, %v19745_v42  ;;  %vm14987_vm13 = vmand %vm19749_vm11, %vm19748_vm6  ;;  %19753 = vst [vmem:[#allocation62_spill] sm:$0xff] %v14998_v9  ;;  %v15003_v50 = vsel %vm19754_vm2, 1, %v17017_v55  ;;  %vm19758_vm6 = vcmp.eq.s32.totalorder %v14357_v61, %v12859_v49  ;;  %vm19762_vm0 = vnez %v19761_v32  ;;  %v19850_v32 = vld [vmem:[#allocation117_spill] sm:$0xff] }
 0x8ce   :  { %19755 = vst [vmem:[#allocation139_spill] sm:$0xff] %v15003_v50  ;;  %vm15013_vm11 = vmand %vm19758_vm6, %vm19757_vm14  ;;  %vm19763_vm12 = vcmp.eq.s32.totalorder %v14447_v13, %v12809_v52  ;;  %v15031_v61 = vsel %vm14726_vm3, 1, %v17017_v55  ;;  %v15036_v25 = vsel %vm14736_vm8, 1, %v17017_v55  ;;  %vm19769_vm14 = vnez %v19768_v38  ;;  %v19806_v50 = vld [vmem:[#allocation136_spill] sm:$0xff] }
 0x8cf   :  { %v19760_v22 = vsel %vm15013_vm11, 4294967295, %v19759_v22  ;;  %vm15022_vm2 = vmand %vm19763_vm12, %vm19762_vm0  ;;  %19766 = vst [vmem:[#allocation87_spill] sm:$0xff] %v15031_v61  ;;  %vm19770_vm12 = vcmp.eq.s32.totalorder %v14447_v13, %v12859_v49  ;;  %vm19774_vm11 = vcmp.gt.f32.partialorder %v19773_v53, %v5470_v36  ;;  %vm19775_vm7 = vcmp.eq.s32.totalorder %v14679_v40, %v12805_v63  ;;  %v19782_v53 = vld [vmem:[#allocation190_spill] sm:$0xff] }
 0x8d0   :  { %19767 = vst [vmem:[#allocation144_spill] sm:$0xff] %v15036_v25  ;;  %vm15043_vm6 = vmand %vm19770_vm12, %vm19769_vm14  ;;  %v19776_v13 = vmov 0  ;;  %vm19778_vm3 = vnez %v19677_v1  ;;  %vm19780_vm0 = vnez %v19682_v5  ;;  %vm19783_vm5 = vnez %v19782_v53  ;;  %v19787_v1 = vld [vmem:[#allocation116_spill] sm:$0xff]  ;;  %v19792_v53 = vld [vmem:[#allocation137_spill] sm:$0xff] }
 0x8d1   :  { %vm15058_vm14 = vmand %vm19775_vm7, %vm19774_vm11  ;;  %v15067_v24 = vsel %vm19778_vm3, 1, %v17017_v55  ;;  %v15072_v38 = vsel %vm19780_vm0, 1, %v17017_v55  ;;  %vm19784_vm7 = vcmp.eq.s32.totalorder %v14679_v40, %v12807_v21  ;;  %v19785_v61 = vmov 0 }
 0x8d2   :  { %v19777_v13 = vsel %vm15058_vm14, 4294967295, %v19776_v13  ;;  %19779 = vst [vmem:[#allocation35_spill] sm:$0xff] %v15067_v24  ;;  %vm15079_vm11 = vmand %vm19784_vm7, %vm19783_vm5  ;;  %vm19788_vm3 = vnez %v19787_v1  ;;  %vm19789_vm10 = vcmp.eq.s32.totalorder %v14679_v40, %v12809_v52  ;;  %v19790_v5 = vmov 0  ;;  %v19797_v24 = vld [vmem:[#allocation165_spill] sm:$0xff] }
 0x8d3   :  { %19781 = vst [vmem:[#allocation110_spill] sm:$0xff] %v15072_v38  ;;  %v19786_v61 = vsel %vm15079_vm11, 4294967295, %v19785_v61  ;;  %vm15090_vm0 = vmand %vm19789_vm10, %vm19788_vm3  ;;  %vm19793_vm8 = vnez %v19792_v53  ;;  %vm19794_vm5 = vcmp.eq.s32.totalorder %v14679_v40, %v12859_v49  ;;  %v19795_v38 = vmov 0 }
 0x8d4   :  { %v19791_v5 = vsel %vm15090_vm0, 4294967295, %v19790_v5  ;;  %vm15099_vm7 = vmand %vm19794_vm5, %vm19793_vm8  ;;  %vm19798_vm12 = vnez %v19797_v24  ;;  %vm19799_vm11 = vcmp.eq.s32.totalorder %v14713_v15, %v12805_v63  ;;  %vm19805_vm10 = vcmp.gt.s32.totalorder %v4849_v28, %v4350_v59 }
 0x8d5   :  { %v19796_v38 = vsel %vm15099_vm7, 4294967295, %v19795_v38  ;;  %vm15108_vm14 = vmand %vm19799_vm11, %vm19798_vm12  ;;  %vm19802_vm7 = vnez %v19703_v18  ;;  %vm19803_vm12 = vcmp.gt.s32.totalorder %v14127_v51, %v4348_v12  ;;  %vm19804_vm11 = vcmp.gt.s32.totalorder %v4714_v37, %v4349_v29  ;;  %v19811_v18 = vld [vmem:[#allocation168_spill] sm:$0xff] }
 0x8d6   :  { %v15123_v40 = vsel %vm19802_vm7, 1, %v17017_v55  ;;  %v4581_v24 = vsel %vm19803_vm12, %v14127_v51, %v4348_v12  ;;  %v4716_v53 = vsel %vm19804_vm11, %v4714_v37, %v4349_v29  ;;  %v4851_v25 = vsel %vm19805_vm10, %v4849_v28, %v4350_v59 }
 0x8d7   :  { %vm19807_vm3 = vcmp.gt.f32.partialorder %v19806_v50, %v5470_v36  ;;  %vm19808_vm8 = vcmp.eq.s32.totalorder %v14630_v23, %v12805_v63  ;;  %v19809_v9 = vmov 0  ;;  %vm19812_vm7 = vnez %v19811_v18  ;;  %v19831_v18 = vld [vmem:[#allocation265_spill] sm:$0xff] }
 0x8d8   :  { %vm15136_vm5 = vmand %vm19808_vm8, %vm19807_vm3  ;;  %vm19813_vm0 = vcmp.eq.s32.totalorder %v14713_v15, %v12807_v21  ;;  %v19814_v51 = vmov 0  ;;  %v15152_v37 = vsel %vm14869_vm15, 1, %v17017_v55  ;;  %vm19816_vm10 = vcmp.gt.s32.totalorder %v4984_v46, %v4351_v7 }
 0x8d9   :  { %v19810_v9 = vsel %vm15136_vm5, 4294967295, %v19809_v9  ;;  %vm15145_vm12 = vmand %vm19813_vm0, %vm19812_vm7  ;;  %v4986_v28 = vsel %vm19816_vm10, %v4984_v46, %v4351_v7  ;;  %vm19817_vm3 = vcmp.gt.f32.partialorder %v19806_v50, %v5629_v34  ;;  %vm19818_vm8 = vcmp.eq.s32.totalorder %v14630_v23, %v12807_v21  ;;  %v19825_v46 = vld [vmem:[#allocation169_spill] sm:$0xff] }
 0x8da   :  { %v19815_v51 = vsel %vm15145_vm12, 4294967295, %v19814_v51  ;;  %vm15161_vm11 = vmand %vm19818_vm8, %vm19817_vm3  ;;  %vm19821_vm0 = vnez %v18797_v54  ;;  %vm19822_vm7 = vcmp.eq.s32.totalorder %v14630_v23, %v12809_v52  ;;  %vm19826_vm15 = vnez %v19825_v46  ;;  %v15187_v54 = vpop.trf.xlu0 }
 0x8db   :  { %vm15170_vm5 = vmand %vm19822_vm7, %vm19821_vm0  ;;  %vm19827_vm10 = vcmp.eq.s32.totalorder %v14713_v15, %v12809_v52  ;;  %vm19830_vm0 = vnez %v19717_v35  ;;  %v4352_v50 = vsel %vm14954_vm9, 1, %v17017_v55  ;;  %v4353_v7 = vsel %vm14987_vm13, 1, %v17017_v55  ;;  %v19836_v35 = vld [vmem:[#allocation170_spill] sm:$0xff] }
 0x8dc   :  { %vm15179_vm12 = vmand %vm19827_vm10, %vm19826_vm15  ;;  %v15192_v59 = vsel %vm19830_vm0, 1, %v17017_v55  ;;  %vm19832_vm7 = vnez %v19831_v18  ;;  %vm19833_vm15 = vcmp.eq.s32.totalorder %v14630_v23, %v12859_v49  ;;  %vm19837_vm0 = vnez %v19836_v35  ;;  %v19843_v18 = vld [vmem:[#allocation49_spill] sm:$0xff] }
 0x8dd   :  { %vm15205_vm10 = vmand %vm19833_vm15, %vm19832_vm7  ;;  %vm19838_vm8 = vcmp.eq.s32.totalorder %v14713_v15, %v12859_v49  ;;  %vm19841_vm13 = vnez %v19725_v44  ;;  %v4354_v57 = vsel %vm15022_vm2, 1, %v17017_v55  ;;  %v4355_v15 = vsel %vm15043_vm6, 1, %v17017_v55 }
 0x8de   :  { %vm15214_vm3 = vmand %vm19838_vm8, %vm19837_vm0  ;;  %v15223_v23 = vsel %vm19841_vm13, 1, %v17017_v55  ;;  %vm19844_vm8 = vcmp.gt.f32.partialorder %v19843_v18, %v5470_v36  ;;  %vm19845_vm7 = vcmp.eq.s32.totalorder %v14962_v11, %v12805_v63  ;;  %v15246_v44 = vsel %vm14935_vm4, 1, %v17017_v55 }
 0x8df   :  { %19842 = vst [vmem:[#allocation89_spill] sm:$0xff] %v15223_v23  ;;  %vm15237_vm15 = vmand %vm19845_vm7, %vm19844_vm8  ;;  %v15251_v33 = vsel %vm14945_vm1, 1, %v17017_v55  ;;  %vm19851_vm2 = vnez %v19850_v32  ;;  %vm19852_vm6 = vcmp.eq.s32.totalorder %v14962_v11, %v12807_v21  ;;  %v19853_v18 = vmov 0  ;;  %v19855_v23 = vld [vmem:[#allocation32_spill] sm:$0xff] }
 0x8e0   :  { %19848 = vst [vmem:[#allocation112_spill] sm:$0xff] %v15246_v44  ;;  %vm15258_vm13 = vmand %vm19852_vm6, %vm19851_vm2  ;;  %vm19856_vm8 = vnez %v19855_v23  ;;  %vm19857_vm4 = vcmp.eq.s32.totalorder %v14962_v11, %v12809_v52  ;;  %v19858_v39 = vmov 0  ;;  %vm19860_vm2 = vnez %v19746_v42  ;;  %v19862_v23 = vld [vmem:[#allocation72_spill] sm:$0xff] }
 0x8e1   :  { %19849 = vst [vmem:[#allocation91_spill] sm:$0xff] %v15251_v33  ;;  %v19854_v18 = vsel %vm15258_vm13, 4294967295, %v19853_v18  ;;  %vm15267_vm7 = vmand %vm19857_vm4, %vm19856_vm8  ;;  %v15280_v32 = vsel %vm19860_vm2, 1, %v17017_v55  ;;  %vm19863_vm8 = vnez %v19862_v23  ;;  %vm19864_vm4 = vcmp.eq.s32.totalorder %v14962_v11, %v12859_v49 }
 0x8e2   :  { %v19859_v39 = vsel %vm15267_vm7, 4294967295, %v19858_v39  ;;  %19861 = vst [vmem:[#allocation93_spill] sm:$0xff] %v15280_v32  ;;  %vm15287_vm7 = vmand %vm19864_vm4, %vm19863_vm8  ;;  %v19865_v44 = vmov 0  ;;  %vm19867_vm0 = vcmp.gt.f32.partialorder %v9600_v27, %v5470_v36  ;;  %vm19868_vm1 = vcmp.eq.s32.totalorder %v14897_v4, %v12805_v63 }
 0x8e3   :  { %v19866_v44 = vsel %vm15287_vm7, 4294967295, %v19865_v44  ;;  %vm15297_vm13 = vmand %vm19868_vm1, %vm19867_vm0  ;;  %vm19871_vm9 = vnez %v19760_v22  ;;  %vm19873_vm6 = vcmp.gt.f32.partialorder %v9600_v27, %v5629_v34  ;;  %vm19874_vm7 = vcmp.eq.s32.totalorder %v14897_v4, %v12807_v21 }
 0x8e4   :  { %v15306_v11 = vsel %vm19871_vm9, 1, %v17017_v55  ;;  %vm15314_vm0 = vmand %vm19874_vm7, %vm19873_vm6  ;;  %v19875_v23 = vmov 0  ;;  %v4356_v22 = vsel %vm15108_vm14, 1, %v17017_v55  ;;  %vm19877_vm9 = vnez %v19815_v51 }
 0x8e5   :  { %19872 = vst [vmem:[#allocation113_spill] sm:$0xff] %v15306_v11  ;;  %v19876_v23 = vsel %vm15314_vm0, 4294967295, %v19875_v23  ;;  %v4357_v11 = vsel %vm19877_vm9, 1, %v17017_v55  ;;  %vm19878_vm2 = vnez %v18867_v6  ;;  %vm19879_vm4 = vcmp.eq.s32.totalorder %v14897_v4, %v12809_v52 }
 0x8e6   :  { %vm15331_vm7 = vmand %vm19879_vm4, %vm19878_vm2  ;;  %v19880_v27 = vmov 0  ;;  %vm19882_vm14 = vnez %v19777_v13  ;;  %vm19883_vm9 = vcmp.gt.s32.totalorder %v4581_v24, %v4352_v50  ;;  %vm19884_vm8 = vcmp.gt.s32.totalorder %v4716_v53, %v4353_v7 }
 0x8e7   :  { %v19881_v27 = vsel %vm15331_vm7, 4294967295, %v19880_v27  ;;  %v15342_v1 = vsel %vm19882_vm14, 1, %v17017_v55  ;;  %v4583_v6 = vsel %vm19883_vm9, %v4581_v24, %v4352_v50  ;;  %v4718_v51 = vsel %vm19884_vm8, %v4716_v53, %v4353_v7 }
 0x8e8   :  { %v4358_v32 = vsel %vm15179_vm12, 1, %v17017_v55  ;;  %vm19885_vm2 = vnez %v18871_v3  ;;  %vm19886_vm4 = vcmp.eq.s32.totalorder %v14897_v4, %v12859_v49  ;;  %v19887_v33 = vmov 0  ;;  %v19892_v4 = vld [vmem:[#allocation180_spill] sm:$0xff] }
 0x8e9   :  { %vm15354_vm6 = vmand %vm19886_vm4, %vm19885_vm2  ;;  %vm19889_vm9 = vnez %v19786_v61  ;;  %vm19890_vm8 = vcmp.gt.s32.totalorder %v4851_v25, %v4354_v57  ;;  %vm19891_vm12 = vcmp.gt.s32.totalorder %v4986_v28, %v4355_v15  ;;  %v4359_v3 = vsel %vm15214_vm3, 1, %v17017_v55 }
 0x8ea   :  { %v19888_v33 = vsel %vm15354_vm6, 4294967295, %v19887_v33  ;;  %v15363_v13 = vsel %vm19889_vm9, 1, %v17017_v55  ;;  %v4853_v24 = vsel %vm19890_vm8, %v4851_v25, %v4354_v57  ;;  %v4988_v53 = vsel %vm19891_vm12, %v4986_v28, %v4355_v15  ;;  %v19897_v28 = vld [vmem:[#allocation127_spill] sm:$0xff] }
 0x8eb   :  { %vm19893_vm2 = vnez %v19892_v4  ;;  %vm19894_vm4 = vcmp.eq.s32.totalorder %v14993_v31, %v12805_v63  ;;  %vm19895_vm9 = vnez %v19791_v5  ;;  %vm19896_vm8 = vnez %v19796_v38  ;;  %v19901_v5 = vld [vmem:[#allocation181_spill] sm:$0xff] }
 0x8ec   :  { %vm4104_vm1 = vmand %vm19894_vm4, %vm19893_vm2  ;;  %v15380_v61 = vsel %vm19895_vm9, 1, %v17017_v55  ;;  %v15385_v25 = vsel %vm19896_vm8, 1, %v17017_v55  ;;  %vm4584_vm3 = vcmp.gt.s32.totalorder %v4583_v6, %v4356_v22  ;;  %vm4719_vm12 = vcmp.gt.s32.totalorder %v4718_v51, %v4357_v11 }
 0x8ed   :  { %vm19898_vm6 = vnez %v19897_v28  ;;  %vm19899_vm2 = vcmp.eq.s32.totalorder %v14993_v31, %v12807_v21  ;;  %vm19900_vm14 = vnez %v19810_v9  ;;  %vm4854_vm9 = vcmp.gt.s32.totalorder %v4853_v24, %v4358_v32 }
 0x8ee   :  { %vm4105_vm4 = vmand %vm19899_vm2, %vm19898_vm6  ;;  %v15395_v29 = vsel %vm19900_vm14, 1, %v17017_v55  ;;  %vm19902_vm7 = vnez %v19901_v5  ;;  %vm19903_vm8 = vcmp.eq.s32.totalorder %v14993_v31, %v12809_v52  ;;  %v4360_v38 = vsel %vm4104_vm1, 1, %v17017_v55 }
 0x8ef   :  { %vm4106_vm0 = vmand %vm19903_vm8, %vm19902_vm7  ;;  %v4361_v50 = vsel %vm4105_vm4, 1, %v17017_v55  ;;  %v15407_v7 = vsel %vm15161_vm11, 1, %v17017_v55  ;;  %v15412_v9 = vsel %vm15170_vm5, 1, %v17017_v55  ;;  %vm4989_vm6 = vcmp.gt.s32.totalorder %v4988_v53, %v4359_v3 }
 0x8f0   :  { %vm19905_vm14 = vnez %v19904_v19  ;;  %vm19906_vm7 = vcmp.eq.s32.totalorder %v14993_v31, %v12859_v49  ;;  %v4362_v57 = vsel %vm4106_vm0, 1, %v17017_v55  ;;  %v15423_v12 = vsel %vm15205_vm10, 1, %v17017_v55 }
 0x8f1   :  { %vm4107_vm2 = vmand %vm19906_vm7, %vm19905_vm14  ;;  %v4585_v15 = vsel %vm4584_vm3, %v4583_v6, %v4356_v22  ;;  %v4720_v4 = vsel %vm4719_vm12, %v4718_v51, %v4357_v11  ;;  %vm19907_vm5 = vcmp.gt.f32.partialorder %v9671_v2, %v5470_v36  ;;  %vm19908_vm11 = vcmp.eq.s32.totalorder %v15187_v54, %v12805_v63 }
 0x8f2   :  { %v4363_v8 = vsel %vm4107_vm2, 1, %v17017_v55  ;;  %vm15432_vm1 = vmand %vm19908_vm11, %vm19907_vm5  ;;  %v15439_v46 = vsel %vm15237_vm15, 1, %v17017_v55  ;;  %v4855_v28 = vsel %vm4854_vm9, %v4853_v24, %v4358_v32  ;;  %vm4586_vm10 = vcmp.gt.s32.totalorder %v4585_v15, %v4360_v38  ;;  %v19932_v24 = vld [vmem:[#allocation192_spill] sm:$0xff] }
 0x8f3   :  { %vm4721_vm0 = vcmp.gt.s32.totalorder %v4720_v4, %v4361_v50  ;;  %vm19911_vm3 = vcmp.gt.f32.partialorder %v9671_v2, %v5629_v34  ;;  %vm19912_vm12 = vcmp.eq.s32.totalorder %v15187_v54, %v12807_v21  ;;  %vm19915_vm8 = vnez %v19854_v18 }
 0x8f4   :  { %vm15447_vm4 = vmand %vm19912_vm12, %vm19911_vm3  ;;  %v15454_v22 = vsel %vm19915_vm8, 1, %v17017_v55  ;;  %vm19916_vm15 = vnez %v19859_v39  ;;  %v4990_v32 = vsel %vm4989_vm6, %v4988_v53, %v4359_v3  ;;  %vm4856_vm9 = vcmp.gt.s32.totalorder %v4855_v28, %v4362_v57 }
 0x8f5   :  { %v15459_v35 = vsel %vm19916_vm15, 1, %v17017_v55  ;;  %vm19917_vm14 = vnez %v18884_v14  ;;  %vm19918_vm7 = vcmp.eq.s32.totalorder %v15187_v54, %v12809_v52  ;;  %vm19921_vm5 = vnez %v19866_v44  ;;  %v19941_v44 = vld [vmem:[#allocation203_spill] sm:$0xff] }
 0x8f6   :  { %vm15466_vm2 = vmand %vm19918_vm7, %vm19917_vm14  ;;  %v15473_v18 = vsel %vm19921_vm5, 1, %v17017_v55  ;;  %v15478_v39 = vsel %vm15297_vm13, 1, %v17017_v55  ;;  %vm19922_vm6 = vnez %v19876_v23  ;;  %vm4991_vm11 = vcmp.gt.s32.totalorder %v4990_v32, %v4363_v8 }
 0x8f7   :  { %v15483_v14 = vsel %vm19922_vm6, 1, %v17017_v55  ;;  %vm19923_vm3 = vnez %v18889_v58  ;;  %vm19924_vm12 = vcmp.eq.s32.totalorder %v15187_v54, %v12859_v49  ;;  %vm19927_vm15 = vnez %v19881_v27  ;;  %v19929_v58 = vld [vmem:[#allocation191_spill] sm:$0xff] }
 0x8f8   :  { %vm15490_vm8 = vmand %vm19924_vm12, %vm19923_vm3  ;;  %v15497_v42 = vsel %vm19927_vm15, 1, %v17017_v55  ;;  %vm19928_vm13 = vnez %v19888_v33  ;;  %v4587_v6 = vsel %vm4586_vm10, %v4585_v15, %v4360_v38  ;;  %v4722_v51 = vsel %vm4721_vm0, %v4720_v4, %v4361_v50  ;;  %v19935_v38 = vld [vmem:[#allocation193_spill] sm:$0xff] }
 0x8f9   :  { %v15502_v23 = vsel %vm19928_vm13, 1, %v17017_v55  ;;  %vm19930_vm14 = vnez %v19929_v58  ;;  %vm19931_vm7 = vcmp.eq.s32.totalorder %v15275_v62, %v12805_v63  ;;  %v15512_v54 = vsel %vm15432_vm1, 1, %v17017_v55 }
 0x8fa   :  { %vm4108_vm5 = vmand %vm19931_vm7, %vm19930_vm14  ;;  %v15517_v27 = vsel %vm15447_vm4, 1, %v17017_v55  ;;  %v4857_v33 = vsel %vm4856_vm9, %v4855_v28, %v4362_v57  ;;  %vm19933_vm10 = vnez %v19932_v24  ;;  %vm19934_vm0 = vcmp.eq.s32.totalorder %v15275_v62, %v12807_v21  ;;  %v19938_v57 = vld [vmem:[#allocation194_spill] sm:$0xff] }
 0x8fb   :  { %vm4109_vm6 = vmand %vm19934_vm0, %vm19933_vm10  ;;  %v4364_v53 = vsel %vm4108_vm5, 1, %v17017_v55  ;;  %v15528_v3 = vsel %vm15466_vm2, 1, %v17017_v55  ;;  %v4992_v5 = vsel %vm4991_vm11, %v4990_v32, %v4363_v8  ;;  %vm19936_vm1 = vnez %v19935_v38  ;;  %v19947_v38 = vld [vmem:[#allocation222_spill] sm:$0xff] }
 0x8fc   :  { %vm19937_vm4 = vcmp.eq.s32.totalorder %v15275_v62, %v12809_v52  ;;  %v4365_v50 = vsel %vm4109_vm6, 1, %v17017_v55  ;;  %vm4588_vm3 = vcmp.gt.s32.totalorder %v4587_v6, %v4364_v53  ;;  %v15539_v19 = vsel %vm15490_vm8, 1, %v17017_v55 }
 0x8fd   :  { %vm4110_vm9 = vmand %vm19937_vm4, %vm19936_vm1  ;;  %vm19939_vm12 = vnez %v19938_v57  ;;  %vm19940_vm2 = vcmp.eq.s32.totalorder %v15275_v62, %v12859_v49  ;;  %v4589_v4 = vsel %vm4588_vm3, %v4587_v6, %v4364_v53  ;;  %vm4723_vm15 = vcmp.gt.s32.totalorder %v4722_v51, %v4365_v50  ;;  %v19945_v53 = vld [vmem:[#allocation218_spill] sm:$0xff] }
 0x8fe   :  { %vm4111_vm11 = vmand %vm19940_vm2, %vm19939_vm12  ;;  %v4366_v15 = vsel %vm4110_vm9, 1, %v17017_v55  ;;  %vm4590_vm13 = vcmp.gt.s32.totalorder %v4589_v4, %v13287_v56  ;;  %v4724_v31 = vsel %vm4723_vm15, %v4722_v51, %v4365_v50  ;;  %v19942_v51 = vld [vmem:[#allocation197_spill] sm:$0xff] }
 0x8ff   :  { %v4367_v8 = vsel %vm4111_vm11, 1, %v17017_v55  ;;  %vm4858_vm14 = vcmp.gt.s32.totalorder %v4857_v33, %v4366_v15  ;;  %v4591_v28 = vsel %vm4590_vm13, %v4589_v4, %v13287_v56  ;;  %vm4725_vm8 = vcmp.gt.s32.totalorder %v4724_v31, %v13292_v60  ;;  %v19943_v56 = vld [vmem:[#allocation206_spill] sm:$0xff]  ;;  %v19948_v50 = vld [vmem:[#allocation213_spill] sm:$0xff] }
 0x900   :  { %v4859_v11 = vsel %vm4858_vm14, %v4857_v33, %v4366_v15  ;;  %vm4993_vm7 = vcmp.gt.s32.totalorder %v4992_v5, %v4367_v8  ;;  %vm4592_vm5 = vcmp.gt.s32.totalorder %v4591_v28, %v13339_v26  ;;  %v4726_v62 = vsel %vm4725_vm8, %v4724_v31, %v13292_v60  ;;  %v19944_v33 = vld [vmem:[#allocation201_spill] sm:$0xff]  ;;  %v19949_v4 = vld [vmem:[#allocation234_spill] sm:$0xff]  ;;  %v19950_v31 = vld [vmem:[#allocation220_spill] sm:$0xff] }
 0x901   :  { %vm4860_vm10 = vcmp.gt.s32.totalorder %v4859_v11, %v13329_v20  ;;  %v4994_v32 = vsel %vm4993_vm7, %v4992_v5, %v4367_v8  ;;  %v4593_v2 = vsel %vm4592_vm5, %v4591_v28, %v13339_v26  ;;  %vm4727_vm0 = vcmp.gt.s32.totalorder %v4726_v62, %v19941_v44  ;;  %v19946_v5 = vld [vmem:[#allocation204_spill] sm:$0xff]  ;;  %v19951_v28 = vld [vmem:[#allocation249_spill] sm:$0xff] }
 0x902   :  { %v4861_v6 = vsel %vm4860_vm10, %v4859_v11, %v13329_v20  ;;  %vm4995_vm6 = vcmp.gt.s32.totalorder %v4994_v32, %v19942_v51  ;;  %vm4594_vm1 = vcmp.gt.s32.totalorder %v4593_v2, %v19943_v56  ;;  %v4728_v58 = vsel %vm4727_vm0, %v4726_v62, %v19941_v44  ;;  %v19952_v62 = vld [vmem:[#allocation229_spill] sm:$0xff]  ;;  %v19953_v44 = vld [vmem:[#allocation243_spill] sm:$0xff] }
 0x903   :  { %vm4862_vm4 = vcmp.gt.s32.totalorder %v4861_v6, %v19944_v33  ;;  %v4996_v24 = vsel %vm4995_vm6, %v4994_v32, %v19942_v51  ;;  %v4595_v60 = vsel %vm4594_vm1, %v4593_v2, %v19943_v56  ;;  %vm4729_vm9 = vcmp.gt.s32.totalorder %v4728_v58, %v19945_v53  ;;  %v19954_v51 = vld [vmem:[#allocation235_spill] sm:$0xff] }
 0x904   :  { %v4863_v26 = vsel %vm4862_vm4, %v4861_v6, %v19944_v33  ;;  %vm4997_vm3 = vcmp.gt.s32.totalorder %v4996_v24, %v19946_v5  ;;  %vm4596_vm12 = vcmp.gt.s32.totalorder %v4595_v60, %v19947_v38  ;;  %v4730_v20 = vsel %vm4729_vm9, %v4728_v58, %v19945_v53  ;;  %v19955_v56 = vld [vmem:[#allocation259_spill] sm:$0xff]  ;;  %v19956_v33 = vld [vmem:[#allocation250_spill] sm:$0xff] }
 0x905   :  { %vm4864_vm2 = vcmp.gt.s32.totalorder %v4863_v26, %v19948_v50  ;;  %v4998_v57 = vsel %vm4997_vm3, %v4996_v24, %v19946_v5  ;;  %v4597_v15 = vsel %vm4596_vm12, %v4595_v60, %v19947_v38  ;;  %vm4731_vm11 = vcmp.gt.s32.totalorder %v4730_v20, %v19949_v4  ;;  %v19957_v53 = vld [vmem:[#allocation23_spill] sm:$0xff]  ;;  %v19958_v5 = vld [vmem:[#allocation244_spill] sm:$0xff] }
 0x906   :  { %v4865_v8 = vsel %vm4864_vm2, %v4863_v26, %v19948_v50  ;;  %vm4999_vm15 = vcmp.gt.s32.totalorder %v4998_v57, %v19950_v31  ;;  %vm4598_vm13 = vcmp.gt.s32.totalorder %v4597_v15, %v19951_v28  ;;  %v4732_v11 = vsel %vm4731_vm11, %v4730_v20, %v19949_v4  ;;  %v19959_v20 = vld [vmem:[#allocation25_spill] sm:$0xff]  ;;  %v19960_v4 = vld [vmem:[#allocation30_spill] sm:$0xff] }
 0x907   :  { %vm4866_vm14 = vcmp.gt.s32.totalorder %v4865_v8, %v19952_v62  ;;  %v5000_v32 = vsel %vm4999_vm15, %v4998_v57, %v19950_v31  ;;  %v4599_v2 = vsel %vm4598_vm13, %v4597_v15, %v19951_v28  ;;  %vm4733_vm8 = vcmp.gt.s32.totalorder %v4732_v11, %v19953_v44 }
 0x908   :  { %v4867_v6 = vsel %vm4866_vm14, %v4865_v8, %v19952_v62  ;;  %vm5001_vm7 = vcmp.gt.s32.totalorder %v5000_v32, %v19954_v51  ;;  %vm4600_vm5 = vcmp.gt.s32.totalorder %v4599_v2, %v19955_v56  ;;  %v4734_v58 = vsel %vm4733_vm8, %v4732_v11, %v19953_v44 }
 0x909   :  { %vm4868_vm10 = vcmp.gt.s32.totalorder %v4867_v6, %v19956_v33  ;;  %v5002_v24 = vsel %vm5001_vm7, %v5000_v32, %v19954_v51  ;;  %v4601_v60 = vsel %vm4600_vm5, %v4599_v2, %v19955_v56  ;;  %vm4735_vm0 = vcmp.gt.s32.totalorder %v4734_v58, %v19957_v53  ;;  %v19961_v32 = vld [vmem:[#allocation52_spill] sm:$0xff]  ;;  %v19962_v2 = vld [vmem:[#allocation57_spill] sm:$0xff] }
 0x90a   :  { %v4869_v26 = vsel %vm4868_vm10, %v4867_v6, %v19956_v33  ;;  %vm5003_vm6 = vcmp.gt.s32.totalorder %v5002_v24, %v19958_v5  ;;  %vm4602_vm1 = vcmp.gt.s32.totalorder %v4601_v60, %v14167_v0  ;;  %v4736_v38 = vsel %vm4735_vm0, %v4734_v58, %v19957_v53  ;;  %v19963_v6 = vld [vmem:[#allocation64_spill] sm:$0xff]  ;;  %v19965_v51 = vld [vmem:[#allocation73_spill] sm:$0xff]  ;;  %v19967_v33 = vld [vmem:[#allocation75_spill] sm:$0xff] }
 0x90b   :  { %vm4870_vm4 = vcmp.gt.s32.totalorder %v4869_v26, %v19959_v20  ;;  %v5004_v50 = vsel %vm5003_vm6, %v5002_v24, %v19958_v5  ;;  %v4603_v57 = vsel %vm4602_vm1, %v4601_v60, %v14167_v0  ;;  %vm4737_vm9 = vcmp.gt.s32.totalorder %v4736_v38, %v14172_v16  ;;  %v19966_v56 = vld [vmem:[#allocation65_spill] sm:$0xff]  ;;  %v19968_v24 = vld [vmem:[#allocation66_spill] sm:$0xff] }
 0x90c   :  { %v4871_v15 = vsel %vm4870_vm4, %v4869_v26, %v19959_v20  ;;  %vm5005_vm3 = vcmp.gt.s32.totalorder %v5004_v50, %v19960_v4  ;;  %vm4604_vm12 = vcmp.gt.s32.totalorder %v4603_v57, %v14273_v47  ;;  %v4738_v8 = vsel %vm4737_vm9, %v4736_v38, %v14172_v16  ;;  %v19969_v60 = vld [vmem:[#allocation85_spill] sm:$0xff]  ;;  %v19970_v26 = vld [vmem:[#allocation76_spill] sm:$0xff]  ;;  %v15634_v38 = vpop.trf.xlu1 }
 0x90d   :  { %vm4872_vm2 = vcmp.gt.s32.totalorder %v4871_v15, %v14177_v17  ;;  %v5006_v31 = vsel %vm5005_vm3, %v5004_v50, %v19960_v4  ;;  %v4605_v28 = vsel %vm4604_vm12, %v4603_v57, %v14273_v47  ;;  %vm4739_vm11 = vcmp.gt.s32.totalorder %v4738_v8, %v14278_v30  ;;  %v19971_v50 = vld [vmem:[#allocation86_spill] sm:$0xff]  ;;  %v19973_v4 = vld [vmem:[#allocation104_spill] sm:$0xff] }
 0x90e   :  { %v4873_v0 = vsel %vm4872_vm2, %v4871_v15, %v14177_v17  ;;  %vm5007_vm15 = vcmp.gt.s32.totalorder %v5006_v31, %v14212_v10  ;;  %vm4606_vm13 = vcmp.gt.s32.totalorder %v4605_v28, %v14367_v43  ;;  %v4740_v11 = vsel %vm4739_vm11, %v4738_v8, %v14278_v30  ;;  %v19972_v15 = vld [vmem:[#allocation77_spill] sm:$0xff] }
 0x90f   :  { %vm4874_vm14 = vcmp.gt.s32.totalorder %v4873_v0, %v14295_v48  ;;  %v5008_v16 = vsel %vm5007_vm15, %v5006_v31, %v14212_v10  ;;  %v4607_v62 = vsel %vm4606_vm13, %v4605_v28, %v14367_v43  ;;  %vm4741_vm8 = vcmp.gt.s32.totalorder %v4740_v11, %v14372_v41  ;;  %v19964_v43 = vld [vmem:[#allocation58_spill] sm:$0xff]  ;;  %v19974_v31 = vld [vmem:[#allocation31_spill] sm:$0xff] }
 0x910   :  { %v4875_v47 = vsel %vm4874_vm14, %v4873_v0, %v14295_v48  ;;  %vm5009_vm7 = vcmp.gt.s32.totalorder %v5008_v16, %v19961_v32  ;;  %vm4608_vm5 = vcmp.gt.s32.totalorder %v4607_v62, %v14472_v45  ;;  %v4742_v17 = vsel %vm4741_vm8, %v4740_v11, %v14372_v41  ;;  %v19975_v11 = vld [vmem:[#allocation106_spill] sm:$0xff] }
 0x911   :  { %vm4876_vm10 = vcmp.gt.s32.totalorder %v4875_v47, %v19962_v2  ;;  %v5010_v30 = vsel %vm5009_vm7, %v5008_v16, %v19961_v32  ;;  %v4609_v44 = vsel %vm4608_vm5, %v4607_v62, %v14472_v45  ;;  %vm4743_vm0 = vcmp.gt.s32.totalorder %v4742_v17, %v19963_v6  ;;  %v19976_v62 = vld [vmem:[#allocation100_spill] sm:$0xff]  ;;  %v19977_v32 = vld [vmem:[#allocation62_spill] sm:$0xff] }
 0x912   :  { %v4877_v10 = vsel %vm4876_vm10, %v4875_v47, %v19962_v2  ;;  %vm5011_vm6 = vcmp.gt.s32.totalorder %v5010_v30, %v19964_v43  ;;  %vm4610_vm1 = vcmp.gt.s32.totalorder %v4609_v44, %v19965_v51  ;;  %v4744_v48 = vsel %vm4743_vm0, %v4742_v17, %v19963_v6 }
 0x913   :  { %vm4878_vm4 = vcmp.gt.s32.totalorder %v4877_v10, %v19966_v56  ;;  %v5012_v41 = vsel %vm5011_vm6, %v5010_v30, %v19964_v43  ;;  %v4611_v58 = vsel %vm4610_vm1, %v4609_v44, %v19965_v51  ;;  %vm4745_vm9 = vcmp.gt.s32.totalorder %v4744_v48, %v19967_v33  ;;  %v19978_v44 = vld [vmem:[#allocation139_spill] sm:$0xff]  ;;  %v19979_v51 = vld [vmem:[#allocation89_spill] sm:$0xff] }
 0x914   :  { %v4879_v45 = vsel %vm4878_vm4, %v4877_v10, %v19966_v56  ;;  %vm5013_vm3 = vcmp.gt.s32.totalorder %v5012_v41, %v19968_v24  ;;  %vm4612_vm12 = vcmp.gt.s32.totalorder %v4611_v58, %v19969_v60  ;;  %v4746_v53 = vsel %vm4745_vm9, %v4744_v48, %v19967_v33  ;;  %v19981_v33 = vld [vmem:[#allocation210_spill] sm:$0xff] }
 0x915   :  { %vm4880_vm2 = vcmp.gt.s32.totalorder %v4879_v45, %v19970_v26  ;;  %v5014_v5 = vsel %vm5013_vm3, %v5012_v41, %v19968_v24  ;;  %v4613_v20 = vsel %vm4612_vm12, %v4611_v58, %v19969_v60  ;;  %vm4747_vm11 = vcmp.gt.s32.totalorder %v4746_v53, %v19971_v50  ;;  %v19980_v41 = vld [vmem:[#allocation202_spill] sm:$0xff]  ;;  %v15676_v58 = vpop.trf.xlu1  ;;  %v20010_v24 = vld [vmem:[#allocation29_spill] sm:$0xff] }
 0x916   :  { %v4881_v57 = vsel %vm4880_vm2, %v4879_v45, %v19970_v26  ;;  %vm5015_vm15 = vcmp.gt.s32.totalorder %v5014_v5, %v19972_v15  ;;  %vm4614_vm13 = vcmp.gt.s32.totalorder %v4613_v20, %v19973_v4  ;;  %v4748_v8 = vsel %vm4747_vm11, %v4746_v53, %v19971_v50  ;;  %v19988_v60 = vld [vmem:[#allocation226_spill] sm:$0xff]  ;;  %v19990_v26 = vld [vmem:[#allocation221_spill] sm:$0xff]  ;;  %v19993_v50 = vld [vmem:[#allocation236_spill] sm:$0xff] }
 0x917   :  { %vm4882_vm14 = vcmp.gt.s32.totalorder %v4881_v57, %v19974_v31  ;;  %v5016_v28 = vsel %vm5015_vm15, %v5014_v5, %v19972_v15  ;;  %v4615_v0 = vsel %vm4614_vm13, %v4613_v20, %v19973_v4  ;;  %vm4749_vm8 = vcmp.gt.s32.totalorder %v4748_v8, %v19975_v11  ;;  %v19991_v20 = vld [vmem:[#allocation40_spill] sm:$0xff]  ;;  %v19995_v4 = vld [vmem:[#allocation166_spill] sm:$0xff] }
 0x918   :  { %v4883_v16 = vsel %vm4882_vm14, %v4881_v57, %v19974_v31  ;;  %vm5017_vm7 = vcmp.gt.s32.totalorder %v5016_v28, %v19976_v62  ;;  %vm4616_vm5 = vcmp.gt.s32.totalorder %v4615_v0, %v15123_v40  ;;  %v4750_v47 = vsel %vm4749_vm8, %v4748_v8, %v19975_v11  ;;  %v19994_v15 = vld [vmem:[#allocation228_spill] sm:$0xff]  ;;  %v19997_v31 = vld [vmem:[#allocation242_spill] sm:$0xff]  ;;  %v19998_v11 = vld [vmem:[#allocation257_spill] sm:$0xff] }
 0x919   :  { %vm4884_vm10 = vcmp.gt.s32.totalorder %v4883_v16, %v19977_v32  ;;  %v5018_v17 = vsel %vm5017_vm7, %v5016_v28, %v19976_v62  ;;  %v4617_v2 = vsel %vm4616_vm5, %v4615_v0, %v15123_v40  ;;  %vm4751_vm0 = vcmp.gt.s32.totalorder %v4750_v47, %v15152_v37  ;;  %v19999_v62 = vld [vmem:[#allocation237_spill] sm:$0xff] }
 0x91a   :  { %v4885_v30 = vsel %vm4884_vm10, %v4883_v16, %v19977_v32  ;;  %vm5019_vm6 = vcmp.gt.s32.totalorder %v5018_v17, %v19978_v44  ;;  %vm4618_vm1 = vcmp.gt.s32.totalorder %v4617_v2, %v15342_v1  ;;  %v4752_v6 = vsel %vm4751_vm0, %v4750_v47, %v15152_v37 }
 0x91b   :  { %vm4886_vm4 = vcmp.gt.s32.totalorder %v4885_v30, %v15192_v59  ;;  %v5020_v10 = vsel %vm5019_vm6, %v5018_v17, %v19978_v44  ;;  %v4619_v43 = vsel %vm4618_vm1, %v4617_v2, %v15342_v1  ;;  %vm4753_vm9 = vcmp.gt.s32.totalorder %v4752_v6, %v15363_v13  ;;  %v20000_v17 = vld [vmem:[#allocation252_spill] sm:$0xff]  ;;  %v20001_v44 = vld [vmem:[#allocation18_spill] sm:$0xff] }
 0x91c   :  { %v4887_v40 = vsel %vm4886_vm4, %v4885_v30, %v15192_v59  ;;  %vm5021_vm3 = vcmp.gt.s32.totalorder %v5020_v10, %v19979_v51  ;;  %vm4620_vm12 = vcmp.gt.s32.totalorder %v4619_v43, %v15439_v46  ;;  %v4754_v48 = vsel %vm4753_vm9, %v4752_v6, %v15363_v13 }
 0x91d   :  { %vm4888_vm2 = vcmp.gt.s32.totalorder %v4887_v40, %v15380_v61  ;;  %v5022_v37 = vsel %vm5021_vm3, %v5020_v10, %v19979_v51  ;;  %v4621_v56 = vsel %vm4620_vm12, %v4619_v43, %v15439_v46  ;;  %vm4755_vm11 = vcmp.gt.s32.totalorder %v4754_v48, %v15454_v22  ;;  %v20002_v10 = vld [vmem:[#allocation258_spill] sm:$0xff]  ;;  %v20003_v51 = vld [vmem:[#allocation19_spill] sm:$0xff] }
 0x91e   :  { %v4889_v1 = vsel %vm4888_vm2, %v4887_v40, %v15380_v61  ;;  %vm5023_vm15 = vcmp.gt.s32.totalorder %v5022_v37, %v15385_v25  ;;  %vm4622_vm13 = vcmp.gt.s32.totalorder %v4621_v56, %v19980_v41  ;;  %v4756_v59 = vsel %vm4755_vm11, %v4754_v48, %v15454_v22  ;;  %v19982_v61 = vld [vmem:[#allocation205_spill] sm:$0xff] }
 0x91f   :  { %vm4890_vm14 = vcmp.gt.s32.totalorder %v4889_v1, %v15459_v35  ;;  %v5024_v13 = vsel %vm5023_vm15, %v5022_v37, %v15385_v25  ;;  %vm4757_vm8 = vcmp.gt.s32.totalorder %v4756_v59, %v19981_v33  ;;  %vm3984_vm5 = vcmp.eq.s32.totalorder %v15634_v38, %v12805_v63  ;;  %v19983_v25 = vld [vmem:[#allocation145_spill] sm:$0xff]  ;;  %v20004_v37 = vld [vmem:[#allocation214_spill] sm:$0xff] }
 0x920   :  { %v4891_v46 = vsel %vm4890_vm14, %v4889_v1, %v15459_v35  ;;  %vm5025_vm7 = vcmp.gt.s32.totalorder %v5024_v13, %v15473_v18  ;;  %v4758_v22 = vsel %vm4757_vm8, %v4756_v59, %v19981_v33  ;;  %vm3985_vm0 = vcmp.eq.s32.totalorder %v15634_v38, %v12807_v21  ;;  %v19987_v35 = vld [vmem:[#allocation212_spill] sm:$0xff]  ;;  %v15749_v1 = vpop.trf.xlu1  ;;  %v20005_v59 = vld [vmem:[#allocation26_spill] sm:$0xff] }
 0x921   :  { %vm4892_vm10 = vcmp.gt.s32.totalorder %v4891_v46, %v19982_v61  ;;  %v5026_v45 = vsel %vm5025_vm7, %v5024_v13, %v15473_v18  ;;  %vm19984_vm6 = vcmp.gt.f32.partialorder %v19983_v25, %v5470_v36  ;;  %vm4759_vm9 = vcmp.gt.s32.totalorder %v4758_v22, %v19988_v60  ;;  %v20006_v33 = vld [vmem:[#allocation16_spill] sm:$0xff] }
 0x922   :  { %vm15691_vm1 = vmand %vm3984_vm5, %vm19984_vm6  ;;  %vm5027_vm4 = vcmp.gt.s32.totalorder %v5026_v45, %v19987_v35  ;;  %v4893_v53 = vsel %vm4892_vm10, %v4891_v46, %v19982_v61  ;;  %vm3986_vm3 = vcmp.eq.s32.totalorder %v15634_v38, %v12809_v52  ;;  %vm19989_vm12 = vcmp.gt.f32.partialorder %v19983_v25, %v5629_v34 }
 0x923   :  { %vm4241_vm2 = vmand %vm3985_vm0, %vm19989_vm12  ;;  %v4760_v18 = vsel %vm4759_vm9, %v4758_v22, %v19988_v60  ;;  %vm4894_vm11 = vcmp.gt.s32.totalorder %v4893_v53, %v19990_v26  ;;  %v5028_v5 = vsel %vm5027_vm4, %v5026_v45, %v19987_v35  ;;  %vm3987_vm15 = vcmp.eq.s32.totalorder %v15634_v38, %v12859_v49  ;;  %v20008_v45 = vld [vmem:[#allocation230_spill] sm:$0xff] }
 0x924   :  { %vm19992_vm14 = vcmp.gt.f32.partialorder %v19983_v25, %v19991_v20  ;;  %vm4761_vm7 = vcmp.gt.s32.totalorder %v4760_v18, %v19993_v50  ;;  %v4895_v57 = vsel %vm4894_vm11, %v4893_v53, %v19990_v26  ;;  %vm5029_vm5 = vcmp.gt.s32.totalorder %v5028_v5, %v19994_v15  ;;  %v20009_v22 = vld [vmem:[#allocation54_spill] sm:$0xff]  ;;  %v20011_v53 = vld [vmem:[#allocation55_spill] sm:$0xff] }
 0x925   :  { %vm4242_vm8 = vmand %vm3986_vm3, %vm19992_vm14  ;;  %vm19996_vm10 = vnez %v19995_v4  ;;  %v15719_v8 = vsel %vm15691_vm1, 1, %v17017_v55  ;;  %v4762_v38 = vsel %vm4761_vm7, %v4760_v18, %v19993_v50  ;;  %vm4896_vm6 = vcmp.gt.s32.totalorder %v4895_v57, %v19997_v31  ;;  %v20012_v26 = vld [vmem:[#allocation251_spill] sm:$0xff] }
 0x926   :  { %vm4243_vm0 = vmand %vm3987_vm15, %vm19996_vm10  ;;  %v5030_v28 = vsel %vm5029_vm5, %v5028_v5, %v19994_v15  ;;  %v15725_v0 = vsel %vm4241_vm2, 1, %v17017_v55  ;;  %vm4763_vm4 = vcmp.gt.s32.totalorder %v4762_v38, %v19998_v11  ;;  %v4897_v16 = vsel %vm4896_vm6, %v4895_v57, %v19997_v31  ;;  %v20013_v5 = vld [vmem:[#allocation60_spill] sm:$0xff] }
 0x927   :  { %vm5031_vm9 = vcmp.gt.s32.totalorder %v5030_v28, %v19999_v62  ;;  %v15731_v47 = vsel %vm4242_vm8, 1, %v17017_v55  ;;  %v4764_v32 = vsel %vm4763_vm4, %v4762_v38, %v19998_v11  ;;  %vm4898_vm1 = vcmp.gt.s32.totalorder %v4897_v16, %v20000_v17  ;;  %v20014_v57 = vld [vmem:[#allocation56_spill] sm:$0xff]  ;;  %v20015_v38 = vld [vmem:[#allocation61_spill] sm:$0xff] }
 0x928   :  { %v5032_v2 = vsel %vm5031_vm9, %v5030_v28, %v19999_v62  ;;  %v15737_v30 = vsel %vm4243_vm0, 1, %v17017_v55  ;;  %vm4765_vm3 = vcmp.gt.s32.totalorder %v4764_v32, %v20001_v44  ;;  %v4899_v6 = vsel %vm4898_vm1, %v4897_v16, %v20000_v17  ;;  %v20016_v28 = vld [vmem:[#allocation17_spill] sm:$0xff]  ;;  %v20018_v62 = vld [vmem:[#allocation63_spill] sm:$0xff] }
 0x929   :  { %vm5033_vm12 = vcmp.gt.s32.totalorder %v5032_v2, %v20002_v10  ;;  %v4623_v43 = vsel %vm4622_vm13, %v4621_v56, %v19980_v41  ;;  %v4766_v40 = vsel %vm4765_vm3, %v4764_v32, %v20001_v44  ;;  %vm4900_vm2 = vcmp.gt.s32.totalorder %v4899_v6, %v20003_v51  ;;  %v20007_v41 = vld [vmem:[#allocation28_spill] sm:$0xff]  ;;  %v20017_v11 = vld [vmem:[#allocation69_spill] sm:$0xff] }
 0x92a   :  { %v5034_v48 = vsel %vm5033_vm12, %v5032_v2, %v20002_v10  ;;  %vm4624_vm11 = vcmp.gt.s32.totalorder %v4623_v43, %v20004_v37  ;;  %vm4767_vm15 = vcmp.gt.s32.totalorder %v4766_v40, %v20005_v59  ;;  %v4901_v13 = vsel %vm4900_vm2, %v4899_v6, %v20003_v51  ;;  %v20019_v2 = vld [vmem:[#allocation70_spill] sm:$0xff]  ;;  %v20020_v6 = vld [vmem:[#allocation27_spill] sm:$0xff]  ;;  %v15783_v10 = vpop.trf.xlu1 }
 0x92b   :  { %vm5035_vm14 = vcmp.gt.s32.totalorder %v5034_v48, %v20006_v33  ;;  %v4625_v46 = vsel %vm4624_vm11, %v4623_v43, %v20004_v37  ;;  %v4768_v56 = vsel %vm4767_vm15, %v4766_v40, %v20005_v59  ;;  %vm4902_vm13 = vcmp.gt.s32.totalorder %v4901_v13, %v20007_v41  ;;  %v20021_v43 = vld [vmem:[#allocation80_spill] sm:$0xff]  ;;  %v20022_v51 = vld [vmem:[#allocation71_spill] sm:$0xff]  ;;  %v20023_v59 = vld [vmem:[#allocation81_spill] sm:$0xff] }
 0x92c   :  { %v5036_v61 = vsel %vm5035_vm14, %v5034_v48, %v20006_v33  ;;  %vm4626_vm8 = vcmp.gt.s32.totalorder %v4625_v46, %v20008_v45  ;;  %vm4769_vm7 = vcmp.gt.s32.totalorder %v4768_v56, %v20009_v22  ;;  %v4903_v25 = vsel %vm4902_vm13, %v4901_v13, %v20007_v41  ;;  %v20024_v33 = vld [vmem:[#allocation53_spill] sm:$0xff]  ;;  %v20026_v41 = vld [vmem:[#allocation83_spill] sm:$0xff] }
 0x92d   :  { %vm5037_vm5 = vcmp.gt.s32.totalorder %v5036_v61, %v20010_v24  ;;  %v4627_v35 = vsel %vm4626_vm8, %v4625_v46, %v20008_v45  ;;  %v4770_v60 = vsel %vm4769_vm7, %v4768_v56, %v20009_v22  ;;  %vm4904_vm10 = vcmp.gt.s32.totalorder %v4903_v25, %v20011_v53  ;;  %v20025_v46 = vld [vmem:[#allocation102_spill] sm:$0xff]  ;;  %v20027_v22 = vld [vmem:[#allocation33_spill] sm:$0xff] }
 0x92e   :  { %v5038_v18 = vsel %vm5037_vm5, %v5036_v61, %v20010_v24  ;;  %vm4628_vm0 = vcmp.gt.s32.totalorder %v4627_v35, %v20012_v26  ;;  %vm4771_vm6 = vcmp.gt.s32.totalorder %v4770_v60, %v20013_v5  ;;  %v4905_v50 = vsel %vm4904_vm10, %v4903_v25, %v20011_v53  ;;  %v20028_v24 = vld [vmem:[#allocation59_spill] sm:$0xff] }
 0x92f   :  { %vm5039_vm4 = vcmp.gt.s32.totalorder %v5038_v18, %v20014_v57  ;;  %v4629_v15 = vsel %vm4628_vm0, %v4627_v35, %v20012_v26  ;;  %v4772_v4 = vsel %vm4771_vm6, %v4770_v60, %v20013_v5  ;;  %vm4906_vm9 = vcmp.gt.s32.totalorder %v4905_v50, %v20015_v38  ;;  %v20029_v35 = vld [vmem:[#allocation144_spill] sm:$0xff]  ;;  %v20030_v53 = vld [vmem:[#allocation103_spill] sm:$0xff] }
 0x930   :  { %v5040_v31 = vsel %vm5039_vm4, %v5038_v18, %v20014_v57  ;;  %vm4630_vm1 = vcmp.gt.s32.totalorder %v4629_v15, %v20016_v28  ;;  %vm4773_vm3 = vcmp.gt.s32.totalorder %v4772_v4, %v20017_v11  ;;  %v4907_v16 = vsel %vm4906_vm9, %v4905_v50, %v20015_v38  ;;  %v20031_v5 = vld [vmem:[#allocation35_spill] sm:$0xff]  ;;  %v20032_v57 = vld [vmem:[#allocation68_spill] sm:$0xff]  ;;  %v20034_v38 = vld [vmem:[#allocation110_spill] sm:$0xff] }
 0x931   :  { %vm5041_vm12 = vcmp.gt.s32.totalorder %v5040_v31, %v20018_v62  ;;  %v4631_v32 = vsel %vm4630_vm1, %v4629_v15, %v20016_v28  ;;  %v4774_v17 = vsel %vm4773_vm3, %v4772_v4, %v20017_v11  ;;  %vm4908_vm2 = vcmp.gt.s32.totalorder %v4907_v16, %v20019_v2  ;;  %v20033_v15 = vld [vmem:[#allocation91_spill] sm:$0xff]  ;;  %v20035_v11 = vld [vmem:[#allocation93_spill] sm:$0xff] }
 0x932   :  { %v5042_v44 = vsel %vm5041_vm12, %v5040_v31, %v20018_v62  ;;  %vm4632_vm11 = vcmp.gt.s32.totalorder %v4631_v32, %v20020_v6  ;;  %vm4775_vm15 = vcmp.gt.s32.totalorder %v4774_v17, %v20021_v43  ;;  %v4909_v40 = vsel %vm4908_vm2, %v4907_v16, %v20019_v2  ;;  %v20036_v62 = vld [vmem:[#allocation79_spill] sm:$0xff]  ;;  %v20037_v2 = vld [vmem:[#allocation113_spill] sm:$0xff] }
 0x933   :  { %vm5043_vm14 = vcmp.gt.s32.totalorder %v5042_v44, %v20022_v51  ;;  %v4633_v48 = vsel %vm4632_vm11, %v4631_v32, %v20020_v6  ;;  %v4776_v37 = vsel %vm4775_vm15, %v4774_v17, %v20021_v43  ;;  %vm4910_vm13 = vcmp.gt.s32.totalorder %v4909_v40, %v20023_v59  ;;  %v15817_v32 = vpop.trf.xlu1 }
 0x934   :  { %v5044_v13 = vsel %vm5043_vm14, %v5042_v44, %v20022_v51  ;;  %vm4634_vm8 = vcmp.gt.s32.totalorder %v4633_v48, %v20024_v33  ;;  %vm4777_vm7 = vcmp.gt.s32.totalorder %v4776_v37, %v20025_v46  ;;  %v4911_v56 = vsel %vm4910_vm13, %v4909_v40, %v20023_v59  ;;  %v20038_v40 = vld [vmem:[#allocation101_spill] sm:$0xff]  ;;  %v20039_v59 = vld [vmem:[#allocation87_spill] sm:$0xff] }
 0x935   :  { %vm5045_vm5 = vcmp.gt.s32.totalorder %v5044_v13, %v20026_v41  ;;  %v4635_v61 = vsel %vm4634_vm8, %v4633_v48, %v20024_v33  ;;  %v4778_v45 = vsel %vm4777_vm7, %v4776_v37, %v20025_v46  ;;  %vm4912_vm10 = vcmp.gt.s32.totalorder %v4911_v56, %v20027_v22  ;;  %v20040_v46 = vld [vmem:[#allocation112_spill] sm:$0xff] }
 0x936   :  { %v5046_v25 = vsel %vm5045_vm5, %v5044_v13, %v20026_v41  ;;  %vm4636_vm0 = vcmp.gt.s32.totalorder %v4635_v61, %v20028_v24  ;;  %vm4779_vm6 = vcmp.gt.s32.totalorder %v4778_v45, %v20029_v35  ;;  %v4913_v60 = vsel %vm4912_vm10, %v4911_v56, %v20027_v22 }
 0x937   :  { %vm5047_vm4 = vcmp.gt.s32.totalorder %v5046_v25, %v20030_v53  ;;  %v4637_v18 = vsel %vm4636_vm0, %v4635_v61, %v20028_v24  ;;  %v4780_v26 = vsel %vm4779_vm6, %v4778_v45, %v20029_v35  ;;  %vm4914_vm9 = vcmp.gt.s32.totalorder %v4913_v60, %v20031_v5 }
 0x938   :  { %v5048_v50 = vsel %vm5047_vm4, %v5046_v25, %v20030_v53  ;;  %vm4638_vm1 = vcmp.gt.s32.totalorder %v4637_v18, %v20032_v57  ;;  %vm4781_vm3 = vcmp.gt.s32.totalorder %v4780_v26, %v20033_v15  ;;  %v4915_v4 = vsel %vm4914_vm9, %v4913_v60, %v20031_v5  ;;  %v20047_v25 = vld [vmem:[#allocation146_spill] sm:$0xff] }
 0x939   :  { %vm5049_vm12 = vcmp.gt.s32.totalorder %v5048_v50, %v20034_v38  ;;  %v4639_v31 = vsel %vm4638_vm1, %v4637_v18, %v20032_v57  ;;  %v4782_v28 = vsel %vm4781_vm3, %v4780_v26, %v20033_v15  ;;  %vm4916_vm2 = vcmp.gt.s32.totalorder %v4915_v4, %v20035_v11  ;;  %v20051_v18 = vld [vmem:[#allocation167_spill] sm:$0xff]  ;;  %v20053_v15 = vld [vmem:[#allocation34_spill] sm:$0xff] }
 0x93a   :  { %v5050_v16 = vsel %vm5049_vm12, %v5048_v50, %v20034_v38  ;;  %vm4640_vm11 = vcmp.gt.s32.totalorder %v4639_v31, %v20036_v62  ;;  %vm4783_vm15 = vcmp.gt.s32.totalorder %v4782_v28, %v15407_v7  ;;  %v4917_v17 = vsel %vm4916_vm2, %v4915_v4, %v20035_v11  ;;  %v20057_v11 = vld [vmem:[#allocation185_spill] sm:$0xff] }
 0x93b   :  { %vm5051_vm14 = vcmp.gt.s32.totalorder %v5050_v16, %v20037_v2  ;;  %v4641_v44 = vsel %vm4640_vm11, %v4639_v31, %v20036_v62  ;;  %v4784_v6 = vsel %vm4783_vm15, %v4782_v28, %v15407_v7  ;;  %vm4918_vm13 = vcmp.gt.s32.totalorder %v4917_v17, %v15412_v9  ;;  %v15851_v41 = vpop.trf.xlu1 }
 0x93c   :  { %v5052_v43 = vsel %vm5051_vm14, %v5050_v16, %v20037_v2  ;;  %vm4642_vm8 = vcmp.gt.s32.totalorder %v4641_v44, %v20038_v40  ;;  %vm4785_vm7 = vcmp.gt.s32.totalorder %v4784_v6, %v15483_v14  ;;  %v4919_v51 = vsel %vm4918_vm13, %v4917_v17, %v15412_v9  ;;  %v20059_v17 = vld [vmem:[#allocation151_spill] sm:$0xff] }
 0x93d   :  { %vm5053_vm5 = vcmp.gt.s32.totalorder %v5052_v43, %v15423_v12  ;;  %v4643_v48 = vsel %vm4642_vm8, %v4641_v44, %v20038_v40  ;;  %v4786_v37 = vsel %vm4785_vm7, %v4784_v6, %v15483_v14  ;;  %vm4920_vm10 = vcmp.gt.s32.totalorder %v4919_v51, %v15497_v42 }
 0x93e   :  { %v5054_v7 = vsel %vm5053_vm5, %v5052_v43, %v15423_v12  ;;  %vm4644_vm0 = vcmp.gt.s32.totalorder %v4643_v48, %v20039_v59  ;;  %vm4787_vm6 = vcmp.gt.s32.totalorder %v4786_v37, %v15517_v27  ;;  %v4921_v13 = vsel %vm4920_vm10, %v4919_v51, %v15497_v42 }
 0x93f   :  { %vm5055_vm4 = vcmp.gt.s32.totalorder %v5054_v7, %v15502_v23  ;;  %v4645_v9 = vsel %vm4644_vm0, %v4643_v48, %v20039_v59  ;;  %v4788_v33 = vsel %vm4787_vm6, %v4786_v37, %v15517_v27  ;;  %vm4922_vm9 = vcmp.gt.s32.totalorder %v4921_v13, %v15528_v3  ;;  %v20063_v48 = vld [vmem:[#allocation51_spill] sm:$0xff] }
 0x940   :  { %v5056_v14 = vsel %vm5055_vm4, %v5054_v7, %v15502_v23  ;;  %vm4646_vm1 = vcmp.gt.s32.totalorder %v4645_v9, %v20040_v46  ;;  %v4923_v12 = vsel %vm4922_vm9, %v4921_v13, %v15528_v3  ;;  %vm4789_vm12 = vcmp.gt.s32.totalorder %v4788_v33, %v15725_v0 }
 0x941   :  { %vm5057_vm3 = vcmp.gt.s32.totalorder %v5056_v14, %v15539_v19  ;;  %v4647_v56 = vsel %vm4646_vm1, %v4645_v9, %v20040_v46  ;;  %vm4924_vm11 = vcmp.gt.s32.totalorder %v4923_v12, %v15731_v47  ;;  %v4790_v27 = vsel %vm4789_vm12, %v4788_v33, %v15725_v0  ;;  %v20041_v0 = vld [vmem:[#allocation130_spill] sm:$0xff]  ;;  %v20065_v33 = vld [vmem:[#allocation163_spill] sm:$0xff]  ;;  %v20069_v46 = vld [vmem:[#allocation196_spill] sm:$0xff] }
 0x942   :  { %v5058_v42 = vsel %vm5057_vm3, %v5056_v14, %v15539_v19  ;;  %vm4648_vm2 = vcmp.gt.s32.totalorder %v4647_v56, %v15395_v29  ;;  %v4925_v3 = vsel %vm4924_vm11, %v4923_v12, %v15731_v47  ;;  %vm3988_vm14 = vcmp.eq.s32.totalorder %v15676_v58, %v12805_v63 }
 0x943   :  { %v4649_v23 = vsel %vm4648_vm2, %v4647_v56, %v15395_v29  ;;  %vm5059_vm15 = vcmp.gt.s32.totalorder %v5058_v42, %v15737_v30  ;;  %vm3989_vm8 = vcmp.eq.s32.totalorder %v15676_v58, %v12807_v21  ;;  %vm3990_vm7 = vcmp.eq.s32.totalorder %v15676_v58, %v12809_v52  ;;  %v15916_v53 = vpop.trf.xlu1 }
 0x944   :  { %vm4650_vm13 = vcmp.gt.s32.totalorder %v4649_v23, %v15478_v39  ;;  %v5060_v19 = vsel %vm5059_vm15, %v5058_v42, %v15737_v30  ;;  %vm20042_vm5 = vcmp.gt.f32.partialorder %v20041_v0, %v5470_v36  ;;  %vm3991_vm0 = vcmp.eq.s32.totalorder %v15676_v58, %v12859_v49  ;;  %v20045_v30 = vld [vmem:[#allocation161_spill] sm:$0xff] }
 0x945   :  { %vm4244_vm10 = vmand %vm3988_vm14, %vm20042_vm5  ;;  %v4651_v29 = vsel %vm4650_vm13, %v4649_v23, %v15478_v39  ;;  %vm20043_vm6 = vcmp.gt.f32.partialorder %v20041_v0, %v5629_v34  ;;  %vm3992_vm9 = vcmp.eq.s32.totalorder %v15749_v1, %v12805_v63  ;;  %vm20044_vm3 = vcmp.gt.f32.partialorder %v20041_v0, %v19991_v20 }
 0x946   :  { %vm4245_vm4 = vmand %vm3989_vm8, %vm20043_vm6  ;;  %v4500_v47 = vsel %vm4244_vm10, 1, %v17017_v55  ;;  %vm4652_vm1 = vcmp.gt.s32.totalorder %v4651_v29, %v15512_v54  ;;  %vm3993_vm2 = vcmp.eq.s32.totalorder %v15749_v1, %v12807_v21  ;;  %vm3994_vm11 = vcmp.eq.s32.totalorder %v15749_v1, %v12809_v52 }
 0x947   :  { %vm4246_vm12 = vmand %vm3990_vm7, %vm20044_vm3  ;;  %v4501_v39 = vsel %vm4245_vm4, 1, %v17017_v55  ;;  %v4653_v58 = vsel %vm4652_vm1, %v4651_v29, %v15512_v54  ;;  %vm20046_vm15 = vnez %v20045_v30  ;;  %vm3995_vm8 = vcmp.eq.s32.totalorder %v15749_v1, %v12859_v49 }
 0x948   :  { %vm4247_vm14 = vmand %vm3991_vm0, %vm20046_vm15  ;;  %v4502_v61 = vsel %vm4246_vm12, 1, %v17017_v55  ;;  %vm4791_vm13 = vcmp.gt.s32.totalorder %v4790_v27, %v4501_v39  ;;  %vm4654_vm7 = vcmp.gt.s32.totalorder %v4653_v58, %v15719_v8  ;;  %vm20048_vm10 = vcmp.gt.f32.partialorder %v20047_v25, %v5470_v36 }
 0x949   :  { %v4503_v45 = vsel %vm4247_vm14, 1, %v17017_v55  ;;  %vm4926_vm5 = vcmp.gt.s32.totalorder %v4925_v3, %v4502_v61  ;;  %v4792_v22 = vsel %vm4791_vm13, %v4790_v27, %v4501_v39  ;;  %vm4248_vm6 = vmand %vm3992_vm9, %vm20048_vm10  ;;  %v4655_v54 = vsel %vm4654_vm7, %v4653_v58, %v15719_v8 }
 0x94a   :  { %vm5061_vm0 = vcmp.gt.s32.totalorder %v5060_v19, %v4503_v45  ;;  %v4927_v24 = vsel %vm4926_vm5, %v4925_v3, %v4502_v61  ;;  %vm20049_vm4 = vcmp.gt.f32.partialorder %v20047_v25, %v5629_v34  ;;  %v4504_v35 = vsel %vm4248_vm6, 1, %v17017_v55 }
 0x94b   :  { %vm4249_vm1 = vmand %vm3993_vm2, %vm20049_vm4  ;;  %vm4656_vm3 = vcmp.gt.s32.totalorder %v4655_v54, %v4500_v47  ;;  %v5062_v60 = vsel %vm5061_vm0, %v5060_v19, %v4503_v45  ;;  %vm20050_vm12 = vcmp.gt.f32.partialorder %v20047_v25, %v19991_v20  ;;  %vm3996_vm15 = vcmp.eq.s32.totalorder %v15783_v10, %v12805_v63  ;;  %v3783_v51 = vpop.trf.xlu1  ;;  %v20075_v19 = vld [vmem:[#allocation207_spill] sm:$0xff]  ;;  %v20077_v45 = vld [vmem:[#allocation173_spill] sm:$0xff] }
 0x94c   :  { %vm4250_vm9 = vmand %vm3994_vm11, %vm20050_vm12  ;;  %v4505_v8 = vsel %vm4249_vm1, 1, %v17017_v55  ;;  %vm20052_vm2 = vnez %v20051_v18  ;;  %v4657_v5 = vsel %vm4656_vm3, %v4655_v54, %v4500_v47  ;;  %vm3997_vm11 = vcmp.eq.s32.totalorder %v15783_v10, %v12807_v21  ;;  %v20081_v25 = vld [vmem:[#allocation215_spill] sm:$0xff] }
 0x94d   :  { %vm4251_vm14 = vmand %vm3995_vm8, %vm20052_vm2  ;;  %v4506_v26 = vsel %vm4250_vm9, 1, %v17017_v55  ;;  %vm4793_vm13 = vcmp.gt.s32.totalorder %v4792_v22, %v4505_v8  ;;  %vm4658_vm7 = vcmp.gt.s32.totalorder %v4657_v5, %v4504_v35  ;;  %vm20054_vm10 = vcmp.gt.f32.partialorder %v20053_v15, %v5470_v36 }
 0x94e   :  { %v4507_v50 = vsel %vm4251_vm14, 1, %v17017_v55  ;;  %vm4928_vm5 = vcmp.gt.s32.totalorder %v4927_v24, %v4506_v26  ;;  %v4794_v57 = vsel %vm4793_vm13, %v4792_v22, %v4505_v8  ;;  %vm4252_vm6 = vmand %vm3996_vm15, %vm20054_vm10  ;;  %vm3998_vm8 = vcmp.eq.s32.totalorder %v15783_v10, %v12809_v52 }
 0x94f   :  { %vm5063_vm0 = vcmp.gt.s32.totalorder %v5062_v60, %v4507_v50  ;;  %v4929_v4 = vsel %vm4928_vm5, %v4927_v24, %v4506_v26  ;;  %vm3999_vm4 = vcmp.eq.s32.totalorder %v15783_v10, %v12859_v49  ;;  %vm20055_vm1 = vcmp.gt.f32.partialorder %v20053_v15, %v5629_v34 }
 0x950   :  { %vm4253_vm3 = vmand %vm3997_vm11, %vm20055_vm1  ;;  %v5064_v1 = vsel %vm5063_vm0, %v5062_v60, %v4507_v50  ;;  %vm20056_vm12 = vcmp.gt.f32.partialorder %v20053_v15, %v19991_v20  ;;  %v4508_v38 = vsel %vm4252_vm6, 1, %v17017_v55  ;;  %v4659_v28 = vsel %vm4658_vm7, %v4657_v5, %v4504_v35  ;;  %v20083_v5 = vld [vmem:[#allocation50_spill] sm:$0xff] }
 0x951   :  { %vm4254_vm9 = vmand %vm3998_vm8, %vm20056_vm12  ;;  %v4509_v31 = vsel %vm4253_vm3, 1, %v17017_v55  ;;  %vm20058_vm15 = vnez %v20057_v11  ;;  %vm4660_vm14 = vcmp.gt.s32.totalorder %v4659_v28, %v4508_v38  ;;  %vm4000_vm11 = vcmp.eq.s32.totalorder %v15817_v32, %v12805_v63 }
 0x952   :  { %vm4255_vm2 = vmand %vm3999_vm4, %vm20058_vm15  ;;  %v4510_v16 = vsel %vm4254_vm9, 1, %v17017_v55  ;;  %vm4795_vm13 = vcmp.gt.s32.totalorder %v4794_v57, %v4509_v31  ;;  %vm4001_vm10 = vcmp.eq.s32.totalorder %v15817_v32, %v12807_v21  ;;  %vm20060_vm7 = vcmp.gt.f32.partialorder %v20059_v17, %v5470_v36 }
 0x953   :  { %v4511_v10 = vsel %vm4255_vm2, 1, %v17017_v55  ;;  %vm4930_vm5 = vcmp.gt.s32.totalorder %v4929_v4, %v4510_v16  ;;  %v4796_v62 = vsel %vm4795_vm13, %v4794_v57, %v4509_v31  ;;  %vm4256_vm6 = vmand %vm4000_vm11, %vm20060_vm7  ;;  %vm4002_vm8 = vcmp.eq.s32.totalorder %v15817_v32, %v12809_v52  ;;  %v15981_v14 = vpop.trf.xlu1  ;;  %v20087_v57 = vld [vmem:[#allocation223_spill] sm:$0xff] }
 0x954   :  { %vm5065_vm0 = vcmp.gt.s32.totalorder %v5064_v1, %v4511_v10  ;;  %v4931_v2 = vsel %vm4930_vm5, %v4929_v4, %v4510_v16  ;;  %vm4003_vm4 = vcmp.eq.s32.totalorder %v15817_v32, %v12859_v49  ;;  %vm20061_vm1 = vcmp.gt.f32.partialorder %v20059_v17, %v5629_v34 }
 0x955   :  { %vm4257_vm3 = vmand %vm4001_vm10, %vm20061_vm1  ;;  %v5066_v44 = vsel %vm5065_vm0, %v5064_v1, %v4511_v10  ;;  %vm20062_vm12 = vcmp.gt.f32.partialorder %v20059_v17, %v19991_v20  ;;  %v4512_v6 = vsel %vm4256_vm6, 1, %v17017_v55  ;;  %v4661_v40 = vsel %vm4660_vm14, %v4659_v28, %v4508_v38  ;;  %v20089_v28 = vld [vmem:[#allocation211_spill] sm:$0xff] }
 0x956   :  { %vm4258_vm9 = vmand %vm4002_vm8, %vm20062_vm12  ;;  %v4513_v43 = vsel %vm4257_vm3, 1, %v17017_v55  ;;  %vm20064_vm15 = vnez %v20063_v48  ;;  %vm4662_vm13 = vcmp.gt.s32.totalorder %v4661_v40, %v4512_v6  ;;  %vm4004_vm7 = vcmp.eq.s32.totalorder %v15851_v41, %v12805_v63 }
 0x957   :  { %vm4259_vm2 = vmand %vm4003_vm4, %vm20064_vm15  ;;  %v4514_v32 = vsel %vm4258_vm9, 1, %v17017_v55  ;;  %vm4797_vm11 = vcmp.gt.s32.totalorder %v4796_v62, %v4513_v43  ;;  %v4663_v9 = vsel %vm4662_vm13, %v4661_v40, %v4512_v6  ;;  %vm4005_vm14 = vcmp.eq.s32.totalorder %v15851_v41, %v12807_v21 }
 0x958   :  { %v4515_v37 = vsel %vm4259_vm2, 1, %v17017_v55  ;;  %vm4932_vm5 = vcmp.gt.s32.totalorder %v4931_v2, %v4514_v32  ;;  %v4798_v7 = vsel %vm4797_vm11, %v4796_v62, %v4513_v43  ;;  %vm4006_vm6 = vcmp.eq.s32.totalorder %v15851_v41, %v12809_v52  ;;  %v20101_v43 = vld [vmem:[#allocation219_spill] sm:$0xff] }
 0x959   :  { %vm5067_vm10 = vcmp.gt.s32.totalorder %v5066_v44, %v4515_v37  ;;  %v4933_v59 = vsel %vm4932_vm5, %v4931_v2, %v4514_v32  ;;  %vm4007_vm0 = vcmp.eq.s32.totalorder %v15851_v41, %v12859_v49  ;;  %vm20066_vm8 = vcmp.gt.f32.partialorder %v20065_v33, %v5470_v36  ;;  %v20071_v41 = vld [vmem:[#allocation159_spill] sm:$0xff] }
 0x95a   :  { %v5068_v13 = vsel %vm5067_vm10, %v5066_v44, %v4515_v37  ;;  %vm4260_vm4 = vmand %vm4004_vm7, %vm20066_vm8  ;;  %vm20067_vm1 = vcmp.gt.f32.partialorder %v20065_v33, %v5629_v34  ;;  %vm20068_vm12 = vcmp.gt.f32.partialorder %v20065_v33, %v19991_v20  ;;  %vm20070_vm15 = vnez %v20069_v46  ;;  %v20099_v44 = vld [vmem:[#allocation231_spill] sm:$0xff]  ;;  %v20111_v33 = vld [vmem:[#allocation238_spill] sm:$0xff] }
 0x95b   :  { %vm4261_vm3 = vmand %vm4005_vm14, %vm20067_vm1  ;;  %vm4008_vm13 = vcmp.eq.s32.totalorder %v15916_v53, %v12805_v63  ;;  %vm4009_vm11 = vcmp.eq.s32.totalorder %v15916_v53, %v12807_v21  ;;  %v4516_v12 = vsel %vm4260_vm4, 1, %v17017_v55  ;;  %vm4010_vm5 = vcmp.eq.s32.totalorder %v15916_v53, %v12809_v52  ;;  %v16012_v23 = vpop.trf.xlu1 }
 0x95c   :  { %vm4262_vm9 = vmand %vm4006_vm6, %vm20068_vm12  ;;  %v4517_v56 = vsel %vm4261_vm3, 1, %v17017_v55  ;;  %vm4011_vm7 = vcmp.eq.s32.totalorder %v15916_v53, %v12859_v49  ;;  %vm20072_vm14 = vcmp.gt.f32.partialorder %v20071_v41, %v5470_v36  ;;  %vm20073_vm1 = vcmp.gt.f32.partialorder %v20071_v41, %v5629_v34 }
 0x95d   :  { %vm4263_vm2 = vmand %vm4007_vm0, %vm20070_vm15  ;;  %v4518_v42 = vsel %vm4262_vm9, 1, %v17017_v55  ;;  %vm4799_vm10 = vcmp.gt.s32.totalorder %v4798_v7, %v4517_v56  ;;  %vm4664_vm0 = vcmp.gt.s32.totalorder %v4663_v9, %v4516_v12  ;;  %vm20074_vm12 = vcmp.gt.f32.partialorder %v20071_v41, %v19991_v20 }
 0x95e   :  { %v4519_v27 = vsel %vm4263_vm2, 1, %v17017_v55  ;;  %vm4264_vm6 = vmand %vm4008_vm13, %vm20072_vm14  ;;  %vm4934_vm8 = vcmp.gt.s32.totalorder %v4933_v59, %v4518_v42  ;;  %v4800_v3 = vsel %vm4799_vm10, %v4798_v7, %v4517_v56  ;;  %vm20076_vm15 = vnez %v20075_v19 }
 0x95f   :  { %vm5069_vm4 = vcmp.gt.s32.totalorder %v5068_v13, %v4519_v27  ;;  %vm4265_vm3 = vmand %vm4009_vm11, %vm20073_vm1  ;;  %vm4012_vm13 = vcmp.eq.s32.totalorder %v3783_v51, %v12805_v63  ;;  %v4935_v0 = vsel %vm4934_vm8, %v4933_v59, %v4518_v42  ;;  %v4665_v47 = vsel %vm4664_vm0, %v4663_v9, %v4516_v12 }
 0x960   :  { %vm4266_vm9 = vmand %vm4010_vm5, %vm20074_vm12  ;;  %v5070_v29 = vsel %vm5069_vm4, %v5068_v13, %v4519_v27  ;;  %vm4013_vm14 = vcmp.eq.s32.totalorder %v3783_v51, %v12807_v21  ;;  %v4520_v39 = vsel %vm4264_vm6, 1, %v17017_v55  ;;  %v4521_v58 = vsel %vm4265_vm3, 1, %v17017_v55 }
 0x961   :  { %vm4267_vm2 = vmand %vm4011_vm7, %vm20076_vm15  ;;  %vm4014_vm11 = vcmp.eq.s32.totalorder %v3783_v51, %v12809_v52  ;;  %v4522_v30 = vsel %vm4266_vm9, 1, %v17017_v55  ;;  %vm4801_vm5 = vcmp.gt.s32.totalorder %v4800_v3, %v4521_v58  ;;  %vm4015_vm10 = vcmp.eq.s32.totalorder %v3783_v51, %v12859_v49 }
 0x962   :  { %v4523_v61 = vsel %vm4267_vm2, 1, %v17017_v55  ;;  %vm20078_vm7 = vcmp.gt.f32.partialorder %v20077_v45, %v5470_v36  ;;  %vm4666_vm0 = vcmp.gt.s32.totalorder %v4665_v47, %v4520_v39  ;;  %vm4936_vm4 = vcmp.gt.s32.totalorder %v4935_v0, %v4522_v30 }
 0x963   :  { %vm4268_vm8 = vmand %vm4012_vm13, %vm20078_vm7  ;;  %vm5071_vm1 = vcmp.gt.s32.totalorder %v5070_v29, %v4523_v61  ;;  %vm20079_vm6 = vcmp.gt.f32.partialorder %v20077_v45, %v5629_v34  ;;  %vm20080_vm12 = vcmp.gt.f32.partialorder %v20077_v45, %v19991_v20  ;;  %v4802_v22 = vsel %vm4801_vm5, %v4800_v3, %v4521_v58  ;;  %v3786_v60 = vpop.trf.xlu1 }
 0x964   :  { %vm4269_vm3 = vmand %vm4013_vm14, %vm20079_vm6  ;;  %vm20082_vm15 = vnez %v20081_v25  ;;  %vm4016_vm7 = vcmp.eq.s32.totalorder %v15981_v14, %v12805_v63  ;;  %v4937_v54 = vsel %vm4936_vm4, %v4935_v0, %v4522_v30  ;;  %v5072_v24 = vsel %vm5071_vm1, %v5070_v29, %v4523_v61  ;;  %v20128_v61 = vld [vmem:[#allocation239_spill] sm:$0xff] }
 0x965   :  { %vm4270_vm9 = vmand %vm4014_vm11, %vm20080_vm12  ;;  %v4667_v35 = vsel %vm4666_vm0, %v4665_v47, %v4520_v39  ;;  %vm4017_vm13 = vcmp.eq.s32.totalorder %v15981_v14, %v12807_v21  ;;  %v4524_v8 = vsel %vm4268_vm8, 1, %v17017_v55  ;;  %v4525_v53 = vsel %vm4269_vm3, 1, %v17017_v55  ;;  %v20125_v39 = vld [vmem:[#allocation245_spill] sm:$0xff] }
 0x966   :  { %vm4271_vm2 = vmand %vm4015_vm10, %vm20082_vm15  ;;  %vm4018_vm14 = vcmp.eq.s32.totalorder %v15981_v14, %v12809_v52  ;;  %v4526_v18 = vsel %vm4270_vm9, 1, %v17017_v55  ;;  %vm4803_vm11 = vcmp.gt.s32.totalorder %v4802_v22, %v4525_v53  ;;  %vm4019_vm5 = vcmp.eq.s32.totalorder %v15981_v14, %v12859_v49  ;;  %v20113_v14 = vld [vmem:[#allocation227_spill] sm:$0xff] }
 0x967   :  { %v4527_v26 = vsel %vm4271_vm2, 1, %v17017_v55  ;;  %vm20084_vm10 = vcmp.gt.f32.partialorder %v20083_v5, %v5470_v36  ;;  %vm4668_vm4 = vcmp.gt.s32.totalorder %v4667_v35, %v4524_v8  ;;  %vm4938_vm1 = vcmp.gt.s32.totalorder %v4937_v54, %v4526_v18 }
 0x968   :  { %vm4272_vm0 = vmand %vm4016_vm7, %vm20084_vm10  ;;  %vm5073_vm8 = vcmp.gt.s32.totalorder %v5072_v24, %v4527_v26  ;;  %vm20085_vm6 = vcmp.gt.f32.partialorder %v20083_v5, %v5629_v34  ;;  %vm20086_vm12 = vcmp.gt.f32.partialorder %v20083_v5, %v19991_v20  ;;  %vm4020_vm15 = vcmp.eq.s32.totalorder %v16012_v23, %v12805_v63 }
 0x969   :  { %vm4273_vm3 = vmand %vm4017_vm13, %vm20085_vm6  ;;  %v4804_v50 = vsel %vm4803_vm11, %v4802_v22, %v4525_v53  ;;  %vm20088_vm2 = vnez %v20087_v57  ;;  %vm4021_vm10 = vcmp.eq.s32.totalorder %v16012_v23, %v12807_v21  ;;  %v4939_v15 = vsel %vm4938_vm1, %v4937_v54, %v4526_v18 }
 0x96a   :  { %vm4274_vm9 = vmand %vm4018_vm14, %vm20086_vm12  ;;  %v5074_v4 = vsel %vm5073_vm8, %v5072_v24, %v4527_v26  ;;  %v4669_v1 = vsel %vm4668_vm4, %v4667_v35, %v4524_v8  ;;  %vm4022_vm13 = vcmp.eq.s32.totalorder %v16012_v23, %v12809_v52  ;;  %v4528_v38 = vsel %vm4272_vm0, 1, %v17017_v55 }
 0x96b   :  { %vm4275_vm7 = vmand %vm4019_vm5, %vm20088_vm2  ;;  %v4529_v31 = vsel %vm4273_vm3, 1, %v17017_v55  ;;  %vm4023_vm14 = vcmp.eq.s32.totalorder %v16012_v23, %v12859_v49  ;;  %vm20090_vm11 = vcmp.gt.f32.partialorder %v20089_v28, %v5470_v36  ;;  %v20091_v11 = vmov 0  ;;  %v3787_v17 = vpop.trf.xlu1 }
 0x96c   :  { %vm16071_vm5 = vmand %vm4020_vm15, %vm20090_vm11  ;;  %v4530_v16 = vsel %vm4274_vm9, 1, %v17017_v55  ;;  %v4531_v10 = vsel %vm4275_vm7, 1, %v17017_v55  ;;  %vm4805_vm4 = vcmp.gt.s32.totalorder %v4804_v50, %v4529_v31  ;;  %vm20093_vm0 = vcmp.gt.f32.partialorder %v20089_v28, %v5629_v34 }
 0x96d   :  { %v20092_v11 = vsel %vm16071_vm5, 4294967295, %v20091_v11  ;;  %vm16080_vm1 = vmand %vm4021_vm10, %vm20093_vm0  ;;  %v20094_v62 = vmov 0  ;;  %vm4024_vm8 = vcmp.eq.s32.totalorder %v3786_v60, %v12805_v63  ;;  %vm4670_vm6 = vcmp.gt.s32.totalorder %v4669_v1, %v4528_v38 }
 0x96e   :  { %v20095_v62 = vsel %vm16080_vm1, 4294967295, %v20094_v62  ;;  %vm4940_vm3 = vcmp.gt.s32.totalorder %v4939_v15, %v4530_v16  ;;  %vm5075_vm12 = vcmp.gt.s32.totalorder %v5074_v4, %v4531_v10  ;;  %vm20096_vm15 = vcmp.gt.f32.partialorder %v20089_v28, %v19991_v20 }
 0x96f   :  { %vm16088_vm9 = vmand %vm4022_vm13, %vm20096_vm15  ;;  %vm4025_vm2 = vcmp.eq.s32.totalorder %v3786_v60, %v12807_v21  ;;  %vm20100_vm7 = vnez %v20099_v44  ;;  %vm4026_vm11 = vcmp.eq.s32.totalorder %v3786_v60, %v12809_v52  ;;  %v4806_v6 = vsel %vm4805_vm4, %v4804_v50, %v4529_v31  ;;  %v20134_v50 = vld [vmem:[#allocation248_spill] sm:$0xff] }
 0x970   :  { %vm4279_vm10 = vmand %vm4023_vm14, %vm20100_vm7  ;;  %vm4027_vm0 = vcmp.eq.s32.totalorder %v3786_v60, %v12859_v49  ;;  %vm20102_vm1 = vcmp.gt.f32.partialorder %v20101_v43, %v5470_v36  ;;  %v20103_v40 = vmov 0  ;;  %v4941_v51 = vsel %vm4940_vm3, %v4939_v15, %v4530_v16  ;;  %v20132_v60 = vld [vmem:[#allocation253_spill] sm:$0xff] }
 0x971   :  { %vm16100_vm5 = vmand %vm4024_vm8, %vm20102_vm1  ;;  %v5076_v48 = vsel %vm5075_vm12, %v5074_v4, %v4531_v10  ;;  %v4671_v32 = vsel %vm4670_vm6, %v4669_v1, %v4528_v38  ;;  %vm20105_vm13 = vcmp.gt.f32.partialorder %v20101_v43, %v5629_v34  ;;  %v20106_v37 = vmov 0  ;;  %v20138_v38 = vld [vmem:[#allocation260_spill] sm:$0xff] }
 0x972   :  { %v20104_v40 = vsel %vm16100_vm5, 4294967295, %v20103_v40  ;;  %vm16107_vm15 = vmand %vm4025_vm2, %vm20105_vm13  ;;  %vm4028_vm14 = vcmp.eq.s32.totalorder %v3787_v17, %v12805_v63  ;;  %vm20108_vm4 = vnez %v20092_v11  ;;  %vm20109_vm1 = vnez %v20095_v62 }
 0x973   :  { %v20107_v37 = vsel %vm16107_vm15, 4294967295, %v20106_v37  ;;  %v4532_v7 = vsel %vm20108_vm4, 1, %v17017_v55  ;;  %v4533_v59 = vsel %vm20109_vm1, 1, %v17017_v55  ;;  %vm20110_vm8 = vcmp.gt.f32.partialorder %v20101_v43, %v19991_v20  ;;  %v3788_v41 = vpop.trf.xlu1 }
 0x974   :  { %vm4282_vm6 = vmand %vm4026_vm11, %vm20110_vm8  ;;  %vm4029_vm3 = vcmp.eq.s32.totalorder %v3787_v17, %v12807_v21  ;;  %v4534_v13 = vsel %vm16088_vm9, 1, %v17017_v55  ;;  %v4535_v9 = vsel %vm4279_vm10, 1, %v17017_v55  ;;  %vm4807_vm12 = vcmp.gt.s32.totalorder %v4806_v6, %v4533_v59 }
 0x975   :  { %vm20112_vm2 = vnez %v20111_v33  ;;  %vm4030_vm13 = vcmp.eq.s32.totalorder %v3787_v17, %v12809_v52  ;;  %vm4672_vm4 = vcmp.gt.s32.totalorder %v4671_v32, %v4532_v7  ;;  %vm4942_vm1 = vcmp.gt.s32.totalorder %v4941_v51, %v4534_v13 }
 0x976   :  { %vm4283_vm7 = vmand %vm4027_vm0, %vm20112_vm2  ;;  %vm5077_vm15 = vcmp.gt.s32.totalorder %v5076_v48, %v4535_v9  ;;  %vm4031_vm5 = vcmp.eq.s32.totalorder %v3787_v17, %v12859_v49  ;;  %vm20114_vm11 = vcmp.gt.f32.partialorder %v20113_v14, %v5470_v36  ;;  %vm20117_vm9 = vnez %v20104_v40 }
 0x977   :  { %vm16133_vm8 = vmand %vm4028_vm14, %vm20114_vm11  ;;  %v4536_v12 = vsel %vm20117_vm9, 1, %v17017_v55  ;;  %vm20118_vm10 = vnez %v20107_v37  ;;  %v4538_v42 = vsel %vm4282_vm6, 1, %v17017_v55  ;;  %vm20119_vm0 = vcmp.gt.f32.partialorder %v20113_v14, %v5629_v34 }
 0x978   :  { %v4537_v56 = vsel %vm20118_vm10, 1, %v17017_v55  ;;  %vm16147_vm2 = vmand %vm4029_vm3, %vm20119_vm0  ;;  %v20120_v27 = vmov 0  ;;  %v4808_v23 = vsel %vm4807_vm12, %v4806_v6, %v4533_v59  ;;  %v4539_v3 = vsel %vm4283_vm7, 1, %v17017_v55  ;;  %v20140_v6 = vld [vmem:[#allocation256_spill] sm:$0xff] }
 0x979   :  { %v20121_v27 = vsel %vm16147_vm2, 4294967295, %v20120_v27  ;;  %vm20122_vm14 = vcmp.gt.f32.partialorder %v20113_v14, %v19991_v20  ;;  %vm4032_vm6 = vcmp.eq.s32.totalorder %v3788_v41, %v12805_v63  ;;  %v4943_v0 = vsel %vm4942_vm1, %v4941_v51, %v4534_v13 }
 0x97a   :  { %vm16155_vm11 = vmand %vm4030_vm13, %vm20122_vm14  ;;  %v5078_v29 = vsel %vm5077_vm15, %v5076_v48, %v4535_v9  ;;  %v4673_v47 = vsel %vm4672_vm4, %v4671_v32, %v4532_v7  ;;  %vm20126_vm3 = vnez %v20125_v39  ;;  %vm4033_vm12 = vcmp.eq.s32.totalorder %v3788_v41, %v12807_v21  ;;  %v20144_v7 = vld [vmem:[#allocation264_spill] sm:$0xff]  ;;  %v20146_v9 = vld [vmem:[#allocation21_spill] sm:$0xff] }
 0x97b   :  { %vm4287_vm9 = vmand %vm4031_vm5, %vm20126_vm3  ;;  %vm4674_vm10 = vcmp.gt.s32.totalorder %v4673_v47, %v4536_v12  ;;  %vm4809_vm7 = vcmp.gt.s32.totalorder %v4808_v23, %v4537_v56  ;;  %vm4944_vm0 = vcmp.gt.s32.totalorder %v4943_v0, %v4538_v42  ;;  %vm4034_vm2 = vcmp.eq.s32.totalorder %v3788_v41, %v12809_v52  ;;  %v3789_v18 = vpop.trf.xlu1  ;;  %v20154_v39 = vld [vmem:[#allocation9_spill] sm:$0xff] }
 0x97c   :  { %vm5079_vm13 = vcmp.gt.s32.totalorder %v5078_v29, %v4539_v3  ;;  %v4540_v58 = vsel %vm16133_vm8, 1, %v17017_v55  ;;  %vm20127_vm15 = vnez %v20121_v27  ;;  %vm4035_vm4 = vcmp.eq.s32.totalorder %v3788_v41, %v12859_v49  ;;  %v20148_v27 = vld [vmem:[#allocation24_spill] sm:$0xff] }
 0x97d   :  { %v4541_v30 = vsel %vm20127_vm15, 1, %v17017_v55  ;;  %vm20129_vm5 = vcmp.gt.f32.partialorder %v20128_v61, %v5470_v36  ;;  %v4542_v45 = vsel %vm16155_vm11, 1, %v17017_v55  ;;  %v4543_v22 = vsel %vm4287_vm9, 1, %v17017_v55 }
 0x97e   :  { %vm4288_vm1 = vmand %vm4032_vm6, %vm20129_vm5  ;;  %vm20130_vm14 = vcmp.gt.f32.partialorder %v20128_v61, %v5629_v34  ;;  %v4810_v25 = vsel %vm4809_vm7, %v4808_v23, %v4537_v56  ;;  %v4675_v54 = vsel %vm4674_vm10, %v4673_v47, %v4536_v12  ;;  %vm20131_vm3 = vcmp.gt.f32.partialorder %v20128_v61, %v19991_v20  ;;  %v20147_v12 = vld [vmem:[#allocation22_spill] sm:$0xff]  ;;  %v20149_v23 = vld [vmem:[#allocation20_spill] sm:$0xff] }
 0x97f   :  { %vm4289_vm8 = vmand %vm4033_vm12, %vm20130_vm14  ;;  %v4945_v24 = vsel %vm4944_vm0, %v4943_v0, %v4538_v42  ;;  %v5080_v35 = vsel %vm5079_vm13, %v5078_v29, %v4539_v3  ;;  %vm4676_vm5 = vcmp.gt.s32.totalorder %v4675_v54, %v4540_v58  ;;  %vm4811_vm6 = vcmp.gt.s32.totalorder %v4810_v25, %v4541_v30 }
 0x980   :  { %vm4290_vm15 = vmand %vm4034_vm2, %vm20131_vm3  ;;  %vm20133_vm11 = vnez %v20132_v60  ;;  %vm4946_vm12 = vcmp.gt.s32.totalorder %v4945_v24, %v4542_v45  ;;  %vm5081_vm14 = vcmp.gt.s32.totalorder %v5080_v35, %v4543_v22  ;;  %v4544_v8 = vsel %vm4288_vm1, 1, %v17017_v55  ;;  %v20162_v60 = vld [vmem:[#allocation13_spill] sm:$0xff] }
 0x981   :  { %vm4291_vm9 = vmand %vm4035_vm4, %vm20133_vm11  ;;  %v4545_v53 = vsel %vm4289_vm8, 1, %v17017_v55  ;;  %v4546_v26 = vsel %vm4290_vm15, 1, %v17017_v55  ;;  %vm4036_vm10 = vcmp.eq.s32.totalorder %v3789_v18, %v12805_v63  ;;  %vm4037_vm2 = vcmp.eq.s32.totalorder %v3789_v18, %v12807_v21 }
 0x982   :  { %vm4038_vm7 = vcmp.eq.s32.totalorder %v3789_v18, %v12809_v52  ;;  %v4547_v5 = vsel %vm4291_vm9, 1, %v17017_v55  ;;  %vm4039_vm0 = vcmp.eq.s32.totalorder %v3789_v18, %v12859_v49  ;;  %vm20135_vm13 = vcmp.gt.f32.partialorder %v20134_v50, %v5470_v36 }
 0x983   :  { %vm4292_vm4 = vmand %vm4036_vm10, %vm20135_vm13  ;;  %v4812_v57 = vsel %vm4811_vm6, %v4810_v25, %v4541_v30  ;;  %v4947_v15 = vsel %vm4946_vm12, %v4945_v24, %v4542_v45  ;;  %v4677_v4 = vsel %vm4676_vm5, %v4675_v54, %v4540_v58  ;;  %vm20136_vm1 = vcmp.gt.f32.partialorder %v20134_v50, %v5629_v34  ;;  %v3790_v44 = vpop.trf.xlu1  ;;  %v20155_v30 = vld [vmem:[#allocation10_spill] sm:$0xff]  ;;  %v20156_v45 = vld [vmem:[#allocation263_spill] sm:$0xff] }
 0x984   :  { %vm4293_vm8 = vmand %vm4037_vm2, %vm20136_vm1  ;;  %v5082_v1 = vsel %vm5081_vm14, %v5080_v35, %v4543_v22  ;;  %vm4678_vm3 = vcmp.gt.s32.totalorder %v4677_v4, %v4544_v8  ;;  %vm4813_vm15 = vcmp.gt.s32.totalorder %v4812_v57, %v4545_v53  ;;  %vm4948_vm11 = vcmp.gt.s32.totalorder %v4947_v15, %v4546_v26  ;;  %v20159_v25 = vld [vmem:[#allocation11_spill] sm:$0xff]  ;;  %v20160_v24 = vld [vmem:[#allocation8_spill] sm:$0xff] }
 0x985   :  { %vm20137_vm9 = vcmp.gt.f32.partialorder %v20134_v50, %v19991_v20  ;;  %vm5083_vm13 = vcmp.gt.s32.totalorder %v5082_v1, %v4547_v5  ;;  %vm20139_vm6 = vnez %v20138_v38  ;;  %v4548_v31 = vsel %vm4292_vm4, 1, %v17017_v55 }
 0x986   :  { %vm4294_vm10 = vmand %vm4038_vm7, %vm20137_vm9  ;;  %v4549_v28 = vsel %vm4293_vm8, 1, %v17017_v55  ;;  %v4814_v10 = vsel %vm4813_vm15, %v4812_v57, %v4545_v53  ;;  %v4949_v62 = vsel %vm4948_vm11, %v4947_v15, %v4546_v26  ;;  %v4679_v17 = vsel %vm4678_vm3, %v4677_v4, %v4544_v8  ;;  %v20166_v53 = vld [vmem:[#allocation15_spill] sm:$0xff]  ;;  %v20171_v57 = vld [vmem:[#allocation266_spill] sm:$0xff] }
 0x987   :  { %vm4295_vm12 = vmand %vm4039_vm0, %vm20139_vm6  ;;  %v4550_v11 = vsel %vm4294_vm10, 1, %v17017_v55  ;;  %v5084_v2 = vsel %vm5083_vm13, %v5082_v1, %v4547_v5  ;;  %vm4680_vm5 = vcmp.gt.s32.totalorder %v4679_v17, %v4548_v31  ;;  %vm4815_vm14 = vcmp.gt.s32.totalorder %v4814_v10, %v4549_v28  ;;  %v20169_v5 = vld [vmem:[#allocation12_spill] sm:$0xff] }
 0x988   :  { %v4551_v16 = vsel %vm4295_vm12, 1, %v17017_v55  ;;  %vm4950_vm2 = vcmp.gt.s32.totalorder %v4949_v62, %v4550_v11  ;;  %vm4040_vm1 = vcmp.eq.s32.totalorder %v3790_v44, %v12805_v63  ;;  %vm4041_vm0 = vcmp.eq.s32.totalorder %v3790_v44, %v12807_v21 }
 0x989   :  { %vm5085_vm7 = vcmp.gt.s32.totalorder %v5084_v2, %v4551_v16  ;;  %vm4042_vm4 = vcmp.eq.s32.totalorder %v3790_v44, %v12809_v52  ;;  %vm4043_vm8 = vcmp.eq.s32.totalorder %v3790_v44, %v12859_v49  ;;  %vm20141_vm9 = vcmp.gt.f32.partialorder %v20140_v6, %v5470_v36 }
 0x98a   :  { %vm4296_vm15 = vmand %vm4040_vm1, %vm20141_vm9  ;;  %v4816_v43 = vsel %vm4815_vm14, %v4814_v10, %v4549_v28  ;;  %vm20142_vm3 = vcmp.gt.f32.partialorder %v20140_v6, %v5629_v34  ;;  %v4681_v51 = vsel %vm4680_vm5, %v4679_v17, %v4548_v31  ;;  %v4951_v48 = vsel %vm4950_vm2, %v4949_v62, %v4550_v11 }
 0x98b   :  { %vm4297_vm11 = vmand %vm4041_vm0, %vm20142_vm3  ;;  %v4552_v40 = vsel %vm4296_vm15, 1, %v17017_v55  ;;  %v5086_v32 = vsel %vm5085_vm7, %v5084_v2, %v4551_v16  ;;  %vm20143_vm10 = vcmp.gt.f32.partialorder %v20140_v6, %v19991_v20  ;;  %vm20145_vm12 = vnez %v20144_v7  ;;  %v3791_v0 = vpop.trf.xlu1 }
 0x98c   :  { %vm4298_vm13 = vmand %vm4042_vm4, %vm20143_vm10  ;;  %v4553_v37 = vsel %vm4297_vm11, 1, %v17017_v55  ;;  %vm4682_vm6 = vcmp.gt.s32.totalorder %v4681_v51, %v4552_v40  ;;  %v5124_v33 = vrot.slane %v20146_v9, 7  ;;  %v5125_v56 = vrot.slane %v20147_v12, 6 }
 0x98d   :  { %vm4299_vm1 = vmand %vm4043_vm8, %vm20145_vm12  ;;  %v4554_v59 = vsel %vm4298_vm13, 1, %v17017_v55  ;;  %vm4817_vm14 = vcmp.gt.s32.totalorder %v4816_v43, %v4553_v37  ;;  %v4683_v13 = vsel %vm4682_vm6, %v4681_v51, %v4552_v40  ;;  %v5126_v41 = vrot.slane %v20148_v27, 5 }
 0x98e   :  { %v4555_v14 = vsel %vm4299_vm1, 1, %v17017_v55  ;;  %vm4952_vm5 = vcmp.gt.s32.totalorder %v4951_v48, %v4554_v59  ;;  %v4818_v46 = vsel %vm4817_vm14, %v4816_v43, %v4553_v37  ;;  %vm20150_vm7 = vcmask 1040384  }
 0x98f   :  { %vm5087_vm2 = vcmp.gt.s32.totalorder %v5086_v32, %v4555_v14  ;;  %v4953_v42 = vsel %vm4952_vm5, %v4951_v48, %v4554_v59  ;;  %v5127_v3 = vsel %vm20150_vm7, %v20149_v23, %v5124_v33  ;;  %v20151_v29 = vlaneseq  ;;  %vm20161_vm13 = vmmov %vm20150_vm7 }
 0x990   :  { %v5088_v19 = vsel %vm5087_vm2, %v5086_v32, %v4555_v14  ;;  %v5140_v58 = vrot.slane %v20154_v39, 7  ;;  %v5141_v61 = vrot.slane %v20155_v30, 6  ;;  %vm4044_vm4 = vcmp.eq.s32.totalorder %v3791_v0, %v12805_v63 }
 0x991   :  { %vm16237_vm0 = vcmp.lt.s32.totalorder %v20151_v29, 512  ;;  %vm4045_vm8 = vcmp.eq.s32.totalorder %v3791_v0, %v12807_v21  ;;  %vm4046_vm9 = vcmp.eq.s32.totalorder %v3791_v0, %v12809_v52  ;;  %vm4047_vm15 = vcmp.eq.s32.totalorder %v3791_v0, %v12859_v49  ;;  %v20165_v52 = vld [vmem:[#allocation14_spill] sm:$0xff] }
 0x992   :  { %vm20157_vm3 = vcmp.gt.f32.partialorder %v20156_v45, %v5470_v36  ;;  %vm20158_vm10 = vcmask 1042434   ;;  %v5142_v54 = vrot.slane %v20159_v25, 5  ;;  %v5143_v35 = vsel %vm20161_vm13, %v20160_v24, %v5140_v58 }
 0x993   :  { %vm4300_vm11 = vmand %vm4044_vm4, %vm20157_vm3  ;;  %v5128_v22 = vsel %vm20158_vm10, %v5125_v56, %v5126_v41  ;;  %v5153_v8 = vrot.slane %v20162_v60, 7  ;;  %vm20163_vm6 = vcmp.gt.f32.partialorder %v20156_v45, %v5629_v34  ;;  %vm20164_vm1 = vcmask 1041408  }
 0x994   :  { %vm4301_vm12 = vmand %vm4045_vm8, %vm20163_vm6  ;;  %v4556_v63 = vsel %vm4300_vm11, 1, %v17017_v55  ;;  %v5129_v21 = vsel %vm20164_vm1, %v5127_v3, %v5128_v22  ;;  %v5154_v36 = vrot.slane %v20165_v52, 6  ;;  %v5155_v18 = vrot.slane %v20166_v53, 5 }
 0x995   :  { %vm20167_vm14 = vcmp.gt.f32.partialorder %v20156_v45, %v19991_v20  ;;  %v4557_v26 = vsel %vm4301_vm12, 1, %v17017_v55  ;;  %vm4684_vm2 = vcmp.gt.s32.totalorder %v4683_v13, %v4556_v63  ;;  %5135 = vst.msk [vmem:[#allocation5] ss:$4 sm:$0xf] %vm16237_vm0, %v5129_v21  ;;  %vm20168_vm7 = vmmov %vm20158_vm10  ;;  %vm20172_vm8 = vnez %v20171_v57  ;;  %v20180_v45 = vld [vmem:[#allocation199_spill] sm:$0xff] }
 0x996   :  { %vm4302_vm5 = vmand %vm4046_vm9, %vm20167_vm14  ;;  %v5144_v34 = vsel %vm20168_vm7, %v5141_v61, %v5142_v54  ;;  %v4685_v20 = vsel %vm4684_vm2, %v4683_v13, %v4556_v63  ;;  %vm4819_vm9 = vcmp.gt.s32.totalorder %v4818_v46, %v4557_v26 }
 0x997   :  { %vm20170_vm4 = vmmov %vm20161_vm13  ;;  %v4558_v15 = vsel %vm4302_vm5, 1, %v17017_v55  ;;  %v4686_v38 = vrot.slane %v4685_v20, 4  ;;  %v4820_v31 = vsel %vm4819_vm9, %v4818_v46, %v4557_v26 }
 0x998   :  { %v5156_v50 = vsel %vm20170_vm4, %v20169_v5, %v5153_v8  ;;  %vm4303_vm3 = vmand %vm4047_vm15, %vm20172_vm8  ;;  %vm4954_vm10 = vcmp.gt.s32.totalorder %v4953_v42, %v4558_v15  ;;  %v4821_v28 = vrot.slane %v4820_v31, 4 }
 0x999   :  { %vm20173_vm11 = vmmov %vm20164_vm1  ;;  %v4559_v1 = vsel %vm4303_vm3, 1, %v17017_v55  ;;  %v4955_v11 = vsel %vm4954_vm10, %v4953_v42, %v4558_v15  ;;  %vm4687_vm15 = vcmp.gt.s32.totalorder %v4685_v20, %v4686_v38 }
 0x99a   :  { %v5145_v4 = vsel %vm20173_vm11, %v5143_v35, %v5144_v34  ;;  %vm5089_vm13 = vcmp.gt.s32.totalorder %v5088_v19, %v4559_v1  ;;  %vm20174_vm6 = vmmov %vm20168_vm7  ;;  %v4956_v16 = vrot.slane %v4955_v11, 4  ;;  %v4688_v17 = vsel %vm4687_vm15, %v4685_v20, %v4686_v38 }
 0x99b   :  { %5148 = vst.msk [vmem:[#allocation5 + $0x1] ss:$4 sm:$0xf] %vm16237_vm0, %v5145_v4  ;;  %v5157_v49 = vsel %vm20174_vm6, %v5154_v36, %v5155_v18  ;;  %v5090_v10 = vsel %vm5089_vm13, %v5088_v19, %v4559_v1  ;;  %vm20175_vm12 = vmmov %vm20164_vm1  ;;  %vm4822_vm1 = vcmp.gt.s32.totalorder %v4820_v31, %v4821_v28  ;;  %v4689_v44 = vrot.slane %v4688_v17, 2 }
 0x99c   :  { %v5158_v62 = vsel %vm20175_vm12, %v5156_v50, %v5157_v49  ;;  %v5091_v2 = vrot.slane %v5090_v10, 4  ;;  %v4823_v6 = vsel %vm4822_vm1, %v4820_v31, %v4821_v28  ;;  %vm4957_vm14 = vcmp.gt.s32.totalorder %v4955_v11, %v4956_v16 }
 0x99d   :  { %5161 = vst.msk [vmem:[#allocation5 + $0x2] ss:$4 sm:$0xf] %vm16237_vm0, %v5158_v62  ;;  %v4824_v43 = vrot.slane %v4823_v6, 2  ;;  %v4958_v40 = vsel %vm4957_vm14, %v4955_v11, %v4956_v16  ;;  %vm4690_vm2 = vcmp.gt.s32.totalorder %v4688_v17, %v4689_v44  ;;  %vm20176_vm15 = vmmov 1  }
 0x99e   :  { %vm5092_vm5 = vcmp.gt.s32.totalorder %v5090_v10, %v5091_v2  ;;  %v4959_v51 = vrot.slane %v4958_v40, 2  ;;  %v4691_v32 = vsel %vm4690_vm2, %v4688_v17, %v4689_v44 }
 0x99f   :  { %v5093_v48 = vsel %vm5092_vm5, %v5090_v10, %v5091_v2  ;;  %vm4825_vm7 = vcmp.gt.s32.totalorder %v4823_v6, %v4824_v43  ;;  %v4692_v7 = vrot.slane %v4691_v32, 1 }
 0x9a0   :  { %v5094_v37 = vrot.slane %v5093_v48, 2  ;;  %v4826_v59 = vsel %vm4825_vm7, %v4823_v6, %v4824_v43  ;;  %vm4960_vm4 = vcmp.gt.s32.totalorder %v4958_v40, %v4959_v51 }
 0x9a1   :  { %v4827_v13 = vrot.slane %v4826_v59, 1  ;;  %v4961_v9 = vsel %vm4960_vm4, %v4958_v40, %v4959_v51  ;;  %vm4693_vm3 = vcmp.gt.s32.totalorder %v4691_v32, %v4692_v7  ;;  %vm20177_vm4 = vcmask 1040384  }
 0x9a2   :  { %vm5095_vm8 = vcmp.gt.s32.totalorder %v5093_v48, %v5094_v37  ;;  %v4962_v33 = vrot.slane %v4961_v9, 1  ;;  %v4694_v46 = vsel %vm4693_vm3, %v4691_v32, %v4692_v7  ;;  %vm20179_vm3 = vcmask 1041408  }
 0x9a3   :  { %v5096_v14 = vsel %vm5095_vm8, %v5093_v48, %v5094_v37  ;;  %vm4828_vm9 = vcmp.gt.s32.totalorder %v4826_v59, %v4827_v13  ;;  %vm5100_vm10 = vcmp.gt.s32.totalorder %v4694_v46, 0  ;;  %vm20178_vm8 = vcmask 1042434  }
 0x9a4   :  { %v5097_v12 = vrot.slane %v5096_v14, 1  ;;  %v4829_v56 = vsel %vm4828_vm9, %v4826_v59, %v4827_v13  ;;  %vm4963_vm11 = vcmp.gt.s32.totalorder %v4961_v9, %v4962_v33  ;;  %vm5104_vm12 = vmxor %vm5100_vm10, %vm20176_vm15 }
 0x9a5   :  { %v4964_v42 = vsel %vm4963_vm11, %v4961_v9, %v4962_v33  ;;  %vm5101_vm6 = vcmp.gt.s32.totalorder %v4829_v56, 0  ;;  %v5108_v29 = vsel %vm5104_vm12, 1, %v17017_v55  ;;  %vm20181_vm11 = vnez %v20180_v45 }
 0x9a6   :  { %vm5098_vm13 = vcmp.gt.s32.totalorder %v5096_v14, %v5097_v12  ;;  %vm5102_vm1 = vcmp.gt.s32.totalorder %v4964_v42, 0  ;;  %vm5105_vm14 = vmxor %vm5101_vm6, %vm20176_vm15 }
 0x9a7   :  { %v5099_v27 = vsel %vm5098_vm13, %v5096_v14, %v5097_v12  ;;  %vm5106_vm2 = vmxor %vm5102_vm1, %vm20176_vm15  ;;  %v5109_v41 = vsel %vm5105_vm14, 1, %v17017_v55 }
 0x9a8   :  { %vm5103_vm5 = vcmp.gt.s32.totalorder %v5099_v27, 0  ;;  %v5110_v23 = vsel %vm5106_vm2, 1, %v17017_v55  ;;  %v5112_v3 = vrot.slane %v5109_v41, 7 }
 0x9a9   :  { %vm5107_vm7 = vmxor %vm5103_vm5, %vm20176_vm15  ;;  %v5113_v0 = vrot.slane %v5110_v23, 6 }
 0x9aa   :  { %v5111_v19 = vsel %vm5107_vm7, 1, %v17017_v55  ;;  %v5115_v58 = vsel %vm20177_vm4, %v5108_v29, %v5112_v3  ;;  %v5310_v55 = vmov 0.0  }
 0x9ab   :  { %v5114_v39 = vrot.slane %v5111_v19, 5 }
 0x9ad   :  { %v5116_v30 = vsel %vm20178_vm8, %v5113_v0, %v5114_v39 }
 0x9ae   :  { %v5117_v61 = vsel %vm20179_vm3, %v5115_v58, %v5116_v30 }
 0x9af   :  { %vm5118_vm9 = vcmp.ne.s32.totalorder %v5117_v61, 0 }
 0x9b0   :  { %vm5119_vm10 = vmand %vm20181_vm11, %vm5118_vm9 }
 0x9b1   :  { %v5162_v22 = vsel %vm5119_vm10, 1.0, %v5310_v55 }
 0x9b2   :  { %5164 = vst.msk [vmem:[#allocation5 + $0x3] ss:$4 sm:$0xf] %vm16237_vm0, %v5162_v22 }
 0x9b3   :  { %5175 = dma.vmem_to_hbm [thread:$0]  %s5171_s20, 256, %s5173_s23, [#allocation3]  }
 0x9b4   :  { %5303 = dma.done.wait [#allocation3], 256  }
 0x9b5   :  { %5304 = vsyncadd [#allocation3], 4294967040 }
 0x9b6   :  { %5180 = vsyncpa [#allocation3], 1 }
 0x9b7   :  { %5181 = vsyncpa [#allocation4], 1 }

</bundles_post_ra>
